<compile_context>
chip_gen: v6e
topology: v6e:2x2x1
jax: 0.10.0
libtpu: 0.0.40
codegen_flags: <defaults>
</compile_context>

<pallas_src>
import functools

import numpy as np

import jax
import jax.numpy as jnp
from jax.experimental import pallas as pl
from jax.experimental.pallas import tpu as pltpu


# ----------------------------------------------------------------------------
# Pallas kernels
# ----------------------------------------------------------------------------
def _conv_gemm_kernel(x_ref, w_ref, b_ref, o_ref, *, act):
    """One GEMM tile: o = act(x @ w + b). bf16 MXU operands, f32 accumulate."""
    acc = jnp.dot(x_ref[...], w_ref[...], preferred_element_type=jnp.float32)
    acc = acc + b_ref[...]                      # (1, N) broadcasts over rows
    if act == "relu":
        acc = jnp.maximum(acc, 0.0)
    o_ref[...] = acc.astype(o_ref.dtype)


def _conv_gemm_bn_relu_kernel(x_ref, w_ref, b_ref, g_ref, bb_ref, o_ref, *, eps):
    """GEMM + BatchNorm(batch statistics) + ReLU fused as an f32 epilogue.

    Needs the full M block resident (grid=(1,)) so the per-channel reduction
    sees every row; reductions go to the XLU while the MXU/VPU are otherwise
    busy, so the epilogue is nearly free.
    """
    acc = jnp.dot(x_ref[...], w_ref[...], preferred_element_type=jnp.float32)
    acc = acc + b_ref[...]
    mean = jnp.mean(acc, axis=0, keepdims=True)
    var = jnp.mean((acc - mean) ** 2, axis=0, keepdims=True)   # biased, like PyTorch fwd
    y = (acc - mean) * jax.lax.rsqrt(var + eps)
    y = y * g_ref[...] + bb_ref[...]
    o_ref[...] = jnp.maximum(y, 0.0).astype(o_ref.dtype)


def _mlp_kernel(x_ref, w0_ref, b0_ref, w1_ref, b1_ref, w2_ref, b2_ref, o_ref):
    """linear->ReLU->linear1->ReLU->linear2->tanh; intermediates stay in VMEM."""
    h = jnp.dot(x_ref[...], w0_ref[...], preferred_element_type=jnp.float32)
    h = jnp.maximum(h + b0_ref[...], 0.0)
    h = jnp.dot(h.astype(w1_ref.dtype), w1_ref[...],
                preferred_element_type=jnp.float32)
    h = jnp.maximum(h + b1_ref[...], 0.0)
    h = jnp.dot(h.astype(w2_ref.dtype), w2_ref[...],
                preferred_element_type=jnp.float32)
    o_ref[...] = jnp.tanh(h + b2_ref[...]).astype(o_ref.dtype)


# ----------------------------------------------------------------------------
# Kernel wrappers
# ----------------------------------------------------------------------------
def fused_conv_gemm(x2d, w2d, b, gamma=None, beta=None, act="relu",
                    num_m_tiles=1, out_dtype=jnp.bfloat16, eps=1e-5):
    """o = epilogue(x2d @ w2d + b), x2d:(M,K) w2d:(K,N) b:(1,N).

    Epilogue: ReLU, identity, or BatchNorm(batch stats)+ReLU (gamma/beta given).
    Without BN the GEMM may be tiled over M with "parallel" semantics so both
    v7x TensorCores get work; with BN we keep grid=(1,) (full-M reduction).
    """
    M, K = x2d.shape
    Kw, N = w2d.shape
    assert Kw == K and b.shape == (1, N)

    if gamma is not None:
        num_m_tiles = 1          # batch statistics need every row in one block
    if num_m_tiles > 1 and (M % num_m_tiles != 0 or (M // num_m_tiles) % 16 != 0):
        num_m_tiles = 1
    tm = M // num_m_tiles

    out_itemsize = np.dtype(out_dtype).itemsize
    in_bytes = sum(a.size * a.dtype.itemsize for a in (x2d, w2d, b))
    cost = pl.CostEstimate(flops=2 * M * K * N,
                           transcendentals=N if gamma is not None else 0,
                           bytes_accessed=in_bytes + M * N * out_itemsize)

    if gamma is None:
        kernel = functools.partial(_conv_gemm_kernel, act=act)
        extra_args, extra_specs = (), []
    else:
        kernel = functools.partial(_conv_gemm_bn_relu_kernel, eps=eps)
        extra_args = (gamma, beta)
        extra_specs = [pl.BlockSpec((1, N), lambda i: (0, 0)),
                       pl.BlockSpec((1, N), lambda i: (0, 0))]

    return pl.pallas_call(
        kernel,
        out_shape=jax.ShapeDtypeStruct((M, N), out_dtype),
        grid=(num_m_tiles,),
        in_specs=[pl.BlockSpec((tm, K), lambda i: (i, 0)),
                  pl.BlockSpec((K, N), lambda i: (0, 0)),
                  pl.BlockSpec((1, N), lambda i: (0, 0)),
                  *extra_specs],
        out_specs=pl.BlockSpec((tm, N), lambda i: (i, 0)),
        compiler_params=pltpu.CompilerParams(
            dimension_semantics=("parallel",) if num_m_tiles > 1 else ("arbitrary",)),
        cost_estimate=cost,
    )(x2d, w2d, b, *extra_args)


def mlp_head(flat, w0, b0, w1, b1, w2, b2):
    """All three Linear layers (ReLU/ReLU/tanh) in a single pallas_call."""
    M, K0 = flat.shape
    H0, H1, A = w0.shape[1], w1.shape[1], w2.shape[1]
    in_bytes = sum(a.size * a.dtype.itemsize for a in (flat, w0, b0, w1, b1, w2, b2))
    cost = pl.CostEstimate(flops=2 * M * (K0 * H0 + H0 * H1 + H1 * A),
                           transcendentals=M * A,
                           bytes_accessed=in_bytes + M * A * 4)

    def full_spec(arr):
        return pl.BlockSpec(arr.shape, lambda i: (0, 0))

    return pl.pallas_call(
        _mlp_kernel,
        out_shape=jax.ShapeDtypeStruct((M, A), jnp.float32),
        grid=(1,),
        in_specs=[full_spec(a) for a in (flat, w0, b0, w1, b1, w2, b2)],
        out_specs=pl.BlockSpec((M, A), lambda i: (0, 0)),
        compiler_params=pltpu.CompilerParams(dimension_semantics=("arbitrary",)),
        cost_estimate=cost,
    )(flat, w0, b0, w1, b1, w2, b2)


# ----------------------------------------------------------------------------
# im2col glue for Conv2d(k=4, stride=2, pad=1)  (plain-JAX; GEMM is in Pallas)
# ----------------------------------------------------------------------------
def im2col_k4s2p1(x_nhwc):
    """Patches with K ordered (kh, kw, ci) -> no transpose of the activations;
    the matching reorder is applied to the weights once at prep time."""
    N, H, W, C = x_nhwc.shape
    KH = KW = 4
    s, p = 2, 1
    OH = (H + 2 * p - KH) // s + 1
    OW = (W + 2 * p - KW) // s + 1
    xp = jnp.pad(x_nhwc, ((0, 0), (p, p), (p, p), (0, 0)))
    taps = []
    for kh in range(KH):
        for kw in range(KW):
            taps.append(xp[:, kh:kh + s * OH:s, kw:kw + s * OW:s, :])  # (N,OH,OW,C)
    patches = jnp.concatenate(taps, axis=-1)              # (N, OH, OW, KH*KW*C)
    return patches.reshape(N * OH * OW, KH * KW * C), OH, OW


# ----------------------------------------------------------------------------
# Actor: parameter init (PyTorch-style layout) + one-time kernel-layout prep
# ----------------------------------------------------------------------------
def init_actor_params(key, action_size, hidden=256, hidden1=256, w_init=0.003):
    ks = jax.random.split(key, 16)
    p = {}

    def uni(k, shape, bound):
        return jax.random.uniform(k, shape, jnp.float32, -bound, bound)

    conv_cfg = [(9, 32), (32, 64), (64, 128), (128, 256)]
    for n, (ci, co) in enumerate(conv_cfg):
        fan_in = ci * 4 * 4
        bound = 1.0 / float(np.sqrt(fan_in))
        p[f"conv{n}_w"] = uni(ks[2 * n], (co, ci, 4, 4), bound)
        p[f"conv{n}_b"] = uni(ks[2 * n + 1], (co,), bound)

    for c in (64, 128):                      # BatchNorm2d defaults: gamma=1, beta=0
        p[f"bn{c}_g"] = jnp.ones((1, c), jnp.float32)
        p[f"bn{c}_b"] = jnp.zeros((1, c), jnp.float32)

    lin_cfg = [(256 * 3 * 3, hidden), (hidden, hidden1), (hidden1, action_size)]
    for n, (fi, fo) in enumerate(lin_cfg):
        bound = w_init if n == 2 else 1.0 / float(np.sqrt(fi))
        p[f"lin{n}_w"] = uni(ks[8 + 2 * n], (fo, fi), bound)   # PyTorch (out, in)
        p[f"lin{n}_b"] = uni(ks[9 + 2 * n], (fo,), bound)
    return p


def prepare_params(p):
    """One-time layout/dtype conversion into what the kernels consume:
    conv weights as (KH*KW*Ci, Co) bf16, linear weights pre-transposed bf16,
    lin0's input axis permuted so an NHWC flatten feeds it directly."""
    q = {}
    for n in range(4):
        w = p[f"conv{n}_w"]                                  # (Co, Ci, 4, 4)
        co = w.shape[0]
        q[f"conv{n}_w"] = (jnp.transpose(w, (2, 3, 1, 0))
                           .reshape(-1, co).astype(jnp.bfloat16))
        q[f"conv{n}_b"] = p[f"conv{n}_b"].reshape(1, co).astype(jnp.float32)
    for c in (64, 128):
        q[f"bn{c}_g"] = p[f"bn{c}_g"].astype(jnp.float32)
        q[f"bn{c}_b"] = p[f"bn{c}_b"].astype(jnp.float32)

    # Fold PyTorch's NCHW flatten (c*9 + h*3 + w) into lin0's weight rows so the
    # forward path only needs a reshape of the NHWC conv4 output.
    C, H, W = 256, 3, 3
    w0 = p["lin0_w"]                                         # (hidden, C*H*W)
    hid = w0.shape[0]
    w0t = (w0.T.reshape(C, H, W, hid)
           .transpose(1, 2, 0, 3)                            # rows -> (h, w, c)
           .reshape(C * H * W, hid))
    q["lin0_w"] = w0t.astype(jnp.bfloat16)
    q["lin0_b"] = p["lin0_b"].reshape(1, -1).astype(jnp.float32)
    q["lin1_w"] = p["lin1_w"].T.astype(jnp.bfloat16)
    q["lin1_b"] = p["lin1_b"].reshape(1, -1).astype(jnp.float32)
    q["lin2_w"] = p["lin2_w"].T.astype(jnp.bfloat16)
    q["lin2_b"] = p["lin2_b"].reshape(1, -1).astype(jnp.float32)
    return q


# ----------------------------------------------------------------------------
# Forward pass (5 pallas_calls total)
# ----------------------------------------------------------------------------
def actor_forward(q, state_nchw):
    x = jnp.transpose(state_nchw, (0, 2, 3, 1)).astype(jnp.bfloat16)  # NCHW->NHWC
    n = x.shape[0]

    # conv1 (9->32) + ReLU; M-parallel grid so a v7x megacore can split it.
    pch, oh, ow = im2col_k4s2p1(x)
    y = fused_conv_gemm(pch, q["conv0_w"], q["conv0_b"], act="relu", num_m_tiles=2)
    x = y.reshape(n, oh, ow, 32)

    # conv2 (32->64) + BatchNorm(batch stats) + ReLU fused as GEMM epilogue.
    pch, oh, ow = im2col_k4s2p1(x)
    y = fused_conv_gemm(pch, q["conv1_w"], q["conv1_b"],
                        gamma=q["bn64_g"], beta=q["bn64_b"])
    x = y.reshape(n, oh, ow, 64)

    # conv3 (64->128) + BatchNorm + ReLU.
    pch, oh, ow = im2col_k4s2p1(x)
    y = fused_conv_gemm(pch, q["conv2_w"], q["conv2_b"],
                        gamma=q["bn128_g"], beta=q["bn128_b"])
    x = y.reshape(n, oh, ow, 128)

    # conv4 (128->256) + ReLU.
    pch, oh, ow = im2col_k4s2p1(x)
    y = fused_conv_gemm(pch, q["conv3_w"], q["conv3_b"], act="relu")

    # NHWC flatten is a pure reshape (NCHW permutation was folded into lin0_w).
    flat = y.reshape(n, oh * ow * 256)

    # linear -> ReLU -> linear1 -> ReLU -> linear2 -> tanh, in one kernel.
    return mlp_head(flat, q["lin0_w"], q["lin0_b"], q["lin1_w"], q["lin1_b"],
                    q["lin2_w"], q["lin2_b"])


if __name__ == "__main__":
    key = jax.random.PRNGKey(0)
    k_param, k_state = jax.random.split(key)

    ACTION_SIZE = 4
    # CNN geometry (4x stride-2 convs ending at 3x3 with 256 ch) requires 48x48 input.
    BATCH = 2
    state = jax.random.normal(k_state, (BATCH, 9, 48, 48), jnp.float32)

    params = init_actor_params(k_param, ACTION_SIZE)
    prep = prepare_params(params)

    fwd = jax.jit(actor_forward)
    out = jax.block_until_ready(fwd(prep, state))

    assert out.shape == (BATCH, ACTION_SIZE), out.shape
    assert bool(jnp.all(jnp.isfinite(out)))
    assert bool(jnp.all(jnp.abs(out) <= 1.0))  # tanh range
    print("KERNEL_OK")
</pallas_src>

<mosaic_0001>
module attributes {stable_mosaic.version = 11 : i64} {
  func.func @_conv_gemm_kernel(%arg0: i32, %arg1: memref<576x144xbf16, #tpu.memory_space<vmem>>, %arg2: memref<144x32xbf16, #tpu.memory_space<vmem>>, %arg3: memref<1x32xf32, #tpu.memory_space<vmem>>, %arg4: memref<576x32xbf16, #tpu.memory_space<vmem>>) attributes {dimension_semantics = [#tpu.dimension_semantics<parallel>], iteration_bounds = array<i64: 2>, scalar_prefetch = 0 : i64, scratch_operands = 0 : i64, tpu.core_type = #tpu.core_type<tc>, window_params = [{transform_indices = @transform_0, window_bounds = array<i64: 576, 144>}, {pipeline_mode = #tpu.pipeline_mode<synchronous>, transform_indices = @transform_1, window_bounds = array<i64: 144, 32>}, {pipeline_mode = #tpu.pipeline_mode<synchronous>, transform_indices = @transform_2, window_bounds = array<i64: 1, 32>}, {transform_indices = @transform_3, window_bounds = array<i64: 576, 32>}]} {
    %c0 = arith.constant 0 : index
    %c0_0 = arith.constant 0 : index
    %0 = vector.load %arg1[%c0, %c0_0] : memref<576x144xbf16, #tpu.memory_space<vmem>>, vector<576x144xbf16>
    %c0_1 = arith.constant 0 : index
    %c0_2 = arith.constant 0 : index
    %1 = vector.load %arg2[%c0_1, %c0_2] : memref<144x32xbf16, #tpu.memory_space<vmem>>, vector<144x32xbf16>
    %cst = arith.constant dense<0.000000e+00> : vector<576x32xf32>
    %2 = tpu.matmul %0, %1, %cst {dimension_numbers = #tpu.dot_dimension_numbers<[1], [0], [0], [1], [0, 0, 1, 1], [], []>} : vector<576x144xbf16>, vector<144x32xbf16>, vector<576x32xf32> -> vector<576x32xf32>
    %c0_3 = arith.constant 0 : index
    %c0_4 = arith.constant 0 : index
    %3 = vector.load %arg3[%c0_3, %c0_4] : memref<1x32xf32, #tpu.memory_space<vmem>>, vector<1x32xf32>
    %4 = vector.broadcast %3 : vector<1x32xf32> to vector<576x32xf32>
    %5 = arith.addf %2, %4 : vector<576x32xf32>
    %cst_5 = arith.constant 0.000000e+00 : f32
    %6 = vector.broadcast %cst_5 : f32 to vector<576x32xf32>
    %7 = arith.maximumf %5, %6 : vector<576x32xf32>
    %8 = arith.truncf %7 : vector<576x32xf32> to vector<576x32xbf16>
    %c0_6 = arith.constant 0 : index
    %c0_7 = arith.constant 0 : index
    %9 = vector.load %arg4[%c0_6, %c0_7] : memref<576x32xbf16, #tpu.memory_space<vmem>>, vector<576x32xbf16>
    tpu.vector_store %arg4[%c0_6, %c0_7], %8 {strides = array<i32>} : memref<576x32xbf16, #tpu.memory_space<vmem>>, vector<576x32xbf16>,
    return
  }
  func.func @transform_0(%arg0: i32) -> (i32, i32) {
    %c0_i32 = arith.constant 0 : i32
    %c0_i32_0 = arith.constant 0 : i32
    return %arg0, %c0_i32 : i32, i32
  }
  func.func @transform_1(%arg0: i32) -> (i32, i32) {
    %c0_i32 = arith.constant 0 : i32
    %c0_i32_0 = arith.constant 0 : i32
    %c0_i32_1 = arith.constant 0 : i32
    return %c0_i32, %c0_i32_0 : i32, i32
  }
  func.func @transform_2(%arg0: i32) -> (i32, i32) {
    %c0_i32 = arith.constant 0 : i32
    %c0_i32_0 = arith.constant 0 : i32
    %c0_i32_1 = arith.constant 0 : i32
    return %c0_i32, %c0_i32_0 : i32, i32
  }
  func.func @transform_3(%arg0: i32) -> (i32, i32) {
    %c0_i32 = arith.constant 0 : i32
    %c0_i32_0 = arith.constant 0 : i32
    return %arg0, %c0_i32 : i32, i32
  }
}

module attributes {stable_mosaic.version = 11 : i64} {
  func.func @_conv_gemm_bn_relu_kernel(%arg0: i32, %arg1: memref<288x512xbf16, #tpu.memory_space<vmem>>, %arg2: memref<512x64xbf16, #tpu.memory_space<vmem>>, %arg3: memref<1x64xf32, #tpu.memory_space<vmem>>, %arg4: memref<1x64xf32, #tpu.memory_space<vmem>>, %arg5: memref<1x64xf32, #tpu.memory_space<vmem>>, %arg6: memref<288x64xbf16, #tpu.memory_space<vmem>>) attributes {dimension_semantics = [#tpu.dimension_semantics<arbitrary>], iteration_bounds = array<i64: 1>, scalar_prefetch = 0 : i64, scratch_operands = 0 : i64, tpu.core_type = #tpu.core_type<tc>, window_params = [{transform_indices = @transform_0, window_bounds = array<i64: 288, 512>}, {pipeline_mode = #tpu.pipeline_mode<synchronous>, transform_indices = @transform_1, window_bounds = array<i64: 512, 64>}, {pipeline_mode = #tpu.pipeline_mode<synchronous>, transform_indices = @transform_2, window_bounds = array<i64: 1, 64>}, {pipeline_mode = #tpu.pipeline_mode<synchronous>, transform_indices = @transform_3, window_bounds = array<i64: 1, 64>}, {pipeline_mode = #tpu.pipeline_mode<synchronous>, transform_indices = @transform_4, window_bounds = array<i64: 1, 64>}, {transform_indices = @transform_5, window_bounds = array<i64: 288, 64>}]} {
    %c0 = arith.constant 0 : index
    %c0_0 = arith.constant 0 : index
    %0 = vector.load %arg1[%c0, %c0_0] : memref<288x512xbf16, #tpu.memory_space<vmem>>, vector<288x512xbf16>
    %c0_1 = arith.constant 0 : index
    %c0_2 = arith.constant 0 : index
    %1 = vector.load %arg2[%c0_1, %c0_2] : memref<512x64xbf16, #tpu.memory_space<vmem>>, vector<512x64xbf16>
    %cst = arith.constant dense<0.000000e+00> : vector<288x64xf32>
    %2 = tpu.matmul %0, %1, %cst {dimension_numbers = #tpu.dot_dimension_numbers<[1], [0], [0], [1], [0, 0, 1, 1], [], []>} : vector<288x512xbf16>, vector<512x64xbf16>, vector<288x64xf32> -> vector<288x64xf32>
    %c0_3 = arith.constant 0 : index
    %c0_4 = arith.constant 0 : index
    %3 = vector.load %arg3[%c0_3, %c0_4] : memref<1x64xf32, #tpu.memory_space<vmem>>, vector<1x64xf32>
    %4 = vector.broadcast %3 : vector<1x64xf32> to vector<288x64xf32>
    %5 = arith.addf %2, %4 : vector<288x64xf32>
    %cst_5 = arith.constant dense<0.000000e+00> : vector<64xf32>
    %6 = vector.multi_reduction <add>, %5, %cst_5 [0] : vector<288x64xf32> to vector<64xf32>
    %7 = vector.shape_cast %6 : vector<64xf32> to vector<1x64xf32>
    %cst_6 = arith.constant 2.880000e+02 : f32
    %8 = vector.broadcast %cst_6 : f32 to vector<1x64xf32>
    %9 = arith.divf %7, %8 : vector<1x64xf32>
    %10 = vector.broadcast %9 : vector<1x64xf32> to vector<288x64xf32>
    %11 = arith.subf %5, %10 : vector<288x64xf32>
    %12 = arith.mulf %11, %11 : vector<288x64xf32>
    %cst_7 = arith.constant dense<0.000000e+00> : vector<64xf32>
    %13 = vector.multi_reduction <add>, %12, %cst_7 [0] : vector<288x64xf32> to vector<64xf32>
    %14 = vector.shape_cast %13 : vector<64xf32> to vector<1x64xf32>
    %cst_8 = arith.constant 2.880000e+02 : f32
    %15 = vector.broadcast %cst_8 : f32 to vector<1x64xf32>
    %16 = arith.divf %14, %15 : vector<1x64xf32>
    %17 = vector.broadcast %9 : vector<1x64xf32> to vector<288x64xf32>
    %18 = arith.subf %5, %17 : vector<288x64xf32>
    %cst_9 = arith.constant 9.99999974E-6 : f32
    %19 = vector.broadcast %cst_9 : f32 to vector<1x64xf32>
    %20 = arith.addf %16, %19 : vector<1x64xf32>
    %21 = math.rsqrt %20 : vector<1x64xf32>
    %22 = vector.broadcast %21 : vector<1x64xf32> to vector<288x64xf32>
    %23 = arith.mulf %18, %22 : vector<288x64xf32>
    %c0_10 = arith.constant 0 : index
    %c0_11 = arith.constant 0 : index
    %24 = vector.load %arg4[%c0_10, %c0_11] : memref<1x64xf32, #tpu.memory_space<vmem>>, vector<1x64xf32>
    %25 = vector.broadcast %24 : vector<1x64xf32> to vector<288x64xf32>
    %26 = arith.mulf %23, %25 : vector<288x64xf32>
    %c0_12 = arith.constant 0 : index
    %c0_13 = arith.constant 0 : index
    %27 = vector.load %arg5[%c0_12, %c0_13] : memref<1x64xf32, #tpu.memory_space<vmem>>, vector<1x64xf32>
    %28 = vector.broadcast %27 : vector<1x64xf32> to vector<288x64xf32>
    %29 = arith.addf %26, %28 : vector<288x64xf32>
    %cst_14 = arith.constant 0.000000e+00 : f32
    %30 = vector.broadcast %cst_14 : f32 to vector<288x64xf32>
    %31 = arith.maximumf %29, %30 : vector<288x64xf32>
    %32 = arith.truncf %31 : vector<288x64xf32> to vector<288x64xbf16>
    %c0_15 = arith.constant 0 : index
    %c0_16 = arith.constant 0 : index
    %33 = vector.load %arg6[%c0_15, %c0_16] : memref<288x64xbf16, #tpu.memory_space<vmem>>, vector<288x64xbf16>
    tpu.vector_store %arg6[%c0_15, %c0_16], %32 {strides = array<i32>} : memref<288x64xbf16, #tpu.memory_space<vmem>>, vector<288x64xbf16>,
    return
  }
  func.func @transform_0(%arg0: i32) -> (i32, i32) {
    %c0_i32 = arith.constant 0 : i32
    %c0_i32_0 = arith.constant 0 : i32
    return %arg0, %c0_i32 : i32, i32
  }
  func.func @transform_1(%arg0: i32) -> (i32, i32) {
    %c0_i32 = arith.constant 0 : i32
    %c0_i32_0 = arith.constant 0 : i32
    %c0_i32_1 = arith.constant 0 : i32
    return %c0_i32, %c0_i32_0 : i32, i32
  }
  func.func @transform_2(%arg0: i32) -> (i32, i32) {
    %c0_i32 = arith.constant 0 : i32
    %c0_i32_0 = arith.constant 0 : i32
    %c0_i32_1 = arith.constant 0 : i32
    return %c0_i32, %c0_i32_0 : i32, i32
  }
  func.func @transform_3(%arg0: i32) -> (i32, i32) {
    %c0_i32 = arith.constant 0 : i32
    %c0_i32_0 = arith.constant 0 : i32
    %c0_i32_1 = arith.constant 0 : i32
    return %c0_i32, %c0_i32_0 : i32, i32
  }
  func.func @transform_4(%arg0: i32) -> (i32, i32) {
    %c0_i32 = arith.constant 0 : i32
    %c0_i32_0 = arith.constant 0 : i32
    %c0_i32_1 = arith.constant 0 : i32
    return %c0_i32, %c0_i32_0 : i32, i32
  }
  func.func @transform_5(%arg0: i32) -> (i32, i32) {
    %c0_i32 = arith.constant 0 : i32
    %c0_i32_0 = arith.constant 0 : i32
    return %arg0, %c0_i32 : i32, i32
  }
}

module attributes {stable_mosaic.version = 11 : i64} {
  func.func @_conv_gemm_bn_relu_kernel(%arg0: i32, %arg1: memref<72x1024xbf16, #tpu.memory_space<vmem>>, %arg2: memref<1024x128xbf16, #tpu.memory_space<vmem>>, %arg3: memref<1x128xf32, #tpu.memory_space<vmem>>, %arg4: memref<1x128xf32, #tpu.memory_space<vmem>>, %arg5: memref<1x128xf32, #tpu.memory_space<vmem>>, %arg6: memref<72x128xbf16, #tpu.memory_space<vmem>>) attributes {dimension_semantics = [#tpu.dimension_semantics<arbitrary>], iteration_bounds = array<i64: 1>, scalar_prefetch = 0 : i64, scratch_operands = 0 : i64, tpu.core_type = #tpu.core_type<tc>, window_params = [{transform_indices = @transform_0, window_bounds = array<i64: 72, 1024>}, {pipeline_mode = #tpu.pipeline_mode<synchronous>, transform_indices = @transform_1, window_bounds = array<i64: 1024, 128>}, {pipeline_mode = #tpu.pipeline_mode<synchronous>, transform_indices = @transform_2, window_bounds = array<i64: 1, 128>}, {pipeline_mode = #tpu.pipeline_mode<synchronous>, transform_indices = @transform_3, window_bounds = array<i64: 1, 128>}, {pipeline_mode = #tpu.pipeline_mode<synchronous>, transform_indices = @transform_4, window_bounds = array<i64: 1, 128>}, {transform_indices = @transform_5, window_bounds = array<i64: 72, 128>}]} {
    %c0 = arith.constant 0 : index
    %c0_0 = arith.constant 0 : index
    %0 = vector.load %arg1[%c0, %c0_0] : memref<72x1024xbf16, #tpu.memory_space<vmem>>, vector<72x1024xbf16>
    %c0_1 = arith.constant 0 : index
    %c0_2 = arith.constant 0 : index
    %1 = vector.load %arg2[%c0_1, %c0_2] : memref<1024x128xbf16, #tpu.memory_space<vmem>>, vector<1024x128xbf16>
    %cst = arith.constant dense<0.000000e+00> : vector<72x128xf32>
    %2 = tpu.matmul %0, %1, %cst {dimension_numbers = #tpu.dot_dimension_numbers<[1], [0], [0], [1], [0, 0, 1, 1], [], []>} : vector<72x1024xbf16>, vector<1024x128xbf16>, vector<72x128xf32> -> vector<72x128xf32>
    %c0_3 = arith.constant 0 : index
    %c0_4 = arith.constant 0 : index
    %3 = vector.load %arg3[%c0_3, %c0_4] : memref<1x128xf32, #tpu.memory_space<vmem>>, vector<1x128xf32>
    %4 = vector.broadcast %3 : vector<1x128xf32> to vector<72x128xf32>
    %5 = arith.addf %2, %4 : vector<72x128xf32>
    %cst_5 = arith.constant dense<0.000000e+00> : vector<128xf32>
    %6 = vector.multi_reduction <add>, %5, %cst_5 [0] : vector<72x128xf32> to vector<128xf32>
    %7 = vector.shape_cast %6 : vector<128xf32> to vector<1x128xf32>
    %cst_6 = arith.constant 7.200000e+01 : f32
    %8 = vector.broadcast %cst_6 : f32 to vector<1x128xf32>
    %9 = arith.divf %7, %8 : vector<1x128xf32>
    %10 = vector.broadcast %9 : vector<1x128xf32> to vector<72x128xf32>
    %11 = arith.subf %5, %10 : vector<72x128xf32>
    %12 = arith.mulf %11, %11 : vector<72x128xf32>
    %cst_7 = arith.constant dense<0.000000e+00> : vector<128xf32>
    %13 = vector.multi_reduction <add>, %12, %cst_7 [0] : vector<72x128xf32> to vector<128xf32>
    %14 = vector.shape_cast %13 : vector<128xf32> to vector<1x128xf32>
    %cst_8 = arith.constant 7.200000e+01 : f32
    %15 = vector.broadcast %cst_8 : f32 to vector<1x128xf32>
    %16 = arith.divf %14, %15 : vector<1x128xf32>
    %17 = vector.broadcast %9 : vector<1x128xf32> to vector<72x128xf32>
    %18 = arith.subf %5, %17 : vector<72x128xf32>
    %cst_9 = arith.constant 9.99999974E-6 : f32
    %19 = vector.broadcast %cst_9 : f32 to vector<1x128xf32>
    %20 = arith.addf %16, %19 : vector<1x128xf32>
    %21 = math.rsqrt %20 : vector<1x128xf32>
    %22 = vector.broadcast %21 : vector<1x128xf32> to vector<72x128xf32>
    %23 = arith.mulf %18, %22 : vector<72x128xf32>
    %c0_10 = arith.constant 0 : index
    %c0_11 = arith.constant 0 : index
    %24 = vector.load %arg4[%c0_10, %c0_11] : memref<1x128xf32, #tpu.memory_space<vmem>>, vector<1x128xf32>
    %25 = vector.broadcast %24 : vector<1x128xf32> to vector<72x128xf32>
    %26 = arith.mulf %23, %25 : vector<72x128xf32>
    %c0_12 = arith.constant 0 : index
    %c0_13 = arith.constant 0 : index
    %27 = vector.load %arg5[%c0_12, %c0_13] : memref<1x128xf32, #tpu.memory_space<vmem>>, vector<1x128xf32>
    %28 = vector.broadcast %27 : vector<1x128xf32> to vector<72x128xf32>
    %29 = arith.addf %26, %28 : vector<72x128xf32>
    %cst_14 = arith.constant 0.000000e+00 : f32
    %30 = vector.broadcast %cst_14 : f32 to vector<72x128xf32>
    %31 = arith.maximumf %29, %30 : vector<72x128xf32>
    %32 = arith.truncf %31 : vector<72x128xf32> to vector<72x128xbf16>
    %c0_15 = arith.constant 0 : index
    %c0_16 = arith.constant 0 : index
    %33 = vector.load %arg6[%c0_15, %c0_16] : memref<72x128xbf16, #tpu.memory_space<vmem>>, vector<72x128xbf16>
    tpu.vector_store %arg6[%c0_15, %c0_16], %32 {strides = array<i32>} : memref<72x128xbf16, #tpu.memory_space<vmem>>, vector<72x128xbf16>,
    return
  }
  func.func @transform_0(%arg0: i32) -> (i32, i32) {
    %c0_i32 = arith.constant 0 : i32
    %c0_i32_0 = arith.constant 0 : i32
    return %arg0, %c0_i32 : i32, i32
  }
  func.func @transform_1(%arg0: i32) -> (i32, i32) {
    %c0_i32 = arith.constant 0 : i32
    %c0_i32_0 = arith.constant 0 : i32
    %c0_i32_1 = arith.constant 0 : i32
    return %c0_i32, %c0_i32_0 : i32, i32
  }
  func.func @transform_2(%arg0: i32) -> (i32, i32) {
    %c0_i32 = arith.constant 0 : i32
    %c0_i32_0 = arith.constant 0 : i32
    %c0_i32_1 = arith.constant 0 : i32
    return %c0_i32, %c0_i32_0 : i32, i32
  }
  func.func @transform_3(%arg0: i32) -> (i32, i32) {
    %c0_i32 = arith.constant 0 : i32
    %c0_i32_0 = arith.constant 0 : i32
    %c0_i32_1 = arith.constant 0 : i32
    return %c0_i32, %c0_i32_0 : i32, i32
  }
  func.func @transform_4(%arg0: i32) -> (i32, i32) {
    %c0_i32 = arith.constant 0 : i32
    %c0_i32_0 = arith.constant 0 : i32
    %c0_i32_1 = arith.constant 0 : i32
    return %c0_i32, %c0_i32_0 : i32, i32
  }
  func.func @transform_5(%arg0: i32) -> (i32, i32) {
    %c0_i32 = arith.constant 0 : i32
    %c0_i32_0 = arith.constant 0 : i32
    return %arg0, %c0_i32 : i32, i32
  }
}

module attributes {stable_mosaic.version = 11 : i64} {
  func.func @_mlp_kernel(%arg0: i32, %arg1: memref<2x2304xbf16, #tpu.memory_space<vmem>>, %arg2: memref<2304x256xbf16, #tpu.memory_space<vmem>>, %arg3: memref<1x256xf32, #tpu.memory_space<vmem>>, %arg4: memref<256x256xbf16, #tpu.memory_space<vmem>>, %arg5: memref<1x256xf32, #tpu.memory_space<vmem>>, %arg6: memref<256x4xbf16, #tpu.memory_space<vmem>>, %arg7: memref<1x4xf32, #tpu.memory_space<vmem>>, %arg8: memref<2x4xf32, #tpu.memory_space<vmem>>) attributes {dimension_semantics = [#tpu.dimension_semantics<arbitrary>], iteration_bounds = array<i64: 1>, scalar_prefetch = 0 : i64, scratch_operands = 0 : i64, tpu.core_type = #tpu.core_type<tc>, window_params = [{pipeline_mode = #tpu.pipeline_mode<synchronous>, transform_indices = @transform_0, window_bounds = array<i64: 2, 2304>}, {pipeline_mode = #tpu.pipeline_mode<synchronous>, transform_indices = @transform_1, window_bounds = array<i64: 2304, 256>}, {pipeline_mode = #tpu.pipeline_mode<synchronous>, transform_indices = @transform_2, window_bounds = array<i64: 1, 256>}, {pipeline_mode = #tpu.pipeline_mode<synchronous>, transform_indices = @transform_3, window_bounds = array<i64: 256, 256>}, {pipeline_mode = #tpu.pipeline_mode<synchronous>, transform_indices = @transform_4, window_bounds = array<i64: 1, 256>}, {pipeline_mode = #tpu.pipeline_mode<synchronous>, transform_indices = @transform_5, window_bounds = array<i64: 256, 4>}, {pipeline_mode = #tpu.pipeline_mode<synchronous>, transform_indices = @transform_6, window_bounds = array<i64: 1, 4>}, {pipeline_mode = #tpu.pipeline_mode<synchronous>, transform_indices = @transform_7, window_bounds = array<i64: 2, 4>}]} {
    %c0 = arith.constant 0 : index
    %c0_0 = arith.constant 0 : index
    %0 = vector.load %arg1[%c0, %c0_0] : memref<2x2304xbf16, #tpu.memory_space<vmem>>, vector<2x2304xbf16>
    %c0_1 = arith.constant 0 : index
    %c0_2 = arith.constant 0 : index
    %1 = vector.load %arg2[%c0_1, %c0_2] : memref<2304x256xbf16, #tpu.memory_space<vmem>>, vector<2304x256xbf16>
    %cst = arith.constant dense<0.000000e+00> : vector<2x256xf32>
    %2 = tpu.matmul %0, %1, %cst {dimension_numbers = #tpu.dot_dimension_numbers<[1], [0], [0], [1], [0, 0, 1, 1], [], []>} : vector<2x2304xbf16>, vector<2304x256xbf16>, vector<2x256xf32> -> vector<2x256xf32>
    %c0_3 = arith.constant 0 : index
    %c0_4 = arith.constant 0 : index
    %3 = vector.load %arg3[%c0_3, %c0_4] : memref<1x256xf32, #tpu.memory_space<vmem>>, vector<1x256xf32>
    %4 = vector.broadcast %3 : vector<1x256xf32> to vector<2x256xf32>
    %5 = arith.addf %2, %4 : vector<2x256xf32>
    %cst_5 = arith.constant 0.000000e+00 : f32
    %6 = vector.broadcast %cst_5 : f32 to vector<2x256xf32>
    %7 = arith.maximumf %5, %6 : vector<2x256xf32>
    %8 = arith.truncf %7 : vector<2x256xf32> to vector<2x256xbf16>
    %c0_6 = arith.constant 0 : index
    %c0_7 = arith.constant 0 : index
    %9 = vector.load %arg4[%c0_6, %c0_7] : memref<256x256xbf16, #tpu.memory_space<vmem>>, vector<256x256xbf16>
    %cst_8 = arith.constant dense<0.000000e+00> : vector<2x256xf32>
    %10 = tpu.matmul %8, %9, %cst_8 {dimension_numbers = #tpu.dot_dimension_numbers<[1], [0], [0], [1], [0, 0, 1, 1], [], []>} : vector<2x256xbf16>, vector<256x256xbf16>, vector<2x256xf32> -> vector<2x256xf32>
    %c0_9 = arith.constant 0 : index
    %c0_10 = arith.constant 0 : index
    %11 = vector.load %arg5[%c0_9, %c0_10] : memref<1x256xf32, #tpu.memory_space<vmem>>, vector<1x256xf32>
    %12 = vector.broadcast %11 : vector<1x256xf32> to vector<2x256xf32>
    %13 = arith.addf %10, %12 : vector<2x256xf32>
    %cst_11 = arith.constant 0.000000e+00 : f32
    %14 = vector.broadcast %cst_11 : f32 to vector<2x256xf32>
    %15 = arith.maximumf %13, %14 : vector<2x256xf32>
    %16 = arith.truncf %15 : vector<2x256xf32> to vector<2x256xbf16>
    %c0_12 = arith.constant 0 : index
    %c0_13 = arith.constant 0 : index
    %17 = vector.load %arg6[%c0_12, %c0_13] : memref<256x4xbf16, #tpu.memory_space<vmem>>, vector<256x4xbf16>
    %cst_14 = arith.constant dense<0.000000e+00> : vector<2x4xf32>
    %18 = tpu.matmul %16, %17, %cst_14 {dimension_numbers = #tpu.dot_dimension_numbers<[1], [0], [0], [1], [0, 0, 1, 1], [], []>} : vector<2x256xbf16>, vector<256x4xbf16>, vector<2x4xf32> -> vector<2x4xf32>
    %c0_15 = arith.constant 0 : index
    %c0_16 = arith.constant 0 : index
    %19 = vector.load %arg7[%c0_15, %c0_16] : memref<1x4xf32, #tpu.memory_space<vmem>>, vector<1x4xf32>
    %20 = vector.broadcast %19 : vector<1x4xf32> to vector<2x4xf32>
    %21 = arith.addf %18, %20 : vector<2x4xf32>
    %22 = math.tanh %21 : vector<2x4xf32>
    %c0_17 = arith.constant 0 : index
    %c0_18 = arith.constant 0 : index
    %23 = vector.load %arg8[%c0_17, %c0_18] : memref<2x4xf32, #tpu.memory_space<vmem>>, vector<2x4xf32>
    tpu.vector_store %arg8[%c0_17, %c0_18], %22 {strides = array<i32>} : memref<2x4xf32, #tpu.memory_space<vmem>>, vector<2x4xf32>,
    return
  }
  func.func @transform_0(%arg0: i32) -> (i32, i32) {
    %c0_i32 = arith.constant 0 : i32
    %c0_i32_0 = arith.constant 0 : i32
    %c0_i32_1 = arith.constant 0 : i32
    return %c0_i32, %c0_i32_0 : i32, i32
  }
  func.func @transform_1(%arg0: i32) -> (i32, i32) {
    %c0_i32 = arith.constant 0 : i32
    %c0_i32_0 = arith.constant 0 : i32
    %c0_i32_1 = arith.constant 0 : i32
    return %c0_i32, %c0_i32_0 : i32, i32
  }
  func.func @transform_2(%arg0: i32) -> (i32, i32) {
    %c0_i32 = arith.constant 0 : i32
    %c0_i32_0 = arith.constant 0 : i32
    %c0_i32_1 = arith.constant 0 : i32
    return %c0_i32, %c0_i32_0 : i32, i32
  }
  func.func @transform_3(%arg0: i32) -> (i32, i32) {
    %c0_i32 = arith.constant 0 : i32
    %c0_i32_0 = arith.constant 0 : i32
    %c0_i32_1 = arith.constant 0 : i32
    return %c0_i32, %c0_i32_0 : i32, i32
  }
  func.func @transform_4(%arg0: i32) -> (i32, i32) {
    %c0_i32 = arith.constant 0 : i32
    %c0_i32_0 = arith.constant 0 : i32
    %c0_i32_1 = arith.constant 0 : i32
    return %c0_i32, %c0_i32_0 : i32, i32
  }
  func.func @transform_5(%arg0: i32) -> (i32, i32) {
    %c0_i32 = arith.constant 0 : i32
    %c0_i32_0 = arith.constant 0 : i32
    %c0_i32_1 = arith.constant 0 : i32
    return %c0_i32, %c0_i32_0 : i32, i32
  }
  func.func @transform_6(%arg0: i32) -> (i32, i32) {
    %c0_i32 = arith.constant 0 : i32
    %c0_i32_0 = arith.constant 0 : i32
    %c0_i32_1 = arith.constant 0 : i32
    return %c0_i32, %c0_i32_0 : i32, i32
  }
  func.func @transform_7(%arg0: i32) -> (i32, i32) {
    %c0_i32 = arith.constant 0 : i32
    %c0_i32_0 = arith.constant 0 : i32
    %c0_i32_1 = arith.constant 0 : i32
    return %c0_i32, %c0_i32_0 : i32, i32
  }
}

module attributes {stable_mosaic.version = 11 : i64} {
  func.func @_conv_gemm_kernel(%arg0: i32, %arg1: memref<18x2048xbf16, #tpu.memory_space<vmem>>, %arg2: memref<2048x256xbf16, #tpu.memory_space<vmem>>, %arg3: memref<1x256xf32, #tpu.memory_space<vmem>>, %arg4: memref<18x256xbf16, #tpu.memory_space<vmem>>) attributes {dimension_semantics = [#tpu.dimension_semantics<arbitrary>], iteration_bounds = array<i64: 1>, scalar_prefetch = 0 : i64, scratch_operands = 0 : i64, tpu.core_type = #tpu.core_type<tc>, window_params = [{transform_indices = @transform_0, window_bounds = array<i64: 18, 2048>}, {pipeline_mode = #tpu.pipeline_mode<synchronous>, transform_indices = @transform_1, window_bounds = array<i64: 2048, 256>}, {pipeline_mode = #tpu.pipeline_mode<synchronous>, transform_indices = @transform_2, window_bounds = array<i64: 1, 256>}, {transform_indices = @transform_3, window_bounds = array<i64: 18, 256>}]} {
    %c0 = arith.constant 0 : index
    %c0_0 = arith.constant 0 : index
    %0 = vector.load %arg1[%c0, %c0_0] : memref<18x2048xbf16, #tpu.memory_space<vmem>>, vector<18x2048xbf16>
    %c0_1 = arith.constant 0 : index
    %c0_2 = arith.constant 0 : index
    %1 = vector.load %arg2[%c0_1, %c0_2] : memref<2048x256xbf16, #tpu.memory_space<vmem>>, vector<2048x256xbf16>
    %cst = arith.constant dense<0.000000e+00> : vector<18x256xf32>
    %2 = tpu.matmul %0, %1, %cst {dimension_numbers = #tpu.dot_dimension_numbers<[1], [0], [0], [1], [0, 0, 1, 1], [], []>} : vector<18x2048xbf16>, vector<2048x256xbf16>, vector<18x256xf32> -> vector<18x256xf32>
    %c0_3 = arith.constant 0 : index
    %c0_4 = arith.constant 0 : index
    %3 = vector.load %arg3[%c0_3, %c0_4] : memref<1x256xf32, #tpu.memory_space<vmem>>, vector<1x256xf32>
    %4 = vector.broadcast %3 : vector<1x256xf32> to vector<18x256xf32>
    %5 = arith.addf %2, %4 : vector<18x256xf32>
    %cst_5 = arith.constant 0.000000e+00 : f32
    %6 = vector.broadcast %cst_5 : f32 to vector<18x256xf32>
    %7 = arith.maximumf %5, %6 : vector<18x256xf32>
    %8 = arith.truncf %7 : vector<18x256xf32> to vector<18x256xbf16>
    %c0_6 = arith.constant 0 : index
    %c0_7 = arith.constant 0 : index
    %9 = vector.load %arg4[%c0_6, %c0_7] : memref<18x256xbf16, #tpu.memory_space<vmem>>, vector<18x256xbf16>
    tpu.vector_store %arg4[%c0_6, %c0_7], %8 {strides = array<i32>} : memref<18x256xbf16, #tpu.memory_space<vmem>>, vector<18x256xbf16>,
    return
  }
  func.func @transform_0(%arg0: i32) -> (i32, i32) {
    %c0_i32 = arith.constant 0 : i32
    %c0_i32_0 = arith.constant 0 : i32
    return %arg0, %c0_i32 : i32, i32
  }
  func.func @transform_1(%arg0: i32) -> (i32, i32) {
    %c0_i32 = arith.constant 0 : i32
    %c0_i32_0 = arith.constant 0 : i32
    %c0_i32_1 = arith.constant 0 : i32
    return %c0_i32, %c0_i32_0 : i32, i32
  }
  func.func @transform_2(%arg0: i32) -> (i32, i32) {
    %c0_i32 = arith.constant 0 : i32
    %c0_i32_0 = arith.constant 0 : i32
    %c0_i32_1 = arith.constant 0 : i32
    return %c0_i32, %c0_i32_0 : i32, i32
  }
  func.func @transform_3(%arg0: i32) -> (i32, i32) {
    %c0_i32 = arith.constant 0 : i32
    %c0_i32_0 = arith.constant 0 : i32
    return %arg0, %c0_i32 : i32, i32
  }
}

</mosaic_0001>

<bundles_post_ra>
// kernel: actor_forward.5
= control target key start
LH: loop header
LB: loop body
LE: loop exit
PB: predicated region body
PF: predicated region fallthrough
CT: control target
= control target key end

     0   :  { %s2018_s12 = smov 0   ;;  %s2399_s0 = inlined_call_operand.vmem [shape: bf16[1152,144], index: 0, kind: input, shape index: {}]   ;;  %s2400_s1 = inlined_call_operand.vmem [shape: bf16[144,32], index: 1, kind: input, shape index: {}]   ;;  %s2401_s2 = inlined_call_operand.vmem [shape: f32[1,32], index: 2, kind: input, shape index: {}]   ;;  %s2402_s3 = inlined_call_operand.vmem [shape: bf16[1152,32], index: 3, kind: output, shape index: {}]  }
   0x1 LB: > { %s1572_s13 = sadd.s32 4294967295, %s1995_s12   ;;  %p1576_p0 = scmp.ge.s32.totalorder %s1995_s12, 1  ;;  %s1995_s12 = sphi %s2018_s12, %s13_s12  }
   0x2   : > { %p139_p1 = scmp.lt.s32.totalorder %s1995_s12, 3 }
   0x4   : > { %p140_p2 = pnand %p1576_p0, %p139_p1 }
   0x5   : > { %s164_s16 = smul.u32 (!%p140_p2), 72, %s1572_s13 }
   0x6   : > { %143 = sbr.rel (%p140_p2) target bundleno = 388 (0x184), region = 32 }
   0x7   : > { %p165_p3 = scmp.lt.s32.totalorder (!%p140_p2), %s164_s16, 143 }
   0xb   : > { %v1872_v0 = vld [vmem:[%s2400_s1 + $0x38] sm:$0xff]   ;;  %v1997_v1 = vmov 0   ;;  %v1873_v2 = vld [vmem:[%s2400_s1 + $0x30] sm:$0xff]   ;;  %s2404_s16 = smov (!%p165_p3, %s164_s16), 143  ;;  %v1874_v3 = vld [vmem:[%s2400_s1 + $0x28] sm:$0xff]   ;;  %vm653_vm0 = vcmask 130048  }
   0xc   : > { %762 = vmatprep.subr.bf16.mxu0 %v1997_v1  ;;  %1845 = vmatprep.subr.bf16.mxu1 %v1997_v1  ;;  %s1772_s21 = sshll.u32 %s2404_s16, 3  ;;  %v1875_v4 = vld [vmem:[%s2400_s1 + $0x20] sm:$0xff]   ;;  %v1876_v7 = vld [vmem:[%s2400_s1 + $0x18] sm:$0xff]   ;;  %v1877_v8 = vld [vmem:[%s2400_s1 + $0x10] sm:$0xff]   ;;  %s1579_s13 = sshll.u32 %s2404_s16, 2  ;;  %vm1443_vm1 = vcmask 257024  }
   0xd   : > { %763 = vmatpush1.bf16.msra.mxu0 %v1872_v0  ;;  %1854 = vmatpush1.bf16.msra.mxu1 %v1872_v0  ;;  %s2041_s24 = scalar_lea.vmem %s2399_s0, %s1772_s21  ;;  %v1878_v9 = vld [vmem:[%s2400_s1 + $0x8] sm:$0xff]   ;;  %v1879_v10 = vld [vmem:[%s2400_s1] sm:$0xff]   ;;  %s2180_s17 = scalar_lea.vmem %s2402_s3, %s1579_s13 }
   0xe   : > { %764 = vmatprep.subr.bf16.mxu0 %v1997_v1  ;;  %1846 = vmatprep.subr.bf16.mxu1 %v1997_v1  ;;  %v1883_v5 = vld [vmem:[%s2041_s24 + $0x4] ss:$8 sps:$4 sm:$0xff]   ;;  %v1881_v12 = vld [vmem:[%s2041_s24] ss:$8 sps:$4 sm:$0xff]   ;;  %v1887_v14 = vld [vmem:[%s2041_s24 + $0x14] ss:$8 sps:$4 sm:$0xff]  }
   0xf   : > { %v1886_v6 = vld [vmem:[%s2041_s24 + $0x124] ss:$8 sps:$4 sm:$0xff]   ;;  %1662 = vmatprep.mubr.msk.bf16.mxu0 %vm653_vm0, %v1883_v5  ;;  %v1884_v13 = vld [vmem:[%s2041_s24 + $0x120] ss:$8 sps:$4 sm:$0xff]   ;;  %v1889_v15 = vld [vmem:[%s2041_s24 + $0x134] ss:$8 sps:$4 sm:$0xff]  }
  0x10   : > { %1680 = vmatprep.mubr.msk.bf16.mxu1 %vm653_vm0, %v1886_v6  ;;  %v1880_v11 = vld [vmem:[%s2400_s1 + $0x40] sm:$0xff]   ;;  %v1891_v16 = vld [vmem:[%s2041_s24 + $0x10] ss:$8 sps:$4 sm:$0xff]   ;;  %v1899_v22 = vld [vmem:[%s2041_s24 + $0x34] ss:$8 sps:$4 sm:$0xff]  }
  0x11   : > { %765 = vmatpush1.bf16.msra.mxu0 %v1873_v2  ;;  %1855 = vmatpush1.bf16.msra.mxu1 %v1873_v2  ;;  %v1892_v17 = vld [vmem:[%s2041_s24 + $0x130] ss:$8 sps:$4 sm:$0xff]   ;;  %v1893_v18 = vld [vmem:[%s2041_s24 + $0x24] ss:$8 sps:$4 sm:$0xff]   ;;  %v1897_v20 = vld [vmem:[%s2041_s24 + $0x20] ss:$8 sps:$4 sm:$0xff]  }
  0x12   : > { %766 = vmatprep.subr.bf16.mxu0 %v1997_v1  ;;  %1847 = vmatprep.subr.bf16.mxu1 %v1997_v1  ;;  %v1895_v19 = vld [vmem:[%s2041_s24 + $0x144] ss:$8 sps:$4 sm:$0xff]   ;;  %v1898_v21 = vld [vmem:[%s2041_s24 + $0x140] ss:$8 sps:$4 sm:$0xff]   ;;  %v1901_v23 = vld [vmem:[%s2041_s24 + $0x154] ss:$8 sps:$4 sm:$0xff]  }
  0x13   : > { %v1903_v24 = vld [vmem:[%s2041_s24 + $0x30] ss:$8 sps:$4 sm:$0xff]   ;;  %v1905_v26 = vld [vmem:[%s2041_s24 + $0x44] ss:$8 sps:$4 sm:$0xff]   ;;  %v1909_v28 = vld [vmem:[%s2041_s24 + $0x40] ss:$8 sps:$4 sm:$0xff]  }
  0x14   : > { %v1904_v25 = vld [vmem:[%s2041_s24 + $0x150] ss:$8 sps:$4 sm:$0xff]   ;;  %v1907_v27 = vld [vmem:[%s2041_s24 + $0x164] ss:$8 sps:$4 sm:$0xff]   ;;  %v1910_v29 = vld [vmem:[%s2041_s24 + $0x160] ss:$8 sps:$4 sm:$0xff]  }
  0x15   : > { %767 = vmatpush1.bf16.msra.mxu0 %v1874_v3  ;;  %1856 = vmatpush1.bf16.msra.mxu1 %v1874_v3  ;;  %v1911_v30 = vld [vmem:[%s2041_s24 + $0x54] ss:$8 sps:$4 sm:$0xff]   ;;  %v1915_v32 = vld [vmem:[%s2041_s24 + $0x50] ss:$8 sps:$4 sm:$0xff]   ;;  %v1917_v34 = vld [vmem:[%s2041_s24 + $0x64] ss:$8 sps:$4 sm:$0xff]  }
  0x16   : > { %768 = vmatprep.subr.bf16.mxu0 %v1997_v1  ;;  %1848 = vmatprep.subr.bf16.mxu1 %v1997_v1  ;;  %v1913_v31 = vld [vmem:[%s2041_s24 + $0x174] ss:$8 sps:$4 sm:$0xff]   ;;  %v1916_v33 = vld [vmem:[%s2041_s24 + $0x170] ss:$8 sps:$4 sm:$0xff]   ;;  %v1919_v35 = vld [vmem:[%s2041_s24 + $0x184] ss:$8 sps:$4 sm:$0xff]  }
  0x17   : > { %v1921_v36 = vld [vmem:[%s2041_s24 + $0x60] ss:$8 sps:$4 sm:$0xff]   ;;  %v1923_v38 = vld [vmem:[%s2041_s24 + $0x74] ss:$8 sps:$4 sm:$0xff]   ;;  %v1927_v40 = vld [vmem:[%s2041_s24 + $0x70] ss:$8 sps:$4 sm:$0xff]  }
  0x18   : > { %v1922_v37 = vld [vmem:[%s2041_s24 + $0x180] ss:$8 sps:$4 sm:$0xff]   ;;  %v1925_v39 = vld [vmem:[%s2041_s24 + $0x194] ss:$8 sps:$4 sm:$0xff]   ;;  %v1928_v41 = vld [vmem:[%s2041_s24 + $0x190] ss:$8 sps:$4 sm:$0xff]  }
  0x19   : > { %769 = vmatpush1.bf16.msra.mxu0 %v1875_v4  ;;  %1857 = vmatpush1.bf16.msra.mxu1 %v1875_v4  ;;  %v1929_v42 = vld [vmem:[%s2041_s24 + $0x84] ss:$8 sps:$4 sm:$0xff]   ;;  %v1933_v44 = vld [vmem:[%s2041_s24 + $0x80] ss:$8 sps:$4 sm:$0xff]   ;;  %v1935_v46 = vld [vmem:[%s2041_s24 + $0x94] ss:$8 sps:$4 sm:$0xff]  }
  0x1a   : > { %770 = vmatprep.subr.bf16.mxu0 %v1997_v1  ;;  %1849 = vmatprep.subr.bf16.mxu1 %v1997_v1  ;;  %v1931_v43 = vld [vmem:[%s2041_s24 + $0x1a4] ss:$8 sps:$4 sm:$0xff]   ;;  %v1934_v45 = vld [vmem:[%s2041_s24 + $0x1a0] ss:$8 sps:$4 sm:$0xff]   ;;  %v1937_v47 = vld [vmem:[%s2041_s24 + $0x1b4] ss:$8 sps:$4 sm:$0xff]  }
  0x1b   : > { %v1939_v48 = vld [vmem:[%s2041_s24 + $0x90] ss:$8 sps:$4 sm:$0xff]   ;;  %v1941_v50 = vld [vmem:[%s2041_s24 + $0xa4] ss:$8 sps:$4 sm:$0xff]   ;;  %v1945_v52 = vld [vmem:[%s2041_s24 + $0xa0] ss:$8 sps:$4 sm:$0xff]  }
  0x1c   : > { %v1940_v49 = vld [vmem:[%s2041_s24 + $0x1b0] ss:$8 sps:$4 sm:$0xff]   ;;  %v1943_v51 = vld [vmem:[%s2041_s24 + $0x1c4] ss:$8 sps:$4 sm:$0xff]   ;;  %v1946_v53 = vld [vmem:[%s2041_s24 + $0x1c0] ss:$8 sps:$4 sm:$0xff]  }
  0x1d   : > { %771 = vmatpush1.bf16.msra.mxu0 %v1876_v7  ;;  %1858 = vmatpush1.bf16.msra.mxu1 %v1876_v7  ;;  %v1947_v54 = vld [vmem:[%s2041_s24 + $0xb4] ss:$8 sps:$4 sm:$0xff]   ;;  %v1951_v56 = vld [vmem:[%s2041_s24 + $0xb0] ss:$8 sps:$4 sm:$0xff]   ;;  %v1953_v58 = vld [vmem:[%s2041_s24 + $0xc4] ss:$8 sps:$4 sm:$0xff]  }
  0x1e   : > { %772 = vmatprep.subr.bf16.mxu0 %v1997_v1  ;;  %1850 = vmatprep.subr.bf16.mxu1 %v1997_v1  ;;  %v1949_v55 = vld [vmem:[%s2041_s24 + $0x1d4] ss:$8 sps:$4 sm:$0xff]   ;;  %v1952_v57 = vld [vmem:[%s2041_s24 + $0x1d0] ss:$8 sps:$4 sm:$0xff]   ;;  %v1955_v59 = vld [vmem:[%s2041_s24 + $0x1e4] ss:$8 sps:$4 sm:$0xff]  }
  0x1f   : > { %v1957_v60 = vld [vmem:[%s2041_s24 + $0xc0] ss:$8 sps:$4 sm:$0xff]   ;;  %v1959_v62 = vld [vmem:[%s2041_s24 + $0xd4] ss:$8 sps:$4 sm:$0xff]   ;;  %v1963_v0 = vld [vmem:[%s2041_s24 + $0xd0] ss:$8 sps:$4 sm:$0xff]  }
  0x20   : > { %v1958_v61 = vld [vmem:[%s2041_s24 + $0x1e0] ss:$8 sps:$4 sm:$0xff]   ;;  %v1961_v63 = vld [vmem:[%s2041_s24 + $0x1f4] ss:$8 sps:$4 sm:$0xff]   ;;  %v1965_v2 = vld [vmem:[%s2041_s24 + $0xe4] ss:$8 sps:$4 sm:$0xff]  }
  0x21   : > { %773 = vmatpush1.bf16.msra.mxu0 %v1877_v8  ;;  %1859 = vmatpush1.bf16.msra.mxu1 %v1877_v8  ;;  %v1967_v3 = vld [vmem:[%s2041_s24 + $0x204] ss:$8 sps:$4 sm:$0xff]   ;;  %v1969_v4 = vld [vmem:[%s2041_s24 + $0xe0] ss:$8 sps:$4 sm:$0xff]   ;;  %v1971_v6 = vld [vmem:[%s2041_s24 + $0xf4] ss:$8 sps:$4 sm:$0xff]  }
  0x22   : > { %774 = vmatprep.subr.bf16.mxu0 %v1997_v1  ;;  %1851 = vmatprep.subr.bf16.mxu1 %v1997_v1  ;;  %v1970_v5 = vld [vmem:[%s2041_s24 + $0x200] ss:$8 sps:$4 sm:$0xff]   ;;  %v1973_v7 = vld [vmem:[%s2041_s24 + $0x214] ss:$8 sps:$4 sm:$0xff]   ;;  %v1975_v8 = vld [vmem:[%s2041_s24 + $0xf0] ss:$8 sps:$4 sm:$0xff]  }
  0x25   : > { %775 = vmatpush1.bf16.msra.mxu0 %v1878_v9  ;;  %1860 = vmatpush1.bf16.msra.mxu1 %v1878_v9  ;;  %v1976_v9 = vld [vmem:[%s2041_s24 + $0x210] ss:$8 sps:$4 sm:$0xff]  }
  0x26   : > { %776 = vmatprep.subr.bf16.mxu0 %v1997_v1  ;;  %1852 = vmatprep.subr.bf16.mxu1 %v1997_v1 }
  0x29   : > { %777 = vmatpush1.bf16.msra.mxu0 %v1879_v10  ;;  %1861 = vmatpush1.bf16.msra.mxu1 %v1879_v10  ;;  %v1977_v10 = vld [vmem:[%s2041_s24 + $0x104] ss:$8 sps:$4 sm:$0xff]  }
  0x2a   : > { %792 = vmatprep.subr.bf16.mxu0 %v1997_v1  ;;  %1853 = vmatprep.subr.bf16.mxu1 %v1997_v1  ;;  %v1964_v1 = vld [vmem:[%s2041_s24 + $0x1f0] ss:$8 sps:$4 sm:$0xff]  }
  0x2d   : > { %793 = vmatpush2.bf16.msra.mxu0 %v1880_v11  ;;  %1862 = vmatpush2.bf16.msra.mxu1 %v1880_v11  ;;  %v1979_v11 = vld [vmem:[%s2041_s24 + $0x224] ss:$8 sps:$4 sm:$0xff]  }
  0x30   : > { %795 = vmatmul.mubr.bf16.vlgmr.msra.gmra.mxu0 %v1881_v12  ;;  %939 = vmatmul.mubr.bf16.vlgmr.msra.gmra.mxu1 %v1884_v13  ;;  %v1981_v12 = vld [vmem:[%s2041_s24 + $0x100] ss:$8 sps:$4 sm:$0xff]  }
  0x31   : > { %1663 = vmatprep.mubr.msk.bf16.mxu0 %vm653_vm0, %v1887_v14  ;;  %1681 = vmatprep.mubr.msk.bf16.mxu1 %vm653_vm0, %v1889_v15  ;;  %v1982_v13 = vld [vmem:[%s2041_s24 + $0x220] ss:$8 sps:$4 sm:$0xff]   ;;  %v1983_v14 = vld [vmem:[%s2041_s24 + $0x114] ss:$8 sps:$4 sm:$0xff]  }
  0x32   : > { %v1985_v15 = vld [vmem:[%s2041_s24 + $0x234] ss:$8 sps:$4 sm:$0xff]  }
  0x38   : > { %803 = vmatmul.mubr.bf16.gmra.mxu0 %v1891_v16  ;;  %947 = vmatmul.mubr.bf16.gmra.mxu1 %v1892_v17  ;;  %v1987_v16 = vld [vmem:[%s2041_s24 + $0x110] ss:$8 sps:$4 sm:$0xff]  }
  0x39   : > { %1664 = vmatprep.mubr.msk.bf16.mxu0 %vm653_vm0, %v1893_v18  ;;  %1682 = vmatprep.mubr.msk.bf16.mxu1 %vm653_vm0, %v1895_v19  ;;  %v1988_v17 = vld [vmem:[%s2041_s24 + $0x230] ss:$8 sps:$4 sm:$0xff]   ;;  %v2172_v18 = vld [vmem:[%s2401_s2] ss:$0 sm:$0xff] }
  0x40   : > { %811 = vmatmul.mubr.bf16.gmra.mxu0 %v1897_v20  ;;  %955 = vmatmul.mubr.bf16.gmra.mxu1 %v1898_v21 }
  0x41   : > { %1665 = vmatprep.mubr.msk.bf16.mxu0 %vm653_vm0, %v1899_v22  ;;  %1683 = vmatprep.mubr.msk.bf16.mxu1 %vm653_vm0, %v1901_v23 }
  0x48   : > { %819 = vmatmul.mubr.bf16.gmra.mxu0 %v1903_v24  ;;  %963 = vmatmul.mubr.bf16.gmra.mxu1 %v1904_v25 }
  0x49   : > { %1666 = vmatprep.mubr.msk.bf16.mxu0 %vm653_vm0, %v1905_v26  ;;  %1684 = vmatprep.mubr.msk.bf16.mxu1 %vm653_vm0, %v1907_v27 }
  0x50   : > { %827 = vmatmul.mubr.bf16.gmra.mxu0 %v1909_v28  ;;  %971 = vmatmul.mubr.bf16.gmra.mxu1 %v1910_v29 }
  0x51   : > { %1667 = vmatprep.mubr.msk.bf16.mxu0 %vm653_vm0, %v1911_v30  ;;  %1685 = vmatprep.mubr.msk.bf16.mxu1 %vm653_vm0, %v1913_v31 }
  0x58   : > { %835 = vmatmul.mubr.bf16.gmra.mxu0 %v1915_v32  ;;  %979 = vmatmul.mubr.bf16.gmra.mxu1 %v1916_v33 }
  0x59   : > { %1668 = vmatprep.mubr.msk.bf16.mxu0 %vm653_vm0, %v1917_v34  ;;  %1686 = vmatprep.mubr.msk.bf16.mxu1 %vm653_vm0, %v1919_v35 }
  0x60   : > { %843 = vmatmul.mubr.bf16.gmra.mxu0 %v1921_v36  ;;  %987 = vmatmul.mubr.bf16.gmra.mxu1 %v1922_v37 }
  0x61   : > { %1669 = vmatprep.mubr.msk.bf16.mxu0 %vm653_vm0, %v1923_v38  ;;  %1687 = vmatprep.mubr.msk.bf16.mxu1 %vm653_vm0, %v1925_v39 }
  0x68   : > { %851 = vmatmul.mubr.bf16.gmra.mxu0 %v1927_v40  ;;  %995 = vmatmul.mubr.bf16.gmra.mxu1 %v1928_v41 }
  0x69   : > { %1670 = vmatprep.mubr.msk.bf16.mxu0 %vm653_vm0, %v1929_v42  ;;  %1688 = vmatprep.mubr.msk.bf16.mxu1 %vm653_vm0, %v1931_v43 }
  0x70   : > { %859 = vmatmul.mubr.bf16.gmra.mxu0 %v1933_v44  ;;  %1003 = vmatmul.mubr.bf16.gmra.mxu1 %v1934_v45 }
  0x71   : > { %1671 = vmatprep.mubr.msk.bf16.mxu0 %vm653_vm0, %v1935_v46  ;;  %1689 = vmatprep.mubr.msk.bf16.mxu1 %vm653_vm0, %v1937_v47 }
  0x78   : > { %867 = vmatmul.mubr.bf16.gmra.mxu0 %v1939_v48  ;;  %1011 = vmatmul.mubr.bf16.gmra.mxu1 %v1940_v49 }
  0x79   : > { %1672 = vmatprep.mubr.msk.bf16.mxu0 %vm653_vm0, %v1941_v50  ;;  %1690 = vmatprep.mubr.msk.bf16.mxu1 %vm653_vm0, %v1943_v51 }
  0x80   : > { %875 = vmatmul.mubr.bf16.gmra.mxu0 %v1945_v52  ;;  %1019 = vmatmul.mubr.bf16.gmra.mxu1 %v1946_v53 }
  0x81   : > { %1673 = vmatprep.mubr.msk.bf16.mxu0 %vm653_vm0, %v1947_v54  ;;  %1691 = vmatprep.mubr.msk.bf16.mxu1 %vm653_vm0, %v1949_v55 }
  0x88   : > { %883 = vmatmul.mubr.bf16.gmra.mxu0 %v1951_v56  ;;  %1027 = vmatmul.mubr.bf16.gmra.mxu1 %v1952_v57 }
  0x89   : > { %1674 = vmatprep.mubr.msk.bf16.mxu0 %vm653_vm0, %v1953_v58  ;;  %1692 = vmatprep.mubr.msk.bf16.mxu1 %vm653_vm0, %v1955_v59 }
  0x90   : > { %891 = vmatmul.mubr.bf16.gmra.mxu0 %v1957_v60  ;;  %1035 = vmatmul.mubr.bf16.gmra.mxu1 %v1958_v61 }
  0x91   : > { %1675 = vmatprep.mubr.msk.bf16.mxu0 %vm653_vm0, %v1959_v62  ;;  %1693 = vmatprep.mubr.msk.bf16.mxu1 %vm653_vm0, %v1961_v63 }
  0x98   : > { %899 = vmatmul.mubr.bf16.gmra.mxu0 %v1963_v0  ;;  %1043 = vmatmul.mubr.bf16.gmra.mxu1 %v1964_v1 }
  0x99   : > { %1676 = vmatprep.mubr.msk.bf16.mxu0 %vm653_vm0, %v1965_v2  ;;  %1694 = vmatprep.mubr.msk.bf16.mxu1 %vm653_vm0, %v1967_v3 }
  0xa0   : > { %907 = vmatmul.mubr.bf16.gmra.mxu0 %v1969_v4  ;;  %1051 = vmatmul.mubr.bf16.gmra.mxu1 %v1970_v5 }
  0xa1   : > { %1677 = vmatprep.mubr.msk.bf16.mxu0 %vm653_vm0, %v1971_v6  ;;  %1695 = vmatprep.mubr.msk.bf16.mxu1 %vm653_vm0, %v1973_v7 }
  0xa8   : > { %915 = vmatmul.mubr.bf16.gmra.mxu0 %v1975_v8  ;;  %1059 = vmatmul.mubr.bf16.gmra.mxu1 %v1976_v9 }
  0xa9   : > { %1678 = vmatprep.mubr.msk.bf16.mxu0 %vm653_vm0, %v1977_v10  ;;  %1696 = vmatprep.mubr.msk.bf16.mxu1 %vm653_vm0, %v1979_v11 }
  0xb0   : > { %923 = vmatmul.mubr.bf16.gmra.mxu0 %v1981_v12  ;;  %1067 = vmatmul.mubr.bf16.gmra.mxu1 %v1982_v13 }
  0xb1   : > { %1679 = vmatprep.mubr.msk.bf16.mxu0 %vm653_vm0, %v1983_v14  ;;  %1697 = vmatprep.mubr.msk.bf16.mxu1 %vm653_vm0, %v1985_v15 }
  0xb8   : > { %931 = vmatmul.mubr.bf16.gmra.mxu0 %v1987_v16  ;;  %1075 = vmatmul.mubr.bf16.gmra.mxu1 %v1988_v17 }
  0xf0   : > { %v796_v19 = vpop.f32.mrf.mxu0  ;;  %v940_v20 = vpop.f32.mrf.mxu1 }
  0xf1   : > { %v797_v21 = vadd.f32 %v2172_v18, %v796_v19  ;;  %v941_v22 = vadd.f32 %v2172_v18, %v940_v20 }
  0xf2   : > { %v798_v23 = vpop.f32.mrf.mxu0  ;;  %v942_v24 = vpop.f32.mrf.mxu1 }
  0xf3   : > { %v1083_v25 = vmax.f32 %v797_v21, 0.0  ;;  %v1119_v26 = vmax.f32 %v941_v22, 0.0 }
  0xf4   : > { %v799_v27 = vpop.f32.mrf.mxu0  ;;  %v943_v28 = vpop.f32.mrf.mxu1 }
  0xf5   : > { %v1773_v29 = vpack.c.bf16 %v1083_v25, %v1083_v25  ;;  %v1809_v30 = vpack.c.bf16 %v1119_v26, %v1119_v26  ;;  %v800_v31 = vadd.f32 %v2172_v18, %v799_v27  ;;  %v944_v32 = vadd.f32 %v2172_v18, %v943_v28 }
  0xf6   : > { %v801_v33 = vpop.f32.mrf.mxu0  ;;  %v945_v34 = vpop.f32.mrf.mxu1 }
  0xf7   : > { %1444 = vst.msk [vmem:[%s2180_s17] sm:$0xf] %vm1443_vm1, %v1773_v29  ;;  %1480 = vst.msk [vmem:[%s2180_s17 + $0x90] sm:$0xf] %vm1443_vm1, %v1809_v30  ;;  %v1084_v35 = vmax.f32 %v800_v31, 0.0  ;;  %v1120_v36 = vmax.f32 %v944_v32, 0.0 }
  0xf8   : > { %v804_v37 = vpop.f32.mrf.mxu0  ;;  %v948_v38 = vpop.f32.mrf.mxu1 }
  0xf9   : > { %v1774_v39 = vpack.c.bf16 %v1084_v35, %v1084_v35  ;;  %v1810_v40 = vpack.c.bf16 %v1120_v36, %v1120_v36  ;;  %v805_v41 = vadd.f32 %v2172_v18, %v804_v37  ;;  %v949_v42 = vadd.f32 %v2172_v18, %v948_v38 }
  0xfa   : > { %v806_v43 = vpop.f32.mrf.mxu0  ;;  %v950_v44 = vpop.f32.mrf.mxu1 }
  0xfb   : > { %1445 = vst.msk [vmem:[%s2180_s17 + $0x4] sm:$0xf] %vm1443_vm1, %v1774_v39  ;;  %1481 = vst.msk [vmem:[%s2180_s17 + $0x94] sm:$0xf] %vm1443_vm1, %v1810_v40  ;;  %v1085_v45 = vmax.f32 %v805_v41, 0.0  ;;  %v1121_v46 = vmax.f32 %v949_v42, 0.0 }
  0xfc   : > { %v807_v47 = vpop.f32.mrf.mxu0  ;;  %v951_v48 = vpop.f32.mrf.mxu1 }
  0xfd   : > { %v1775_v49 = vpack.c.bf16 %v1085_v45, %v1085_v45  ;;  %v1811_v50 = vpack.c.bf16 %v1121_v46, %v1121_v46  ;;  %v808_v51 = vadd.f32 %v2172_v18, %v807_v47  ;;  %v952_v52 = vadd.f32 %v2172_v18, %v951_v48 }
  0xfe   : > { %v809_v53 = vpop.f32.mrf.mxu0  ;;  %v953_v54 = vpop.f32.mrf.mxu1 }
  0xff   : > { %1446 = vst.msk [vmem:[%s2180_s17 + $0x8] sm:$0xf] %vm1443_vm1, %v1775_v49  ;;  %1482 = vst.msk [vmem:[%s2180_s17 + $0x98] sm:$0xf] %vm1443_vm1, %v1811_v50  ;;  %v1086_v55 = vmax.f32 %v808_v51, 0.0  ;;  %v1122_v56 = vmax.f32 %v952_v52, 0.0 }
 0x100   : > { %v812_v57 = vpop.f32.mrf.mxu0  ;;  %v956_v58 = vpop.f32.mrf.mxu1 }
 0x101   : > { %v1776_v59 = vpack.c.bf16 %v1086_v55, %v1086_v55  ;;  %v1812_v60 = vpack.c.bf16 %v1122_v56, %v1122_v56  ;;  %v813_v61 = vadd.f32 %v2172_v18, %v812_v57  ;;  %v957_v62 = vadd.f32 %v2172_v18, %v956_v58 }
 0x102   : > { %v814_v63 = vpop.f32.mrf.mxu0  ;;  %v958_v0 = vpop.f32.mrf.mxu1 }
 0x103   : > { %1447 = vst.msk [vmem:[%s2180_s17 + $0xc] sm:$0xf] %vm1443_vm1, %v1776_v59  ;;  %1483 = vst.msk [vmem:[%s2180_s17 + $0x9c] sm:$0xf] %vm1443_vm1, %v1812_v60  ;;  %v1087_v1 = vmax.f32 %v813_v61, 0.0  ;;  %v1123_v2 = vmax.f32 %v957_v62, 0.0 }
 0x104   : > { %v815_v3 = vpop.f32.mrf.mxu0  ;;  %v959_v4 = vpop.f32.mrf.mxu1 }
 0x105   : > { %v1777_v5 = vpack.c.bf16 %v1087_v1, %v1087_v1  ;;  %v1813_v6 = vpack.c.bf16 %v1123_v2, %v1123_v2  ;;  %v816_v7 = vadd.f32 %v2172_v18, %v815_v3  ;;  %v960_v8 = vadd.f32 %v2172_v18, %v959_v4 }
 0x106   : > { %v817_v9 = vpop.f32.mrf.mxu0  ;;  %v961_v10 = vpop.f32.mrf.mxu1 }
 0x107   : > { %1448 = vst.msk [vmem:[%s2180_s17 + $0x10] sm:$0xf] %vm1443_vm1, %v1777_v5  ;;  %1484 = vst.msk [vmem:[%s2180_s17 + $0xa0] sm:$0xf] %vm1443_vm1, %v1813_v6  ;;  %v1088_v11 = vmax.f32 %v816_v7, 0.0  ;;  %v1124_v12 = vmax.f32 %v960_v8, 0.0 }
 0x108   : > { %v820_v13 = vpop.f32.mrf.mxu0  ;;  %v964_v14 = vpop.f32.mrf.mxu1 }
 0x109   : > { %v1778_v15 = vpack.c.bf16 %v1088_v11, %v1088_v11  ;;  %v1814_v16 = vpack.c.bf16 %v1124_v12, %v1124_v12  ;;  %v821_v17 = vadd.f32 %v2172_v18, %v820_v13  ;;  %v965_v19 = vadd.f32 %v2172_v18, %v964_v14 }
 0x10a   : > { %v822_v20 = vpop.f32.mrf.mxu0  ;;  %v966_v21 = vpop.f32.mrf.mxu1 }
 0x10b   : > { %1449 = vst.msk [vmem:[%s2180_s17 + $0x14] sm:$0xf] %vm1443_vm1, %v1778_v15  ;;  %1485 = vst.msk [vmem:[%s2180_s17 + $0xa4] sm:$0xf] %vm1443_vm1, %v1814_v16  ;;  %v1089_v22 = vmax.f32 %v821_v17, 0.0  ;;  %v1125_v23 = vmax.f32 %v965_v19, 0.0 }
 0x10c   : > { %v823_v24 = vpop.f32.mrf.mxu0  ;;  %v967_v25 = vpop.f32.mrf.mxu1 }
 0x10d   : > { %v1779_v26 = vpack.c.bf16 %v1089_v22, %v1089_v22  ;;  %v1815_v27 = vpack.c.bf16 %v1125_v23, %v1125_v23  ;;  %v824_v28 = vadd.f32 %v2172_v18, %v823_v24  ;;  %v968_v29 = vadd.f32 %v2172_v18, %v967_v25 }
 0x10e   : > { %v825_v30 = vpop.f32.mrf.mxu0  ;;  %v969_v31 = vpop.f32.mrf.mxu1 }
 0x10f   : > { %1450 = vst.msk [vmem:[%s2180_s17 + $0x18] sm:$0xf] %vm1443_vm1, %v1779_v26  ;;  %1486 = vst.msk [vmem:[%s2180_s17 + $0xa8] sm:$0xf] %vm1443_vm1, %v1815_v27  ;;  %v1090_v32 = vmax.f32 %v824_v28, 0.0  ;;  %v1126_v33 = vmax.f32 %v968_v29, 0.0 }
 0x110   : > { %v828_v34 = vpop.f32.mrf.mxu0  ;;  %v972_v35 = vpop.f32.mrf.mxu1 }
 0x111   : > { %v1780_v36 = vpack.c.bf16 %v1090_v32, %v1090_v32  ;;  %v1816_v37 = vpack.c.bf16 %v1126_v33, %v1126_v33  ;;  %v829_v38 = vadd.f32 %v2172_v18, %v828_v34  ;;  %v973_v39 = vadd.f32 %v2172_v18, %v972_v35 }
 0x112   : > { %v830_v40 = vpop.f32.mrf.mxu0  ;;  %v974_v41 = vpop.f32.mrf.mxu1 }
 0x113   : > { %1451 = vst.msk [vmem:[%s2180_s17 + $0x1c] sm:$0xf] %vm1443_vm1, %v1780_v36  ;;  %1487 = vst.msk [vmem:[%s2180_s17 + $0xac] sm:$0xf] %vm1443_vm1, %v1816_v37  ;;  %v1091_v42 = vmax.f32 %v829_v38, 0.0  ;;  %v1127_v43 = vmax.f32 %v973_v39, 0.0 }
 0x114   : > { %v831_v44 = vpop.f32.mrf.mxu0  ;;  %v975_v45 = vpop.f32.mrf.mxu1 }
 0x115   : > { %v1781_v46 = vpack.c.bf16 %v1091_v42, %v1091_v42  ;;  %v1817_v47 = vpack.c.bf16 %v1127_v43, %v1127_v43  ;;  %v832_v48 = vadd.f32 %v2172_v18, %v831_v44  ;;  %v976_v49 = vadd.f32 %v2172_v18, %v975_v45 }
 0x116   : > { %v833_v50 = vpop.f32.mrf.mxu0  ;;  %v977_v51 = vpop.f32.mrf.mxu1 }
 0x117   : > { %1452 = vst.msk [vmem:[%s2180_s17 + $0x20] sm:$0xf] %vm1443_vm1, %v1781_v46  ;;  %1488 = vst.msk [vmem:[%s2180_s17 + $0xb0] sm:$0xf] %vm1443_vm1, %v1817_v47  ;;  %v1092_v52 = vmax.f32 %v832_v48, 0.0  ;;  %v1128_v53 = vmax.f32 %v976_v49, 0.0 }
 0x118   : > { %v836_v54 = vpop.f32.mrf.mxu0  ;;  %v980_v55 = vpop.f32.mrf.mxu1 }
 0x119   : > { %v1782_v56 = vpack.c.bf16 %v1092_v52, %v1092_v52  ;;  %v1818_v57 = vpack.c.bf16 %v1128_v53, %v1128_v53  ;;  %v837_v58 = vadd.f32 %v2172_v18, %v836_v54  ;;  %v981_v59 = vadd.f32 %v2172_v18, %v980_v55 }
 0x11a   : > { %v838_v60 = vpop.f32.mrf.mxu0  ;;  %v982_v61 = vpop.f32.mrf.mxu1 }
 0x11b   : > { %1453 = vst.msk [vmem:[%s2180_s17 + $0x24] sm:$0xf] %vm1443_vm1, %v1782_v56  ;;  %1489 = vst.msk [vmem:[%s2180_s17 + $0xb4] sm:$0xf] %vm1443_vm1, %v1818_v57  ;;  %v1093_v62 = vmax.f32 %v837_v58, 0.0  ;;  %v1129_v63 = vmax.f32 %v981_v59, 0.0 }
 0x11c   : > { %v839_v0 = vpop.f32.mrf.mxu0  ;;  %v983_v1 = vpop.f32.mrf.mxu1 }
 0x11d   : > { %v1783_v2 = vpack.c.bf16 %v1093_v62, %v1093_v62  ;;  %v1819_v3 = vpack.c.bf16 %v1129_v63, %v1129_v63  ;;  %v840_v4 = vadd.f32 %v2172_v18, %v839_v0  ;;  %v984_v5 = vadd.f32 %v2172_v18, %v983_v1 }
 0x11e   : > { %v841_v6 = vpop.f32.mrf.mxu0  ;;  %v985_v7 = vpop.f32.mrf.mxu1 }
 0x11f   : > { %1454 = vst.msk [vmem:[%s2180_s17 + $0x28] sm:$0xf] %vm1443_vm1, %v1783_v2  ;;  %1490 = vst.msk [vmem:[%s2180_s17 + $0xb8] sm:$0xf] %vm1443_vm1, %v1819_v3  ;;  %v1094_v8 = vmax.f32 %v840_v4, 0.0  ;;  %v1130_v9 = vmax.f32 %v984_v5, 0.0 }
 0x120   : > { %v844_v10 = vpop.f32.mrf.mxu0  ;;  %v988_v11 = vpop.f32.mrf.mxu1 }
 0x121   : > { %v1784_v12 = vpack.c.bf16 %v1094_v8, %v1094_v8  ;;  %v1820_v13 = vpack.c.bf16 %v1130_v9, %v1130_v9  ;;  %v845_v14 = vadd.f32 %v2172_v18, %v844_v10  ;;  %v989_v15 = vadd.f32 %v2172_v18, %v988_v11 }
 0x122   : > { %v846_v16 = vpop.f32.mrf.mxu0  ;;  %v990_v17 = vpop.f32.mrf.mxu1 }
 0x123   : > { %1455 = vst.msk [vmem:[%s2180_s17 + $0x2c] sm:$0xf] %vm1443_vm1, %v1784_v12  ;;  %1491 = vst.msk [vmem:[%s2180_s17 + $0xbc] sm:$0xf] %vm1443_vm1, %v1820_v13  ;;  %v1095_v19 = vmax.f32 %v845_v14, 0.0  ;;  %v1131_v20 = vmax.f32 %v989_v15, 0.0 }
 0x124   : > { %v847_v21 = vpop.f32.mrf.mxu0  ;;  %v991_v22 = vpop.f32.mrf.mxu1 }
 0x125   : > { %v1785_v23 = vpack.c.bf16 %v1095_v19, %v1095_v19  ;;  %v1821_v24 = vpack.c.bf16 %v1131_v20, %v1131_v20  ;;  %v848_v25 = vadd.f32 %v2172_v18, %v847_v21  ;;  %v992_v26 = vadd.f32 %v2172_v18, %v991_v22 }
 0x126   : > { %v849_v27 = vpop.f32.mrf.mxu0  ;;  %v993_v28 = vpop.f32.mrf.mxu1 }
 0x127   : > { %1456 = vst.msk [vmem:[%s2180_s17 + $0x30] sm:$0xf] %vm1443_vm1, %v1785_v23  ;;  %1492 = vst.msk [vmem:[%s2180_s17 + $0xc0] sm:$0xf] %vm1443_vm1, %v1821_v24  ;;  %v1096_v29 = vmax.f32 %v848_v25, 0.0  ;;  %v1132_v30 = vmax.f32 %v992_v26, 0.0 }
 0x128   : > { %v852_v31 = vpop.f32.mrf.mxu0  ;;  %v996_v32 = vpop.f32.mrf.mxu1 }
 0x129   : > { %v1786_v33 = vpack.c.bf16 %v1096_v29, %v1096_v29  ;;  %v1822_v34 = vpack.c.bf16 %v1132_v30, %v1132_v30  ;;  %v853_v35 = vadd.f32 %v2172_v18, %v852_v31  ;;  %v997_v36 = vadd.f32 %v2172_v18, %v996_v32 }
 0x12a   : > { %v854_v37 = vpop.f32.mrf.mxu0  ;;  %v998_v38 = vpop.f32.mrf.mxu1 }
 0x12b   : > { %1457 = vst.msk [vmem:[%s2180_s17 + $0x34] sm:$0xf] %vm1443_vm1, %v1786_v33  ;;  %1493 = vst.msk [vmem:[%s2180_s17 + $0xc4] sm:$0xf] %vm1443_vm1, %v1822_v34  ;;  %v1097_v39 = vmax.f32 %v853_v35, 0.0  ;;  %v1133_v40 = vmax.f32 %v997_v36, 0.0 }
 0x12c   : > { %v855_v41 = vpop.f32.mrf.mxu0  ;;  %v999_v42 = vpop.f32.mrf.mxu1 }
 0x12d   : > { %v1787_v43 = vpack.c.bf16 %v1097_v39, %v1097_v39  ;;  %v1823_v44 = vpack.c.bf16 %v1133_v40, %v1133_v40  ;;  %v856_v45 = vadd.f32 %v2172_v18, %v855_v41  ;;  %v1000_v46 = vadd.f32 %v2172_v18, %v999_v42 }
 0x12e   : > { %v857_v47 = vpop.f32.mrf.mxu0  ;;  %v1001_v48 = vpop.f32.mrf.mxu1 }
 0x12f   : > { %1458 = vst.msk [vmem:[%s2180_s17 + $0x38] sm:$0xf] %vm1443_vm1, %v1787_v43  ;;  %1494 = vst.msk [vmem:[%s2180_s17 + $0xc8] sm:$0xf] %vm1443_vm1, %v1823_v44  ;;  %v1098_v49 = vmax.f32 %v856_v45, 0.0  ;;  %v1134_v50 = vmax.f32 %v1000_v46, 0.0 }
 0x130   : > { %v860_v51 = vpop.f32.mrf.mxu0  ;;  %v1004_v52 = vpop.f32.mrf.mxu1 }
 0x131   : > { %v1788_v53 = vpack.c.bf16 %v1098_v49, %v1098_v49  ;;  %v1824_v54 = vpack.c.bf16 %v1134_v50, %v1134_v50  ;;  %v861_v55 = vadd.f32 %v2172_v18, %v860_v51  ;;  %v1005_v56 = vadd.f32 %v2172_v18, %v1004_v52 }
 0x132   : > { %v862_v57 = vpop.f32.mrf.mxu0  ;;  %v1006_v58 = vpop.f32.mrf.mxu1 }
 0x133   : > { %1459 = vst.msk [vmem:[%s2180_s17 + $0x3c] sm:$0xf] %vm1443_vm1, %v1788_v53  ;;  %1495 = vst.msk [vmem:[%s2180_s17 + $0xcc] sm:$0xf] %vm1443_vm1, %v1824_v54  ;;  %v1099_v59 = vmax.f32 %v861_v55, 0.0  ;;  %v1135_v60 = vmax.f32 %v1005_v56, 0.0 }
 0x134   : > { %v863_v61 = vpop.f32.mrf.mxu0  ;;  %v1007_v62 = vpop.f32.mrf.mxu1 }
 0x135   : > { %v1789_v63 = vpack.c.bf16 %v1099_v59, %v1099_v59  ;;  %v1825_v0 = vpack.c.bf16 %v1135_v60, %v1135_v60  ;;  %v864_v1 = vadd.f32 %v2172_v18, %v863_v61  ;;  %v1008_v2 = vadd.f32 %v2172_v18, %v1007_v62 }
 0x136   : > { %v865_v3 = vpop.f32.mrf.mxu0  ;;  %v1009_v4 = vpop.f32.mrf.mxu1 }
 0x137   : > { %1460 = vst.msk [vmem:[%s2180_s17 + $0x40] sm:$0xf] %vm1443_vm1, %v1789_v63  ;;  %1496 = vst.msk [vmem:[%s2180_s17 + $0xd0] sm:$0xf] %vm1443_vm1, %v1825_v0  ;;  %v1100_v5 = vmax.f32 %v864_v1, 0.0  ;;  %v1136_v6 = vmax.f32 %v1008_v2, 0.0 }
 0x138   : > { %v868_v7 = vpop.f32.mrf.mxu0  ;;  %v1012_v8 = vpop.f32.mrf.mxu1 }
 0x139   : > { %v1790_v9 = vpack.c.bf16 %v1100_v5, %v1100_v5  ;;  %v1826_v10 = vpack.c.bf16 %v1136_v6, %v1136_v6  ;;  %v869_v11 = vadd.f32 %v2172_v18, %v868_v7  ;;  %v1013_v12 = vadd.f32 %v2172_v18, %v1012_v8 }
 0x13a   : > { %v870_v13 = vpop.f32.mrf.mxu0  ;;  %v1014_v14 = vpop.f32.mrf.mxu1 }
 0x13b   : > { %1461 = vst.msk [vmem:[%s2180_s17 + $0x44] sm:$0xf] %vm1443_vm1, %v1790_v9  ;;  %1497 = vst.msk [vmem:[%s2180_s17 + $0xd4] sm:$0xf] %vm1443_vm1, %v1826_v10  ;;  %v1101_v15 = vmax.f32 %v869_v11, 0.0  ;;  %v1137_v16 = vmax.f32 %v1013_v12, 0.0 }
 0x13c   : > { %v871_v17 = vpop.f32.mrf.mxu0  ;;  %v1015_v19 = vpop.f32.mrf.mxu1 }
 0x13d   : > { %v1791_v20 = vpack.c.bf16 %v1101_v15, %v1101_v15  ;;  %v1827_v21 = vpack.c.bf16 %v1137_v16, %v1137_v16  ;;  %v872_v22 = vadd.f32 %v2172_v18, %v871_v17  ;;  %v1016_v23 = vadd.f32 %v2172_v18, %v1015_v19 }
 0x13e   : > { %v873_v24 = vpop.f32.mrf.mxu0  ;;  %v1017_v25 = vpop.f32.mrf.mxu1 }
 0x13f   : > { %1462 = vst.msk [vmem:[%s2180_s17 + $0x48] sm:$0xf] %vm1443_vm1, %v1791_v20  ;;  %1498 = vst.msk [vmem:[%s2180_s17 + $0xd8] sm:$0xf] %vm1443_vm1, %v1827_v21  ;;  %v1102_v26 = vmax.f32 %v872_v22, 0.0  ;;  %v1138_v27 = vmax.f32 %v1016_v23, 0.0 }
 0x140   : > { %v876_v28 = vpop.f32.mrf.mxu0  ;;  %v1020_v29 = vpop.f32.mrf.mxu1 }
 0x141   : > { %v1792_v30 = vpack.c.bf16 %v1102_v26, %v1102_v26  ;;  %v1828_v31 = vpack.c.bf16 %v1138_v27, %v1138_v27  ;;  %v877_v32 = vadd.f32 %v2172_v18, %v876_v28  ;;  %v1021_v33 = vadd.f32 %v2172_v18, %v1020_v29 }
 0x142   : > { %v878_v34 = vpop.f32.mrf.mxu0  ;;  %v1022_v35 = vpop.f32.mrf.mxu1 }
 0x143   : > { %1463 = vst.msk [vmem:[%s2180_s17 + $0x4c] sm:$0xf] %vm1443_vm1, %v1792_v30  ;;  %1499 = vst.msk [vmem:[%s2180_s17 + $0xdc] sm:$0xf] %vm1443_vm1, %v1828_v31  ;;  %v1103_v36 = vmax.f32 %v877_v32, 0.0  ;;  %v1139_v37 = vmax.f32 %v1021_v33, 0.0 }
 0x144   : > { %v879_v38 = vpop.f32.mrf.mxu0  ;;  %v1023_v39 = vpop.f32.mrf.mxu1 }
 0x145   : > { %v1793_v40 = vpack.c.bf16 %v1103_v36, %v1103_v36  ;;  %v1829_v41 = vpack.c.bf16 %v1139_v37, %v1139_v37  ;;  %v880_v42 = vadd.f32 %v2172_v18, %v879_v38  ;;  %v1024_v43 = vadd.f32 %v2172_v18, %v1023_v39 }
 0x146   : > { %v881_v44 = vpop.f32.mrf.mxu0  ;;  %v1025_v45 = vpop.f32.mrf.mxu1 }
 0x147   : > { %1464 = vst.msk [vmem:[%s2180_s17 + $0x50] sm:$0xf] %vm1443_vm1, %v1793_v40  ;;  %1500 = vst.msk [vmem:[%s2180_s17 + $0xe0] sm:$0xf] %vm1443_vm1, %v1829_v41  ;;  %v1104_v46 = vmax.f32 %v880_v42, 0.0  ;;  %v1140_v47 = vmax.f32 %v1024_v43, 0.0 }
 0x148   : > { %v884_v48 = vpop.f32.mrf.mxu0  ;;  %v1028_v49 = vpop.f32.mrf.mxu1 }
 0x149   : > { %v1794_v50 = vpack.c.bf16 %v1104_v46, %v1104_v46  ;;  %v1830_v51 = vpack.c.bf16 %v1140_v47, %v1140_v47  ;;  %v885_v52 = vadd.f32 %v2172_v18, %v884_v48  ;;  %v1029_v53 = vadd.f32 %v2172_v18, %v1028_v49 }
 0x14a   : > { %v886_v54 = vpop.f32.mrf.mxu0  ;;  %v1030_v55 = vpop.f32.mrf.mxu1 }
 0x14b   : > { %1465 = vst.msk [vmem:[%s2180_s17 + $0x54] sm:$0xf] %vm1443_vm1, %v1794_v50  ;;  %1501 = vst.msk [vmem:[%s2180_s17 + $0xe4] sm:$0xf] %vm1443_vm1, %v1830_v51  ;;  %v1105_v56 = vmax.f32 %v885_v52, 0.0  ;;  %v1141_v57 = vmax.f32 %v1029_v53, 0.0 }
 0x14c   : > { %v887_v58 = vpop.f32.mrf.mxu0  ;;  %v1031_v59 = vpop.f32.mrf.mxu1 }
 0x14d   : > { %v1795_v60 = vpack.c.bf16 %v1105_v56, %v1105_v56  ;;  %v1831_v61 = vpack.c.bf16 %v1141_v57, %v1141_v57  ;;  %v888_v62 = vadd.f32 %v2172_v18, %v887_v58  ;;  %v1032_v63 = vadd.f32 %v2172_v18, %v1031_v59 }
 0x14e   : > { %v889_v0 = vpop.f32.mrf.mxu0  ;;  %v1033_v1 = vpop.f32.mrf.mxu1 }
 0x14f   : > { %1466 = vst.msk [vmem:[%s2180_s17 + $0x58] sm:$0xf] %vm1443_vm1, %v1795_v60  ;;  %1502 = vst.msk [vmem:[%s2180_s17 + $0xe8] sm:$0xf] %vm1443_vm1, %v1831_v61  ;;  %v1106_v2 = vmax.f32 %v888_v62, 0.0  ;;  %v1142_v3 = vmax.f32 %v1032_v63, 0.0 }
 0x150   : > { %v892_v4 = vpop.f32.mrf.mxu0  ;;  %v1036_v5 = vpop.f32.mrf.mxu1 }
 0x151   : > { %v1796_v6 = vpack.c.bf16 %v1106_v2, %v1106_v2  ;;  %v1832_v7 = vpack.c.bf16 %v1142_v3, %v1142_v3  ;;  %v893_v8 = vadd.f32 %v2172_v18, %v892_v4  ;;  %v1037_v9 = vadd.f32 %v2172_v18, %v1036_v5 }
 0x152   : > { %v894_v10 = vpop.f32.mrf.mxu0  ;;  %v1038_v11 = vpop.f32.mrf.mxu1 }
 0x153   : > { %1467 = vst.msk [vmem:[%s2180_s17 + $0x5c] sm:$0xf] %vm1443_vm1, %v1796_v6  ;;  %1503 = vst.msk [vmem:[%s2180_s17 + $0xec] sm:$0xf] %vm1443_vm1, %v1832_v7  ;;  %v1107_v12 = vmax.f32 %v893_v8, 0.0  ;;  %v1143_v13 = vmax.f32 %v1037_v9, 0.0 }
 0x154   : > { %v895_v14 = vpop.f32.mrf.mxu0  ;;  %v1039_v15 = vpop.f32.mrf.mxu1 }
 0x155   : > { %v1797_v16 = vpack.c.bf16 %v1107_v12, %v1107_v12  ;;  %v1833_v17 = vpack.c.bf16 %v1143_v13, %v1143_v13  ;;  %v896_v19 = vadd.f32 %v2172_v18, %v895_v14  ;;  %v1040_v20 = vadd.f32 %v2172_v18, %v1039_v15 }
 0x156   : > { %v897_v21 = vpop.f32.mrf.mxu0  ;;  %v1041_v22 = vpop.f32.mrf.mxu1 }
 0x157   : > { %1468 = vst.msk [vmem:[%s2180_s17 + $0x60] sm:$0xf] %vm1443_vm1, %v1797_v16  ;;  %1504 = vst.msk [vmem:[%s2180_s17 + $0xf0] sm:$0xf] %vm1443_vm1, %v1833_v17  ;;  %v1108_v23 = vmax.f32 %v896_v19, 0.0  ;;  %v1144_v24 = vmax.f32 %v1040_v20, 0.0 }
 0x158   : > { %v900_v25 = vpop.f32.mrf.mxu0  ;;  %v1044_v26 = vpop.f32.mrf.mxu1 }
 0x159   : > { %v1798_v27 = vpack.c.bf16 %v1108_v23, %v1108_v23  ;;  %v1834_v28 = vpack.c.bf16 %v1144_v24, %v1144_v24  ;;  %v901_v29 = vadd.f32 %v2172_v18, %v900_v25  ;;  %v1045_v30 = vadd.f32 %v2172_v18, %v1044_v26 }
 0x15a   : > { %v902_v31 = vpop.f32.mrf.mxu0  ;;  %v1046_v32 = vpop.f32.mrf.mxu1 }
 0x15b   : > { %1469 = vst.msk [vmem:[%s2180_s17 + $0x64] sm:$0xf] %vm1443_vm1, %v1798_v27  ;;  %1505 = vst.msk [vmem:[%s2180_s17 + $0xf4] sm:$0xf] %vm1443_vm1, %v1834_v28  ;;  %v1109_v33 = vmax.f32 %v901_v29, 0.0  ;;  %v1145_v34 = vmax.f32 %v1045_v30, 0.0 }
 0x15c   : > { %v903_v35 = vpop.f32.mrf.mxu0  ;;  %v1047_v36 = vpop.f32.mrf.mxu1 }
 0x15d   : > { %v1799_v37 = vpack.c.bf16 %v1109_v33, %v1109_v33  ;;  %v1835_v38 = vpack.c.bf16 %v1145_v34, %v1145_v34  ;;  %v904_v39 = vadd.f32 %v2172_v18, %v903_v35  ;;  %v1048_v40 = vadd.f32 %v2172_v18, %v1047_v36 }
 0x15e   : > { %v905_v41 = vpop.f32.mrf.mxu0  ;;  %v1049_v42 = vpop.f32.mrf.mxu1 }
 0x15f   : > { %1470 = vst.msk [vmem:[%s2180_s17 + $0x68] sm:$0xf] %vm1443_vm1, %v1799_v37  ;;  %1506 = vst.msk [vmem:[%s2180_s17 + $0xf8] sm:$0xf] %vm1443_vm1, %v1835_v38  ;;  %v1110_v43 = vmax.f32 %v904_v39, 0.0  ;;  %v1146_v44 = vmax.f32 %v1048_v40, 0.0 }
 0x160   : > { %v908_v45 = vpop.f32.mrf.mxu0  ;;  %v1052_v46 = vpop.f32.mrf.mxu1 }
 0x161   : > { %v1800_v47 = vpack.c.bf16 %v1110_v43, %v1110_v43  ;;  %v1836_v48 = vpack.c.bf16 %v1146_v44, %v1146_v44  ;;  %v909_v49 = vadd.f32 %v2172_v18, %v908_v45  ;;  %v1053_v50 = vadd.f32 %v2172_v18, %v1052_v46 }
 0x162   : > { %v910_v51 = vpop.f32.mrf.mxu0  ;;  %v1054_v52 = vpop.f32.mrf.mxu1 }
 0x163   : > { %1471 = vst.msk [vmem:[%s2180_s17 + $0x6c] sm:$0xf] %vm1443_vm1, %v1800_v47  ;;  %1507 = vst.msk [vmem:[%s2180_s17 + $0xfc] sm:$0xf] %vm1443_vm1, %v1836_v48  ;;  %v1111_v53 = vmax.f32 %v909_v49, 0.0  ;;  %v1147_v54 = vmax.f32 %v1053_v50, 0.0 }
 0x164   : > { %v911_v55 = vpop.f32.mrf.mxu0  ;;  %v1055_v56 = vpop.f32.mrf.mxu1 }
 0x165   : > { %v1801_v57 = vpack.c.bf16 %v1111_v53, %v1111_v53  ;;  %v1837_v58 = vpack.c.bf16 %v1147_v54, %v1147_v54  ;;  %v912_v59 = vadd.f32 %v2172_v18, %v911_v55  ;;  %v1056_v60 = vadd.f32 %v2172_v18, %v1055_v56 }
 0x166   : > { %v913_v61 = vpop.f32.mrf.mxu0  ;;  %v1057_v62 = vpop.f32.mrf.mxu1 }
 0x167   : > { %1472 = vst.msk [vmem:[%s2180_s17 + $0x70] sm:$0xf] %vm1443_vm1, %v1801_v57  ;;  %1508 = vst.msk [vmem:[%s2180_s17 + $0x100] sm:$0xf] %vm1443_vm1, %v1837_v58  ;;  %v1112_v63 = vmax.f32 %v912_v59, 0.0  ;;  %v1148_v0 = vmax.f32 %v1056_v60, 0.0 }
 0x168   : > { %v916_v1 = vpop.f32.mrf.mxu0  ;;  %v1060_v2 = vpop.f32.mrf.mxu1 }
 0x169   : > { %v1802_v3 = vpack.c.bf16 %v1112_v63, %v1112_v63  ;;  %v1838_v4 = vpack.c.bf16 %v1148_v0, %v1148_v0  ;;  %v917_v5 = vadd.f32 %v2172_v18, %v916_v1  ;;  %v1061_v6 = vadd.f32 %v2172_v18, %v1060_v2 }
 0x16a   : > { %v918_v7 = vpop.f32.mrf.mxu0  ;;  %v1062_v8 = vpop.f32.mrf.mxu1 }
 0x16b   : > { %1473 = vst.msk [vmem:[%s2180_s17 + $0x74] sm:$0xf] %vm1443_vm1, %v1802_v3  ;;  %1509 = vst.msk [vmem:[%s2180_s17 + $0x104] sm:$0xf] %vm1443_vm1, %v1838_v4  ;;  %v1113_v9 = vmax.f32 %v917_v5, 0.0  ;;  %v1149_v10 = vmax.f32 %v1061_v6, 0.0 }
 0x16c   : > { %v919_v11 = vpop.f32.mrf.mxu0  ;;  %v1063_v12 = vpop.f32.mrf.mxu1 }
 0x16d   : > { %v1803_v13 = vpack.c.bf16 %v1113_v9, %v1113_v9  ;;  %v1839_v14 = vpack.c.bf16 %v1149_v10, %v1149_v10  ;;  %v920_v15 = vadd.f32 %v2172_v18, %v919_v11  ;;  %v1064_v16 = vadd.f32 %v2172_v18, %v1063_v12 }
 0x16e   : > { %v921_v17 = vpop.f32.mrf.mxu0  ;;  %v1065_v19 = vpop.f32.mrf.mxu1 }
 0x16f   : > { %1474 = vst.msk [vmem:[%s2180_s17 + $0x78] sm:$0xf] %vm1443_vm1, %v1803_v13  ;;  %1510 = vst.msk [vmem:[%s2180_s17 + $0x108] sm:$0xf] %vm1443_vm1, %v1839_v14  ;;  %v1114_v20 = vmax.f32 %v920_v15, 0.0  ;;  %v1150_v21 = vmax.f32 %v1064_v16, 0.0 }
 0x170   : > { %v924_v22 = vpop.f32.mrf.mxu0  ;;  %v1068_v23 = vpop.f32.mrf.mxu1 }
 0x171   : > { %v1804_v24 = vpack.c.bf16 %v1114_v20, %v1114_v20  ;;  %v1840_v25 = vpack.c.bf16 %v1150_v21, %v1150_v21  ;;  %v925_v26 = vadd.f32 %v2172_v18, %v924_v22  ;;  %v1069_v27 = vadd.f32 %v2172_v18, %v1068_v23 }
 0x172   : > { %v926_v28 = vpop.f32.mrf.mxu0  ;;  %v1070_v29 = vpop.f32.mrf.mxu1 }
 0x173   : > { %1475 = vst.msk [vmem:[%s2180_s17 + $0x7c] sm:$0xf] %vm1443_vm1, %v1804_v24  ;;  %1511 = vst.msk [vmem:[%s2180_s17 + $0x10c] sm:$0xf] %vm1443_vm1, %v1840_v25  ;;  %v1115_v30 = vmax.f32 %v925_v26, 0.0  ;;  %v1151_v31 = vmax.f32 %v1069_v27, 0.0 }
 0x174   : > { %v927_v32 = vpop.f32.mrf.mxu0  ;;  %v1071_v33 = vpop.f32.mrf.mxu1 }
 0x175   : > { %v1805_v34 = vpack.c.bf16 %v1115_v30, %v1115_v30  ;;  %v1841_v35 = vpack.c.bf16 %v1151_v31, %v1151_v31  ;;  %v928_v36 = vadd.f32 %v2172_v18, %v927_v32  ;;  %v1072_v37 = vadd.f32 %v2172_v18, %v1071_v33 }
 0x176   : > { %v929_v38 = vpop.f32.mrf.mxu0  ;;  %v1073_v39 = vpop.f32.mrf.mxu1 }
 0x177   : > { %1476 = vst.msk [vmem:[%s2180_s17 + $0x80] sm:$0xf] %vm1443_vm1, %v1805_v34  ;;  %1512 = vst.msk [vmem:[%s2180_s17 + $0x110] sm:$0xf] %vm1443_vm1, %v1841_v35  ;;  %v1116_v40 = vmax.f32 %v928_v36, 0.0  ;;  %v1152_v41 = vmax.f32 %v1072_v37, 0.0 }
 0x178   : > { %v932_v42 = vpop.f32.mrf.mxu0  ;;  %v1076_v43 = vpop.f32.mrf.mxu1 }
 0x179   : > { %v1806_v44 = vpack.c.bf16 %v1116_v40, %v1116_v40  ;;  %v1842_v45 = vpack.c.bf16 %v1152_v41, %v1152_v41  ;;  %v933_v46 = vadd.f32 %v2172_v18, %v932_v42  ;;  %v1077_v47 = vadd.f32 %v2172_v18, %v1076_v43 }
 0x17a   : > { %v934_v48 = vpop.f32.mrf.mxu0  ;;  %v1078_v49 = vpop.f32.mrf.mxu1 }
 0x17b   : > { %1477 = vst.msk [vmem:[%s2180_s17 + $0x84] sm:$0xf] %vm1443_vm1, %v1806_v44  ;;  %1513 = vst.msk [vmem:[%s2180_s17 + $0x114] sm:$0xf] %vm1443_vm1, %v1842_v45  ;;  %v1117_v50 = vmax.f32 %v933_v46, 0.0  ;;  %v1153_v51 = vmax.f32 %v1077_v47, 0.0 }
 0x17c   : > { %v935_v52 = vpop.f32.mrf.mxu0  ;;  %v1079_v53 = vpop.f32.mrf.mxu1 }
 0x17d   : > { %v1807_v54 = vpack.c.bf16 %v1117_v50, %v1117_v50  ;;  %v1843_v55 = vpack.c.bf16 %v1153_v51, %v1153_v51  ;;  %v936_v56 = vadd.f32 %v2172_v18, %v935_v52  ;;  %v1080_v57 = vadd.f32 %v2172_v18, %v1079_v53 }
 0x17e   : > { %v937_v58 = vpop.f32.mrf.mxu0  ;;  %v1081_v59 = vpop.f32.mrf.mxu1 }
 0x17f   : > { %1478 = vst.msk [vmem:[%s2180_s17 + $0x88] sm:$0xf] %vm1443_vm1, %v1807_v54  ;;  %1514 = vst.msk [vmem:[%s2180_s17 + $0x118] sm:$0xf] %vm1443_vm1, %v1843_v55  ;;  %v1118_v60 = vmax.f32 %v936_v56, 0.0  ;;  %v1154_v61 = vmax.f32 %v1080_v57, 0.0 }
 0x181   : > { %v1808_v62 = vpack.c.bf16 %v1118_v60, %v1118_v60  ;;  %v1844_v63 = vpack.c.bf16 %v1154_v61, %v1154_v61 }
 0x183   : > { %1479 = vst.msk [vmem:[%s2180_s17 + $0x8c] sm:$0xf] %vm1443_vm1, %v1808_v62  ;;  %1515 = vst.msk [vmem:[%s2180_s17 + $0x11c] sm:$0xf] %vm1443_vm1, %v1844_v63 }
 0x184 PF: > { %s13_s12 = sadd.s32 1, %s1995_s12  }
 0x185   : > { %p10_p4 = scmp.ge.s32.totalorder %s13_s12, 4  }
 0x187   :  { %12 = sbr.rel (!%p10_p4) target bundleno = 1 (0x1), region = 62 }

// kernel: actor_forward.6
= control target key start
LH: loop header
LB: loop body
LE: loop exit
PB: predicated region body
PF: predicated region fallthrough
CT: control target
= control target key end

     0   :  { %v1967_v0 = vmov 0   ;;  %vm1070_vm0 = vcmask 523264   ;;  %vm1604_vm1 = vcmask 519168   ;;  %s3063_s1 = inlined_call_operand.vmem [shape: bf16[512,64], index: 1, kind: input, shape index: {}]   ;;  %s3064_s0 = inlined_call_operand.vmem [shape: bf16[288,512], index: 0, kind: input, shape index: {}]   ;;  %s3065_s2 = inlined_call_operand.vmem [shape: f32[1,64], index: 2, kind: input, shape index: {}]   ;;  %s3066_s3 = inlined_call_operand.vmem [shape: f32[1,64], index: 3, kind: input, shape index: {}]   ;;  %s3067_s4 = inlined_call_operand.vmem [shape: f32[1,64], index: 4, kind: input, shape index: {}]   ;;  %s3068_s5 = inlined_call_operand.vmem [shape: bf16[288,64], index: 5, kind: output, shape index: {}]  }
   0x1   :  { %716 = vmatprep.subr.bf16.mxu0 %v1967_v0  ;;  %893 = vmatprep.subr.bf16.mxu1 %v1967_v0  ;;  %v1825_v1 = vld [vmem:[%s3063_s1 + $0x38] sm:$0xff]   ;;  %v1827_v3 = vld [vmem:[%s3063_s1 + $0x30] sm:$0xff]   ;;  %v1829_v5 = vld [vmem:[%s3063_s1 + $0x28] sm:$0xff]  }
   0x2   :  { %v1826_v2 = vld [vmem:[%s3063_s1 + $0xb8] sm:$0xff]   ;;  %717 = vmatpush1.bf16.msra.mxu0 %v1825_v1  ;;  %v1828_v4 = vld [vmem:[%s3063_s1 + $0xb0] sm:$0xff]   ;;  %v1830_v6 = vld [vmem:[%s3063_s1 + $0xa8] sm:$0xff]  }
   0x3   :  { %894 = vmatpush1.bf16.msra.mxu1 %v1826_v2  ;;  %718 = vmatprep.subr.bf16.mxu0 %v1967_v0  ;;  %v1831_v7 = vld [vmem:[%s3063_s1 + $0x20] sm:$0xff]   ;;  %v1833_v9 = vld [vmem:[%s3063_s1 + $0x18] sm:$0xff]   ;;  %v1835_v11 = vld [vmem:[%s3063_s1 + $0x10] sm:$0xff]  }
   0x4   :  { %895 = vmatprep.subr.bf16.mxu1 %v1967_v0  ;;  %v1832_v8 = vld [vmem:[%s3063_s1 + $0xa0] sm:$0xff]   ;;  %v1834_v10 = vld [vmem:[%s3063_s1 + $0x98] sm:$0xff]   ;;  %v1836_v12 = vld [vmem:[%s3063_s1 + $0x90] sm:$0xff]  }
   0x5   :  { %v1837_v13 = vld [vmem:[%s3063_s1 + $0x8] sm:$0xff]   ;;  %v1839_v15 = vld [vmem:[%s3063_s1] sm:$0xff]   ;;  %v1841_v17 = vld [vmem:[%s3063_s1 + $0x78] sm:$0xff]  }
   0x6   :  { %719 = vmatpush1.bf16.msra.mxu0 %v1827_v3  ;;  %v1838_v14 = vld [vmem:[%s3063_s1 + $0x88] sm:$0xff]   ;;  %v1840_v16 = vld [vmem:[%s3063_s1 + $0x80] sm:$0xff]   ;;  %v1842_v18 = vld [vmem:[%s3063_s1 + $0xf8] sm:$0xff]  }
   0x7   :  { %896 = vmatpush1.bf16.msra.mxu1 %v1828_v4  ;;  %720 = vmatprep.subr.bf16.mxu0 %v1967_v0  ;;  %v1859_v19 = vld [vmem:[%s3064_s0 + $0x4] ss:$16 sps:$4 sm:$0xff]   ;;  %v1862_v21 = vld [vmem:[%s3064_s0 + $0xc] ss:$16 sps:$4 sm:$0xff]   ;;  %v1857_v35 = vld [vmem:[%s3064_s0] ss:$16 sps:$4 sm:$0xff]  }
   0x8   :  { %897 = vmatprep.subr.bf16.mxu1 %v1967_v0  ;;  %v1843_v20 = vld [vmem:[%s3063_s1 + $0x70] sm:$0xff]   ;;  %748 = vmatprep.mubr.bf16.mxu0 %v1859_v19  ;;  %v1845_v23 = vld [vmem:[%s3063_s1 + $0x68] sm:$0xff]   ;;  %v1847_v25 = vld [vmem:[%s3063_s1 + $0x60] sm:$0xff]  }
   0x9   :  { %v1844_v22 = vld [vmem:[%s3063_s1 + $0xf0] sm:$0xff]   ;;  %925 = vmatprep.mubr.bf16.mxu1 %v1862_v21  ;;  %v1846_v24 = vld [vmem:[%s3063_s1 + $0xe8] sm:$0xff]   ;;  %v1848_v26 = vld [vmem:[%s3063_s1 + $0xe0] sm:$0xff]  }
   0xa   :  { %721 = vmatpush1.bf16.msra.mxu0 %v1829_v5  ;;  %v1849_v27 = vld [vmem:[%s3063_s1 + $0x58] sm:$0xff]   ;;  %v1851_v29 = vld [vmem:[%s3063_s1 + $0x50] sm:$0xff]   ;;  %v1853_v31 = vld [vmem:[%s3063_s1 + $0x48] sm:$0xff]  }
   0xb   :  { %898 = vmatpush1.bf16.msra.mxu1 %v1830_v6  ;;  %722 = vmatprep.subr.bf16.mxu0 %v1967_v0  ;;  %v1850_v28 = vld [vmem:[%s3063_s1 + $0xd8] sm:$0xff]   ;;  %v1852_v30 = vld [vmem:[%s3063_s1 + $0xd0] sm:$0xff]   ;;  %v1854_v32 = vld [vmem:[%s3063_s1 + $0xc8] sm:$0xff]  }
   0xc   :  { %899 = vmatprep.subr.bf16.mxu1 %v1967_v0  ;;  %v1855_v33 = vld [vmem:[%s3063_s1 + $0x40] sm:$0xff]   ;;  %v1860_v36 = vld [vmem:[%s3064_s0 + $0x8] ss:$16 sps:$4 sm:$0xff]   ;;  %v1865_v38 = vld [vmem:[%s3064_s0 + $0x2c] ss:$16 sps:$4 sm:$0xff]  }
   0xd   :  { %v1856_v34 = vld [vmem:[%s3063_s1 + $0xc0] sm:$0xff]   ;;  %v1868_v40 = vld [vmem:[%s3064_s0 + $0x28] ss:$16 sps:$4 sm:$0xff]   ;;  %v1871_v42 = vld [vmem:[%s3064_s0 + $0x4c] ss:$16 sps:$4 sm:$0xff]  }
   0xe   :  { %723 = vmatpush1.bf16.msra.mxu0 %v1831_v7  ;;  %v1863_v37 = vld [vmem:[%s3064_s0 + $0x24] ss:$16 sps:$4 sm:$0xff]   ;;  %v1867_v39 = vld [vmem:[%s3064_s0 + $0x20] ss:$16 sps:$4 sm:$0xff]   ;;  %v1874_v44 = vld [vmem:[%s3064_s0 + $0x48] ss:$16 sps:$4 sm:$0xff]  }
   0xf   :  { %900 = vmatpush1.bf16.msra.mxu1 %v1832_v8  ;;  %724 = vmatprep.subr.bf16.mxu0 %v1967_v0  ;;  %v1869_v41 = vld [vmem:[%s3064_s0 + $0x44] ss:$16 sps:$4 sm:$0xff]   ;;  %v1873_v43 = vld [vmem:[%s3064_s0 + $0x40] ss:$16 sps:$4 sm:$0xff]   ;;  %v1877_v46 = vld [vmem:[%s3064_s0 + $0x6c] ss:$16 sps:$4 sm:$0xff]  }
  0x10   :  { %901 = vmatprep.subr.bf16.mxu1 %v1967_v0  ;;  %v1875_v45 = vld [vmem:[%s3064_s0 + $0x64] ss:$16 sps:$4 sm:$0xff]   ;;  %v1879_v47 = vld [vmem:[%s3064_s0 + $0x60] ss:$16 sps:$4 sm:$0xff]   ;;  %v1880_v48 = vld [vmem:[%s3064_s0 + $0x68] ss:$16 sps:$4 sm:$0xff]  }
  0x11   :  { %v1881_v49 = vld [vmem:[%s3064_s0 + $0x84] ss:$16 sps:$4 sm:$0xff]   ;;  %v1883_v50 = vld [vmem:[%s3064_s0 + $0x8c] ss:$16 sps:$4 sm:$0xff]   ;;  %v1885_v51 = vld [vmem:[%s3064_s0 + $0x80] ss:$16 sps:$4 sm:$0xff]  }
  0x12   :  { %725 = vmatpush1.bf16.msra.mxu0 %v1833_v9  ;;  %v1886_v52 = vld [vmem:[%s3064_s0 + $0x88] ss:$16 sps:$4 sm:$0xff]   ;;  %v1887_v53 = vld [vmem:[%s3064_s0 + $0xa4] ss:$16 sps:$4 sm:$0xff]   ;;  %v1889_v54 = vld [vmem:[%s3064_s0 + $0xac] ss:$16 sps:$4 sm:$0xff]  }
  0x13   :  { %902 = vmatpush1.bf16.msra.mxu1 %v1834_v10  ;;  %726 = vmatprep.subr.bf16.mxu0 %v1967_v0  ;;  %v1891_v55 = vld [vmem:[%s3064_s0 + $0xa0] ss:$16 sps:$4 sm:$0xff]   ;;  %v1892_v56 = vld [vmem:[%s3064_s0 + $0xa8] ss:$16 sps:$4 sm:$0xff]   ;;  %v1893_v57 = vld [vmem:[%s3064_s0 + $0xc4] ss:$16 sps:$4 sm:$0xff]  }
  0x14   :  { %903 = vmatprep.subr.bf16.mxu1 %v1967_v0  ;;  %v1895_v58 = vld [vmem:[%s3064_s0 + $0xcc] ss:$16 sps:$4 sm:$0xff]   ;;  %v1897_v59 = vld [vmem:[%s3064_s0 + $0xc0] ss:$16 sps:$4 sm:$0xff]   ;;  %v1898_v60 = vld [vmem:[%s3064_s0 + $0xc8] ss:$16 sps:$4 sm:$0xff]  }
  0x15   :  { %v1899_v61 = vld [vmem:[%s3064_s0 + $0xe4] ss:$16 sps:$4 sm:$0xff]   ;;  %v1901_v62 = vld [vmem:[%s3064_s0 + $0xec] ss:$16 sps:$4 sm:$0xff]   ;;  %v1903_v63 = vld [vmem:[%s3064_s0 + $0xe0] ss:$16 sps:$4 sm:$0xff]  }
  0x16   :  { %727 = vmatpush1.bf16.msra.mxu0 %v1835_v11  ;;  %v1905_v1 = vld [vmem:[%s3064_s0 + $0x104] ss:$16 sps:$4 sm:$0xff]   ;;  %v1907_v2 = vld [vmem:[%s3064_s0 + $0x10c] ss:$16 sps:$4 sm:$0xff]   ;;  %v1909_v3 = vld [vmem:[%s3064_s0 + $0x100] ss:$16 sps:$4 sm:$0xff]  }
  0x17   :  { %904 = vmatpush1.bf16.msra.mxu1 %v1836_v12  ;;  %728 = vmatprep.subr.bf16.mxu0 %v1967_v0  ;;  %v1910_v4 = vld [vmem:[%s3064_s0 + $0x108] ss:$16 sps:$4 sm:$0xff]   ;;  %v1911_v5 = vld [vmem:[%s3064_s0 + $0x124] ss:$16 sps:$4 sm:$0xff]   ;;  %v1913_v6 = vld [vmem:[%s3064_s0 + $0x12c] ss:$16 sps:$4 sm:$0xff]  }
  0x18   :  { %905 = vmatprep.subr.bf16.mxu1 %v1967_v0  ;;  %v1915_v7 = vld [vmem:[%s3064_s0 + $0x120] ss:$16 sps:$4 sm:$0xff]   ;;  %v1916_v8 = vld [vmem:[%s3064_s0 + $0x128] ss:$16 sps:$4 sm:$0xff]   ;;  %v1917_v9 = vld [vmem:[%s3064_s0 + $0x144] ss:$16 sps:$4 sm:$0xff]  }
  0x19   :  { %v1919_v10 = vld [vmem:[%s3064_s0 + $0x14c] ss:$16 sps:$4 sm:$0xff]   ;;  %v1921_v11 = vld [vmem:[%s3064_s0 + $0x140] ss:$16 sps:$4 sm:$0xff]   ;;  %v1922_v12 = vld [vmem:[%s3064_s0 + $0x148] ss:$16 sps:$4 sm:$0xff]  }
  0x1a   :  { %729 = vmatpush1.bf16.msra.mxu0 %v1837_v13  ;;  %v1923_v13 = vld [vmem:[%s3064_s0 + $0x164] ss:$16 sps:$4 sm:$0xff]   ;;  %v1933_v19 = vld [vmem:[%s3064_s0 + $0x180] ss:$16 sps:$4 sm:$0xff]  }
  0x1b   :  { %906 = vmatpush1.bf16.msra.mxu1 %v1838_v14  ;;  %730 = vmatprep.subr.bf16.mxu0 %v1967_v0  ;;  %v1925_v14 = vld [vmem:[%s3064_s0 + $0x16c] ss:$16 sps:$4 sm:$0xff]   ;;  %v1935_v21 = vld [vmem:[%s3064_s0 + $0x1a4] ss:$16 sps:$4 sm:$0xff]  }
  0x1c   :  { %907 = vmatprep.subr.bf16.mxu1 %v1967_v0 }
  0x1e   :  { %731 = vmatpush1.bf16.msra.mxu0 %v1839_v15  ;;  %v1927_v15 = vld [vmem:[%s3064_s0 + $0x160] ss:$16 sps:$4 sm:$0xff]  }
  0x1f   :  { %908 = vmatpush1.bf16.msra.mxu1 %v1840_v16  ;;  %732 = vmatprep.subr.bf16.mxu0 %v1967_v0  ;;  %v1928_v16 = vld [vmem:[%s3064_s0 + $0x168] ss:$16 sps:$4 sm:$0xff]  }
  0x20   :  { %909 = vmatprep.subr.bf16.mxu1 %v1967_v0 }
  0x22   :  { %733 = vmatpush2.bf16.msra.mxu0 %v1841_v17  ;;  %v1929_v17 = vld [vmem:[%s3064_s0 + $0x184] ss:$16 sps:$4 sm:$0xff]  }
  0x23   :  { %910 = vmatpush2.bf16.msra.mxu1 %v1842_v18  ;;  %734 = vmatprep.subr.bf16.mxu0 %v1967_v0  ;;  %v1931_v18 = vld [vmem:[%s3064_s0 + $0x18c] ss:$16 sps:$4 sm:$0xff]  }
  0x24   :  { %911 = vmatprep.subr.bf16.mxu1 %v1967_v0 }
  0x26   :  { %735 = vmatpush2.bf16.msra.mxu0 %v1843_v20  ;;  %v1934_v20 = vld [vmem:[%s3064_s0 + $0x188] ss:$16 sps:$4 sm:$0xff]  }
  0x27   :  { %912 = vmatpush2.bf16.msra.mxu1 %v1844_v22  ;;  %736 = vmatprep.subr.bf16.mxu0 %v1967_v0  ;;  %v1937_v22 = vld [vmem:[%s3064_s0 + $0x1ac] ss:$16 sps:$4 sm:$0xff]  }
  0x28   :  { %913 = vmatprep.subr.bf16.mxu1 %v1967_v0 }
  0x2a   :  { %737 = vmatpush2.bf16.msra.mxu0 %v1845_v23  ;;  %v1939_v23 = vld [vmem:[%s3064_s0 + $0x1a0] ss:$16 sps:$4 sm:$0xff]  }
  0x2b   :  { %914 = vmatpush2.bf16.msra.mxu1 %v1846_v24  ;;  %738 = vmatprep.subr.bf16.mxu0 %v1967_v0  ;;  %v1940_v24 = vld [vmem:[%s3064_s0 + $0x1a8] ss:$16 sps:$4 sm:$0xff]  }
  0x2c   :  { %915 = vmatprep.subr.bf16.mxu1 %v1967_v0 }
  0x2e   :  { %739 = vmatpush2.bf16.msra.mxu0 %v1847_v25  ;;  %v1941_v25 = vld [vmem:[%s3064_s0 + $0x1c4] ss:$16 sps:$4 sm:$0xff]  }
  0x2f   :  { %916 = vmatpush2.bf16.msra.mxu1 %v1848_v26  ;;  %740 = vmatprep.subr.bf16.mxu0 %v1967_v0  ;;  %v1943_v26 = vld [vmem:[%s3064_s0 + $0x1cc] ss:$16 sps:$4 sm:$0xff]  }
  0x30   :  { %917 = vmatprep.subr.bf16.mxu1 %v1967_v0 }
  0x32   :  { %741 = vmatpush2.bf16.msra.mxu0 %v1849_v27  ;;  %v1945_v27 = vld [vmem:[%s3064_s0 + $0x1c0] ss:$16 sps:$4 sm:$0xff]  }
  0x33   :  { %918 = vmatpush2.bf16.msra.mxu1 %v1850_v28  ;;  %742 = vmatprep.subr.bf16.mxu0 %v1967_v0  ;;  %v1946_v28 = vld [vmem:[%s3064_s0 + $0x1c8] ss:$16 sps:$4 sm:$0xff]  }
  0x34   :  { %919 = vmatprep.subr.bf16.mxu1 %v1967_v0 }
  0x36   :  { %743 = vmatpush2.bf16.msra.mxu0 %v1851_v29  ;;  %v1947_v29 = vld [vmem:[%s3064_s0 + $0x1e4] ss:$16 sps:$4 sm:$0xff]  }
  0x37   :  { %920 = vmatpush2.bf16.msra.mxu1 %v1852_v30  ;;  %744 = vmatprep.subr.bf16.mxu0 %v1967_v0  ;;  %v1949_v30 = vld [vmem:[%s3064_s0 + $0x1ec] ss:$16 sps:$4 sm:$0xff]  }
  0x38   :  { %921 = vmatprep.subr.bf16.mxu1 %v1967_v0 }
  0x3a   :  { %745 = vmatpush2.bf16.msra.mxu0 %v1853_v31  ;;  %v1951_v31 = vld [vmem:[%s3064_s0 + $0x1e0] ss:$16 sps:$4 sm:$0xff]  }
  0x3b   :  { %922 = vmatpush2.bf16.msra.mxu1 %v1854_v32  ;;  %746 = vmatprep.subr.bf16.mxu0 %v1967_v0  ;;  %v1952_v32 = vld [vmem:[%s3064_s0 + $0x1e8] ss:$16 sps:$4 sm:$0xff]  }
  0x3c   :  { %923 = vmatprep.subr.bf16.mxu1 %v1967_v0  ;;  %v1904_v0 = vld [vmem:[%s3064_s0 + $0xe8] ss:$16 sps:$4 sm:$0xff]  }
  0x3e   :  { %747 = vmatpush2.bf16.msra.mxu0 %v1855_v33  ;;  %v1953_v33 = vld [vmem:[%s3064_s0 + $0x204] ss:$16 sps:$4 sm:$0xff]  }
  0x3f   :  { %924 = vmatpush2.bf16.msra.mxu1 %v1856_v34  ;;  %v1955_v34 = vld [vmem:[%s3064_s0 + $0x20c] ss:$16 sps:$4 sm:$0xff]  }
  0x41   :  { %749 = vmatmul.mubr.bf16.vlgmr.msra.gmra.mxu0 %v1857_v35  ;;  %v1957_v35 = vld [vmem:[%s3064_s0 + $0x200] ss:$16 sps:$4 sm:$0xff]  }
  0x42   :  { %926 = vmatmul.mubr.bf16.vlgmr.msra.gmra.mxu1 %v1860_v36  ;;  %756 = vmatprep.mubr.bf16.mxu0 %v1863_v37  ;;  %v1958_v36 = vld [vmem:[%s3064_s0 + $0x208] ss:$16 sps:$4 sm:$0xff]   ;;  %v1959_v37 = vld [vmem:[%s3064_s0 + $0x224] ss:$16 sps:$4 sm:$0xff]  }
  0x43   :  { %933 = vmatprep.mubr.bf16.mxu1 %v1865_v38  ;;  %v1961_v38 = vld [vmem:[%s3064_s0 + $0x22c] ss:$16 sps:$4 sm:$0xff]  }
  0x49   :  { %757 = vmatmul.mubr.bf16.gmra.mxu0 %v1867_v39  ;;  %v1963_v39 = vld [vmem:[%s3064_s0 + $0x220] ss:$16 sps:$4 sm:$0xff]  }
  0x4a   :  { %934 = vmatmul.mubr.bf16.gmra.mxu1 %v1868_v40  ;;  %764 = vmatprep.mubr.bf16.mxu0 %v1869_v41  ;;  %v1964_v40 = vld [vmem:[%s3064_s0 + $0x228] ss:$16 sps:$4 sm:$0xff]   ;;  %v2345_v41 = vld [vmem:[%s3065_s2] ss:$0 sm:$0xff] }
  0x4b   :  { %941 = vmatprep.mubr.bf16.mxu1 %v1871_v42 }
  0x51   :  { %765 = vmatmul.mubr.bf16.gmra.mxu0 %v1873_v43 }
  0x52   :  { %942 = vmatmul.mubr.bf16.gmra.mxu1 %v1874_v44  ;;  %772 = vmatprep.mubr.bf16.mxu0 %v1875_v45 }
  0x53   :  { %949 = vmatprep.mubr.bf16.mxu1 %v1877_v46 }
  0x59   :  { %773 = vmatmul.mubr.bf16.gmra.mxu0 %v1879_v47 }
  0x5a   :  { %950 = vmatmul.mubr.bf16.gmra.mxu1 %v1880_v48  ;;  %780 = vmatprep.mubr.bf16.mxu0 %v1881_v49 }
  0x5b   :  { %957 = vmatprep.mubr.bf16.mxu1 %v1883_v50 }
  0x61   :  { %781 = vmatmul.mubr.bf16.gmra.mxu0 %v1885_v51 }
  0x62   :  { %958 = vmatmul.mubr.bf16.gmra.mxu1 %v1886_v52  ;;  %788 = vmatprep.mubr.bf16.mxu0 %v1887_v53 }
  0x63   :  { %965 = vmatprep.mubr.bf16.mxu1 %v1889_v54 }
  0x69   :  { %789 = vmatmul.mubr.bf16.gmra.mxu0 %v1891_v55 }
  0x6a   :  { %966 = vmatmul.mubr.bf16.gmra.mxu1 %v1892_v56  ;;  %796 = vmatprep.mubr.bf16.mxu0 %v1893_v57 }
  0x6b   :  { %973 = vmatprep.mubr.bf16.mxu1 %v1895_v58 }
  0x71   :  { %797 = vmatmul.mubr.bf16.gmra.mxu0 %v1897_v59 }
  0x72   :  { %974 = vmatmul.mubr.bf16.gmra.mxu1 %v1898_v60  ;;  %804 = vmatprep.mubr.bf16.mxu0 %v1899_v61 }
  0x73   :  { %981 = vmatprep.mubr.bf16.mxu1 %v1901_v62 }
  0x79   :  { %805 = vmatmul.mubr.bf16.gmra.mxu0 %v1903_v63 }
  0x7a   :  { %982 = vmatmul.mubr.bf16.gmra.mxu1 %v1904_v0  ;;  %812 = vmatprep.mubr.bf16.mxu0 %v1905_v1 }
  0x7b   :  { %989 = vmatprep.mubr.bf16.mxu1 %v1907_v2 }
  0x81   :  { %813 = vmatmul.mubr.bf16.gmra.mxu0 %v1909_v3 }
  0x82   :  { %990 = vmatmul.mubr.bf16.gmra.mxu1 %v1910_v4  ;;  %820 = vmatprep.mubr.bf16.mxu0 %v1911_v5 }
  0x83   :  { %997 = vmatprep.mubr.bf16.mxu1 %v1913_v6 }
  0x89   :  { %821 = vmatmul.mubr.bf16.gmra.mxu0 %v1915_v7 }
  0x8a   :  { %998 = vmatmul.mubr.bf16.gmra.mxu1 %v1916_v8  ;;  %828 = vmatprep.mubr.bf16.mxu0 %v1917_v9 }
  0x8b   :  { %1005 = vmatprep.mubr.bf16.mxu1 %v1919_v10 }
  0x91   :  { %829 = vmatmul.mubr.bf16.gmra.mxu0 %v1921_v11 }
  0x92   :  { %1006 = vmatmul.mubr.bf16.gmra.mxu1 %v1922_v12  ;;  %836 = vmatprep.mubr.bf16.mxu0 %v1923_v13 }
  0x93   :  { %1013 = vmatprep.mubr.bf16.mxu1 %v1925_v14 }
  0x99   :  { %837 = vmatmul.mubr.bf16.gmra.mxu0 %v1927_v15 }
  0x9a   :  { %1014 = vmatmul.mubr.bf16.gmra.mxu1 %v1928_v16  ;;  %844 = vmatprep.mubr.bf16.mxu0 %v1929_v17 }
  0x9b   :  { %1021 = vmatprep.mubr.bf16.mxu1 %v1931_v18 }
  0xa1   :  { %845 = vmatmul.mubr.bf16.gmra.mxu0 %v1933_v19 }
  0xa2   :  { %1022 = vmatmul.mubr.bf16.gmra.mxu1 %v1934_v20  ;;  %852 = vmatprep.mubr.bf16.mxu0 %v1935_v21 }
  0xa3   :  { %1029 = vmatprep.mubr.bf16.mxu1 %v1937_v22 }
  0xa9   :  { %853 = vmatmul.mubr.bf16.gmra.mxu0 %v1939_v23 }
  0xaa   :  { %1030 = vmatmul.mubr.bf16.gmra.mxu1 %v1940_v24  ;;  %860 = vmatprep.mubr.bf16.mxu0 %v1941_v25 }
  0xab   :  { %1037 = vmatprep.mubr.bf16.mxu1 %v1943_v26 }
  0xb1   :  { %861 = vmatmul.mubr.bf16.gmra.mxu0 %v1945_v27 }
  0xb2   :  { %1038 = vmatmul.mubr.bf16.gmra.mxu1 %v1946_v28  ;;  %868 = vmatprep.mubr.bf16.mxu0 %v1947_v29 }
  0xb3   :  { %1045 = vmatprep.mubr.bf16.mxu1 %v1949_v30 }
  0xb9   :  { %869 = vmatmul.mubr.bf16.gmra.mxu0 %v1951_v31 }
  0xba   :  { %1046 = vmatmul.mubr.bf16.gmra.mxu1 %v1952_v32  ;;  %876 = vmatprep.mubr.bf16.mxu0 %v1953_v33 }
  0xbb   :  { %1053 = vmatprep.mubr.bf16.mxu1 %v1955_v34 }
  0xc1   :  { %877 = vmatmul.mubr.bf16.gmra.mxu0 %v1957_v35 }
  0xc2   :  { %1054 = vmatmul.mubr.bf16.gmra.mxu1 %v1958_v36  ;;  %884 = vmatprep.mubr.bf16.mxu0 %v1959_v37 }
  0xc3   :  { %1061 = vmatprep.mubr.bf16.mxu1 %v1961_v38 }
  0xc9   :  { %885 = vmatmul.mubr.bf16.gmra.mxu0 %v1963_v39 }
  0xca   :  { %1062 = vmatmul.mubr.bf16.gmra.mxu1 %v1964_v40 }
 0x101   :  { %v750_v42 = vpop.f32.mrf.mxu0 }
 0x102   :  { %v751_v43 = vadd.f32 %v2345_v41, %v750_v42  ;;  %v927_v44 = vpop.f32.mrf.mxu1 }
 0x103   :  { %v752_v45 = vpop.f32.mrf.mxu0 }
 0x104   :  { %v2348_v46 = vadd.f32 %v927_v44, %v751_v43  ;;  %v929_v47 = vpop.f32.mrf.mxu1 }
 0x105   :  { %v753_v48 = vpop.f32.mrf.mxu0 }
 0x106   :  { %v754_v49 = vadd.f32 %v2345_v41, %v753_v48  ;;  %v930_v50 = vpop.f32.mrf.mxu1 }
 0x107   :  { %v755_v51 = vpop.f32.mrf.mxu0 }
 0x108   :  { %v2351_v52 = vadd.f32 %v930_v50, %v754_v49  ;;  %v932_v53 = vpop.f32.mrf.mxu1 }
 0x109   :  { %v758_v54 = vpop.f32.mrf.mxu0 }
 0x10a   :  { %v759_v55 = vadd.f32 %v2345_v41, %v758_v54  ;;  %v935_v56 = vpop.f32.mrf.mxu1 }
 0x10b   :  { %v760_v57 = vpop.f32.mrf.mxu0 }
 0x10c   :  { %v2354_v58 = vadd.f32 %v935_v56, %v759_v55  ;;  %v937_v59 = vpop.f32.mrf.mxu1 }
 0x10d   :  { %v761_v60 = vpop.f32.mrf.mxu0 }
 0x10e   :  { %v762_v61 = vadd.f32 %v2345_v41, %v761_v60  ;;  %v938_v62 = vpop.f32.mrf.mxu1 }
 0x10f   :  { %v763_v63 = vpop.f32.mrf.mxu0 }
 0x110   :  { %v2357_v0 = vadd.f32 %v938_v62, %v762_v61  ;;  %v940_v1 = vpop.f32.mrf.mxu1 }
 0x111   :  { %v766_v2 = vpop.f32.mrf.mxu0 }
 0x112   :  { %v767_v3 = vadd.f32 %v2345_v41, %v766_v2  ;;  %v943_v4 = vpop.f32.mrf.mxu1 }
 0x113   :  { %v768_v5 = vpop.f32.mrf.mxu0 }
 0x114   :  { %v2360_v6 = vadd.f32 %v943_v4, %v767_v3  ;;  %v945_v7 = vpop.f32.mrf.mxu1 }
 0x115   :  { %v769_v8 = vpop.f32.mrf.mxu0 }
 0x116   :  { %v770_v9 = vadd.f32 %v2345_v41, %v769_v8  ;;  %v946_v10 = vpop.f32.mrf.mxu1 }
 0x117   :  { %v771_v11 = vpop.f32.mrf.mxu0 }
 0x118   :  { %v2363_v12 = vadd.f32 %v946_v10, %v770_v9  ;;  %v948_v13 = vpop.f32.mrf.mxu1 }
 0x119   :  { %v774_v14 = vpop.f32.mrf.mxu0 }
 0x11a   :  { %v775_v15 = vadd.f32 %v2345_v41, %v774_v14  ;;  %v951_v16 = vpop.f32.mrf.mxu1 }
 0x11b   :  { %v776_v17 = vpop.f32.mrf.mxu0 }
 0x11c   :  { %v2366_v18 = vadd.f32 %v951_v16, %v775_v15  ;;  %v953_v19 = vpop.f32.mrf.mxu1 }
 0x11d   :  { %v777_v20 = vpop.f32.mrf.mxu0 }
 0x11e   :  { %v778_v21 = vadd.f32 %v2345_v41, %v777_v20  ;;  %v954_v22 = vpop.f32.mrf.mxu1 }
 0x11f   :  { %v779_v23 = vpop.f32.mrf.mxu0 }
 0x120   :  { %v2369_v24 = vadd.f32 %v954_v22, %v778_v21  ;;  %v956_v25 = vpop.f32.mrf.mxu1 }
 0x121   :  { %v782_v26 = vpop.f32.mrf.mxu0 }
 0x122   :  { %v783_v27 = vadd.f32 %v2345_v41, %v782_v26  ;;  %v959_v28 = vpop.f32.mrf.mxu1 }
 0x123   :  { %v784_v29 = vpop.f32.mrf.mxu0 }
 0x124   :  { %v2372_v30 = vadd.f32 %v959_v28, %v783_v27  ;;  %v961_v31 = vpop.f32.mrf.mxu1 }
 0x125   :  { %v785_v32 = vpop.f32.mrf.mxu0 }
 0x126   :  { %v786_v33 = vadd.f32 %v2345_v41, %v785_v32  ;;  %v962_v34 = vpop.f32.mrf.mxu1 }
 0x127   :  { %v787_v35 = vpop.f32.mrf.mxu0 }
 0x128   :  { %v2375_v36 = vadd.f32 %v962_v34, %v786_v33  ;;  %v964_v37 = vpop.f32.mrf.mxu1 }
 0x129   :  { %v790_v38 = vpop.f32.mrf.mxu0  ;;  %v1072_v37 = vsel %vm1070_vm0, %v2351_v52, 0.0 }
 0x12a   :  { %v791_v39 = vadd.f32 %v2345_v41, %v790_v38  ;;  %v967_v40 = vpop.f32.mrf.mxu1 }
 0x12b   :  { %v792_v42 = vpop.f32.mrf.mxu0 }
 0x12c   :  { %v2378_v43 = vadd.f32 %v967_v40, %v791_v39  ;;  %v969_v44 = vpop.f32.mrf.mxu1  ;;  %v1071_v42 = vsel %vm1070_vm0, %v2348_v46, 0.0 }
 0x12d   :  { %v793_v45 = vpop.f32.mrf.mxu0  ;;  %v1074_v44 = vsel %vm1070_vm0, %v2354_v58, 0.0 }
 0x12e   :  { %v794_v47 = vadd.f32 %v2345_v41, %v793_v45  ;;  %v970_v48 = vpop.f32.mrf.mxu1 }
 0x12f   :  { %v795_v49 = vpop.f32.mrf.mxu0 }
 0x130   :  { %v2381_v50 = vadd.f32 %v970_v48, %v794_v47  ;;  %v972_v51 = vpop.f32.mrf.mxu1  ;;  %v1073_v48 = vadd.f32 %v1072_v37, %v1071_v42  ;;  %v1090_v37 = vsel %vm1070_vm0, %v2378_v43, 0.0 }
 0x131   :  { %v798_v53 = vpop.f32.mrf.mxu0  ;;  %v1076_v51 = vsel %vm1070_vm0, %v2357_v0, 0.0 }
 0x132   :  { %v799_v54 = vadd.f32 %v2345_v41, %v798_v53  ;;  %v975_v55 = vpop.f32.mrf.mxu1 }
 0x133   :  { %v800_v56 = vpop.f32.mrf.mxu0 }
 0x134   :  { %v2384_v57 = vadd.f32 %v975_v55, %v799_v54  ;;  %v977_v59 = vpop.f32.mrf.mxu1  ;;  %v1075_v55 = vadd.f32 %v1074_v44, %v1073_v48 }
 0x135   :  { %v801_v60 = vpop.f32.mrf.mxu0  ;;  %v1078_v59 = vsel %vm1070_vm0, %v2360_v6, 0.0 }
 0x136   :  { %v802_v61 = vadd.f32 %v2345_v41, %v801_v60  ;;  %v978_v62 = vpop.f32.mrf.mxu1 }
 0x137   :  { %v803_v63 = vpop.f32.mrf.mxu0 }
 0x138   :  { %v2387_v1 = vadd.f32 %v978_v62, %v802_v61  ;;  %v980_v2 = vpop.f32.mrf.mxu1  ;;  %v1077_v62 = vadd.f32 %v1076_v51, %v1075_v55 }
 0x139   :  { %v806_v3 = vpop.f32.mrf.mxu0  ;;  %v1080_v2 = vsel %vm1070_vm0, %v2363_v12, 0.0 }
 0x13a   :  { %v807_v4 = vadd.f32 %v2345_v41, %v806_v3  ;;  %v983_v5 = vpop.f32.mrf.mxu1 }
 0x13b   :  { %v808_v7 = vpop.f32.mrf.mxu0 }
 0x13c   :  { %v2390_v8 = vadd.f32 %v983_v5, %v807_v4  ;;  %v985_v9 = vpop.f32.mrf.mxu1  ;;  %v1079_v5 = vadd.f32 %v1078_v59, %v1077_v62 }
 0x13d   :  { %v809_v10 = vpop.f32.mrf.mxu0  ;;  %v1082_v9 = vsel %vm1070_vm0, %v2366_v18, 0.0 }
 0x13e   :  { %v810_v11 = vadd.f32 %v2345_v41, %v809_v10  ;;  %v986_v13 = vpop.f32.mrf.mxu1 }
 0x13f   :  { %v811_v14 = vpop.f32.mrf.mxu0 }
 0x140   :  { %v2393_v15 = vadd.f32 %v986_v13, %v810_v11  ;;  %v988_v16 = vpop.f32.mrf.mxu1  ;;  %v1081_v13 = vadd.f32 %v1080_v2, %v1079_v5  ;;  %v1098_v5 = vsel %vm1070_vm0, %v2390_v8, 0.0 }
 0x141   :  { %v814_v17 = vpop.f32.mrf.mxu0  ;;  %v1084_v16 = vsel %vm1070_vm0, %v2369_v24, 0.0 }
 0x142   :  { %v815_v19 = vadd.f32 %v2345_v41, %v814_v17  ;;  %v991_v20 = vpop.f32.mrf.mxu1 }
 0x143   :  { %v816_v21 = vpop.f32.mrf.mxu0 }
 0x144   :  { %v2396_v22 = vadd.f32 %v991_v20, %v815_v19  ;;  %v993_v23 = vpop.f32.mrf.mxu1  ;;  %v1083_v20 = vadd.f32 %v1082_v9, %v1081_v13 }
 0x145   :  { %v817_v25 = vpop.f32.mrf.mxu0  ;;  %v1086_v23 = vsel %vm1070_vm0, %v2372_v30, 0.0 }
 0x146   :  { %v818_v26 = vadd.f32 %v2345_v41, %v817_v25  ;;  %v994_v27 = vpop.f32.mrf.mxu1 }
 0x147   :  { %v819_v28 = vpop.f32.mrf.mxu0 }
 0x148   :  { %v2399_v29 = vadd.f32 %v994_v27, %v818_v26  ;;  %v996_v31 = vpop.f32.mrf.mxu1  ;;  %v1085_v27 = vadd.f32 %v1084_v16, %v1083_v20 }
 0x149   :  { %v822_v32 = vpop.f32.mrf.mxu0  ;;  %v1088_v31 = vsel %vm1070_vm0, %v2375_v36, 0.0 }
 0x14a   :  { %v823_v33 = vadd.f32 %v2345_v41, %v822_v32  ;;  %v999_v34 = vpop.f32.mrf.mxu1 }
 0x14b   :  { %v824_v35 = vpop.f32.mrf.mxu0 }
 0x14c   :  { %v2404_v38 = vadd.f32 %v999_v34, %v823_v33  ;;  %v1001_v39 = vpop.f32.mrf.mxu1  ;;  %v1087_v34 = vadd.f32 %v1086_v23, %v1085_v27 }
 0x14d   :  { %v825_v40 = vpop.f32.mrf.mxu0 }
 0x14e   :  { %v826_v45 = vadd.f32 %v2345_v41, %v825_v40  ;;  %v1002_v47 = vpop.f32.mrf.mxu1  ;;  %v1089_v42 = vadd.f32 %v1088_v31, %v1087_v34  ;;  %v1106_v31 = vsel %vm1070_vm0, %v2404_v38, 0.0 }
 0x14f   :  { %v827_v49 = vpop.f32.mrf.mxu0 }
 0x150   :  { %v2413_v53 = vadd.f32 %v1002_v47, %v826_v45  ;;  %v1004_v54 = vpop.f32.mrf.mxu1  ;;  %v1092_v45 = vsel %vm1070_vm0, %v2381_v50, 0.0  ;;  %v1091_v49 = vadd.f32 %v1090_v37, %v1089_v42 }
 0x151   :  { %v830_v56 = vpop.f32.mrf.mxu0  ;;  %v1094_v54 = vsel %vm1070_vm0, %v2384_v57, 0.0 }
 0x152   :  { %v831_v60 = vadd.f32 %v2345_v41, %v830_v56  ;;  %v1007_v61 = vpop.f32.mrf.mxu1  ;;  %v1093_v59 = vadd.f32 %v1092_v45, %v1091_v49  ;;  %v1108_v37 = vsel %vm1070_vm0, %v2413_v53, 0.0 }
 0x153   :  { %v832_v63 = vpop.f32.mrf.mxu0 }
 0x154   :  { %v2420_v3 = vadd.f32 %v1007_v61, %v831_v60  ;;  %v1009_v4 = vpop.f32.mrf.mxu1  ;;  %v1096_v61 = vsel %vm1070_vm0, %v2387_v1, 0.0  ;;  %v1095_v2 = vadd.f32 %v1094_v54, %v1093_v59 }
 0x155   :  { %v833_v7 = vpop.f32.mrf.mxu0 }
 0x156   :  { %v834_v10 = vadd.f32 %v2345_v41, %v833_v7  ;;  %v1010_v11 = vpop.f32.mrf.mxu1  ;;  %v1097_v9 = vadd.f32 %v1096_v61, %v1095_v2 }
 0x157   :  { %v835_v14 = vpop.f32.mrf.mxu0 }
 0x158   :  { %v2427_v17 = vadd.f32 %v1010_v11, %v834_v10  ;;  %v1012_v19 = vpop.f32.mrf.mxu1  ;;  %v1100_v11 = vsel %vm1070_vm0, %v2393_v15, 0.0  ;;  %v1099_v14 = vadd.f32 %v1098_v5, %v1097_v9 }
 0x159   :  { %v838_v21 = vpop.f32.mrf.mxu0  ;;  %v1102_v19 = vsel %vm1070_vm0, %v2396_v22, 0.0 }
 0x15a   :  { %v839_v25 = vadd.f32 %v2345_v41, %v838_v21  ;;  %v1015_v26 = vpop.f32.mrf.mxu1  ;;  %v1101_v21 = vadd.f32 %v1100_v11, %v1099_v14 }
 0x15b   :  { %v840_v28 = vpop.f32.mrf.mxu0 }
 0x15c   :  { %v2434_v32 = vadd.f32 %v1015_v26, %v839_v25  ;;  %v1017_v33 = vpop.f32.mrf.mxu1  ;;  %v1104_v25 = vsel %vm1070_vm0, %v2399_v29, 0.0  ;;  %v1103_v27 = vadd.f32 %v1102_v19, %v1101_v21 }
 0x15d   :  { %v841_v35 = vpop.f32.mrf.mxu0 }
 0x15e   :  { %v842_v39 = vadd.f32 %v2345_v41, %v841_v35  ;;  %v1018_v40 = vpop.f32.mrf.mxu1  ;;  %v1105_v34 = vadd.f32 %v1104_v25, %v1103_v27 }
 0x15f   :  { %v843_v44 = vpop.f32.mrf.mxu0 }
 0x160   :  { %v2441_v47 = vadd.f32 %v1018_v40, %v842_v39  ;;  %v1020_v48 = vpop.f32.mrf.mxu1  ;;  %v1107_v40 = vadd.f32 %v1106_v31, %v1105_v34  ;;  %v1110_v44 = vsel %vm1070_vm0, %v2420_v3, 0.0 }
 0x161   :  { %v846_v51 = vpop.f32.mrf.mxu0 }
 0x162   :  { %v847_v55 = vadd.f32 %v2345_v41, %v846_v51  ;;  %v1023_v56 = vpop.f32.mrf.mxu1  ;;  %v1109_v48 = vadd.f32 %v1108_v37, %v1107_v40  ;;  %v1112_v51 = vsel %vm1070_vm0, %v2427_v17, 0.0  ;;  %v1116_v9 = vsel %vm1070_vm0, %v2441_v47, 0.0 }
 0x163   :  { %v848_v60 = vpop.f32.mrf.mxu0 }
 0x164   :  { %v2448_v62 = vadd.f32 %v1023_v56, %v847_v55  ;;  %v1025_v63 = vpop.f32.mrf.mxu1  ;;  %v1111_v56 = vadd.f32 %v1110_v44, %v1109_v48  ;;  %v1114_v60 = vsel %vm1070_vm0, %v2434_v32, 0.0 }
 0x165   :  { %v849_v4 = vpop.f32.mrf.mxu0 }
 0x166   :  { %v1026_v7 = vpop.f32.mrf.mxu1  ;;  %v850_v54 = vadd.f32 %v2345_v41, %v849_v4  ;;  %v1113_v2 = vadd.f32 %v1112_v51, %v1111_v56  ;;  %v1118_v19 = vsel %vm1070_vm0, %v2448_v62, 0.0 }
 0x167   :  { %v851_v10 = vpop.f32.mrf.mxu0 }
 0x168   :  { %v1028_v13 = vpop.f32.mrf.mxu1  ;;  %v2472_v10 = vadd.f32 %v1026_v7, %v850_v54  ;;  %v1115_v4 = vadd.f32 %v1114_v60, %v1113_v2 }
 0x169   :  { %v854_v16 = vpop.f32.mrf.mxu0 }
 0x16a   :  { %v1031_v20 = vpop.f32.mrf.mxu1  ;;  %v855_v61 = vadd.f32 %v2345_v41, %v854_v16  ;;  %v1117_v25 = vadd.f32 %v1116_v9, %v1115_v4  ;;  %v1120_v27 = vsel %vm1070_vm0, %v2472_v10, 0.0 }
 0x16b   :  { %v856_v23 = vpop.f32.mrf.mxu0 }
 0x16c   :  { %v1033_v26 = vpop.f32.mrf.mxu1  ;;  %v2477_v21 = vadd.f32 %v1031_v20, %v855_v61  ;;  %v1119_v34 = vadd.f32 %v1118_v19, %v1117_v25 }
 0x16d   :  { %v857_v28 = vpop.f32.mrf.mxu0 }
 0x16e   :  { %v1034_v33 = vpop.f32.mrf.mxu1  ;;  %v858_v11 = vadd.f32 %v2345_v41, %v857_v28  ;;  %v1122_v37 = vsel %vm1070_vm0, %v2477_v21, 0.0 }
 0x16f   :  { %v859_v35 = vpop.f32.mrf.mxu0 }
 0x170   :  { %v1036_v39 = vpop.f32.mrf.mxu1  ;;  %v2482_v7 = vadd.f32 %v1034_v33, %v858_v11 }
 0x171   :  { %v862_v42 = vpop.f32.mrf.mxu0 }
 0x172   :  { %v1039_v45 = vpop.f32.mrf.mxu1  ;;  %v863_v16 = vadd.f32 %v2345_v41, %v862_v42  ;;  %v1121_v42 = vadd.f32 %v1120_v27, %v1119_v34  ;;  %v1124_v48 = vsel %vm1070_vm0, %v2482_v7, 0.0 }
 0x173   :  { %v864_v49 = vpop.f32.mrf.mxu0 }
 0x174   :  { %v1041_v55 = vpop.f32.mrf.mxu1  ;;  %v2487_v20 = vadd.f32 %v1039_v45, %v863_v16  ;;  %v1123_v54 = vadd.f32 %v1122_v37, %v1121_v42 }
 0x175   :  { %v865_v59 = vpop.f32.mrf.mxu0 }
 0x176   :  { %v1042_v63 = vpop.f32.mrf.mxu1  ;;  %v866_v28 = vadd.f32 %v2345_v41, %v865_v59  ;;  %v1126_v56 = vsel %vm1070_vm0, %v2487_v20, 0.0  ;;  %v1125_v61 = vadd.f32 %v1124_v48, %v1123_v54 }
 0x177   :  { %v867_v5 = vpop.f32.mrf.mxu0 }
 0x178   :  { %v1044_v13 = vpop.f32.mrf.mxu1  ;;  %v2492_v33 = vadd.f32 %v1042_v63, %v866_v28  ;;  %v1127_v11 = vadd.f32 %v1126_v56, %v1125_v61 }
 0x179   :  { %v870_v14 = vpop.f32.mrf.mxu0 }
 0x17a   :  { %v1047_v23 = vpop.f32.mrf.mxu1  ;;  %v871_v39 = vadd.f32 %v2345_v41, %v870_v14  ;;  %v1128_v5 = vsel %vm1070_vm0, %v2492_v33, 0.0 }
 0x17b   :  { %v872_v26 = vpop.f32.mrf.mxu0 }
 0x17c   :  { %v1049_v31 = vpop.f32.mrf.mxu1  ;;  %v2497_v45 = vadd.f32 %v1047_v23, %v871_v39  ;;  %v1129_v23 = vadd.f32 %v1128_v5, %v1127_v11 }
 0x17d   :  { %v873_v35 = vpop.f32.mrf.mxu0 }
 0x17e   :  { %v1050_v40 = vpop.f32.mrf.mxu1  ;;  %v874_v49 = vadd.f32 %v2345_v41, %v873_v35  ;;  %v1130_v4 = vsel %vm1070_vm0, %v2497_v45, 0.0 }
 0x17f   :  { %v875_v44 = vpop.f32.mrf.mxu0  ;;  %v1131_v31 = vadd.f32 %v1130_v4, %v1129_v23 }
 0x180   :  { %v1052_v51 = vpop.f32.mrf.mxu1  ;;  %v2502_v63 = vadd.f32 %v1050_v40, %v874_v49 }
 0x181   :  { %v878_v55 = vpop.f32.mrf.mxu0 }
 0x182   :  { %v879_v59 = vadd.f32 %v2345_v41, %v878_v55  ;;  %v1055_v60 = vpop.f32.mrf.mxu1  ;;  %v1132_v26 = vsel %vm1070_vm0, %v2502_v63, 0.0 }
 0x183   :  { %v880_v2 = vpop.f32.mrf.mxu0  ;;  %v1133_v40 = vadd.f32 %v1132_v26, %v1131_v31 }
 0x184   :  { %v1057_v9 = vpop.f32.mrf.mxu1  ;;  %v2506_v14 = vadd.f32 %v1055_v60, %v879_v59 }
 0x185   :  { %v881_v13 = vpop.f32.mrf.mxu0 }
 0x186   :  { %v882_v19 = vadd.f32 %v2345_v41, %v881_v13  ;;  %v1058_v16 = vpop.f32.mrf.mxu1  ;;  %v1134_v35 = vsel %vm1070_vm0, %v2506_v14, 0.0 }
 0x187   :  { %v883_v25 = vpop.f32.mrf.mxu0  ;;  %v1135_v51 = vadd.f32 %v1134_v35, %v1133_v40 }
 0x188   :  { %v1059_v27 = vadd.f32 %v1058_v16, %v882_v19  ;;  %v1060_v28 = vpop.f32.mrf.mxu1 }
 0x189   :  { %v886_v34 = vpop.f32.mrf.mxu0 }
 0x18a   :  { %v887_v37 = vadd.f32 %v2345_v41, %v886_v34  ;;  %v1063_v39 = vpop.f32.mrf.mxu1  ;;  %v1136_v44 = vsel %vm1070_vm0, %v1059_v27, 0.0 }
 0x18b   :  { %v888_v42 = vpop.f32.mrf.mxu0  ;;  %v1137_v60 = vadd.f32 %v1136_v44, %v1135_v51 }
 0x18c   :  { %v1064_v48 = vadd.f32 %v1063_v39, %v887_v37  ;;  %v1065_v49 = vpop.f32.mrf.mxu1 }
 0x18d   :  { %v889_v54 = vpop.f32.mrf.mxu0 }
 0x18e   :  { %v1138_v55 = vsel %vm1070_vm0, %v1064_v48, 0.0  ;;  %v890_v56 = vadd.f32 %v2345_v41, %v889_v54  ;;  %v1066_v59 = vpop.f32.mrf.mxu1 }
 0x18f   :  { %v891_v61 = vpop.f32.mrf.mxu0  ;;  %v1139_v9 = vadd.f32 %v1138_v55, %v1137_v60 }
 0x190   :  { %v1067_v2 = vadd.f32 %v1066_v59, %v890_v56  ;;  %v1068_v5 = vpop.f32.mrf.mxu1 }
 0x192   :  { %v1140_v11 = vsel %vm1070_vm0, %v1067_v2, 0.0 }
 0x193   :  { %v1141_v13 = vadd.f32 %v1140_v11, %v1139_v9 }
 0x195   :  { %v1142_v4 = vrot.slane %v1141_v13, 4 }
 0x197   :  { %v1143_v19 = vadd.f32 %v1142_v4, %v1141_v13 }
 0x199   :  { %v1144_v16 = vrot.slane %v1143_v19, 2 }
 0x19b   :  { %v1145_v23 = vadd.f32 %v1144_v16, %v1143_v19 }
 0x19d   :  { %v1146_v25 = vrot.slane %v1145_v23, 1 }
 0x19f   :  { %v1147_v26 = vadd.f32 %v1146_v25, %v1145_v23 }
 0x1a1   :  { %v2518_v28 = vmul.f32 0.0034722222, %v1147_v26 }
 0x1a3   :  { %v2521_v31 = vsub.f32 %v1059_v27, %v2518_v28  ;;  %v2524_v41 = vsub.f32 %v1064_v48, %v2518_v28  ;;  %v2527_v34 = vsub.f32 %v1067_v2, %v2518_v28  ;;  %v2531_v35 = vsub.f32 %v2348_v46, %v2518_v28 }
 0x1a4   :  { %v2535_v37 = vsub.f32 %v2351_v52, %v2518_v28  ;;  %v2539_v39 = vsub.f32 %v2354_v58, %v2518_v28  ;;  %v2543_v27 = vsub.f32 %v2357_v0, %v2518_v28  ;;  %v2551_v46 = vsub.f32 %v2360_v6, %v2518_v28 }
 0x1a5   :  { %v1186_v40 = vmul.f32 %v2531_v35, %v2531_v35  ;;  %v2557_v58 = vsub.f32 %v2363_v12, %v2518_v28  ;;  %v2565_v51 = vsub.f32 %v2366_v18, %v2518_v28  ;;  %v2572_v12 = vsub.f32 %v2369_v24, %v2518_v28 }
 0x1a6   :  { %v1187_v42 = vmul.f32 %v2535_v37, %v2535_v37  ;;  %v1188_v52 = vmul.f32 %v2539_v39, %v2539_v39  ;;  %v1189_v0 = vmul.f32 %v2543_v27, %v2543_v27  ;;  %v1190_v6 = vmul.f32 %v2551_v46, %v2551_v46 }
 0x1a7   :  { %v1222_v44 = vsel %vm1070_vm0, %v1186_v40, 0.0  ;;  %v1191_v56 = vmul.f32 %v2557_v58, %v2557_v58  ;;  %v2579_v18 = vsub.f32 %v2372_v30, %v2518_v28  ;;  %v1192_v61 = vmul.f32 %v2565_v51, %v2565_v51 }
 0x1a8   :  { %v1223_v48 = vsel %vm1070_vm0, %v1187_v42, 0.0  ;;  %v1225_v54 = vsel %vm1070_vm0, %v1188_v52, 0.0  ;;  %v1227_v59 = vsel %vm1070_vm0, %v1189_v0, 0.0  ;;  %v1229_v2 = vsel %vm1070_vm0, %v1190_v6, 0.0 }
 0x1a9   :  { %v1224_v49 = vadd.f32 %v1223_v48, %v1222_v44  ;;  %v2586_v24 = vsub.f32 %v2375_v36, %v2518_v28  ;;  %v1193_v9 = vmul.f32 %v2572_v12, %v2572_v12  ;;  %v1231_v11 = vsel %vm1070_vm0, %v1191_v56, 0.0 }
 0x1aa   :  { %v2593_v30 = vsub.f32 %v2378_v43, %v2518_v28  ;;  %v1194_v4 = vmul.f32 %v2579_v18, %v2579_v18  ;;  %v1233_v19 = vsel %vm1070_vm0, %v1192_v61, 0.0  ;;  %v2600_v36 = vsub.f32 %v2381_v50, %v2518_v28 }
 0x1ab   :  { %v1226_v55 = vadd.f32 %v1225_v54, %v1224_v49  ;;  %v1195_v23 = vmul.f32 %v2586_v24, %v2586_v24  ;;  %v1235_v25 = vsel %vm1070_vm0, %v1193_v9, 0.0  ;;  %v2607_v43 = vsub.f32 %v2384_v57, %v2518_v28 }
 0x1ac   :  { %v1196_v40 = vmul.f32 %v2593_v30, %v2593_v30  ;;  %v1237_v42 = vsel %vm1070_vm0, %v1194_v4, 0.0  ;;  %v2614_v50 = vsub.f32 %v2387_v1, %v2518_v28  ;;  %v1197_v0 = vmul.f32 %v2600_v36, %v2600_v36 }
 0x1ad   :  { %v1228_v60 = vadd.f32 %v1227_v59, %v1226_v55  ;;  %v1239_v44 = vsel %vm1070_vm0, %v1195_v23, 0.0  ;;  %v2621_v57 = vsub.f32 %v2390_v8, %v2518_v28  ;;  %v1198_v49 = vmul.f32 %v2607_v43, %v2607_v43 }
 0x1ae   :  { %v1241_v6 = vsel %vm1070_vm0, %v1196_v40, 0.0  ;;  %v2628_v1 = vsub.f32 %v2393_v15, %v2518_v28  ;;  %v1199_v55 = vmul.f32 %v2614_v50, %v2614_v50  ;;  %v1243_v56 = vsel %vm1070_vm0, %v1197_v0, 0.0 }
 0x1af   :  { %v1230_v5 = vadd.f32 %v1229_v2, %v1228_v60  ;;  %v2635_v8 = vsub.f32 %v2396_v22, %v2518_v28  ;;  %v1200_v60 = vmul.f32 %v2621_v57, %v2621_v57  ;;  %v1245_v61 = vsel %vm1070_vm0, %v1198_v49, 0.0 }
 0x1b0   :  { %v2642_v15 = vsub.f32 %v2399_v29, %v2518_v28  ;;  %v1247_v9 = vsel %vm1070_vm0, %v1199_v55, 0.0  ;;  %v2649_v22 = vsub.f32 %v2404_v38, %v2518_v28  ;;  %v2656_v29 = vsub.f32 %v2413_v53, %v2518_v28 }
 0x1b1   :  { %v1232_v13 = vadd.f32 %v1231_v11, %v1230_v5  ;;  %v1201_v5 = vmul.f32 %v2628_v1, %v2628_v1  ;;  %v1249_v4 = vsel %vm1070_vm0, %v1200_v60, 0.0  ;;  %v2663_v38 = vsub.f32 %v2420_v3, %v2518_v28 }
 0x1b2   :  { %v2670_v53 = vsub.f32 %v2427_v17, %v2518_v28  ;;  %v2677_v3 = vsub.f32 %v2434_v32, %v2518_v28  ;;  %v2684_v17 = vsub.f32 %v2441_v47, %v2518_v28  ;;  %v2691_v32 = vsub.f32 %v2448_v62, %v2518_v28 }
 0x1b3   :  { %v1234_v16 = vadd.f32 %v1233_v19, %v1232_v13  ;;  %v1202_v13 = vmul.f32 %v2635_v8, %v2635_v8  ;;  %v1251_v23 = vsel %vm1070_vm0, %v1201_v5, 0.0  ;;  %v2698_v47 = vsub.f32 %v2472_v10, %v2518_v28 }
 0x1b4   :  { %v2705_v62 = vsub.f32 %v2477_v21, %v2518_v28  ;;  %v2712_v10 = vsub.f32 %v2482_v7, %v2518_v28  ;;  %v2719_v21 = vsub.f32 %v2487_v20, %v2518_v28  ;;  %v2726_v7 = vsub.f32 %v2492_v33, %v2518_v28 }
 0x1b5   :  { %v1236_v26 = vadd.f32 %v1235_v25, %v1234_v16  ;;  %v1203_v16 = vmul.f32 %v2642_v15, %v2642_v15  ;;  %v1253_v40 = vsel %vm1070_vm0, %v1202_v13, 0.0  ;;  %v2733_v20 = vsub.f32 %v2497_v45, %v2518_v28 }
 0x1b6   :  { %v2740_v33 = vsub.f32 %v2502_v63, %v2518_v28  ;;  %v2747_v45 = vsub.f32 %v2506_v14, %v2518_v28  ;;  %v1219_v14 = vmul.f32 %v2521_v31, %v2521_v31 }
 0x1b7   :  { %v1238_v52 = vadd.f32 %v1237_v42, %v1236_v26  ;;  %v1204_v26 = vmul.f32 %v2649_v22, %v2649_v22  ;;  %v1255_v0 = vsel %vm1070_vm0, %v1203_v16, 0.0 }
 0x1b8   :  { %v1217_v63 = vmul.f32 %v2740_v33, %v2740_v33 }
 0x1b9   :  { %v1240_v48 = vadd.f32 %v1239_v44, %v1238_v52  ;;  %v1205_v52 = vmul.f32 %v2656_v29, %v2656_v29  ;;  %v1257_v49 = vsel %vm1070_vm0, %v1204_v26, 0.0 }
 0x1ba   :  { %v1283_v28 = vsel %vm1070_vm0, %v1217_v63, 0.0 }
 0x1bb   :  { %v1242_v54 = vadd.f32 %v1241_v6, %v1240_v48  ;;  %v1206_v48 = vmul.f32 %v2663_v38, %v2663_v38  ;;  %v1259_v55 = vsel %vm1070_vm0, %v1205_v52, 0.0 }
 0x1bd   :  { %v1244_v59 = vadd.f32 %v1243_v56, %v1242_v54  ;;  %v1207_v54 = vmul.f32 %v2670_v53, %v2670_v53  ;;  %v1261_v60 = vsel %vm1070_vm0, %v1206_v48, 0.0 }
 0x1bf   :  { %v1246_v2 = vadd.f32 %v1245_v61, %v1244_v59  ;;  %v1208_v59 = vmul.f32 %v2677_v3, %v2677_v3  ;;  %v1263_v5 = vsel %vm1070_vm0, %v1207_v54, 0.0 }
 0x1c1   :  { %v1248_v11 = vadd.f32 %v1247_v9, %v1246_v2  ;;  %v1209_v2 = vmul.f32 %v2684_v17, %v2684_v17  ;;  %v1265_v13 = vsel %vm1070_vm0, %v1208_v59, 0.0 }
 0x1c3   :  { %v1250_v19 = vadd.f32 %v1249_v4, %v1248_v11  ;;  %v1210_v11 = vmul.f32 %v2691_v32, %v2691_v32  ;;  %v1267_v16 = vsel %vm1070_vm0, %v1209_v2, 0.0 }
 0x1c5   :  { %v1252_v25 = vadd.f32 %v1251_v23, %v1250_v19  ;;  %v1211_v19 = vmul.f32 %v2698_v47, %v2698_v47  ;;  %v1269_v26 = vsel %vm1070_vm0, %v1210_v11, 0.0 }
 0x1c7   :  { %v1254_v42 = vadd.f32 %v1253_v40, %v1252_v25  ;;  %v1212_v25 = vmul.f32 %v2705_v62, %v2705_v62  ;;  %v1271_v52 = vsel %vm1070_vm0, %v1211_v19, 0.0 }
 0x1c9   :  { %v1256_v44 = vadd.f32 %v1255_v0, %v1254_v42  ;;  %v1213_v42 = vmul.f32 %v2712_v10, %v2712_v10  ;;  %v1273_v48 = vsel %vm1070_vm0, %v1212_v25, 0.0  ;;  %v1287_v25 = vsel %vm1070_vm0, %v1219_v14, 0.0 }
 0x1cb   :  { %v1258_v6 = vadd.f32 %v1257_v49, %v1256_v44  ;;  %v1214_v44 = vmul.f32 %v2719_v21, %v2719_v21  ;;  %v1275_v54 = vsel %vm1070_vm0, %v1213_v42, 0.0 }
 0x1cd   :  { %v1260_v56 = vadd.f32 %v1259_v55, %v1258_v6  ;;  %v1215_v6 = vmul.f32 %v2726_v7, %v2726_v7  ;;  %v1277_v59 = vsel %vm1070_vm0, %v1214_v44, 0.0 }
 0x1cf   :  { %v1262_v61 = vadd.f32 %v1261_v60, %v1260_v56  ;;  %v1216_v56 = vmul.f32 %v2733_v20, %v2733_v20 }
 0x1d1   :  { %v1264_v9 = vadd.f32 %v1263_v5, %v1262_v61  ;;  %v1279_v61 = vsel %vm1070_vm0, %v1215_v6, 0.0  ;;  %v1218_v5 = vmul.f32 %v2747_v45, %v2747_v45 }
 0x1d3   :  { %v1266_v4 = vadd.f32 %v1265_v13, %v1264_v9  ;;  %v1281_v9 = vsel %vm1070_vm0, %v1216_v56, 0.0  ;;  %v1285_v19 = vsel %vm1070_vm0, %v1218_v5, 0.0 }
 0x1d5   :  { %v1268_v23 = vadd.f32 %v1267_v16, %v1266_v4  ;;  %v1220_v4 = vmul.f32 %v2524_v41, %v2524_v41 }
 0x1d7   :  { %v1270_v40 = vadd.f32 %v1269_v26, %v1268_v23  ;;  %v1221_v23 = vmul.f32 %v2527_v34, %v2527_v34 }
 0x1d9   :  { %v1272_v0 = vadd.f32 %v1271_v52, %v1270_v40  ;;  %v1289_v40 = vsel %vm1070_vm0, %v1220_v4, 0.0  ;;  %v1291_v52 = vsel %vm1070_vm0, %v1221_v23, 0.0 }
 0x1db   :  { %v1274_v49 = vadd.f32 %v1273_v48, %v1272_v0 }
 0x1dd   :  { %v1276_v55 = vadd.f32 %v1275_v54, %v1274_v49 }
 0x1df   :  { %v1278_v60 = vadd.f32 %v1277_v59, %v1276_v55 }
 0x1e1   :  { %v1280_v2 = vadd.f32 %v1279_v61, %v1278_v60 }
 0x1e3   :  { %v1282_v11 = vadd.f32 %v1281_v9, %v1280_v2 }
 0x1e5   :  { %v1284_v13 = vadd.f32 %v1283_v28, %v1282_v11 }
 0x1e7   :  { %v1286_v16 = vadd.f32 %v1285_v19, %v1284_v13 }
 0x1e9   :  { %v1288_v26 = vadd.f32 %v1287_v25, %v1286_v16 }
 0x1eb   :  { %v1290_v42 = vadd.f32 %v1289_v40, %v1288_v26 }
 0x1ed   :  { %v1292_v0 = vadd.f32 %v1291_v52, %v1290_v42 }
 0x1ef   :  { %v1293_v44 = vrot.slane %v1292_v0, 4 }
 0x1f1   :  { %v1294_v48 = vadd.f32 %v1293_v44, %v1292_v0 }
 0x1f3   :  { %v1295_v49 = vrot.slane %v1294_v48, 2 }
 0x1f5   :  { %v1296_v6 = vadd.f32 %v1295_v49, %v1294_v48 }
 0x1f7   :  { %v1297_v54 = vrot.slane %v1296_v6, 1 }
 0x1f9   :  { %v1298_v55 = vadd.f32 %v1297_v54, %v1296_v6 }
 0x1fb   :  { %v1299_v56 = vmul.f32 0.0034722222, %v1298_v55 }
 0x1fd   :  { %v1300_v59 = vadd.f32 1e-05, %v1299_v56 }
 0x1ff   :  { %1965 = vrsqrt.f32 %v1300_v59 }
 0x20c   :  { %v1966_v60 = vpop.eup %1965 }
 0x20d   :  { %v1302_v63 = vmul.f32 %v1966_v60, %v2531_v35  ;;  %v1303_v61 = vmul.f32 %v1966_v60, %v2535_v37  ;;  %v1304_v2 = vmul.f32 %v1966_v60, %v2539_v39  ;;  %v1305_v5 = vmul.f32 %v1966_v60, %v2543_v27 }
 0x20e   :  { %v1306_v9 = vmul.f32 %v1966_v60, %v2551_v46  ;;  %v1307_v11 = vmul.f32 %v1966_v60, %v2557_v58  ;;  %v1308_v14 = vmul.f32 %v1966_v60, %v2565_v51  ;;  %v1309_v28 = vmul.f32 %v1966_v60, %v2572_v12 }
 0x20f   :  { %v1310_v13 = vmul.f32 %v1966_v60, %v2579_v18  ;;  %v1311_v4 = vmul.f32 %v1966_v60, %v2586_v24  ;;  %v1312_v35 = vmul.f32 %v1966_v60, %v2593_v30  ;;  %v1313_v37 = vmul.f32 %v1966_v60, %v2600_v36 }
 0x210   :  { %v1314_v39 = vmul.f32 %v1966_v60, %v2607_v43  ;;  %v1315_v27 = vmul.f32 %v1966_v60, %v2614_v50  ;;  %v1316_v46 = vmul.f32 %v1966_v60, %v2621_v57  ;;  %v1317_v58 = vmul.f32 %v1966_v60, %v2628_v1 }
 0x211   :  { %v1318_v51 = vmul.f32 %v1966_v60, %v2635_v8  ;;  %v1319_v12 = vmul.f32 %v1966_v60, %v2642_v15  ;;  %v1320_v18 = vmul.f32 %v1966_v60, %v2649_v22  ;;  %v1321_v24 = vmul.f32 %v1966_v60, %v2656_v29  ;;  %v1750_v22 = vld [vmem:[%s3066_s3] ss:$0 sm:$0xff] }
 0x212   :  { %v1322_v30 = vmul.f32 %v1966_v60, %v2663_v38  ;;  %v1323_v36 = vmul.f32 %v1966_v60, %v2670_v53  ;;  %v1324_v43 = vmul.f32 %v1966_v60, %v2677_v3  ;;  %v1325_v50 = vmul.f32 %v1966_v60, %v2684_v17 }
 0x213   :  { %v1326_v57 = vmul.f32 %v1966_v60, %v2691_v32  ;;  %v1327_v1 = vmul.f32 %v1966_v60, %v2698_v47  ;;  %v1328_v8 = vmul.f32 %v1966_v60, %v2705_v62  ;;  %v1329_v15 = vmul.f32 %v1966_v60, %v2712_v10 }
 0x214   :  { %v1330_v29 = vmul.f32 %v1966_v60, %v2719_v21  ;;  %v1331_v38 = vmul.f32 %v1966_v60, %v2726_v7  ;;  %v1332_v53 = vmul.f32 %v1966_v60, %v2733_v20  ;;  %v1333_v3 = vmul.f32 %v1966_v60, %v2740_v33 }
 0x215   :  { %v1334_v17 = vmul.f32 %v1966_v60, %v2747_v45  ;;  %v1335_v32 = vmul.f32 %v1966_v60, %v2521_v31  ;;  %v1336_v47 = vmul.f32 %v1966_v60, %v2524_v41  ;;  %v1337_v62 = vmul.f32 %v1966_v60, %v2527_v34 }
 0x216   :  { %v1345_v10 = vmul.f32 %v1750_v22, %v1302_v63  ;;  %v1346_v19 = vmul.f32 %v1750_v22, %v1303_v61  ;;  %v1347_v16 = vmul.f32 %v1750_v22, %v1304_v2  ;;  %v1348_v23 = vmul.f32 %v1750_v22, %v1305_v5  ;;  %v1751_v61 = vld [vmem:[%s3067_s4] ss:$0 sm:$0xff] }
 0x217   :  { %v1349_v25 = vmul.f32 %v1750_v22, %v1306_v9  ;;  %v1350_v21 = vmul.f32 %v1750_v22, %v1307_v11  ;;  %v1351_v26 = vmul.f32 %v1750_v22, %v1308_v14  ;;  %v1352_v7 = vmul.f32 %v1750_v22, %v1309_v28 }
 0x218   :  { %v1353_v40 = vmul.f32 %v1750_v22, %v1310_v13  ;;  %v1354_v20 = vmul.f32 %v1750_v22, %v1311_v4  ;;  %v1355_v42 = vmul.f32 %v1750_v22, %v1312_v35  ;;  %v1356_v33 = vmul.f32 %v1750_v22, %v1313_v37 }
 0x219   :  { %v1357_v52 = vmul.f32 %v1750_v22, %v1314_v39  ;;  %v1358_v45 = vmul.f32 %v1750_v22, %v1315_v27  ;;  %v1359_v0 = vmul.f32 %v1750_v22, %v1316_v46  ;;  %v1360_v31 = vmul.f32 %v1750_v22, %v1317_v58 }
 0x21a   :  { %v1361_v44 = vmul.f32 %v1750_v22, %v1318_v51  ;;  %v1362_v41 = vmul.f32 %v1750_v22, %v1319_v12  ;;  %v1363_v48 = vmul.f32 %v1750_v22, %v1320_v18  ;;  %v1364_v34 = vmul.f32 %v1750_v22, %v1321_v24 }
 0x21b   :  { %v1365_v49 = vmul.f32 %v1750_v22, %v1322_v30  ;;  %v1366_v6 = vmul.f32 %v1750_v22, %v1323_v36  ;;  %v1367_v54 = vmul.f32 %v1750_v22, %v1324_v43  ;;  %v1368_v55 = vmul.f32 %v1750_v22, %v1325_v50 }
 0x21c   :  { %v1369_v56 = vmul.f32 %v1750_v22, %v1326_v57  ;;  %v1370_v59 = vmul.f32 %v1750_v22, %v1327_v1  ;;  %v1371_v60 = vmul.f32 %v1750_v22, %v1328_v8  ;;  %v1372_v63 = vmul.f32 %v1750_v22, %v1329_v15 }
 0x21d   :  { %v1373_v2 = vmul.f32 %v1750_v22, %v1330_v29  ;;  %v1374_v5 = vmul.f32 %v1750_v22, %v1331_v38  ;;  %v1375_v9 = vmul.f32 %v1750_v22, %v1332_v53  ;;  %v1376_v11 = vmul.f32 %v1750_v22, %v1333_v3 }
 0x21e   :  { %v1377_v14 = vmul.f32 %v1750_v22, %v1334_v17  ;;  %v1378_v28 = vmul.f32 %v1750_v22, %v1335_v32  ;;  %v1379_v13 = vmul.f32 %v1750_v22, %v1336_v47  ;;  %v1380_v4 = vmul.f32 %v1750_v22, %v1337_v62 }
 0x21f   :  { %v2811_v35 = vadd.f32 %v1751_v61, %v1345_v10  ;;  %v2813_v37 = vadd.f32 %v1751_v61, %v1346_v19  ;;  %v2815_v39 = vadd.f32 %v1751_v61, %v1347_v16  ;;  %v2817_v27 = vadd.f32 %v1751_v61, %v1348_v23 }
 0x220   :  { %v2819_v46 = vadd.f32 %v1751_v61, %v1349_v25  ;;  %v2821_v58 = vadd.f32 %v1751_v61, %v1350_v21  ;;  %v2823_v51 = vadd.f32 %v1751_v61, %v1351_v26  ;;  %v2825_v12 = vadd.f32 %v1751_v61, %v1352_v7 }
 0x221   :  { %v2827_v18 = vadd.f32 %v1751_v61, %v1353_v40  ;;  %v2829_v24 = vadd.f32 %v1751_v61, %v1354_v20  ;;  %v2831_v30 = vadd.f32 %v1751_v61, %v1355_v42  ;;  %v2833_v36 = vadd.f32 %v1751_v61, %v1356_v33 }
 0x222   :  { %v2835_v43 = vadd.f32 %v1751_v61, %v1357_v52  ;;  %v2837_v50 = vadd.f32 %v1751_v61, %v1358_v45  ;;  %v2839_v57 = vadd.f32 %v1751_v61, %v1359_v0  ;;  %v2841_v1 = vadd.f32 %v1751_v61, %v1360_v31 }
 0x223   :  { %v2843_v8 = vadd.f32 %v1751_v61, %v1361_v44  ;;  %v2845_v15 = vadd.f32 %v1751_v61, %v1362_v41  ;;  %v2847_v22 = vadd.f32 %v1751_v61, %v1363_v48  ;;  %v2849_v29 = vadd.f32 %v1751_v61, %v1364_v34 }
 0x224   :  { %v2851_v38 = vadd.f32 %v1751_v61, %v1365_v49  ;;  %v2853_v53 = vadd.f32 %v1751_v61, %v1366_v6  ;;  %v2855_v3 = vadd.f32 %v1751_v61, %v1367_v54  ;;  %v2857_v17 = vadd.f32 %v1751_v61, %v1368_v55 }
 0x225   :  { %v2859_v32 = vadd.f32 %v1751_v61, %v1369_v56  ;;  %v2861_v47 = vadd.f32 %v1751_v61, %v1370_v59  ;;  %v2863_v62 = vadd.f32 %v1751_v61, %v1371_v60  ;;  %v2865_v10 = vadd.f32 %v1751_v61, %v1372_v63 }
 0x226   :  { %v2867_v19 = vadd.f32 %v1751_v61, %v1373_v2  ;;  %v2869_v16 = vadd.f32 %v1751_v61, %v1374_v5  ;;  %v2871_v23 = vadd.f32 %v1751_v61, %v1375_v9  ;;  %v2873_v25 = vadd.f32 %v1751_v61, %v1376_v11 }
 0x227   :  { %v2875_v21 = vadd.f32 %v1751_v61, %v1377_v14  ;;  %v2877_v26 = vadd.f32 %v1751_v61, %v1378_v28  ;;  %v2879_v7 = vadd.f32 %v1751_v61, %v1379_v13  ;;  %v2881_v40 = vadd.f32 %v1751_v61, %v1380_v4 }
 0x228   :  { %v1424_v20 = vmax.f32 %v2811_v35, 0.0  ;;  %v1425_v42 = vmax.f32 %v2813_v37, 0.0  ;;  %v1426_v33 = vmax.f32 %v2815_v39, 0.0  ;;  %v1427_v52 = vmax.f32 %v2817_v27, 0.0 }
 0x229   :  { %v1428_v45 = vmax.f32 %v2819_v46, 0.0  ;;  %v1429_v0 = vmax.f32 %v2821_v58, 0.0  ;;  %v1430_v31 = vmax.f32 %v2823_v51, 0.0  ;;  %v1431_v44 = vmax.f32 %v2825_v12, 0.0 }
 0x22a   :  { %v1432_v41 = vmax.f32 %v2827_v18, 0.0  ;;  %v1433_v48 = vmax.f32 %v2829_v24, 0.0  ;;  %v1434_v34 = vmax.f32 %v2831_v30, 0.0  ;;  %v1435_v49 = vmax.f32 %v2833_v36, 0.0 }
 0x22b   :  { %v1436_v6 = vmax.f32 %v2835_v43, 0.0  ;;  %v1437_v54 = vmax.f32 %v2837_v50, 0.0  ;;  %v1438_v55 = vmax.f32 %v2839_v57, 0.0  ;;  %v1439_v56 = vmax.f32 %v2841_v1, 0.0 }
 0x22c   :  { %v1440_v59 = vmax.f32 %v2843_v8, 0.0  ;;  %v1441_v60 = vmax.f32 %v2845_v15, 0.0  ;;  %v1442_v63 = vmax.f32 %v2847_v22, 0.0  ;;  %v1443_v61 = vmax.f32 %v2849_v29, 0.0 }
 0x22d   :  { %v1444_v2 = vmax.f32 %v2851_v38, 0.0  ;;  %v1445_v5 = vmax.f32 %v2853_v53, 0.0  ;;  %v1446_v9 = vmax.f32 %v2855_v3, 0.0  ;;  %v1447_v11 = vmax.f32 %v2857_v17, 0.0 }
 0x22e   :  { %v1448_v14 = vmax.f32 %v2859_v32, 0.0  ;;  %v1449_v28 = vmax.f32 %v2861_v47, 0.0  ;;  %v1450_v13 = vmax.f32 %v2863_v62, 0.0  ;;  %v1451_v4 = vmax.f32 %v2865_v10, 0.0 }
 0x22f   :  { %v1452_v35 = vmax.f32 %v2867_v19, 0.0  ;;  %v1453_v37 = vmax.f32 %v2869_v16, 0.0  ;;  %v1454_v39 = vmax.f32 %v2871_v23, 0.0  ;;  %v1455_v27 = vmax.f32 %v2873_v25, 0.0 }
 0x230   :  { %v1456_v46 = vmax.f32 %v2875_v21, 0.0  ;;  %v1457_v58 = vmax.f32 %v2877_v26, 0.0  ;;  %v1458_v51 = vmax.f32 %v2879_v7, 0.0  ;;  %v1459_v12 = vmax.f32 %v2881_v40, 0.0 }
 0x231   :  { %v1788_v18 = vpack.c.bf16 %v1424_v20, %v1424_v20  ;;  %v1789_v24 = vpack.c.bf16 %v1425_v42, %v1425_v42  ;;  %v1790_v30 = vpack.c.bf16 %v1426_v33, %v1426_v33  ;;  %v1791_v36 = vpack.c.bf16 %v1427_v52, %v1427_v52 }
 0x232   :  { %v1792_v43 = vpack.c.bf16 %v1428_v45, %v1428_v45  ;;  %v1793_v50 = vpack.c.bf16 %v1429_v0, %v1429_v0  ;;  %v1794_v57 = vpack.c.bf16 %v1430_v31, %v1430_v31  ;;  %v1795_v1 = vpack.c.bf16 %v1431_v44, %v1431_v44 }
 0x233   :  { %v1796_v8 = vpack.c.bf16 %v1432_v41, %v1432_v41  ;;  %v1797_v15 = vpack.c.bf16 %v1433_v48, %v1433_v48  ;;  %v1798_v22 = vpack.c.bf16 %v1434_v34, %v1434_v34  ;;  %v1799_v29 = vpack.c.bf16 %v1435_v49, %v1435_v49  ;;  %1605 = vst.msk [vmem:[%s3068_s5] sm:$0xf] %vm1604_vm1, %v1788_v18 }
 0x234   :  { %1606 = vst.msk [vmem:[%s3068_s5 + $0x4] sm:$0xf] %vm1604_vm1, %v1789_v24  ;;  %1607 = vst.msk [vmem:[%s3068_s5 + $0x8] sm:$0xf] %vm1604_vm1, %v1790_v30  ;;  %v1800_v38 = vpack.c.bf16 %v1436_v6, %v1436_v6  ;;  %v1801_v53 = vpack.c.bf16 %v1437_v54, %v1437_v54  ;;  %v1802_v3 = vpack.c.bf16 %v1438_v55, %v1438_v55 }
 0x235   :  { %1608 = vst.msk [vmem:[%s3068_s5 + $0xc] sm:$0xf] %vm1604_vm1, %v1791_v36  ;;  %v1803_v17 = vpack.c.bf16 %v1439_v56, %v1439_v56  ;;  %1609 = vst.msk [vmem:[%s3068_s5 + $0x10] sm:$0xf] %vm1604_vm1, %v1792_v43  ;;  %v1804_v32 = vpack.c.bf16 %v1440_v59, %v1440_v59  ;;  %v1805_v47 = vpack.c.bf16 %v1441_v60, %v1441_v60 }
 0x236   :  { %1610 = vst.msk [vmem:[%s3068_s5 + $0x14] sm:$0xf] %vm1604_vm1, %v1793_v50  ;;  %1611 = vst.msk [vmem:[%s3068_s5 + $0x18] sm:$0xf] %vm1604_vm1, %v1794_v57  ;;  %v1806_v62 = vpack.c.bf16 %v1442_v63, %v1442_v63  ;;  %v1807_v10 = vpack.c.bf16 %v1443_v61, %v1443_v61  ;;  %v1808_v19 = vpack.c.bf16 %v1444_v2, %v1444_v2 }
 0x237   :  { %1612 = vst.msk [vmem:[%s3068_s5 + $0x1c] sm:$0xf] %vm1604_vm1, %v1795_v1  ;;  %1613 = vst.msk [vmem:[%s3068_s5 + $0x20] sm:$0xf] %vm1604_vm1, %v1796_v8  ;;  %v1809_v16 = vpack.c.bf16 %v1445_v5, %v1445_v5  ;;  %v1810_v23 = vpack.c.bf16 %v1446_v9, %v1446_v9  ;;  %v1811_v25 = vpack.c.bf16 %v1447_v11, %v1447_v11 }
 0x238   :  { %1614 = vst.msk [vmem:[%s3068_s5 + $0x24] sm:$0xf] %vm1604_vm1, %v1797_v15  ;;  %1615 = vst.msk [vmem:[%s3068_s5 + $0x28] sm:$0xf] %vm1604_vm1, %v1798_v22  ;;  %v1812_v21 = vpack.c.bf16 %v1448_v14, %v1448_v14  ;;  %v1813_v26 = vpack.c.bf16 %v1449_v28, %v1449_v28  ;;  %v1814_v7 = vpack.c.bf16 %v1450_v13, %v1450_v13 }
 0x239   :  { %1616 = vst.msk [vmem:[%s3068_s5 + $0x2c] sm:$0xf] %vm1604_vm1, %v1799_v29  ;;  %1617 = vst.msk [vmem:[%s3068_s5 + $0x30] sm:$0xf] %vm1604_vm1, %v1800_v38  ;;  %v1815_v40 = vpack.c.bf16 %v1451_v4, %v1451_v4  ;;  %v1816_v20 = vpack.c.bf16 %v1452_v35, %v1452_v35  ;;  %v1817_v42 = vpack.c.bf16 %v1453_v37, %v1453_v37 }
 0x23a   :  { %1618 = vst.msk [vmem:[%s3068_s5 + $0x34] sm:$0xf] %vm1604_vm1, %v1801_v53  ;;  %1619 = vst.msk [vmem:[%s3068_s5 + $0x38] sm:$0xf] %vm1604_vm1, %v1802_v3  ;;  %v1818_v33 = vpack.c.bf16 %v1454_v39, %v1454_v39  ;;  %v1819_v52 = vpack.c.bf16 %v1455_v27, %v1455_v27  ;;  %v1820_v45 = vpack.c.bf16 %v1456_v46, %v1456_v46 }
 0x23b   :  { %1620 = vst.msk [vmem:[%s3068_s5 + $0x3c] sm:$0xf] %vm1604_vm1, %v1803_v17  ;;  %1621 = vst.msk [vmem:[%s3068_s5 + $0x40] sm:$0xf] %vm1604_vm1, %v1804_v32  ;;  %v1821_v0 = vpack.c.bf16 %v1457_v58, %v1457_v58  ;;  %v1822_v31 = vpack.c.bf16 %v1458_v51, %v1458_v51  ;;  %v1823_v44 = vpack.c.bf16 %v1459_v12, %v1459_v12 }
 0x23c   :  { %1622 = vst.msk [vmem:[%s3068_s5 + $0x44] sm:$0xf] %vm1604_vm1, %v1805_v47  ;;  %1623 = vst.msk [vmem:[%s3068_s5 + $0x48] sm:$0xf] %vm1604_vm1, %v1806_v62 }
 0x23d   :  { %1624 = vst.msk [vmem:[%s3068_s5 + $0x4c] sm:$0xf] %vm1604_vm1, %v1807_v10  ;;  %1625 = vst.msk [vmem:[%s3068_s5 + $0x50] sm:$0xf] %vm1604_vm1, %v1808_v19 }
 0x23e   :  { %1626 = vst.msk [vmem:[%s3068_s5 + $0x54] sm:$0xf] %vm1604_vm1, %v1809_v16  ;;  %1627 = vst.msk [vmem:[%s3068_s5 + $0x58] sm:$0xf] %vm1604_vm1, %v1810_v23 }
 0x23f   :  { %1628 = vst.msk [vmem:[%s3068_s5 + $0x5c] sm:$0xf] %vm1604_vm1, %v1811_v25  ;;  %1629 = vst.msk [vmem:[%s3068_s5 + $0x60] sm:$0xf] %vm1604_vm1, %v1812_v21 }
 0x240   :  { %1630 = vst.msk [vmem:[%s3068_s5 + $0x64] sm:$0xf] %vm1604_vm1, %v1813_v26  ;;  %1631 = vst.msk [vmem:[%s3068_s5 + $0x68] sm:$0xf] %vm1604_vm1, %v1814_v7 }
 0x241   :  { %1632 = vst.msk [vmem:[%s3068_s5 + $0x6c] sm:$0xf] %vm1604_vm1, %v1815_v40  ;;  %1633 = vst.msk [vmem:[%s3068_s5 + $0x70] sm:$0xf] %vm1604_vm1, %v1816_v20 }
 0x242   :  { %1634 = vst.msk [vmem:[%s3068_s5 + $0x74] sm:$0xf] %vm1604_vm1, %v1817_v42  ;;  %1635 = vst.msk [vmem:[%s3068_s5 + $0x78] sm:$0xf] %vm1604_vm1, %v1818_v33 }
 0x243   :  { %1636 = vst.msk [vmem:[%s3068_s5 + $0x7c] sm:$0xf] %vm1604_vm1, %v1819_v52  ;;  %1637 = vst.msk [vmem:[%s3068_s5 + $0x80] sm:$0xf] %vm1604_vm1, %v1820_v45 }
 0x244   :  { %1638 = vst.msk [vmem:[%s3068_s5 + $0x84] sm:$0xf] %vm1604_vm1, %v1821_v0  ;;  %1639 = vst.msk [vmem:[%s3068_s5 + $0x88] sm:$0xf] %vm1604_vm1, %v1822_v31 }
 0x245   :  { %1640 = vst.msk [vmem:[%s3068_s5 + $0x8c] sm:$0xf] %vm1604_vm1, %v1823_v44 }

// kernel: actor_forward.7
= control target key start
LH: loop header
LB: loop body
LE: loop exit
PB: predicated region body
PF: predicated region fallthrough
CT: control target
= control target key end

     0   :  { %s2035_s1 = inlined_call_operand.vmem [shape: bf16[1024,128], index: 1, kind: input, shape index: {}]   ;;  %s2036_s0 = inlined_call_operand.vmem [shape: bf16[72,1024], index: 0, kind: input, shape index: {}]   ;;  %s2037_s2 = inlined_call_operand.vmem [shape: f32[1,128], index: 2, kind: input, shape index: {}]   ;;  %s2038_s3 = inlined_call_operand.vmem [shape: f32[1,128], index: 3, kind: input, shape index: {}]   ;;  %s2039_s4 = inlined_call_operand.vmem [shape: f32[1,128], index: 4, kind: input, shape index: {}]   ;;  %s2040_s5 = inlined_call_operand.vmem [shape: bf16[72,128], index: 5, kind: output, shape index: {}]  }
   0x1   :  { %v1535_v0 = vld [vmem:[%s2035_s1 + $0x78] sm:$0xff]   ;;  %v1539_v4 = vld [vmem:[%s2035_s1 + $0x70] sm:$0xff]   ;;  %v1543_v8 = vld [vmem:[%s2035_s1 + $0x68] sm:$0xff]  }
   0x2   :  { %v1536_v1 = vld [vmem:[%s2035_s1 + $0xf8] sm:$0xff]   ;;  %1351 = vmatprep.subr.bf16.mxu0 %v1535_v0  ;;  %v1540_v5 = vld [vmem:[%s2035_s1 + $0xf0] sm:$0xff]   ;;  %v1544_v9 = vld [vmem:[%s2035_s1 + $0xe8] sm:$0xff]  }
   0x3   :  { %v1537_v2 = vld [vmem:[%s2035_s1 + $0x38] sm:$0xff]   ;;  %1397 = vmatprep.subr.bf16.mxu1 %v1536_v1  ;;  %v1541_v6 = vld [vmem:[%s2035_s1 + $0x30] sm:$0xff]   ;;  %v1545_v10 = vld [vmem:[%s2035_s1 + $0x28] sm:$0xff]  }
   0x4   :  { %v1538_v3 = vld [vmem:[%s2035_s1 + $0xb8] sm:$0xff]   ;;  %1352 = vmatpush3.bf16.msra.mxu0 %v1537_v2  ;;  %v1542_v7 = vld [vmem:[%s2035_s1 + $0xb0] sm:$0xff]   ;;  %v1546_v11 = vld [vmem:[%s2035_s1 + $0xa8] sm:$0xff]  }
   0x5   :  { %1398 = vmatpush3.bf16.msra.mxu1 %v1538_v3  ;;  %1353 = vmatprep.subr.bf16.mxu0 %v1539_v4  ;;  %v1547_v12 = vld [vmem:[%s2035_s1 + $0x60] sm:$0xff]   ;;  %v1551_v16 = vld [vmem:[%s2035_s1 + $0x58] sm:$0xff]   ;;  %v1555_v20 = vld [vmem:[%s2035_s1 + $0x50] sm:$0xff]  }
   0x6   :  { %1399 = vmatprep.subr.bf16.mxu1 %v1540_v5  ;;  %v1548_v13 = vld [vmem:[%s2035_s1 + $0xe0] sm:$0xff]   ;;  %v1552_v17 = vld [vmem:[%s2035_s1 + $0xd8] sm:$0xff]   ;;  %v1556_v21 = vld [vmem:[%s2035_s1 + $0xd0] sm:$0xff]  }
   0x7   :  { %v1549_v14 = vld [vmem:[%s2035_s1 + $0x20] sm:$0xff]   ;;  %v1553_v18 = vld [vmem:[%s2035_s1 + $0x18] sm:$0xff]   ;;  %v1557_v22 = vld [vmem:[%s2035_s1 + $0x10] sm:$0xff]  }
   0x8   :  { %1354 = vmatpush3.bf16.msra.mxu0 %v1541_v6  ;;  %v1550_v15 = vld [vmem:[%s2035_s1 + $0xa0] sm:$0xff]   ;;  %v1554_v19 = vld [vmem:[%s2035_s1 + $0x98] sm:$0xff]   ;;  %v1558_v23 = vld [vmem:[%s2035_s1 + $0x90] sm:$0xff]  }
   0x9   :  { %1400 = vmatpush3.bf16.msra.mxu1 %v1542_v7  ;;  %1355 = vmatprep.subr.bf16.mxu0 %v1543_v8  ;;  %v1559_v24 = vld [vmem:[%s2035_s1 + $0x48] sm:$0xff]   ;;  %v1563_v28 = vld [vmem:[%s2035_s1 + $0x40] sm:$0xff]   ;;  %v1567_v40 = vld [vmem:[%s2035_s1 + $0x178] sm:$0xff]  }
   0xa   :  { %1401 = vmatprep.subr.bf16.mxu1 %v1544_v9  ;;  %v1560_v25 = vld [vmem:[%s2035_s1 + $0xc8] sm:$0xff]   ;;  %v1564_v29 = vld [vmem:[%s2035_s1 + $0xc0] sm:$0xff]   ;;  %v1568_v41 = vld [vmem:[%s2035_s1 + $0x138] sm:$0xff]  }
   0xb   :  { %v1561_v26 = vld [vmem:[%s2035_s1 + $0x8] sm:$0xff]   ;;  %v1565_v30 = vld [vmem:[%s2035_s1] sm:$0xff]   ;;  %v1569_v42 = vld [vmem:[%s2035_s1 + $0x1f8] sm:$0xff]  }
   0xc   :  { %1356 = vmatpush3.bf16.msra.mxu0 %v1545_v10  ;;  %v1562_v27 = vld [vmem:[%s2035_s1 + $0x88] sm:$0xff]   ;;  %v1566_v31 = vld [vmem:[%s2035_s1 + $0x80] sm:$0xff]   ;;  %v1570_v43 = vld [vmem:[%s2035_s1 + $0x1b8] sm:$0xff]  }
   0xd   :  { %1402 = vmatpush3.bf16.msra.mxu1 %v1546_v11  ;;  %1357 = vmatprep.subr.bf16.mxu0 %v1547_v12  ;;  %v21_v32 = vld [vmem:[%s2036_s0] sm:$0xff]  ;;  %v22_v34 = vld [vmem:[%s2036_s0 + $0x8] sm:$0xff]  ;;  %v1571_v44 = vld [vmem:[%s2035_s1 + $0x170] sm:$0xff]  }
   0xe   :  { %1403 = vmatprep.subr.bf16.mxu1 %v1548_v13  ;;  %v25_v33 = vld [vmem:[%s2036_s0 + $0x20] sm:$0xff]  ;;  %v26_v37 = vld [vmem:[%s2036_s0 + $0x28] sm:$0xff]  ;;  %v1572_v45 = vld [vmem:[%s2035_s1 + $0x130] sm:$0xff]  }
   0xf   :  { %v1204_v35 = vcombine.low %v21_v32, %v25_v33  ;;  %v1205_v36 = vcombine.high %v21_v32, %v25_v33  ;;  %v1206_v38 = vcombine.low %v22_v34, %v26_v37  ;;  %v1207_v39 = vcombine.high %v22_v34, %v26_v37  ;;  %v29_v46 = vld [vmem:[%s2036_s0 + $0x40] sm:$0xff]  ;;  %v30_v49 = vld [vmem:[%s2036_s0 + $0x48] sm:$0xff]  ;;  %v1573_v53 = vld [vmem:[%s2035_s1 + $0x1f0] sm:$0xff]  }
  0x10   :  { %1358 = vmatpush3.bf16.msra.mxu0 %v1549_v14  ;;  %v33_v47 = vld [vmem:[%s2036_s0 + $0x60] sm:$0xff]  ;;  %v34_v50 = vld [vmem:[%s2036_s0 + $0x68] sm:$0xff]  ;;  %v1574_v55 = vld [vmem:[%s2035_s1 + $0x1b0] sm:$0xff]  }
  0x11   :  { %1404 = vmatpush3.bf16.msra.mxu1 %v1550_v15  ;;  %1359 = vmatprep.subr.bf16.mxu0 %v1551_v16  ;;  %v1213_v48 = vcombine.high %v29_v46, %v33_v47  ;;  %v1212_v51 = vcombine.low %v29_v46, %v33_v47  ;;  %v1215_v52 = vcombine.high %v30_v49, %v34_v50  ;;  %v1575_v56 = vld [vmem:[%s2035_s1 + $0x168] sm:$0xff]   ;;  %v37_v60 = vld [vmem:[%s2036_s0 + $0x80] sm:$0xff]  ;;  %v1583_v8 = vld [vmem:[%s2035_s1 + $0x158] sm:$0xff]  }
  0x12   :  { %1405 = vmatprep.subr.bf16.mxu1 %v1552_v17  ;;  %796 = vmatprep.mubr.bf16.mxu0 %v1205_v36  ;;  %v1214_v54 = vcombine.low %v30_v49, %v34_v50  ;;  %v1576_v57 = vld [vmem:[%s2035_s1 + $0x128] sm:$0xff]   ;;  %v41_v61 = vld [vmem:[%s2036_s0 + $0xa0] sm:$0xff]  ;;  %v1584_v9 = vld [vmem:[%s2035_s1 + $0x118] sm:$0xff]  }
  0x13   :  { %868 = vmatprep.mubr.bf16.mxu1 %v1207_v39  ;;  %v1577_v58 = vld [vmem:[%s2035_s1 + $0x1e8] sm:$0xff]   ;;  %v1221_v0 = vcombine.high %v37_v60, %v41_v61  ;;  %v1579_v2 = vld [vmem:[%s2035_s1 + $0x160] sm:$0xff]   ;;  %v1220_v3 = vcombine.low %v37_v60, %v41_v61  ;;  %v1585_v10 = vld [vmem:[%s2035_s1 + $0x1d8] sm:$0xff]  }
  0x14   :  { %1360 = vmatpush3.bf16.msra.mxu0 %v1553_v18  ;;  %v1578_v59 = vld [vmem:[%s2035_s1 + $0x1a8] sm:$0xff]   ;;  %v1580_v5 = vld [vmem:[%s2035_s1 + $0x120] sm:$0xff]   ;;  %v1586_v18 = vld [vmem:[%s2035_s1 + $0x198] sm:$0xff]  }
  0x15   :  { %1406 = vmatpush3.bf16.msra.mxu1 %v1554_v19  ;;  %1361 = vmatprep.subr.bf16.mxu0 %v1555_v20  ;;  %v38_v62 = vld [vmem:[%s2036_s0 + $0x88] sm:$0xff]  ;;  %v1581_v6 = vld [vmem:[%s2035_s1 + $0x1e0] sm:$0xff]   ;;  %v1587_v20 = vld [vmem:[%s2035_s1 + $0x150] sm:$0xff]  }
  0x16   :  { %1407 = vmatprep.subr.bf16.mxu1 %v1556_v21  ;;  %v42_v63 = vld [vmem:[%s2036_s0 + $0xa8] sm:$0xff]  ;;  %v1582_v7 = vld [vmem:[%s2035_s1 + $0x1a0] sm:$0xff]   ;;  %v1588_v21 = vld [vmem:[%s2035_s1 + $0x110] sm:$0xff]  }
  0x17   :  { %v1223_v1 = vcombine.high %v38_v62, %v42_v63  ;;  %v1222_v4 = vcombine.low %v38_v62, %v42_v63  ;;  %v45_v11 = vld [vmem:[%s2036_s0 + $0xc0] sm:$0xff]  ;;  %v46_v13 = vld [vmem:[%s2036_s0 + $0xc8] sm:$0xff]  ;;  %v27_v39 = vld [vmem:[%s2036_s0 + $0x30] sm:$0xff] }
  0x18   :  { %1362 = vmatpush3.bf16.msra.mxu0 %v1557_v22  ;;  %v49_v12 = vld [vmem:[%s2036_s0 + $0xe0] sm:$0xff]  ;;  %v50_v15 = vld [vmem:[%s2036_s0 + $0xe8] sm:$0xff]  ;;  %v1589_v22 = vld [vmem:[%s2035_s1 + $0x1d0] sm:$0xff]  }
  0x19   :  { %1408 = vmatpush3.bf16.msra.mxu1 %v1558_v23  ;;  %1363 = vmatprep.subr.bf16.mxu0 %v1559_v24  ;;  %v1229_v14 = vcombine.high %v45_v11, %v49_v12  ;;  %v1228_v16 = vcombine.low %v45_v11, %v49_v12  ;;  %v1231_v17 = vcombine.high %v46_v13, %v50_v15  ;;  %v1590_v23 = vld [vmem:[%s2035_s1 + $0x190] sm:$0xff]   ;;  %v1591_v24 = vld [vmem:[%s2035_s1 + $0x148] sm:$0xff]   ;;  %v1599_v34 = vld [vmem:[%s2035_s1 + $0x140] sm:$0xff]  }
  0x1a   :  { %1409 = vmatprep.subr.bf16.mxu1 %v1560_v25  ;;  %v1230_v19 = vcombine.low %v46_v13, %v50_v15  ;;  %v53_v25 = vld [vmem:[%s2036_s0 + $0x100] sm:$0xff]  ;;  %v1598_v33 = vld [vmem:[%s2035_s1 + $0x188] sm:$0xff]   ;;  %v32_v47 = vld [vmem:[%s2036_s0 + $0x58] sm:$0xff] }
  0x1b   :  { %v1601_v36 = vld [vmem:[%s2035_s1 + $0x1c0] sm:$0xff]   ;;  %v47_v60 = vld [vmem:[%s2036_s0 + $0xd0] sm:$0xff]  ;;  %v48_v62 = vld [vmem:[%s2036_s0 + $0xd8] sm:$0xff] }
  0x1c   :  { %1364 = vmatpush3.bf16.msra.mxu0 %v1561_v26  ;;  %v54_v26 = vld [vmem:[%s2036_s0 + $0x108] sm:$0xff]  ;;  %v1602_v37 = vld [vmem:[%s2035_s1 + $0x180] sm:$0xff]   ;;  %v51_v61 = vld [vmem:[%s2036_s0 + $0xf0] sm:$0xff] }
  0x1d   :  { %1410 = vmatpush3.bf16.msra.mxu1 %v1562_v27  ;;  %1365 = vmatprep.subr.bf16.mxu0 %v1563_v28  ;;  %v1237_v27 = vcombine.high %v53_v25, %v53_v25  ;;  %v1239_v28 = vcombine.high %v54_v26, %v54_v26  ;;  %v1238_v32 = vcombine.low %v54_v26, %v54_v26  ;;  %v52_v63 = vld [vmem:[%s2036_s0 + $0xf8] sm:$0xff] }
  0x1e   :  { %1411 = vmatprep.subr.bf16.mxu1 %v1564_v29  ;;  %v1594_v29 = vld [vmem:[%s2035_s1 + $0x108] sm:$0xff]  }
  0x20   :  { %1366 = vmatpush3.bf16.msra.mxu0 %v1565_v30  ;;  %v1236_v30 = vcombine.low %v53_v25, %v53_v25 }
  0x21   :  { %1412 = vmatpush3.bf16.msra.mxu1 %v1566_v31  ;;  %1443 = vmatprep.subr.bf16.mxu0 %v1567_v40  ;;  %v1597_v31 = vld [vmem:[%s2035_s1 + $0x1c8] sm:$0xff]   ;;  %v24_v40 = vld [vmem:[%s2036_s0 + $0x18] sm:$0xff] }
  0x22   :  { %1489 = vmatprep.subr.bf16.mxu1 %v1569_v42  ;;  %v28_v42 = vld [vmem:[%s2036_s0 + $0x38] sm:$0xff] }
  0x23   :  { %797 = vmatmul.mubr.bf16.vlgmr.msra.gmra.mxu0 %v1204_v35  ;;  %v1600_v35 = vld [vmem:[%s2035_s1 + $0x100] sm:$0xff]   ;;  %v1211_v46 = vcombine.high %v24_v40, %v28_v42  ;;  %v1210_v49 = vcombine.low %v24_v40, %v28_v42 }
  0x24   :  { %869 = vmatmul.mubr.bf16.vlgmr.msra.gmra.mxu1 %v1206_v38  ;;  %1444 = vmatpush3.bf16.msra.mxu0 %v1568_v41  ;;  %v23_v38 = vld [vmem:[%s2036_s0 + $0x10] sm:$0xff] }
  0x25   :  { %1490 = vmatpush3.bf16.msra.mxu1 %v1570_v43  ;;  %1445 = vmatprep.subr.bf16.mxu0 %v1571_v44  ;;  %v1209_v41 = vcombine.high %v23_v38, %v27_v39  ;;  %v31_v43 = vld [vmem:[%s2036_s0 + $0x50] sm:$0xff] }
  0x26   :  { %804 = vmatprep.mubr.bf16.mxu0 %v1213_v48  ;;  %876 = vmatprep.mubr.bf16.mxu1 %v1215_v52  ;;  %v35_v44 = vld [vmem:[%s2036_s0 + $0x70] sm:$0xff]  ;;  %v36_v48 = vld [vmem:[%s2036_s0 + $0x78] sm:$0xff] }
  0x27   :  { %1491 = vmatprep.subr.bf16.mxu1 %v1573_v53  ;;  %v1217_v50 = vcombine.high %v31_v43, %v35_v44  ;;  %v39_v52 = vld [vmem:[%s2036_s0 + $0x90] sm:$0xff] }
  0x28   :  { %1446 = vmatpush3.bf16.msra.mxu0 %v1572_v45  ;;  %v1208_v45 = vcombine.low %v23_v38, %v27_v39  ;;  %v43_v53 = vld [vmem:[%s2036_s0 + $0xb0] sm:$0xff] }
  0x29   :  { %1492 = vmatpush3.bf16.msra.mxu1 %v1574_v55  ;;  %1447 = vmatprep.subr.bf16.mxu0 %v1575_v56  ;;  %v44_v55 = vld [vmem:[%s2036_s0 + $0xb8] sm:$0xff]  ;;  %v1216_v56 = vcombine.low %v31_v43, %v35_v44 }
  0x2a   :  { %1493 = vmatprep.subr.bf16.mxu1 %v1577_v58  ;;  %v1225_v58 = vcombine.high %v39_v52, %v43_v53 }
  0x2b   :  { %805 = vmatmul.mubr.bf16.gmra.mxu0 %v1212_v51  ;;  %v1219_v51 = vcombine.high %v32_v47, %v36_v48 }
  0x2c   :  { %877 = vmatmul.mubr.bf16.gmra.mxu1 %v1214_v54  ;;  %1448 = vmatpush3.bf16.msra.mxu0 %v1576_v57  ;;  %v40_v54 = vld [vmem:[%s2036_s0 + $0x98] sm:$0xff]  ;;  %v1218_v57 = vcombine.low %v32_v47, %v36_v48 }
  0x2d   :  { %1494 = vmatpush3.bf16.msra.mxu1 %v1578_v59  ;;  %812 = vmatprep.mubr.bf16.mxu0 %v1221_v0  ;;  %v1227_v59 = vcombine.high %v40_v54, %v44_v55  ;;  %v1224_v0 = vcombine.low %v39_v52, %v43_v53 }
  0x2e   :  { %884 = vmatprep.mubr.bf16.mxu1 %v1223_v1  ;;  %1449 = vmatprep.subr.bf16.mxu0 %v1579_v2  ;;  %v1226_v1 = vcombine.low %v40_v54, %v44_v55  ;;  %v1233_v2 = vcombine.high %v47_v60, %v51_v61 }
  0x2f   :  { %1495 = vmatprep.subr.bf16.mxu1 %v1581_v6  ;;  %v1232_v6 = vcombine.low %v47_v60, %v51_v61 }
  0x30   :  { %1450 = vmatpush3.bf16.msra.mxu0 %v1580_v5  ;;  %v56_v5 = vld [vmem:[%s2036_s0 + $0x118] sm:$0xff] }
  0x31   :  { %1496 = vmatpush3.bf16.msra.mxu1 %v1582_v7  ;;  %1451 = vmatprep.subr.bf16.mxu0 %v1583_v8  ;;  %v1234_v7 = vcombine.low %v48_v62, %v52_v63  ;;  %v1242_v11 = vcombine.low %v56_v5, %v56_v5 }
  0x32   :  { %1497 = vmatprep.subr.bf16.mxu1 %v1585_v10 }
  0x33   :  { %813 = vmatmul.mubr.bf16.gmra.mxu0 %v1220_v3  ;;  %v1235_v3 = vcombine.high %v48_v62, %v52_v63 }
  0x34   :  { %885 = vmatmul.mubr.bf16.gmra.mxu1 %v1222_v4  ;;  %1452 = vmatpush3.bf16.msra.mxu0 %v1584_v9  ;;  %v55_v4 = vld [vmem:[%s2036_s0 + $0x110] sm:$0xff]  ;;  %v1243_v9 = vcombine.high %v56_v5, %v56_v5 }
  0x35   :  { %820 = vmatprep.mubr.bf16.mxu0 %v1229_v14  ;;  %892 = vmatprep.mubr.bf16.mxu1 %v1231_v17  ;;  %v1241_v8 = vcombine.high %v55_v4, %v55_v4  ;;  %v1240_v10 = vcombine.low %v55_v4, %v55_v4 }
  0x36   :  { %1498 = vmatpush3.bf16.msra.mxu1 %v1586_v18  ;;  %1453 = vmatprep.subr.bf16.mxu0 %v1587_v20 }
  0x37   :  { %1499 = vmatprep.subr.bf16.mxu1 %v1589_v22 }
  0x38   :  { %1454 = vmatpush3.bf16.msra.mxu0 %v1588_v21 }
  0x39   :  { %1455 = vmatprep.subr.bf16.mxu0 %v1591_v24 }
  0x3a   :  { %1500 = vmatpush3.bf16.msra.mxu1 %v1590_v23 }
  0x3b   :  { %821 = vmatmul.mubr.bf16.gmra.mxu0 %v1228_v16  ;;  %1501 = vmatprep.subr.bf16.mxu1 %v1597_v31 }
  0x3c   :  { %893 = vmatmul.mubr.bf16.gmra.mxu1 %v1230_v19  ;;  %828 = vmatprep.mubr.bf16.mxu0 %v1237_v27 }
  0x3d   :  { %900 = vmatprep.mubr.bf16.mxu1 %v1239_v28  ;;  %1456 = vmatpush3.bf16.msra.mxu0 %v1594_v29 }
  0x3e   :  { %1502 = vmatpush3.bf16.msra.mxu1 %v1598_v33  ;;  %1457 = vmatprep.subr.bf16.mxu0 %v1599_v34 }
  0x3f   :  { %1503 = vmatprep.subr.bf16.mxu1 %v1601_v36 }
  0x41   :  { %1458 = vmatpush3.bf16.msra.mxu0 %v1600_v35 }
  0x42   :  { %1504 = vmatpush3.bf16.msra.mxu1 %v1602_v37 }
  0x43   :  { %829 = vmatmul.mubr.bf16.gmra.mxu0 %v1236_v30 }
  0x44   :  { %901 = vmatmul.mubr.bf16.gmra.mxu1 %v1238_v32  ;;  %940 = vmatprep.mubr.bf16.mxu0 %v1209_v41 }
  0x45   :  { %1012 = vmatprep.mubr.bf16.mxu1 %v1211_v46 }
  0x4b   :  { %941 = vmatmul.mubr.bf16.vlgmr.msra.gmra.mxu0 %v1208_v45 }
  0x4c   :  { %1013 = vmatmul.mubr.bf16.vlgmr.msra.gmra.mxu1 %v1210_v49  ;;  %948 = vmatprep.mubr.bf16.mxu0 %v1217_v50 }
  0x4d   :  { %1020 = vmatprep.mubr.bf16.mxu1 %v1219_v51 }
  0x53   :  { %949 = vmatmul.mubr.bf16.gmra.mxu0 %v1216_v56 }
  0x54   :  { %1021 = vmatmul.mubr.bf16.gmra.mxu1 %v1218_v57  ;;  %956 = vmatprep.mubr.bf16.mxu0 %v1225_v58 }
  0x55   :  { %1028 = vmatprep.mubr.bf16.mxu1 %v1227_v59 }
  0x5b   :  { %957 = vmatmul.mubr.bf16.gmra.mxu0 %v1224_v0 }
  0x5c   :  { %1029 = vmatmul.mubr.bf16.gmra.mxu1 %v1226_v1  ;;  %964 = vmatprep.mubr.bf16.mxu0 %v1233_v2  ;;  %v1980_v1 = vld [vmem:[%s2037_s2] ss:$0 sm:$0xff] }
  0x5d   :  { %1036 = vmatprep.mubr.bf16.mxu1 %v1235_v3 }
  0x63   :  { %965 = vmatmul.mubr.bf16.gmra.mxu0 %v1232_v6 }
  0x64   :  { %1037 = vmatmul.mubr.bf16.gmra.mxu1 %v1234_v7  ;;  %972 = vmatprep.mubr.bf16.mxu0 %v1241_v8 }
  0x65   :  { %1044 = vmatprep.mubr.bf16.mxu1 %v1243_v9 }
  0x6b   :  { %973 = vmatmul.mubr.bf16.gmra.mxu0 %v1240_v10 }
  0x6c   :  { %1045 = vmatmul.mubr.bf16.gmra.mxu1 %v1242_v11 }
  0xe3   :  { %v1367_v12 = vpop.f32.mrf.mxu0 }
  0xe4   :  { %v1939_v13 = vpop.f32.mrf.mxu1 }
  0xe5   :  { %v1368_v14 = vpop.f32.mrf.mxu0 }
  0xe6   :  { %v1941_v15 = vpop.f32.mrf.mxu1  ;;  %v1369_v63 = vadd.f32 %v1368_v14, %v1367_v12 }
  0xe7   :  { %v1370_v16 = vpop.f32.mrf.mxu0 }
  0xe8   :  { %v1416_v17 = vpop.f32.mrf.mxu1  ;;  %v799_v9 = vadd.f32 %v1369_v63, %v1980_v1 }
  0xe9   :  { %v1371_v18 = vpop.f32.mrf.mxu0 }
  0xea   :  { %v1417_v19 = vpop.f32.mrf.mxu1  ;;  %v1372_v60 = vadd.f32 %v1371_v18, %v1370_v16  ;;  %v1415_v18 = vadd.f32 %v1941_v15, %v1939_v13 }
  0xeb   :  { %v1373_v20 = vpop.f32.mrf.mxu0  ;;  %v1418_v10 = vadd.f32 %v1417_v19, %v1416_v17 }
  0xec   :  { %v1943_v21 = vpop.f32.mrf.mxu1  ;;  %v802_v4 = vadd.f32 %v1372_v60, %v1980_v1  ;;  %v871_v19 = vadd.f32 %v1415_v18, %v799_v9 }
  0xed   :  { %v1374_v22 = vpop.f32.mrf.mxu0 }
  0xee   :  { %v1420_v23 = vpop.f32.mrf.mxu1  ;;  %v1375_v2 = vadd.f32 %v1374_v22, %v1373_v20 }
  0xef   :  { %v1376_v24 = vpop.f32.mrf.mxu0 }
  0xf0   :  { %v1945_v25 = vpop.f32.mrf.mxu1  ;;  %v807_v12 = vadd.f32 %v1375_v2, %v1980_v1 }
  0xf1   :  { %v1377_v26 = vpop.f32.mrf.mxu0 }
  0xf2   :  { %v1947_v27 = vpop.f32.mrf.mxu1  ;;  %v1378_v5 = vadd.f32 %v1377_v26, %v1376_v24  ;;  %v1421_v24 = vadd.f32 %v1420_v23, %v1943_v21 }
  0xf3   :  { %v1379_v28 = vpop.f32.mrf.mxu0 }
  0xf4   :  { %v1949_v29 = vpop.f32.mrf.mxu1  ;;  %v810_v20 = vadd.f32 %v1378_v5, %v1980_v1  ;;  %v879_v13 = vadd.f32 %v1421_v24, %v807_v12 }
  0xf5   :  { %v1380_v30 = vpop.f32.mrf.mxu0 }
  0xf6   :  { %v1951_v31 = vpop.f32.mrf.mxu1  ;;  %v1381_v7 = vadd.f32 %v1380_v30, %v1379_v28 }
  0xf7   :  { %v1382_v32 = vpop.f32.mrf.mxu0  ;;  %v1427_v15 = vadd.f32 %v1951_v31, %v1949_v29 }
  0xf8   :  { %v1953_v33 = vpop.f32.mrf.mxu1  ;;  %v815_v26 = vadd.f32 %v1381_v7, %v1980_v1 }
  0xf9   :  { %v1383_v34 = vpop.f32.mrf.mxu0 }
  0xfa   :  { %v1955_v35 = vpop.f32.mrf.mxu1  ;;  %v1384_v28 = vadd.f32 %v1383_v34, %v1382_v32  ;;  %v887_v32 = vadd.f32 %v1427_v15, %v815_v26 }
  0xfb   :  { %v1385_v36 = vpop.f32.mrf.mxu0  ;;  %v1430_v31 = vadd.f32 %v1955_v35, %v1953_v33 }
  0xfc   :  { %v1957_v37 = vpop.f32.mrf.mxu1  ;;  %v818_v34 = vadd.f32 %v1384_v28, %v1980_v1 }
  0xfd   :  { %v1386_v38 = vpop.f32.mrf.mxu0 }
  0xfe   :  { %v1959_v39 = vpop.f32.mrf.mxu1 }
  0xff   :  { %v1961_v40 = vpop.f32.mrf.mxu0 }
 0x100   :  { %v1963_v41 = vpop.f32.mrf.mxu1 }
 0x101   :  { %v1965_v42 = vpop.f32.mrf.mxu0 }
 0x102   :  { %v1967_v43 = vpop.f32.mrf.mxu1 }
 0x103   :  { %v1969_v44 = vpop.f32.mrf.mxu0 }
 0x104   :  { %v1971_v45 = vpop.f32.mrf.mxu1 }
 0x105   :  { %v1973_v46 = vpop.f32.mrf.mxu0 }
 0x106   :  { %v1975_v47 = vpop.f32.mrf.mxu1  ;;  %v1393_v33 = vadd.f32 %v1973_v46, %v1969_v44 }
 0x107   :  { %v1394_v48 = vpop.f32.mrf.mxu0 }
 0x108   :  { %v1440_v49 = vpop.f32.mrf.mxu1  ;;  %v874_v48 = vadd.f32 %v1418_v10, %v802_v4  ;;  %v890_v10 = vadd.f32 %v1430_v31, %v818_v34  ;;  %v831_v44 = vadd.f32 %v1393_v33, %v1980_v1 }
 0x109   :  { %v1395_v50 = vpop.f32.mrf.mxu0 }
 0x10a   :  { %v1441_v51 = vpop.f32.mrf.mxu1  ;;  %v1424_v50 = vadd.f32 %v1947_v27, %v1945_v25  ;;  %v1390_v27 = vadd.f32 %v1965_v42, %v1961_v40 }
 0x10b   :  { %v1459_v52 = vpop.f32.mrf.mxu0  ;;  %v1387_v51 = vadd.f32 %v1386_v38, %v1385_v36 }
 0x10c   :  { %v1505_v53 = vpop.f32.mrf.mxu1  ;;  %v882_v60 = vadd.f32 %v1424_v50, %v810_v20 }
 0x10d   :  { %v1460_v54 = vpop.f32.mrf.mxu0  ;;  %v823_v25 = vadd.f32 %v1387_v51, %v1980_v1  ;;  %v1439_v51 = vadd.f32 %v1975_v47, %v1971_v45 }
 0x10e   :  { %v1506_v55 = vpop.f32.mrf.mxu1  ;;  %v1461_v22 = vadd.f32 %v1460_v54, %v1459_v52 }
 0x10f   :  { %v1462_v56 = vpop.f32.mrf.mxu0  ;;  %v1507_v36 = vadd.f32 %v1506_v55, %v1505_v53  ;;  %v826_v55 = vadd.f32 %v1390_v27, %v1980_v1 }
 0x110   :  { %v1508_v57 = vpop.f32.mrf.mxu1  ;;  %v943_v21 = vadd.f32 %v1461_v22, %v871_v19 }
 0x111   :  { %v1463_v58 = vpop.f32.mrf.mxu0 }
 0x112   :  { %v1509_v59 = vpop.f32.mrf.mxu1  ;;  %v1464_v11 = vadd.f32 %v1463_v58, %v1462_v56  ;;  %v1015_v7 = vadd.f32 %v1507_v36, %v943_v21 }
 0x113   :  { %v1465_v61 = vpop.f32.mrf.mxu0  ;;  %v1510_v23 = vadd.f32 %v1509_v59, %v1508_v57 }
 0x114   :  { %v1511_v62 = vpop.f32.mrf.mxu1  ;;  %v946_v56 = vadd.f32 %v1464_v11, %v874_v48  ;;  %v1436_v48 = vadd.f32 %v1967_v43, %v1963_v41 }
 0x115   :  { %v1466_v0 = vpop.f32.mrf.mxu0 }
 0x116   :  { %v1512_v3 = vpop.f32.mrf.mxu1  ;;  %v1467_v30 = vadd.f32 %v1466_v0, %v1465_v61  ;;  %v1998_v38 = vadd.f32 %v1510_v23, %v946_v56  ;;  %v898_v26 = vadd.f32 %v1436_v48, %v826_v55 }
 0x117   :  { %v1468_v6 = vpop.f32.mrf.mxu0  ;;  %v1513_v57 = vadd.f32 %v1512_v3, %v1511_v62 }
 0x118   :  { %v1514_v8 = vpop.f32.mrf.mxu1  ;;  %v951_v61 = vadd.f32 %v1467_v30, %v879_v13  ;;  %v1052_v35 = vadd.f32 %v1998_v38, %v1015_v7 }
 0x119   :  { %v1469_v16 = vpop.f32.mrf.mxu0 }
 0x11a   :  { %v1515_v14 = vpop.f32.mrf.mxu1  ;;  %v1470_v52 = vadd.f32 %v1469_v16, %v1468_v6  ;;  %v1433_v6 = vadd.f32 %v1959_v39, %v1957_v37  ;;  %v1023_v11 = vadd.f32 %v1513_v57, %v951_v61 }
 0x11b   :  { %v1471_v49 = vpop.f32.mrf.mxu0  ;;  %v1516_v16 = vadd.f32 %v1515_v14, %v1514_v8 }
 0x11c   :  { %v1517_v17 = vpop.f32.mrf.mxu1  ;;  %v954_v59 = vadd.f32 %v1470_v52, %v882_v60  ;;  %v895_v53 = vadd.f32 %v1433_v6, %v823_v25  ;;  %v1053_v14 = vadd.f32 %v1052_v35, %v1023_v11 }
 0x11d   :  { %v1472_v58 = vpop.f32.mrf.mxu0 }
 0x11e   :  { %v1518_v54 = vpop.f32.mrf.mxu1  ;;  %v1473_v0 = vadd.f32 %v1472_v58, %v1471_v49  ;;  %v1026_v3 = vadd.f32 %v1516_v16, %v954_v59 }
 0x11f   :  { %v1474_v63 = vpop.f32.mrf.mxu0  ;;  %v1519_v12 = vadd.f32 %v1518_v54, %v1517_v17  ;;  %v903_v54 = vadd.f32 %v1439_v51, %v831_v44 }
 0x120   :  { %v1520_v2 = vpop.f32.mrf.mxu1  ;;  %v959_v40 = vadd.f32 %v1473_v0, %v887_v32  ;;  %v1054_v28 = vadd.f32 %v1053_v14, %v1026_v3 }
 0x121   :  { %v1475_v29 = vpop.f32.mrf.mxu0 }
 0x122   :  { %v1476_v4 = vadd.f32 %v1475_v29, %v1474_v63  ;;  %v1521_v5 = vpop.f32.mrf.mxu1  ;;  %v1031_v20 = vadd.f32 %v1519_v12, %v959_v40 }
 0x123   :  { %v1477_v9 = vpop.f32.mrf.mxu0  ;;  %v1522_v22 = vadd.f32 %v1521_v5, %v1520_v2 }
 0x124   :  { %v1523_v42 = vpop.f32.mrf.mxu1  ;;  %v962_v18 = vadd.f32 %v1476_v4, %v890_v10  ;;  %v1055_v41 = vadd.f32 %v1054_v28, %v1031_v20 }
 0x125   :  { %v1478_v62 = vpop.f32.mrf.mxu0 }
 0x126   :  { %v1479_v37 = vadd.f32 %v1478_v62, %v1477_v9  ;;  %v1524_v39 = vpop.f32.mrf.mxu1  ;;  %v1034_v30 = vadd.f32 %v1522_v22, %v962_v18 }
 0x127   :  { %v1480_v8 = vpop.f32.mrf.mxu0  ;;  %v1525_v19 = vadd.f32 %v1524_v39, %v1523_v42 }
 0x128   :  { %v967_v49 = vadd.f32 %v1479_v37, %v895_v53  ;;  %v1526_v24 = vpop.f32.mrf.mxu1  ;;  %v1056_v60 = vadd.f32 %v1055_v41, %v1034_v30 }
 0x129   :  { %v1481_v46 = vpop.f32.mrf.mxu0 }
 0x12a   :  { %v1482_v17 = vadd.f32 %v1481_v46, %v1480_v8  ;;  %v1527_v50 = vpop.f32.mrf.mxu1  ;;  %v1039_v43 = vadd.f32 %v1525_v19, %v967_v49 }
 0x12b   :  { %v1483_v56 = vpop.f32.mrf.mxu0  ;;  %v1528_v13 = vadd.f32 %v1527_v50, %v1526_v24 }
 0x12c   :  { %v970_v58 = vadd.f32 %v1482_v17, %v898_v26  ;;  %v1529_v15 = vpop.f32.mrf.mxu1  ;;  %v1057_v32 = vadd.f32 %v1056_v60, %v1039_v43 }
 0x12d   :  { %v1484_v52 = vpop.f32.mrf.mxu0 }
 0x12e   :  { %v1042_v21 = vadd.f32 %v1528_v13, %v970_v58  ;;  %v1485_v1 = vadd.f32 %v1484_v52, %v1483_v56  ;;  %v1530_v23 = vpop.f32.mrf.mxu1  ;;  %v1308_v56 = vld [vmem:[%s2038_s3] ss:$0 sm:$0xff] }
 0x12f   :  { %v1486_v63 = vpop.f32.mrf.mxu0  ;;  %v1531_v61 = vadd.f32 %v1530_v23, %v1529_v15 }
 0x130   :  { %v975_v34 = vadd.f32 %v1485_v1, %v903_v54  ;;  %v1532_v0 = vpop.f32.mrf.mxu1  ;;  %v1058_v25 = vadd.f32 %v1057_v32, %v1042_v21 }
 0x131   :  { %v1487_v2 = vpop.f32.mrf.mxu0 }
 0x132   :  { %v1047_v45 = vadd.f32 %v1531_v61, %v975_v34  ;;  %v1533_v47 = vpop.f32.mrf.mxu1 }
 0x134   :  { %v1059_v27 = vadd.f32 %v1058_v25, %v1047_v45 }
 0x136   :  { %v1060_v36 = vrot.slane %v1059_v27, 4 }
 0x138   :  { %v1061_v29 = vadd.f32 %v1060_v36, %v1059_v27 }
 0x13a   :  { %v1062_v31 = vrot.slane %v1061_v29, 2 }
 0x13c   :  { %v1063_v57 = vadd.f32 %v1062_v31, %v1061_v29 }
 0x13e   :  { %v1064_v59 = vrot.slane %v1063_v57, 1 }
 0x140   :  { %v1065_v4 = vadd.f32 %v1064_v59, %v1063_v57 }
 0x142   :  { %v1067_v5 = vmul.f32 0.013888889, %v1065_v4 }
 0x144   :  { %v1068_v6 = vsub.f32 %v1015_v7, %v1067_v5  ;;  %v1069_v9 = vsub.f32 %v1998_v38, %v1067_v5  ;;  %v1070_v10 = vsub.f32 %v1023_v11, %v1067_v5  ;;  %v1071_v16 = vsub.f32 %v1026_v3, %v1067_v5 }
 0x145   :  { %v1072_v53 = vsub.f32 %v1031_v20, %v1067_v5  ;;  %v1073_v35 = vsub.f32 %v1034_v30, %v1067_v5  ;;  %v1074_v18 = vsub.f32 %v1039_v43, %v1067_v5  ;;  %v1075_v48 = vsub.f32 %v1042_v21, %v1067_v5  ;;  %v1309_v21 = vld [vmem:[%s2039_s4] ss:$0 sm:$0xff] }
 0x146   :  { %v1077_v40 = vmul.f32 %v1068_v6, %v1068_v6  ;;  %v1078_v42 = vmul.f32 %v1069_v9, %v1069_v9  ;;  %v1079_v55 = vmul.f32 %v1070_v10, %v1070_v10  ;;  %v1080_v62 = vmul.f32 %v1071_v16, %v1071_v16 }
 0x147   :  { %v1081_v37 = vmul.f32 %v1072_v53, %v1072_v53  ;;  %v1082_v8 = vmul.f32 %v1073_v35, %v1073_v35  ;;  %v1076_v22 = vsub.f32 %v1047_v45, %v1067_v5  ;;  %v1083_v7 = vmul.f32 %v1074_v18, %v1074_v18 }
 0x148   :  { %v1086_v33 = vadd.f32 %v1078_v42, %v1077_v40  ;;  %v1084_v38 = vmul.f32 %v1075_v48, %v1075_v48 }
 0x149   :  { %v1085_v3 = vmul.f32 %v1076_v22, %v1076_v22 }
 0x14a   :  { %v1087_v12 = vadd.f32 %v1086_v33, %v1079_v55 }
 0x14c   :  { %v1088_v39 = vadd.f32 %v1087_v12, %v1080_v62 }
 0x14e   :  { %v1089_v14 = vadd.f32 %v1088_v39, %v1081_v37 }
 0x150   :  { %v1090_v49 = vadd.f32 %v1089_v14, %v1082_v8 }
 0x152   :  { %v1091_v11 = vadd.f32 %v1090_v49, %v1083_v7 }
 0x154   :  { %v1092_v24 = vadd.f32 %v1091_v11, %v1084_v38 }
 0x156   :  { %v1093_v26 = vadd.f32 %v1092_v24, %v1085_v3 }
 0x158   :  { %v1094_v20 = vrot.slane %v1093_v26, 4 }
 0x15a   :  { %v1095_v44 = vadd.f32 %v1094_v20, %v1093_v26 }
 0x15c   :  { %v1096_v46 = vrot.slane %v1095_v44, 2 }
 0x15e   :  { %v1097_v28 = vadd.f32 %v1096_v46, %v1095_v44 }
 0x160   :  { %v1098_v30 = vrot.slane %v1097_v28, 1 }
 0x162   :  { %v1099_v19 = vadd.f32 %v1098_v30, %v1097_v28 }
 0x164   :  { %v1100_v17 = vmul.f32 0.013888889, %v1099_v19 }
 0x166   :  { %v1101_v50 = vadd.f32 1e-05, %v1100_v17 }
 0x168   :  { %1607 = vrsqrt.f32 %v1101_v50 }
 0x175   :  { %v1608_v51 = vpop.eup %1607 }
 0x176   :  { %v1103_v41 = vmul.f32 %v1608_v51, %v1068_v6  ;;  %v1104_v43 = vmul.f32 %v1608_v51, %v1069_v9  ;;  %v1105_v58 = vmul.f32 %v1608_v51, %v1070_v10  ;;  %v1106_v13 = vmul.f32 %v1608_v51, %v1071_v16 }
 0x177   :  { %v1107_v15 = vmul.f32 %v1608_v51, %v1072_v53  ;;  %v1108_v52 = vmul.f32 %v1608_v51, %v1073_v35  ;;  %v1109_v54 = vmul.f32 %v1608_v51, %v1074_v18  ;;  %v1110_v60 = vmul.f32 %v1608_v51, %v1075_v48 }
 0x178   :  { %v1111_v1 = vmul.f32 %v1608_v51, %v1076_v22  ;;  %v1119_v23 = vmul.f32 %v1308_v56, %v1103_v41  ;;  %v1120_v63 = vmul.f32 %v1308_v56, %v1104_v43  ;;  %v1121_v32 = vmul.f32 %v1308_v56, %v1105_v58 }
 0x179   :  { %v1122_v34 = vmul.f32 %v1308_v56, %v1106_v13  ;;  %v1123_v61 = vmul.f32 %v1308_v56, %v1107_v15  ;;  %v1124_v0 = vmul.f32 %v1308_v56, %v1108_v52  ;;  %v1125_v2 = vmul.f32 %v1308_v56, %v1109_v54 }
 0x17a   :  { %v1126_v25 = vmul.f32 %v1308_v56, %v1110_v60  ;;  %v1127_v45 = vmul.f32 %v1308_v56, %v1111_v1  ;;  %v1135_v47 = vadd.f32 %v1309_v21, %v1119_v23  ;;  %v1136_v27 = vadd.f32 %v1309_v21, %v1120_v63 }
 0x17b   :  { %v1137_v36 = vadd.f32 %v1309_v21, %v1121_v32  ;;  %v1138_v29 = vadd.f32 %v1309_v21, %v1122_v34  ;;  %v1139_v31 = vadd.f32 %v1309_v21, %v1123_v61  ;;  %v1140_v57 = vadd.f32 %v1309_v21, %v1124_v0 }
 0x17c   :  { %v1141_v59 = vadd.f32 %v1309_v21, %v1125_v2  ;;  %v1142_v4 = vadd.f32 %v1309_v21, %v1126_v25  ;;  %v1143_v5 = vadd.f32 %v1309_v21, %v1127_v45  ;;  %v1144_v6 = vmax.f32 %v1135_v47, 0.0 }
 0x17d   :  { %v1145_v9 = vmax.f32 %v1136_v27, 0.0  ;;  %v1146_v10 = vmax.f32 %v1137_v36, 0.0  ;;  %v1147_v16 = vmax.f32 %v1138_v29, 0.0  ;;  %v1148_v40 = vmax.f32 %v1139_v31, 0.0 }
 0x17e   :  { %v1149_v42 = vmax.f32 %v1140_v57, 0.0  ;;  %v1150_v53 = vmax.f32 %v1141_v59, 0.0  ;;  %v1151_v55 = vmax.f32 %v1142_v4, 0.0  ;;  %v1152_v33 = vmax.f32 %v1143_v5, 0.0 }
 0x17f   :  { %v1331_v35 = vpack.c.bf16 %v1145_v9, %v1144_v6  ;;  %v1336_v62 = vpack.c.bf16 %v1147_v16, %v1146_v10 }
 0x180   :  { %v1327_v12 = vpack.c.bf16 %v1152_v33, %v1152_v33  ;;  %v1341_v18 = vpack.c.bf16 %v1149_v42, %v1148_v40  ;;  %v1346_v37 = vpack.c.bf16 %v1151_v55, %v1150_v53 }
 0x181   :  { %1332 = vst [vmem:[%s2040_s5] sm:$0xff] %v1331_v35   ;;  %1348 = vst [vmem:[%s2040_s5 + $0x8] sm:$0xff] %v1336_v62  }
 0x182   :  { %1349 = vst [vmem:[%s2040_s5 + $0x10] sm:$0xff] %v1341_v18   ;;  %1350 = vst [vmem:[%s2040_s5 + $0x18] sm:$0xff] %v1346_v37  }
 0x183   :  { %1198 = vst [vmem:[%s2040_s5 + $0x20] sm:$0xf] %v1327_v12 }

// kernel: actor_forward.8
= control target key start
LH: loop header
LB: loop body
LE: loop exit
PB: predicated region body
PF: predicated region fallthrough
CT: control target
= control target key end

     0   :  { %s3777_s1 = inlined_call_operand.vmem [shape: bf16[2048,256], index: 1, kind: input, shape index: {}]   ;;  %s3778_s0 = inlined_call_operand.vmem [shape: bf16[18,2048], index: 0, kind: input, shape index: {}]   ;;  %s3779_s2 = inlined_call_operand.vmem [shape: f32[1,256], index: 2, kind: input, shape index: {}]   ;;  %s3780_s3 = inlined_call_operand.vmem [shape: bf16[18,256], index: 3, kind: output, shape index: {}]  }
   0x1   :  { %v2457_v0 = vld [vmem:[%s3777_s1 + $0x74] ss:$8 sps:$4 sm:$0xff]   ;;  %v2461_v2 = vld [vmem:[%s3777_s1 + $0x70] ss:$8 sps:$4 sm:$0xff]   ;;  %v2463_v4 = vld [vmem:[%s3777_s1 + $0x64] ss:$8 sps:$4 sm:$0xff]  }
   0x2   :  { %v2459_v1 = vld [vmem:[%s3777_s1 + $0x174] ss:$8 sps:$4 sm:$0xff]   ;;  %1722 = vmatprep.subr.bf16.mxu0 %v2457_v0  ;;  %v2462_v3 = vld [vmem:[%s3777_s1 + $0x170] ss:$8 sps:$4 sm:$0xff]   ;;  %v2465_v5 = vld [vmem:[%s3777_s1 + $0x164] ss:$8 sps:$4 sm:$0xff]  }
   0x3   :  { %1773 = vmatprep.subr.bf16.mxu1 %v2459_v1  ;;  %1723 = vmatpush1.bf16.msra.mxu0 %v2461_v2  ;;  %v2467_v6 = vld [vmem:[%s3777_s1 + $0x60] ss:$8 sps:$4 sm:$0xff]   ;;  %v2469_v8 = vld [vmem:[%s3777_s1 + $0x54] ss:$8 sps:$4 sm:$0xff]   ;;  %v2473_v10 = vld [vmem:[%s3777_s1 + $0x50] ss:$8 sps:$4 sm:$0xff]  }
   0x4   :  { %1774 = vmatpush1.bf16.msra.mxu1 %v2462_v3  ;;  %1724 = vmatprep.subr.bf16.mxu0 %v2463_v4  ;;  %v2468_v7 = vld [vmem:[%s3777_s1 + $0x160] ss:$8 sps:$4 sm:$0xff]   ;;  %v2471_v9 = vld [vmem:[%s3777_s1 + $0x154] ss:$8 sps:$4 sm:$0xff]   ;;  %v2474_v11 = vld [vmem:[%s3777_s1 + $0x150] ss:$8 sps:$4 sm:$0xff]  }
   0x5   :  { %1775 = vmatprep.subr.bf16.mxu1 %v2465_v5  ;;  %v2475_v12 = vld [vmem:[%s3777_s1 + $0x44] ss:$8 sps:$4 sm:$0xff]   ;;  %v2479_v14 = vld [vmem:[%s3777_s1 + $0x40] ss:$8 sps:$4 sm:$0xff]   ;;  %v2481_v16 = vld [vmem:[%s3777_s1 + $0x34] ss:$8 sps:$4 sm:$0xff]  }
   0x6   :  { %v2477_v13 = vld [vmem:[%s3777_s1 + $0x144] ss:$8 sps:$4 sm:$0xff]   ;;  %v2480_v15 = vld [vmem:[%s3777_s1 + $0x140] ss:$8 sps:$4 sm:$0xff]   ;;  %v2483_v17 = vld [vmem:[%s3777_s1 + $0x134] ss:$8 sps:$4 sm:$0xff]  }
   0x7   :  { %1725 = vmatpush1.bf16.msra.mxu0 %v2467_v6  ;;  %v2485_v18 = vld [vmem:[%s3777_s1 + $0x30] ss:$8 sps:$4 sm:$0xff]   ;;  %v2487_v20 = vld [vmem:[%s3777_s1 + $0x24] ss:$8 sps:$4 sm:$0xff]   ;;  %v2491_v22 = vld [vmem:[%s3777_s1 + $0x20] ss:$8 sps:$4 sm:$0xff]  }
   0x8   :  { %1776 = vmatpush1.bf16.msra.mxu1 %v2468_v7  ;;  %1726 = vmatprep.subr.bf16.mxu0 %v2469_v8  ;;  %v2486_v19 = vld [vmem:[%s3777_s1 + $0x130] ss:$8 sps:$4 sm:$0xff]   ;;  %v2489_v21 = vld [vmem:[%s3777_s1 + $0x124] ss:$8 sps:$4 sm:$0xff]   ;;  %v2492_v23 = vld [vmem:[%s3777_s1 + $0x120] ss:$8 sps:$4 sm:$0xff]  }
   0x9   :  { %1777 = vmatprep.subr.bf16.mxu1 %v2471_v9  ;;  %v2493_v24 = vld [vmem:[%s3777_s1 + $0x14] ss:$8 sps:$4 sm:$0xff]   ;;  %v2497_v26 = vld [vmem:[%s3777_s1 + $0x10] ss:$8 sps:$4 sm:$0xff]   ;;  %v2499_v28 = vld [vmem:[%s3777_s1 + $0x4] ss:$8 sps:$4 sm:$0xff]  }
   0xa   :  { %v2495_v25 = vld [vmem:[%s3777_s1 + $0x114] ss:$8 sps:$4 sm:$0xff]   ;;  %v2498_v27 = vld [vmem:[%s3777_s1 + $0x110] ss:$8 sps:$4 sm:$0xff]   ;;  %v2501_v29 = vld [vmem:[%s3777_s1 + $0x104] ss:$8 sps:$4 sm:$0xff]  }
   0xb   :  { %1727 = vmatpush1.bf16.msra.mxu0 %v2473_v10  ;;  %v2503_v30 = vld [vmem:[%s3777_s1] ss:$8 sps:$4 sm:$0xff]   ;;  %v2505_v32 = vld [vmem:[%s3777_s1 + $0xf4] ss:$8 sps:$4 sm:$0xff]   ;;  %v2509_v34 = vld [vmem:[%s3777_s1 + $0xf0] ss:$8 sps:$4 sm:$0xff]  }
   0xc   :  { %1778 = vmatpush1.bf16.msra.mxu1 %v2474_v11  ;;  %1728 = vmatprep.subr.bf16.mxu0 %v2475_v12  ;;  %v2504_v31 = vld [vmem:[%s3777_s1 + $0x100] ss:$8 sps:$4 sm:$0xff]   ;;  %v2507_v33 = vld [vmem:[%s3777_s1 + $0x1f4] ss:$8 sps:$4 sm:$0xff]   ;;  %v2510_v35 = vld [vmem:[%s3777_s1 + $0x1f0] ss:$8 sps:$4 sm:$0xff]  }
   0xd   :  { %1779 = vmatprep.subr.bf16.mxu1 %v2477_v13  ;;  %v2511_v36 = vld [vmem:[%s3777_s1 + $0xe4] ss:$8 sps:$4 sm:$0xff]   ;;  %v2515_v38 = vld [vmem:[%s3777_s1 + $0xe0] ss:$8 sps:$4 sm:$0xff]   ;;  %v2517_v40 = vld [vmem:[%s3777_s1 + $0xd4] ss:$8 sps:$4 sm:$0xff]  }
   0xe   :  { %v2513_v37 = vld [vmem:[%s3777_s1 + $0x1e4] ss:$8 sps:$4 sm:$0xff]   ;;  %v2516_v39 = vld [vmem:[%s3777_s1 + $0x1e0] ss:$8 sps:$4 sm:$0xff]   ;;  %v2519_v41 = vld [vmem:[%s3777_s1 + $0x1d4] ss:$8 sps:$4 sm:$0xff]  }
   0xf   :  { %1729 = vmatpush1.bf16.msra.mxu0 %v2479_v14  ;;  %v2521_v42 = vld [vmem:[%s3777_s1 + $0xd0] ss:$8 sps:$4 sm:$0xff]   ;;  %v2523_v44 = vld [vmem:[%s3777_s1 + $0xc4] ss:$8 sps:$4 sm:$0xff]   ;;  %v2527_v46 = vld [vmem:[%s3777_s1 + $0xc0] ss:$8 sps:$4 sm:$0xff]  }
  0x10   :  { %1780 = vmatpush1.bf16.msra.mxu1 %v2480_v15  ;;  %1730 = vmatprep.subr.bf16.mxu0 %v2481_v16  ;;  %v2522_v43 = vld [vmem:[%s3777_s1 + $0x1d0] ss:$8 sps:$4 sm:$0xff]   ;;  %v2525_v45 = vld [vmem:[%s3777_s1 + $0x1c4] ss:$8 sps:$4 sm:$0xff]   ;;  %v2528_v47 = vld [vmem:[%s3777_s1 + $0x1c0] ss:$8 sps:$4 sm:$0xff]  }
  0x11   :  { %1781 = vmatprep.subr.bf16.mxu1 %v2483_v17  ;;  %v14_v48 = vld [vmem:[%s3778_s0] sm:$0xff]  ;;  %v15_v50 = vld [vmem:[%s3778_s0 + $0x8] sm:$0xff]  ;;  %v2529_v52 = vld [vmem:[%s3777_s1 + $0xb4] ss:$8 sps:$4 sm:$0xff]  }
  0x12   :  { %v22_v49 = vld [vmem:[%s3778_s0 + $0x40] sm:$0xff]  ;;  %v23_v51 = vld [vmem:[%s3778_s0 + $0x48] sm:$0xff]  ;;  %v2531_v54 = vld [vmem:[%s3777_s1 + $0x1b4] ss:$8 sps:$4 sm:$0xff]  }
  0x13   :  { %1731 = vmatpush1.bf16.msra.mxu0 %v2485_v18  ;;  %v2164_v53 = vcombine.high %v14_v48, %v22_v49  ;;  %v2166_v55 = vcombine.high %v15_v50, %v23_v51  ;;  %v2533_v56 = vld [vmem:[%s3777_s1 + $0xb0] ss:$8 sps:$4 sm:$0xff]   ;;  %v2535_v58 = vld [vmem:[%s3777_s1 + $0xa4] ss:$8 sps:$4 sm:$0xff]   ;;  %v2539_v60 = vld [vmem:[%s3777_s1 + $0xa0] ss:$8 sps:$4 sm:$0xff]   ;;  %v2163_v8 = vcombine.low %v14_v48, %v22_v49  ;;  %v2165_v9 = vcombine.low %v15_v50, %v23_v51 }
  0x14   :  { %1782 = vmatpush1.bf16.msra.mxu1 %v2486_v19  ;;  %1732 = vmatprep.subr.bf16.mxu0 %v2487_v20  ;;  %v2534_v57 = vld [vmem:[%s3777_s1 + $0x1b0] ss:$8 sps:$4 sm:$0xff]   ;;  %v2537_v59 = vld [vmem:[%s3777_s1 + $0x1a4] ss:$8 sps:$4 sm:$0xff]   ;;  %v2540_v61 = vld [vmem:[%s3777_s1 + $0x1a0] ss:$8 sps:$4 sm:$0xff]  }
  0x15   :  { %1783 = vmatprep.subr.bf16.mxu1 %v2489_v21  ;;  %1754 = vmatprep.mubr.bf16.mxu0 %v2164_v53  ;;  %v2541_v62 = vld [vmem:[%s3777_s1 + $0x94] ss:$8 sps:$4 sm:$0xff]   ;;  %v2545_v0 = vld [vmem:[%s3777_s1 + $0x90] ss:$8 sps:$4 sm:$0xff]   ;;  %v2547_v2 = vld [vmem:[%s3777_s1 + $0x84] ss:$8 sps:$4 sm:$0xff]  }
  0x16   :  { %1805 = vmatprep.mubr.bf16.mxu1 %v2166_v55  ;;  %v2543_v63 = vld [vmem:[%s3777_s1 + $0x194] ss:$8 sps:$4 sm:$0xff]   ;;  %v2546_v1 = vld [vmem:[%s3777_s1 + $0x190] ss:$8 sps:$4 sm:$0xff]   ;;  %v2549_v3 = vld [vmem:[%s3777_s1 + $0x184] ss:$8 sps:$4 sm:$0xff]  }
  0x17   :  { %1733 = vmatpush1.bf16.msra.mxu0 %v2491_v22  ;;  %v2551_v4 = vld [vmem:[%s3777_s1 + $0x80] ss:$8 sps:$4 sm:$0xff]   ;;  %v2555_v6 = vld [vmem:[%s3777_s1 + $0x274] ss:$8 sps:$4 sm:$0xff]   ;;  %v2553_v10 = vld [vmem:[%s3777_s1 + $0x270] ss:$8 sps:$4 sm:$0xff]  }
  0x18   :  { %1784 = vmatpush1.bf16.msra.mxu1 %v2492_v23  ;;  %1734 = vmatprep.subr.bf16.mxu0 %v2493_v24  ;;  %v2552_v5 = vld [vmem:[%s3777_s1 + $0x180] ss:$8 sps:$4 sm:$0xff]   ;;  %v2558_v7 = vld [vmem:[%s3777_s1 + $0x374] ss:$8 sps:$4 sm:$0xff]   ;;  %v2556_v11 = vld [vmem:[%s3777_s1 + $0x370] ss:$8 sps:$4 sm:$0xff]  }
  0x19   :  { %1785 = vmatprep.subr.bf16.mxu1 %v2495_v25  ;;  %v2561_v12 = vld [vmem:[%s3777_s1 + $0x264] ss:$8 sps:$4 sm:$0xff]   ;;  %v2559_v14 = vld [vmem:[%s3777_s1 + $0x260] ss:$8 sps:$4 sm:$0xff]   ;;  %v2567_v16 = vld [vmem:[%s3777_s1 + $0x254] ss:$8 sps:$4 sm:$0xff]  }
  0x1a   :  { %v2564_v13 = vld [vmem:[%s3777_s1 + $0x364] ss:$8 sps:$4 sm:$0xff]   ;;  %v2562_v15 = vld [vmem:[%s3777_s1 + $0x360] ss:$8 sps:$4 sm:$0xff]   ;;  %v2570_v17 = vld [vmem:[%s3777_s1 + $0x354] ss:$8 sps:$4 sm:$0xff]  }
  0x1b   :  { %1735 = vmatpush1.bf16.msra.mxu0 %v2497_v26  ;;  %v2565_v18 = vld [vmem:[%s3777_s1 + $0x250] ss:$8 sps:$4 sm:$0xff]   ;;  %v2573_v20 = vld [vmem:[%s3777_s1 + $0x244] ss:$8 sps:$4 sm:$0xff]   ;;  %v2571_v22 = vld [vmem:[%s3777_s1 + $0x240] ss:$8 sps:$4 sm:$0xff]  }
  0x1c   :  { %1786 = vmatpush1.bf16.msra.mxu1 %v2498_v27  ;;  %1736 = vmatprep.subr.bf16.mxu0 %v2499_v28  ;;  %v2568_v19 = vld [vmem:[%s3777_s1 + $0x350] ss:$8 sps:$4 sm:$0xff]   ;;  %v2576_v21 = vld [vmem:[%s3777_s1 + $0x344] ss:$8 sps:$4 sm:$0xff]   ;;  %v2574_v23 = vld [vmem:[%s3777_s1 + $0x340] ss:$8 sps:$4 sm:$0xff]  }
  0x1d   :  { %1787 = vmatprep.subr.bf16.mxu1 %v2501_v29  ;;  %v2579_v24 = vld [vmem:[%s3777_s1 + $0x234] ss:$8 sps:$4 sm:$0xff]   ;;  %v30_v26 = vld [vmem:[%s3778_s0 + $0x80] sm:$0x11]  ;;  %v31_v29 = vld [vmem:[%s3778_s0 + $0x88] sm:$0x11] }
  0x1e   :  { %v2582_v25 = vld [vmem:[%s3777_s1 + $0x334] ss:$8 sps:$4 sm:$0xff]   ;;  %v2180_v27 = vcombine.high %v30_v26, %v30_v26  ;;  %v2179_v28 = vcombine.low %v30_v26, %v30_v26  ;;  %v2600_v48 = vld [vmem:[%s3777_s1 + $0x304] ss:$8 sps:$4 sm:$0xff]   ;;  %v2595_v50 = vld [vmem:[%s3777_s1 + $0x200] ss:$8 sps:$4 sm:$0xff]  }
  0x1f   :  { %1737 = vmatpush1.bf16.msra.mxu0 %v2503_v30  ;;  %v2577_v30 = vld [vmem:[%s3777_s1 + $0x230] ss:$8 sps:$4 sm:$0xff]   ;;  %v2598_v51 = vld [vmem:[%s3777_s1 + $0x300] ss:$8 sps:$4 sm:$0xff]   ;;  %v2606_v53 = vld [vmem:[%s3777_s1 + $0x3f4] ss:$8 sps:$4 sm:$0xff]  }
  0x20   :  { %1788 = vmatpush1.bf16.msra.mxu1 %v2504_v31  ;;  %1738 = vmatprep.subr.bf16.mxu0 %v2505_v32  ;;  %v2580_v31 = vld [vmem:[%s3777_s1 + $0x330] ss:$8 sps:$4 sm:$0xff]   ;;  %v2182_v32 = vcombine.high %v31_v29, %v31_v29 }
  0x21   :  { %1789 = vmatprep.subr.bf16.mxu1 %v2507_v33  ;;  %v2181_v33 = vcombine.low %v31_v29, %v31_v29  ;;  %v2604_v55 = vld [vmem:[%s3777_s1 + $0x3f0] ss:$8 sps:$4 sm:$0xff]   ;;  %v2664_v29 = vld [vmem:[%s3777_s1 + $0x564] ss:$8 sps:$4 sm:$0xff]  }
  0x22   :  { %v32_v26 = vld [vmem:[%s3778_s0 + $0x90] sm:$0x11] }
  0x23   :  { %1739 = vmatpush2.bf16.msra.mxu0 %v2509_v34  ;;  %v2585_v34 = vld [vmem:[%s3777_s1 + $0x224] ss:$8 sps:$4 sm:$0xff]  }
  0x24   :  { %1790 = vmatpush2.bf16.msra.mxu1 %v2510_v35  ;;  %1740 = vmatprep.subr.bf16.mxu0 %v2511_v36  ;;  %v2588_v35 = vld [vmem:[%s3777_s1 + $0x324] ss:$8 sps:$4 sm:$0xff]   ;;  %v2583_v36 = vld [vmem:[%s3777_s1 + $0x220] ss:$8 sps:$4 sm:$0xff]  }
  0x25   :  { %1791 = vmatprep.subr.bf16.mxu1 %v2513_v37  ;;  %v2586_v37 = vld [vmem:[%s3777_s1 + $0x320] ss:$8 sps:$4 sm:$0xff]  }
  0x27   :  { %1741 = vmatpush2.bf16.msra.mxu0 %v2515_v38  ;;  %v2591_v38 = vld [vmem:[%s3777_s1 + $0x214] ss:$8 sps:$4 sm:$0xff]  }
  0x28   :  { %1792 = vmatpush2.bf16.msra.mxu1 %v2516_v39  ;;  %1742 = vmatprep.subr.bf16.mxu0 %v2517_v40  ;;  %v2594_v39 = vld [vmem:[%s3777_s1 + $0x314] ss:$8 sps:$4 sm:$0xff]   ;;  %v2589_v40 = vld [vmem:[%s3777_s1 + $0x210] ss:$8 sps:$4 sm:$0xff]  }
  0x29   :  { %1793 = vmatprep.subr.bf16.mxu1 %v2519_v41  ;;  %v2592_v41 = vld [vmem:[%s3777_s1 + $0x310] ss:$8 sps:$4 sm:$0xff]  }
  0x2b   :  { %1743 = vmatpush2.bf16.msra.mxu0 %v2521_v42  ;;  %v3174_v42 = vld [vmem:[%s3778_s0 + $0x10] sm:$0xff] }
  0x2c   :  { %1794 = vmatpush2.bf16.msra.mxu1 %v2522_v43  ;;  %1744 = vmatprep.subr.bf16.mxu0 %v2523_v44  ;;  %v3179_v43 = vld [vmem:[%s3778_s0 + $0x50] sm:$0xff] }
  0x2d   :  { %1795 = vmatprep.subr.bf16.mxu1 %v2525_v45  ;;  %v2168_v44 = vcombine.high %v3174_v42, %v3179_v43  ;;  %v3186_v45 = vld [vmem:[%s3778_s0 + $0x18] sm:$0xff] }
  0x2f   :  { %1745 = vmatpush2.bf16.msra.mxu0 %v2527_v46  ;;  %v3191_v46 = vld [vmem:[%s3778_s0 + $0x58] sm:$0xff] }
  0x30   :  { %1796 = vmatpush2.bf16.msra.mxu1 %v2528_v47  ;;  %1746 = vmatprep.subr.bf16.mxu0 %v2529_v52  ;;  %v2597_v47 = vld [vmem:[%s3777_s1 + $0x204] ss:$8 sps:$4 sm:$0xff]   ;;  %v2170_v49 = vcombine.high %v3186_v45, %v3191_v46  ;;  %v2603_v52 = vld [vmem:[%s3777_s1 + $0x2f4] ss:$8 sps:$4 sm:$0xff]  }
  0x31   :  { %1797 = vmatprep.subr.bf16.mxu1 %v2531_v54  ;;  %v2601_v54 = vld [vmem:[%s3777_s1 + $0x2f0] ss:$8 sps:$4 sm:$0xff]  }
  0x33   :  { %1747 = vmatpush2.bf16.msra.mxu0 %v2533_v56  ;;  %v2609_v56 = vld [vmem:[%s3777_s1 + $0x2e4] ss:$8 sps:$4 sm:$0xff]  }
  0x34   :  { %1798 = vmatpush2.bf16.msra.mxu1 %v2534_v57  ;;  %1748 = vmatprep.subr.bf16.mxu0 %v2535_v58  ;;  %v2612_v57 = vld [vmem:[%s3777_s1 + $0x3e4] ss:$8 sps:$4 sm:$0xff]   ;;  %v2607_v58 = vld [vmem:[%s3777_s1 + $0x2e0] ss:$8 sps:$4 sm:$0xff]  }
  0x35   :  { %1799 = vmatprep.subr.bf16.mxu1 %v2537_v59  ;;  %v2610_v59 = vld [vmem:[%s3777_s1 + $0x3e0] ss:$8 sps:$4 sm:$0xff]  }
  0x37   :  { %1749 = vmatpush2.bf16.msra.mxu0 %v2539_v60  ;;  %v2615_v60 = vld [vmem:[%s3777_s1 + $0x2d4] ss:$8 sps:$4 sm:$0xff]  }
  0x38   :  { %1800 = vmatpush2.bf16.msra.mxu1 %v2540_v61  ;;  %1750 = vmatprep.subr.bf16.mxu0 %v2541_v62  ;;  %v2618_v61 = vld [vmem:[%s3777_s1 + $0x3d4] ss:$8 sps:$4 sm:$0xff]   ;;  %v2613_v62 = vld [vmem:[%s3777_s1 + $0x2d0] ss:$8 sps:$4 sm:$0xff]  }
  0x39   :  { %1801 = vmatprep.subr.bf16.mxu1 %v2543_v63  ;;  %v2616_v63 = vld [vmem:[%s3777_s1 + $0x3d0] ss:$8 sps:$4 sm:$0xff]  }
  0x3b   :  { %1751 = vmatpush2.bf16.msra.mxu0 %v2545_v0  ;;  %v2621_v0 = vld [vmem:[%s3777_s1 + $0x2c4] ss:$8 sps:$4 sm:$0xff]  }
  0x3c   :  { %1802 = vmatpush2.bf16.msra.mxu1 %v2546_v1  ;;  %1752 = vmatprep.subr.bf16.mxu0 %v2547_v2  ;;  %v2624_v1 = vld [vmem:[%s3777_s1 + $0x3c4] ss:$8 sps:$4 sm:$0xff]   ;;  %v2619_v2 = vld [vmem:[%s3777_s1 + $0x2c0] ss:$8 sps:$4 sm:$0xff]  }
  0x3d   :  { %1803 = vmatprep.subr.bf16.mxu1 %v2549_v3  ;;  %v2622_v3 = vld [vmem:[%s3777_s1 + $0x3c0] ss:$8 sps:$4 sm:$0xff]  }
  0x3f   :  { %1753 = vmatpush2.bf16.msra.mxu0 %v2551_v4  ;;  %v2627_v4 = vld [vmem:[%s3777_s1 + $0x2b4] ss:$8 sps:$4 sm:$0xff]  }
  0x40   :  { %1804 = vmatpush2.bf16.msra.mxu1 %v2552_v5  ;;  %1824 = vmatprep.subr.bf16.mxu0 %v2555_v6  ;;  %v2630_v5 = vld [vmem:[%s3777_s1 + $0x3b4] ss:$8 sps:$4 sm:$0xff]   ;;  %v2625_v6 = vld [vmem:[%s3777_s1 + $0x2b0] ss:$8 sps:$4 sm:$0xff]  }
  0x41   :  { %1875 = vmatprep.subr.bf16.mxu1 %v2558_v7  ;;  %v2628_v7 = vld [vmem:[%s3777_s1 + $0x3b0] ss:$8 sps:$4 sm:$0xff]  }
  0x42   :  { %1755 = vmatmul.mubr.bf16.vlgmr.msra.gmra.mxu0 %v2163_v8  ;;  %v2636_v8 = vld [vmem:[%s3777_s1 + $0x2a4] ss:$8 sps:$4 sm:$0xff]  }
  0x43   :  { %1806 = vmatmul.mubr.bf16.vlgmr.msra.gmra.mxu1 %v2165_v9  ;;  %1825 = vmatpush1.bf16.msra.mxu0 %v2553_v10  ;;  %v2639_v9 = vld [vmem:[%s3777_s1 + $0x3a4] ss:$8 sps:$4 sm:$0xff]   ;;  %v2634_v10 = vld [vmem:[%s3777_s1 + $0x2a0] ss:$8 sps:$4 sm:$0xff]  }
  0x44   :  { %1876 = vmatpush1.bf16.msra.mxu1 %v2556_v11  ;;  %1826 = vmatprep.subr.bf16.mxu0 %v2561_v12  ;;  %v2637_v11 = vld [vmem:[%s3777_s1 + $0x3a0] ss:$8 sps:$4 sm:$0xff]   ;;  %v2643_v12 = vld [vmem:[%s3777_s1 + $0x294] ss:$8 sps:$4 sm:$0xff]  }
  0x45   :  { %1877 = vmatprep.subr.bf16.mxu1 %v2564_v13  ;;  %1764 = vmatprep.mubr.bf16.mxu0 %v2180_v27  ;;  %v2646_v13 = vld [vmem:[%s3777_s1 + $0x394] ss:$8 sps:$4 sm:$0xff]  }
  0x46   :  { %1815 = vmatprep.mubr.bf16.mxu1 %v2182_v32  ;;  %v33_v27 = vld [vmem:[%s3778_s0 + $0x98] sm:$0x11]  ;;  %v2659_v32 = vld [vmem:[%s3777_s1 + $0x460] ss:$8 sps:$4 sm:$0xff]  }
  0x47   :  { %1827 = vmatpush1.bf16.msra.mxu0 %v2559_v14  ;;  %v2641_v14 = vld [vmem:[%s3777_s1 + $0x290] ss:$8 sps:$4 sm:$0xff]  }
  0x48   :  { %1878 = vmatpush1.bf16.msra.mxu1 %v2562_v15  ;;  %1828 = vmatprep.subr.bf16.mxu0 %v2567_v16  ;;  %v2644_v15 = vld [vmem:[%s3777_s1 + $0x390] ss:$8 sps:$4 sm:$0xff]   ;;  %v2649_v16 = vld [vmem:[%s3777_s1 + $0x284] ss:$8 sps:$4 sm:$0xff]  }
  0x49   :  { %1879 = vmatprep.subr.bf16.mxu1 %v2570_v17  ;;  %v2652_v17 = vld [vmem:[%s3777_s1 + $0x384] ss:$8 sps:$4 sm:$0xff]  }
  0x4a   :  { %1765 = vmatmul.mubr.bf16.gmra.mxu0 %v2179_v28  ;;  %v2661_v28 = vld [vmem:[%s3777_s1 + $0x464] ss:$8 sps:$4 sm:$0xff]  }
  0x4b   :  { %1829 = vmatpush1.bf16.msra.mxu0 %v2565_v18  ;;  %1816 = vmatmul.mubr.bf16.gmra.mxu1 %v2181_v33  ;;  %v2647_v18 = vld [vmem:[%s3777_s1 + $0x280] ss:$8 sps:$4 sm:$0xff]  }
  0x4c   :  { %1880 = vmatpush1.bf16.msra.mxu1 %v2568_v19  ;;  %1830 = vmatprep.subr.bf16.mxu0 %v2573_v20  ;;  %v2650_v19 = vld [vmem:[%s3777_s1 + $0x380] ss:$8 sps:$4 sm:$0xff]   ;;  %v2655_v20 = vld [vmem:[%s3777_s1 + $0x474] ss:$8 sps:$4 sm:$0xff]  }
  0x4d   :  { %1881 = vmatprep.subr.bf16.mxu1 %v2576_v21  ;;  %1856 = vmatprep.mubr.bf16.mxu0 %v2168_v44  ;;  %v2658_v21 = vld [vmem:[%s3777_s1 + $0x574] ss:$8 sps:$4 sm:$0xff]   ;;  %v2662_v33 = vld [vmem:[%s3777_s1 + $0x560] ss:$8 sps:$4 sm:$0xff]   ;;  %v2677_v44 = vld [vmem:[%s3777_s1 + $0x444] ss:$8 sps:$4 sm:$0xff]  }
  0x4e   :  { %1907 = vmatprep.mubr.bf16.mxu1 %v2170_v49  ;;  %v2678_v49 = vld [vmem:[%s3777_s1 + $0x540] ss:$8 sps:$4 sm:$0xff]  }
  0x4f   :  { %1831 = vmatpush1.bf16.msra.mxu0 %v2571_v22  ;;  %v2653_v22 = vld [vmem:[%s3777_s1 + $0x470] ss:$8 sps:$4 sm:$0xff]  }
  0x50   :  { %1882 = vmatpush1.bf16.msra.mxu1 %v2574_v23  ;;  %1832 = vmatprep.subr.bf16.mxu0 %v2579_v24  ;;  %v2656_v23 = vld [vmem:[%s3777_s1 + $0x570] ss:$8 sps:$4 sm:$0xff]   ;;  %v2167_v24 = vcombine.low %v3174_v42, %v3179_v43  ;;  %v3362_v42 = vld [vmem:[%s3778_s0 + $0x28] sm:$0xff] }
  0x51   :  { %1883 = vmatprep.subr.bf16.mxu1 %v2582_v25  ;;  %v2169_v25 = vcombine.low %v3186_v45, %v3191_v46  ;;  %v3367_v43 = vld [vmem:[%s3778_s0 + $0x68] sm:$0xff] }
  0x52   :  { %v2680_v45 = vld [vmem:[%s3777_s1 + $0x544] ss:$8 sps:$4 sm:$0xff]  }
  0x53   :  { %1833 = vmatpush1.bf16.msra.mxu0 %v2577_v30  ;;  %v2184_v30 = vcombine.high %v32_v26, %v32_v26 }
  0x54   :  { %1884 = vmatpush1.bf16.msra.mxu1 %v2580_v31  ;;  %1834 = vmatprep.subr.bf16.mxu0 %v2585_v34  ;;  %v2186_v31 = vcombine.high %v33_v27, %v33_v27  ;;  %v2669_v34 = vld [vmem:[%s3777_s1 + $0x454] ss:$8 sps:$4 sm:$0xff]  }
  0x55   :  { %1885 = vmatprep.subr.bf16.mxu1 %v2588_v35  ;;  %v2672_v35 = vld [vmem:[%s3777_s1 + $0x554] ss:$8 sps:$4 sm:$0xff]  }
  0x57   :  { %1835 = vmatpush1.bf16.msra.mxu0 %v2583_v36  ;;  %v2667_v36 = vld [vmem:[%s3777_s1 + $0x450] ss:$8 sps:$4 sm:$0xff]  }
  0x58   :  { %1886 = vmatpush1.bf16.msra.mxu1 %v2586_v37  ;;  %1836 = vmatprep.subr.bf16.mxu0 %v2591_v38  ;;  %v2670_v37 = vld [vmem:[%s3777_s1 + $0x550] ss:$8 sps:$4 sm:$0xff]   ;;  %v3352_v38 = vld [vmem:[%s3778_s0 + $0x20] sm:$0xff] }
  0x59   :  { %1887 = vmatprep.subr.bf16.mxu1 %v2594_v39  ;;  %v3357_v39 = vld [vmem:[%s3778_s0 + $0x60] sm:$0xff] }
  0x5a   :  { %v2172_v46 = vcombine.high %v3352_v38, %v3357_v39 }
  0x5b   :  { %1837 = vmatpush1.bf16.msra.mxu0 %v2589_v40  ;;  %v2183_v40 = vcombine.low %v32_v26, %v32_v26  ;;  %v2743_v26 = vld [vmem:[%s3777_s1 + $0x494] ss:$8 sps:$4 sm:$0xff]  }
  0x5c   :  { %1888 = vmatpush1.bf16.msra.mxu1 %v2592_v41  ;;  %1838 = vmatprep.subr.bf16.mxu0 %v2597_v47  ;;  %v2185_v41 = vcombine.low %v33_v27, %v33_v27  ;;  %v2174_v47 = vcombine.high %v3362_v42, %v3367_v43  ;;  %v2746_v27 = vld [vmem:[%s3777_s1 + $0x594] ss:$8 sps:$4 sm:$0xff]  }
  0x5d   :  { %1889 = vmatprep.subr.bf16.mxu1 %v2600_v48  ;;  %v2675_v48 = vld [vmem:[%s3777_s1 + $0x440] ss:$8 sps:$4 sm:$0xff]  }
  0x5f   :  { %1839 = vmatpush1.bf16.msra.mxu0 %v2595_v50  ;;  %v2683_v50 = vld [vmem:[%s3777_s1 + $0x434] ss:$8 sps:$4 sm:$0xff]  }
  0x60   :  { %1890 = vmatpush1.bf16.msra.mxu1 %v2598_v51  ;;  %1840 = vmatprep.subr.bf16.mxu0 %v2603_v52  ;;  %v2686_v51 = vld [vmem:[%s3777_s1 + $0x534] ss:$8 sps:$4 sm:$0xff]   ;;  %v2681_v52 = vld [vmem:[%s3777_s1 + $0x430] ss:$8 sps:$4 sm:$0xff]  }
  0x61   :  { %1891 = vmatprep.subr.bf16.mxu1 %v2606_v53  ;;  %v2684_v53 = vld [vmem:[%s3777_s1 + $0x530] ss:$8 sps:$4 sm:$0xff]  }
  0x63   :  { %1841 = vmatpush2.bf16.msra.mxu0 %v2601_v54  ;;  %v2689_v54 = vld [vmem:[%s3777_s1 + $0x424] ss:$8 sps:$4 sm:$0xff]  }
  0x64   :  { %1892 = vmatpush2.bf16.msra.mxu1 %v2604_v55  ;;  %1842 = vmatprep.subr.bf16.mxu0 %v2609_v56  ;;  %v2692_v55 = vld [vmem:[%s3777_s1 + $0x524] ss:$8 sps:$4 sm:$0xff]   ;;  %v2687_v56 = vld [vmem:[%s3777_s1 + $0x420] ss:$8 sps:$4 sm:$0xff]  }
  0x65   :  { %1893 = vmatprep.subr.bf16.mxu1 %v2612_v57  ;;  %v2690_v57 = vld [vmem:[%s3777_s1 + $0x520] ss:$8 sps:$4 sm:$0xff]  }
  0x67   :  { %1843 = vmatpush2.bf16.msra.mxu0 %v2607_v58  ;;  %v2695_v58 = vld [vmem:[%s3777_s1 + $0x414] ss:$8 sps:$4 sm:$0xff]  }
  0x68   :  { %1894 = vmatpush2.bf16.msra.mxu1 %v2610_v59  ;;  %1844 = vmatprep.subr.bf16.mxu0 %v2615_v60  ;;  %v2698_v59 = vld [vmem:[%s3777_s1 + $0x514] ss:$8 sps:$4 sm:$0xff]   ;;  %v2693_v60 = vld [vmem:[%s3777_s1 + $0x410] ss:$8 sps:$4 sm:$0xff]  }
  0x69   :  { %1895 = vmatprep.subr.bf16.mxu1 %v2618_v61  ;;  %v2696_v61 = vld [vmem:[%s3777_s1 + $0x510] ss:$8 sps:$4 sm:$0xff]  }
  0x6b   :  { %1845 = vmatpush2.bf16.msra.mxu0 %v2613_v62  ;;  %v2701_v62 = vld [vmem:[%s3777_s1 + $0x404] ss:$8 sps:$4 sm:$0xff]  }
  0x6c   :  { %1896 = vmatpush2.bf16.msra.mxu1 %v2616_v63  ;;  %1846 = vmatprep.subr.bf16.mxu0 %v2621_v0  ;;  %v2704_v63 = vld [vmem:[%s3777_s1 + $0x504] ss:$8 sps:$4 sm:$0xff]   ;;  %v2699_v0 = vld [vmem:[%s3777_s1 + $0x400] ss:$8 sps:$4 sm:$0xff]  }
  0x6d   :  { %1897 = vmatprep.subr.bf16.mxu1 %v2624_v1  ;;  %v2702_v1 = vld [vmem:[%s3777_s1 + $0x500] ss:$8 sps:$4 sm:$0xff]  }
  0x6f   :  { %1847 = vmatpush2.bf16.msra.mxu0 %v2619_v2  ;;  %v2707_v2 = vld [vmem:[%s3777_s1 + $0x4f4] ss:$8 sps:$4 sm:$0xff]  }
  0x70   :  { %1898 = vmatpush2.bf16.msra.mxu1 %v2622_v3  ;;  %1848 = vmatprep.subr.bf16.mxu0 %v2627_v4  ;;  %v2710_v3 = vld [vmem:[%s3777_s1 + $0x5f4] ss:$8 sps:$4 sm:$0xff]   ;;  %v2705_v4 = vld [vmem:[%s3777_s1 + $0x4f0] ss:$8 sps:$4 sm:$0xff]  }
  0x71   :  { %1899 = vmatprep.subr.bf16.mxu1 %v2630_v5  ;;  %v2708_v5 = vld [vmem:[%s3777_s1 + $0x5f0] ss:$8 sps:$4 sm:$0xff]  }
  0x73   :  { %1849 = vmatpush2.bf16.msra.mxu0 %v2625_v6  ;;  %v2713_v6 = vld [vmem:[%s3777_s1 + $0x4e4] ss:$8 sps:$4 sm:$0xff]  }
  0x74   :  { %1900 = vmatpush2.bf16.msra.mxu1 %v2628_v7  ;;  %1850 = vmatprep.subr.bf16.mxu0 %v2636_v8  ;;  %v2716_v7 = vld [vmem:[%s3777_s1 + $0x5e4] ss:$8 sps:$4 sm:$0xff]   ;;  %v2711_v8 = vld [vmem:[%s3777_s1 + $0x4e0] ss:$8 sps:$4 sm:$0xff]  }
  0x75   :  { %1901 = vmatprep.subr.bf16.mxu1 %v2639_v9  ;;  %v2714_v9 = vld [vmem:[%s3777_s1 + $0x5e0] ss:$8 sps:$4 sm:$0xff]  }
  0x77   :  { %1851 = vmatpush2.bf16.msra.mxu0 %v2634_v10  ;;  %v2719_v10 = vld [vmem:[%s3777_s1 + $0x4d4] ss:$8 sps:$4 sm:$0xff]  }
  0x78   :  { %1902 = vmatpush2.bf16.msra.mxu1 %v2637_v11  ;;  %1852 = vmatprep.subr.bf16.mxu0 %v2643_v12  ;;  %v2722_v11 = vld [vmem:[%s3777_s1 + $0x5d4] ss:$8 sps:$4 sm:$0xff]   ;;  %v2717_v12 = vld [vmem:[%s3777_s1 + $0x4d0] ss:$8 sps:$4 sm:$0xff]  }
  0x79   :  { %1903 = vmatprep.subr.bf16.mxu1 %v2646_v13  ;;  %v2720_v13 = vld [vmem:[%s3777_s1 + $0x5d0] ss:$8 sps:$4 sm:$0xff]  }
  0x7b   :  { %1853 = vmatpush2.bf16.msra.mxu0 %v2641_v14  ;;  %v2725_v14 = vld [vmem:[%s3777_s1 + $0x4c4] ss:$8 sps:$4 sm:$0xff]  }
  0x7c   :  { %1904 = vmatpush2.bf16.msra.mxu1 %v2644_v15  ;;  %1854 = vmatprep.subr.bf16.mxu0 %v2649_v16  ;;  %v2728_v15 = vld [vmem:[%s3777_s1 + $0x5c4] ss:$8 sps:$4 sm:$0xff]   ;;  %v2723_v16 = vld [vmem:[%s3777_s1 + $0x4c0] ss:$8 sps:$4 sm:$0xff]  }
  0x7d   :  { %1905 = vmatprep.subr.bf16.mxu1 %v2652_v17  ;;  %v2726_v17 = vld [vmem:[%s3777_s1 + $0x5c0] ss:$8 sps:$4 sm:$0xff]  }
  0x7f   :  { %1855 = vmatpush2.bf16.msra.mxu0 %v2647_v18  ;;  %v2731_v18 = vld [vmem:[%s3777_s1 + $0x4b4] ss:$8 sps:$4 sm:$0xff]  }
  0x80   :  { %1906 = vmatpush2.bf16.msra.mxu1 %v2650_v19  ;;  %1926 = vmatprep.subr.bf16.mxu0 %v2655_v20  ;;  %v2734_v19 = vld [vmem:[%s3777_s1 + $0x5b4] ss:$8 sps:$4 sm:$0xff]   ;;  %v2729_v20 = vld [vmem:[%s3777_s1 + $0x4b0] ss:$8 sps:$4 sm:$0xff]  }
  0x81   :  { %1977 = vmatprep.subr.bf16.mxu1 %v2658_v21  ;;  %v2732_v21 = vld [vmem:[%s3777_s1 + $0x5b0] ss:$8 sps:$4 sm:$0xff]  }
  0x82   :  { %1857 = vmatmul.mubr.bf16.vlgmr.msra.gmra.mxu0 %v2167_v24  ;;  %v2735_v24 = vld [vmem:[%s3777_s1 + $0x4a0] ss:$8 sps:$4 sm:$0xff]  }
  0x83   :  { %1908 = vmatmul.mubr.bf16.vlgmr.msra.gmra.mxu1 %v2169_v25  ;;  %1927 = vmatpush1.bf16.msra.mxu0 %v2653_v22  ;;  %v2737_v22 = vld [vmem:[%s3777_s1 + $0x4a4] ss:$8 sps:$4 sm:$0xff]   ;;  %v2738_v25 = vld [vmem:[%s3777_s1 + $0x5a0] ss:$8 sps:$4 sm:$0xff]  }
  0x84   :  { %1978 = vmatpush1.bf16.msra.mxu1 %v2656_v23  ;;  %1928 = vmatprep.subr.bf16.mxu0 %v2661_v28  ;;  %v2740_v23 = vld [vmem:[%s3777_s1 + $0x5a4] ss:$8 sps:$4 sm:$0xff]   ;;  %v2741_v28 = vld [vmem:[%s3777_s1 + $0x490] ss:$8 sps:$4 sm:$0xff]  }
  0x85   :  { %1979 = vmatprep.subr.bf16.mxu1 %v2664_v29  ;;  %1866 = vmatprep.mubr.bf16.mxu0 %v2184_v30  ;;  %v2744_v29 = vld [vmem:[%s3777_s1 + $0x590] ss:$8 sps:$4 sm:$0xff]   ;;  %v2749_v30 = vld [vmem:[%s3777_s1 + $0x484] ss:$8 sps:$4 sm:$0xff]  }
  0x86   :  { %1917 = vmatprep.mubr.bf16.mxu1 %v2186_v31  ;;  %v2752_v31 = vld [vmem:[%s3777_s1 + $0x584] ss:$8 sps:$4 sm:$0xff]  }
  0x87   :  { %1929 = vmatpush1.bf16.msra.mxu0 %v2659_v32  ;;  %v2747_v32 = vld [vmem:[%s3777_s1 + $0x480] ss:$8 sps:$4 sm:$0xff]  }
  0x88   :  { %1980 = vmatpush1.bf16.msra.mxu1 %v2662_v33  ;;  %1930 = vmatprep.subr.bf16.mxu0 %v2669_v34  ;;  %v2750_v33 = vld [vmem:[%s3777_s1 + $0x580] ss:$8 sps:$4 sm:$0xff]   ;;  %v2755_v34 = vld [vmem:[%s3777_s1 + $0x674] ss:$8 sps:$4 sm:$0xff]  }
  0x89   :  { %1981 = vmatprep.subr.bf16.mxu1 %v2672_v35  ;;  %v2758_v35 = vld [vmem:[%s3777_s1 + $0x774] ss:$8 sps:$4 sm:$0xff]  }
  0x8a   :  { %1867 = vmatmul.mubr.bf16.gmra.mxu0 %v2183_v40  ;;  %v34_v40 = vld [vmem:[%s3778_s0 + $0xa0] sm:$0x11] }
  0x8b   :  { %1918 = vmatmul.mubr.bf16.gmra.mxu1 %v2185_v41  ;;  %1931 = vmatpush1.bf16.msra.mxu0 %v2667_v36  ;;  %v2171_v36 = vcombine.low %v3352_v38, %v3357_v39  ;;  %v35_v41 = vld [vmem:[%s3778_s0 + $0xa8] sm:$0x11]  ;;  %v2756_v38 = vld [vmem:[%s3777_s1 + $0x770] ss:$8 sps:$4 sm:$0xff]  }
  0x8c   :  { %1982 = vmatpush1.bf16.msra.mxu1 %v2670_v37  ;;  %1932 = vmatprep.subr.bf16.mxu0 %v2677_v44  ;;  %v2173_v37 = vcombine.low %v3362_v42, %v3367_v43  ;;  %v2753_v44 = vld [vmem:[%s3777_s1 + $0x670] ss:$8 sps:$4 sm:$0xff]   ;;  %v2761_v39 = vld [vmem:[%s3777_s1 + $0x664] ss:$8 sps:$4 sm:$0xff]   ;;  %v2188_v43 = vcombine.high %v34_v40, %v34_v40 }
  0x8d   :  { %1983 = vmatprep.subr.bf16.mxu1 %v2680_v45  ;;  %1958 = vmatprep.mubr.bf16.mxu0 %v2172_v46  ;;  %v2764_v42 = vld [vmem:[%s3777_s1 + $0x764] ss:$8 sps:$4 sm:$0xff]   ;;  %v2190_v45 = vcombine.high %v35_v41, %v35_v41  ;;  %v2759_v46 = vld [vmem:[%s3777_s1 + $0x660] ss:$8 sps:$4 sm:$0xff]  }
  0x8e   :  { %2009 = vmatprep.mubr.bf16.mxu1 %v2174_v47  ;;  %v2762_v47 = vld [vmem:[%s3777_s1 + $0x760] ss:$8 sps:$4 sm:$0xff]  }
  0x8f   :  { %1933 = vmatpush1.bf16.msra.mxu0 %v2675_v48  ;;  %v2769_v48 = vld [vmem:[%s3777_s1 + $0x654] ss:$8 sps:$4 sm:$0xff]  }
  0x90   :  { %1984 = vmatpush1.bf16.msra.mxu1 %v2678_v49  ;;  %1934 = vmatprep.subr.bf16.mxu0 %v2683_v50  ;;  %v2772_v49 = vld [vmem:[%s3777_s1 + $0x754] ss:$8 sps:$4 sm:$0xff]  }
  0x91   :  { %1985 = vmatprep.subr.bf16.mxu1 %v2686_v51  ;;  %v3572_v50 = vld [vmem:[%s3778_s0 + $0x30] sm:$0xff]  ;;  %v2187_v51 = vcombine.low %v34_v40, %v34_v40  ;;  %v2835_v40 = vld [vmem:[%s3777_s1 + $0x6a0] ss:$8 sps:$4 sm:$0xff]  }
  0x93   :  { %1935 = vmatpush1.bf16.msra.mxu0 %v2681_v52  ;;  %v2189_v52 = vcombine.low %v35_v41, %v35_v41  ;;  %v2838_v41 = vld [vmem:[%s3777_s1 + $0x7a0] ss:$8 sps:$4 sm:$0xff]  }
  0x94   :  { %1986 = vmatpush1.bf16.msra.mxu1 %v2684_v53  ;;  %1936 = vmatprep.subr.bf16.mxu0 %v2689_v54  ;;  %v3577_v53 = vld [vmem:[%s3778_s0 + $0x70] sm:$0xff]  ;;  %v3582_v54 = vld [vmem:[%s3778_s0 + $0x38] sm:$0xff] }
  0x95   :  { %1987 = vmatprep.subr.bf16.mxu1 %v2692_v55  ;;  %v3587_v55 = vld [vmem:[%s3778_s0 + $0x78] sm:$0xff] }
  0x97   :  { %1937 = vmatpush1.bf16.msra.mxu0 %v2687_v56  ;;  %v2767_v56 = vld [vmem:[%s3777_s1 + $0x650] ss:$8 sps:$4 sm:$0xff]  }
  0x98   :  { %1988 = vmatpush1.bf16.msra.mxu1 %v2690_v57  ;;  %1938 = vmatprep.subr.bf16.mxu0 %v2695_v58  ;;  %v2770_v57 = vld [vmem:[%s3777_s1 + $0x750] ss:$8 sps:$4 sm:$0xff]   ;;  %v2777_v58 = vld [vmem:[%s3777_s1 + $0x644] ss:$8 sps:$4 sm:$0xff]  }
  0x99   :  { %1989 = vmatprep.subr.bf16.mxu1 %v2698_v59  ;;  %v2780_v59 = vld [vmem:[%s3777_s1 + $0x744] ss:$8 sps:$4 sm:$0xff]  }
  0x9b   :  { %1939 = vmatpush1.bf16.msra.mxu0 %v2693_v60  ;;  %v2176_v60 = vcombine.high %v3572_v50, %v3577_v53 }
  0x9c   :  { %1990 = vmatpush1.bf16.msra.mxu1 %v2696_v61  ;;  %1940 = vmatprep.subr.bf16.mxu0 %v2701_v62  ;;  %v2178_v61 = vcombine.high %v3582_v54, %v3587_v55  ;;  %v2775_v62 = vld [vmem:[%s3777_s1 + $0x640] ss:$8 sps:$4 sm:$0xff]  }
  0x9d   :  { %1991 = vmatprep.subr.bf16.mxu1 %v2704_v63  ;;  %v2778_v63 = vld [vmem:[%s3777_s1 + $0x740] ss:$8 sps:$4 sm:$0xff]  }
  0x9f   :  { %1941 = vmatpush1.bf16.msra.mxu0 %v2699_v0  ;;  %v2783_v0 = vld [vmem:[%s3777_s1 + $0x634] ss:$8 sps:$4 sm:$0xff]  }
  0xa0   :  { %1992 = vmatpush1.bf16.msra.mxu1 %v2702_v1  ;;  %1942 = vmatprep.subr.bf16.mxu0 %v2707_v2  ;;  %v2786_v1 = vld [vmem:[%s3777_s1 + $0x734] ss:$8 sps:$4 sm:$0xff]   ;;  %v2781_v2 = vld [vmem:[%s3777_s1 + $0x630] ss:$8 sps:$4 sm:$0xff]  }
  0xa1   :  { %1993 = vmatprep.subr.bf16.mxu1 %v2710_v3  ;;  %v2784_v3 = vld [vmem:[%s3777_s1 + $0x730] ss:$8 sps:$4 sm:$0xff]  }
  0xa3   :  { %1943 = vmatpush2.bf16.msra.mxu0 %v2705_v4  ;;  %v2789_v4 = vld [vmem:[%s3777_s1 + $0x624] ss:$8 sps:$4 sm:$0xff]  }
  0xa4   :  { %1994 = vmatpush2.bf16.msra.mxu1 %v2708_v5  ;;  %1944 = vmatprep.subr.bf16.mxu0 %v2713_v6  ;;  %v2792_v5 = vld [vmem:[%s3777_s1 + $0x724] ss:$8 sps:$4 sm:$0xff]   ;;  %v2787_v6 = vld [vmem:[%s3777_s1 + $0x620] ss:$8 sps:$4 sm:$0xff]  }
  0xa5   :  { %1995 = vmatprep.subr.bf16.mxu1 %v2716_v7  ;;  %v2790_v7 = vld [vmem:[%s3777_s1 + $0x720] ss:$8 sps:$4 sm:$0xff]  }
  0xa7   :  { %1945 = vmatpush2.bf16.msra.mxu0 %v2711_v8  ;;  %v2795_v8 = vld [vmem:[%s3777_s1 + $0x614] ss:$8 sps:$4 sm:$0xff]  }
  0xa8   :  { %1996 = vmatpush2.bf16.msra.mxu1 %v2714_v9  ;;  %1946 = vmatprep.subr.bf16.mxu0 %v2719_v10  ;;  %v2798_v9 = vld [vmem:[%s3777_s1 + $0x714] ss:$8 sps:$4 sm:$0xff]   ;;  %v2793_v10 = vld [vmem:[%s3777_s1 + $0x610] ss:$8 sps:$4 sm:$0xff]  }
  0xa9   :  { %1997 = vmatprep.subr.bf16.mxu1 %v2722_v11  ;;  %v2796_v11 = vld [vmem:[%s3777_s1 + $0x710] ss:$8 sps:$4 sm:$0xff]  }
  0xab   :  { %1947 = vmatpush2.bf16.msra.mxu0 %v2717_v12  ;;  %v2801_v12 = vld [vmem:[%s3777_s1 + $0x604] ss:$8 sps:$4 sm:$0xff]  }
  0xac   :  { %1998 = vmatpush2.bf16.msra.mxu1 %v2720_v13  ;;  %1948 = vmatprep.subr.bf16.mxu0 %v2725_v14  ;;  %v2804_v13 = vld [vmem:[%s3777_s1 + $0x704] ss:$8 sps:$4 sm:$0xff]   ;;  %v2799_v14 = vld [vmem:[%s3777_s1 + $0x600] ss:$8 sps:$4 sm:$0xff]  }
  0xad   :  { %1999 = vmatprep.subr.bf16.mxu1 %v2728_v15  ;;  %v2802_v15 = vld [vmem:[%s3777_s1 + $0x700] ss:$8 sps:$4 sm:$0xff]  }
  0xaf   :  { %1949 = vmatpush2.bf16.msra.mxu0 %v2723_v16  ;;  %v2807_v16 = vld [vmem:[%s3777_s1 + $0x6f4] ss:$8 sps:$4 sm:$0xff]  }
  0xb0   :  { %2000 = vmatpush2.bf16.msra.mxu1 %v2726_v17  ;;  %1950 = vmatprep.subr.bf16.mxu0 %v2731_v18  ;;  %v2810_v17 = vld [vmem:[%s3777_s1 + $0x7f4] ss:$8 sps:$4 sm:$0xff]   ;;  %v2805_v18 = vld [vmem:[%s3777_s1 + $0x6f0] ss:$8 sps:$4 sm:$0xff]  }
  0xb1   :  { %2001 = vmatprep.subr.bf16.mxu1 %v2734_v19  ;;  %v2808_v19 = vld [vmem:[%s3777_s1 + $0x7f0] ss:$8 sps:$4 sm:$0xff]  }
  0xb3   :  { %1951 = vmatpush2.bf16.msra.mxu0 %v2729_v20  ;;  %v2813_v20 = vld [vmem:[%s3777_s1 + $0x6e4] ss:$8 sps:$4 sm:$0xff]  }
  0xb4   :  { %2002 = vmatpush2.bf16.msra.mxu1 %v2732_v21  ;;  %1952 = vmatprep.subr.bf16.mxu0 %v2737_v22  ;;  %v2816_v21 = vld [vmem:[%s3777_s1 + $0x7e4] ss:$8 sps:$4 sm:$0xff]   ;;  %v2811_v22 = vld [vmem:[%s3777_s1 + $0x6e0] ss:$8 sps:$4 sm:$0xff]  }
  0xb5   :  { %2003 = vmatprep.subr.bf16.mxu1 %v2740_v23  ;;  %v2814_v23 = vld [vmem:[%s3777_s1 + $0x7e0] ss:$8 sps:$4 sm:$0xff]  }
  0xb7   :  { %1953 = vmatpush2.bf16.msra.mxu0 %v2735_v24  ;;  %v2819_v24 = vld [vmem:[%s3777_s1 + $0x6d4] ss:$8 sps:$4 sm:$0xff]  }
  0xb8   :  { %2004 = vmatpush2.bf16.msra.mxu1 %v2738_v25  ;;  %1954 = vmatprep.subr.bf16.mxu0 %v2743_v26  ;;  %v2822_v25 = vld [vmem:[%s3777_s1 + $0x7d4] ss:$8 sps:$4 sm:$0xff]   ;;  %v2817_v26 = vld [vmem:[%s3777_s1 + $0x6d0] ss:$8 sps:$4 sm:$0xff]  }
  0xb9   :  { %2005 = vmatprep.subr.bf16.mxu1 %v2746_v27  ;;  %v2820_v27 = vld [vmem:[%s3777_s1 + $0x7d0] ss:$8 sps:$4 sm:$0xff]  }
  0xbb   :  { %1955 = vmatpush2.bf16.msra.mxu0 %v2741_v28  ;;  %v2825_v28 = vld [vmem:[%s3777_s1 + $0x6c4] ss:$8 sps:$4 sm:$0xff]  }
  0xbc   :  { %2006 = vmatpush2.bf16.msra.mxu1 %v2744_v29  ;;  %1956 = vmatprep.subr.bf16.mxu0 %v2749_v30  ;;  %v2828_v29 = vld [vmem:[%s3777_s1 + $0x7c4] ss:$8 sps:$4 sm:$0xff]   ;;  %v2823_v30 = vld [vmem:[%s3777_s1 + $0x6c0] ss:$8 sps:$4 sm:$0xff]  }
  0xbd   :  { %2007 = vmatprep.subr.bf16.mxu1 %v2752_v31  ;;  %v2826_v31 = vld [vmem:[%s3777_s1 + $0x7c0] ss:$8 sps:$4 sm:$0xff]  }
  0xbf   :  { %1957 = vmatpush2.bf16.msra.mxu0 %v2747_v32  ;;  %v2831_v32 = vld [vmem:[%s3777_s1 + $0x6b4] ss:$8 sps:$4 sm:$0xff]  }
  0xc0   :  { %2008 = vmatpush2.bf16.msra.mxu1 %v2750_v33  ;;  %2028 = vmatprep.subr.bf16.mxu0 %v2755_v34  ;;  %v2834_v33 = vld [vmem:[%s3777_s1 + $0x7b4] ss:$8 sps:$4 sm:$0xff]   ;;  %v2829_v34 = vld [vmem:[%s3777_s1 + $0x6b0] ss:$8 sps:$4 sm:$0xff]  }
  0xc1   :  { %2079 = vmatprep.subr.bf16.mxu1 %v2758_v35  ;;  %v2832_v35 = vld [vmem:[%s3777_s1 + $0x7b0] ss:$8 sps:$4 sm:$0xff]  }
  0xc2   :  { %1959 = vmatmul.mubr.bf16.vlgmr.msra.gmra.mxu0 %v2171_v36  ;;  %v2837_v36 = vld [vmem:[%s3777_s1 + $0x6a4] ss:$8 sps:$4 sm:$0xff]  }
  0xc3   :  { %2010 = vmatmul.mubr.bf16.vlgmr.msra.gmra.mxu1 %v2173_v37  ;;  %2029 = vmatpush1.bf16.msra.mxu0 %v2753_v44  ;;  %v2840_v37 = vld [vmem:[%s3777_s1 + $0x7a4] ss:$8 sps:$4 sm:$0xff]   ;;  %v296_v44 = vlaneseq }
  0xc4   :  { %2080 = vmatpush1.bf16.msra.mxu1 %v2756_v38  ;;  %2030 = vmatprep.subr.bf16.mxu0 %v2761_v39  ;;  %v2843_v38 = vld [vmem:[%s3777_s1 + $0x694] ss:$8 sps:$4 sm:$0xff]  }
  0xc5   :  { %2081 = vmatprep.subr.bf16.mxu1 %v2764_v42  ;;  %1968 = vmatprep.mubr.bf16.mxu0 %v2188_v43  ;;  %v2846_v39 = vld [vmem:[%s3777_s1 + $0x794] ss:$8 sps:$4 sm:$0xff]   ;;  %v2841_v42 = vld [vmem:[%s3777_s1 + $0x690] ss:$8 sps:$4 sm:$0xff]  }
  0xc6   :  { %2019 = vmatprep.mubr.bf16.mxu1 %v2190_v45  ;;  %v2844_v43 = vld [vmem:[%s3777_s1 + $0x790] ss:$8 sps:$4 sm:$0xff]   ;;  %v297_v45 = vshrl.u32 %v296_v44, 7 }
  0xc7   :  { %2031 = vmatpush1.bf16.msra.mxu0 %v2759_v46  ;;  %v2849_v46 = vld [vmem:[%s3777_s1 + $0x684] ss:$8 sps:$4 sm:$0xff]  }
  0xc8   :  { %2082 = vmatpush1.bf16.msra.mxu1 %v2762_v47  ;;  %2032 = vmatprep.subr.bf16.mxu0 %v2769_v48  ;;  %v2852_v47 = vld [vmem:[%s3777_s1 + $0x784] ss:$8 sps:$4 sm:$0xff]   ;;  %v2847_v48 = vld [vmem:[%s3777_s1 + $0x680] ss:$8 sps:$4 sm:$0xff]  }
  0xc9   :  { %2083 = vmatprep.subr.bf16.mxu1 %v2772_v49  ;;  %v2850_v49 = vld [vmem:[%s3777_s1 + $0x780] ss:$8 sps:$4 sm:$0xff]  }
  0xca   :  { %1969 = vmatmul.mubr.bf16.gmra.mxu0 %v2187_v51  ;;  %v298_v51 = vsub.s32 0, %v297_v45 }
  0xcb   :  { %2020 = vmatmul.mubr.bf16.gmra.mxu1 %v2189_v52  ;;  %2033 = vmatpush1.bf16.msra.mxu0 %v2767_v56  ;;  %v294_v52 = vld [vmem:[%s3779_s2] sm:$0x3]  ;;  %v36_v56 = vld [vmem:[%s3778_s0 + $0xb0] sm:$0x11] }
  0xcc   :  { %2084 = vmatpush1.bf16.msra.mxu1 %v2770_v57  ;;  %2034 = vmatprep.subr.bf16.mxu0 %v2777_v58  ;;  %v37_v57 = vld [vmem:[%s3778_s0 + $0xb8] sm:$0x11]  ;;  %v302_v58 = vsub.s32 1, %v297_v45 }
  0xcd   :  { %2085 = vmatprep.subr.bf16.mxu1 %v2780_v59  ;;  %2060 = vmatprep.mubr.bf16.mxu0 %v2176_v60  ;;  %v2175_v59 = vcombine.low %v3572_v50, %v3577_v53  ;;  %v2177_v60 = vcombine.low %v3582_v54, %v3587_v55  ;;  %v2191_v54 = vcombine.low %v36_v56, %v36_v56 }
  0xce   :  { %2111 = vmatprep.mubr.bf16.mxu1 %v2178_v61  ;;  %v299_v61 = vrot.slane %v294_v52, %v298_v51  ;;  %v2193_v55 = vcombine.low %v37_v57, %v37_v57 }
  0xcf   :  { %2035 = vmatpush1.bf16.msra.mxu0 %v2775_v62  ;;  %v2192_v62 = vcombine.high %v36_v56, %v36_v56 }
  0xd0   :  { %2086 = vmatpush1.bf16.msra.mxu1 %v2778_v63  ;;  %2036 = vmatprep.subr.bf16.mxu0 %v2783_v0  ;;  %v2194_v63 = vcombine.high %v37_v57, %v37_v57  ;;  %v303_v0 = vrot.slane %v294_v52, %v302_v58 }
  0xd1   :  { %2087 = vmatprep.subr.bf16.mxu1 %v2786_v1 }
  0xd3   :  { %2037 = vmatpush1.bf16.msra.mxu0 %v2781_v2 }
  0xd4   :  { %2088 = vmatpush1.bf16.msra.mxu1 %v2784_v3  ;;  %2038 = vmatprep.subr.bf16.mxu0 %v2789_v4 }
  0xd5   :  { %2089 = vmatprep.subr.bf16.mxu1 %v2792_v5 }
  0xd7   :  { %2039 = vmatpush1.bf16.msra.mxu0 %v2787_v6 }
  0xd8   :  { %2090 = vmatpush1.bf16.msra.mxu1 %v2790_v7  ;;  %2040 = vmatprep.subr.bf16.mxu0 %v2795_v8 }
  0xd9   :  { %2091 = vmatprep.subr.bf16.mxu1 %v2798_v9 }
  0xdb   :  { %2041 = vmatpush1.bf16.msra.mxu0 %v2793_v10 }
  0xdc   :  { %2092 = vmatpush1.bf16.msra.mxu1 %v2796_v11  ;;  %2042 = vmatprep.subr.bf16.mxu0 %v2801_v12 }
  0xdd   :  { %2093 = vmatprep.subr.bf16.mxu1 %v2804_v13 }
  0xdf   :  { %2043 = vmatpush1.bf16.msra.mxu0 %v2799_v14 }
  0xe0   :  { %2094 = vmatpush1.bf16.msra.mxu1 %v2802_v15  ;;  %2044 = vmatprep.subr.bf16.mxu0 %v2807_v16 }
  0xe1   :  { %2095 = vmatprep.subr.bf16.mxu1 %v2810_v17 }
  0xe3   :  { %2045 = vmatpush2.bf16.msra.mxu0 %v2805_v18 }
  0xe4   :  { %2096 = vmatpush2.bf16.msra.mxu1 %v2808_v19  ;;  %2046 = vmatprep.subr.bf16.mxu0 %v2813_v20 }
  0xe5   :  { %2097 = vmatprep.subr.bf16.mxu1 %v2816_v21 }
  0xe7   :  { %2047 = vmatpush2.bf16.msra.mxu0 %v2811_v22 }
  0xe8   :  { %2098 = vmatpush2.bf16.msra.mxu1 %v2814_v23  ;;  %2048 = vmatprep.subr.bf16.mxu0 %v2819_v24 }
  0xe9   :  { %2099 = vmatprep.subr.bf16.mxu1 %v2822_v25 }
  0xeb   :  { %2049 = vmatpush2.bf16.msra.mxu0 %v2817_v26 }
  0xec   :  { %2100 = vmatpush2.bf16.msra.mxu1 %v2820_v27  ;;  %2050 = vmatprep.subr.bf16.mxu0 %v2825_v28 }
  0xed   :  { %2101 = vmatprep.subr.bf16.mxu1 %v2828_v29 }
  0xef   :  { %2051 = vmatpush2.bf16.msra.mxu0 %v2823_v30 }
  0xf0   :  { %2102 = vmatpush2.bf16.msra.mxu1 %v2826_v31  ;;  %2052 = vmatprep.subr.bf16.mxu0 %v2831_v32 }
  0xf1   :  { %2103 = vmatprep.subr.bf16.mxu1 %v2834_v33 }
  0xf3   :  { %2053 = vmatpush2.bf16.msra.mxu0 %v2829_v34 }
  0xf4   :  { %2104 = vmatpush2.bf16.msra.mxu1 %v2832_v35  ;;  %2054 = vmatprep.subr.bf16.mxu0 %v2837_v36 }
  0xf5   :  { %2105 = vmatprep.subr.bf16.mxu1 %v2840_v37 }
  0xf7   :  { %2055 = vmatpush2.bf16.msra.mxu0 %v2835_v40 }
  0xf8   :  { %2106 = vmatpush2.bf16.msra.mxu1 %v2838_v41  ;;  %2056 = vmatprep.subr.bf16.mxu0 %v2843_v38 }
  0xf9   :  { %2107 = vmatprep.subr.bf16.mxu1 %v2846_v39 }
  0xfb   :  { %2057 = vmatpush2.bf16.msra.mxu0 %v2841_v42 }
  0xfc   :  { %2108 = vmatpush2.bf16.msra.mxu1 %v2844_v43  ;;  %2058 = vmatprep.subr.bf16.mxu0 %v2849_v46 }
  0xfd   :  { %2109 = vmatprep.subr.bf16.mxu1 %v2852_v47 }
  0xff   :  { %2059 = vmatpush2.bf16.msra.mxu0 %v2847_v48 }
 0x100   :  { %2110 = vmatpush2.bf16.msra.mxu1 %v2850_v49 }
 0x102   :  { %v1756_v1 = vpop.f32.mrf.mxu0  ;;  %2061 = vmatmul.mubr.bf16.vlgmr.msra.gmra.mxu0 %v2175_v59 }
 0x103   :  { %v1807_v2 = vpop.f32.mrf.mxu1  ;;  %2112 = vmatmul.mubr.bf16.vlgmr.msra.gmra.mxu1 %v2177_v60  ;;  %v1757_v3 = vadd.f32 %v1756_v1, %v299_v61  ;;  %2070 = vmatprep.mubr.bf16.mxu0 %v2192_v62 }
 0x104   :  { %2121 = vmatprep.mubr.bf16.mxu1 %v2194_v63  ;;  %v1758_v4 = vpop.f32.mrf.mxu0 }
 0x105   :  { %v1809_v5 = vpop.f32.mrf.mxu1  ;;  %v1808_v6 = vadd.f32 %v1807_v2, %v1757_v3  ;;  %v1759_v50 = vadd.f32 %v1758_v4, %v303_v0 }
 0x106   :  { %v1760_v53 = vpop.f32.mrf.mxu0 }
 0x107   :  { %v1811_v7 = vpop.f32.mrf.mxu1  ;;  %v1810_v8 = vadd.f32 %v1809_v5, %v1759_v50  ;;  %v1761_v9 = vadd.f32 %v1760_v53, %v299_v61 }
 0x108   :  { %v1762_v10 = vpop.f32.mrf.mxu0 }
 0x109   :  { %v1812_v11 = vadd.f32 %v1811_v7, %v1761_v9  ;;  %v1763_v12 = vadd.f32 %v1762_v10, %v303_v0  ;;  %v1813_v13 = vpop.f32.mrf.mxu1 }
 0x10a   :  { %2071 = vmatmul.mubr.bf16.gmra.mxu0 %v2191_v54  ;;  %v1766_v15 = vpop.f32.mrf.mxu0 }
 0x10b   :  { %2122 = vmatmul.mubr.bf16.gmra.mxu1 %v2193_v55  ;;  %v1814_v14 = vadd.f32 %v1813_v13, %v1763_v12  ;;  %v1817_v16 = vpop.f32.mrf.mxu1  ;;  %v1767_v17 = vadd.f32 %v1766_v15, %v299_v61 }
 0x10c   :  { %v1768_v18 = vpop.f32.mrf.mxu0 }
 0x10d   :  { %v1819_v19 = vpop.f32.mrf.mxu1  ;;  %v1769_v20 = vadd.f32 %v1768_v18, %v303_v0  ;;  %v1818_v21 = vadd.f32 %v1817_v16, %v1767_v17 }
 0x10e   :  { %v1770_v22 = vpop.f32.mrf.mxu0 }
 0x10f   :  { %v1821_v23 = vpop.f32.mrf.mxu1  ;;  %v1820_v24 = vadd.f32 %v1819_v19, %v1769_v20 }
 0x110   :  { %v1771_v25 = vpop.f32.mrf.mxu0 }
 0x111   :  { %v1822_v26 = vpop.f32.mrf.mxu1 }
 0x142   :  { %v1858_v27 = vpop.f32.mrf.mxu0 }
 0x143   :  { %v1909_v28 = vpop.f32.mrf.mxu1  ;;  %v1859_v29 = vadd.f32 %v1858_v27, %v1808_v6 }
 0x144   :  { %v1860_v30 = vpop.f32.mrf.mxu0 }
 0x145   :  { %v1911_v31 = vpop.f32.mrf.mxu1  ;;  %v1910_v32 = vadd.f32 %v1909_v28, %v1859_v29  ;;  %v1861_v33 = vadd.f32 %v1860_v30, %v1810_v8 }
 0x146   :  { %v1862_v34 = vpop.f32.mrf.mxu0 }
 0x147   :  { %v1913_v35 = vpop.f32.mrf.mxu1  ;;  %v1912_v36 = vadd.f32 %v1911_v31, %v1861_v33  ;;  %v1863_v37 = vadd.f32 %v1862_v34, %v1812_v11 }
 0x148   :  { %v1864_v40 = vpop.f32.mrf.mxu0 }
 0x149   :  { %v1915_v41 = vpop.f32.mrf.mxu1  ;;  %v1914_v44 = vadd.f32 %v1913_v35, %v1863_v37  ;;  %v1865_v38 = vadd.f32 %v1864_v40, %v1814_v14 }
 0x14a   :  { %v1868_v39 = vpop.f32.mrf.mxu0 }
 0x14b   :  { %v1919_v42 = vpop.f32.mrf.mxu1  ;;  %v1916_v43 = vadd.f32 %v1915_v41, %v1865_v38  ;;  %v1869_v45 = vadd.f32 %v1868_v39, %v1818_v21 }
 0x14c   :  { %v1870_v46 = vpop.f32.mrf.mxu0 }
 0x14d   :  { %v1921_v47 = vpop.f32.mrf.mxu1  ;;  %v1871_v48 = vadd.f32 %v1870_v46, %v1820_v24  ;;  %v1920_v49 = vadd.f32 %v1919_v42, %v1869_v45 }
 0x14e   :  { %v1872_v51 = vpop.f32.mrf.mxu0 }
 0x14f   :  { %v1923_v52 = vpop.f32.mrf.mxu1  ;;  %v1922_v56 = vadd.f32 %v1921_v47, %v1871_v48 }
 0x150   :  { %v1873_v57 = vpop.f32.mrf.mxu0 }
 0x151   :  { %v1924_v58 = vpop.f32.mrf.mxu1 }
 0x182   :  { %v1960_v59 = vpop.f32.mrf.mxu0 }
 0x183   :  { %v2011_v60 = vpop.f32.mrf.mxu1  ;;  %v1961_v61 = vadd.f32 %v1960_v59, %v1910_v32 }
 0x184   :  { %v1962_v62 = vpop.f32.mrf.mxu0 }
 0x185   :  { %v2013_v63 = vpop.f32.mrf.mxu1  ;;  %v2012_v0 = vadd.f32 %v2011_v60, %v1961_v61  ;;  %v1963_v13 = vadd.f32 %v1962_v62, %v1912_v36 }
 0x186   :  { %v1964_v1 = vpop.f32.mrf.mxu0 }
 0x187   :  { %v2015_v2 = vpop.f32.mrf.mxu1  ;;  %v1965_v3 = vadd.f32 %v1964_v1, %v1914_v44  ;;  %v2014_v16 = vadd.f32 %v2013_v63, %v1963_v13 }
 0x188   :  { %v1966_v4 = vpop.f32.mrf.mxu0 }
 0x189   :  { %v2017_v5 = vpop.f32.mrf.mxu1  ;;  %v2016_v6 = vadd.f32 %v2015_v2, %v1965_v3  ;;  %v1967_v17 = vadd.f32 %v1966_v4, %v1916_v43 }
 0x18a   :  { %v1970_v50 = vpop.f32.mrf.mxu0 }
 0x18b   :  { %v2021_v53 = vpop.f32.mrf.mxu1  ;;  %v1971_v7 = vadd.f32 %v1970_v50, %v1920_v49  ;;  %v2018_v25 = vadd.f32 %v2017_v5, %v1967_v17 }
 0x18c   :  { %v1972_v54 = vpop.f32.mrf.mxu0 }
 0x18d   :  { %v2023_v55 = vpop.f32.mrf.mxu1  ;;  %v2022_v8 = vadd.f32 %v2021_v53, %v1971_v7  ;;  %v1973_v26 = vadd.f32 %v1972_v54, %v1922_v56 }
 0x18e   :  { %v1974_v9 = vpop.f32.mrf.mxu0 }
 0x18f   :  { %v2025_v10 = vpop.f32.mrf.mxu1  ;;  %v2024_v37 = vadd.f32 %v2023_v55, %v1973_v26 }
 0x190   :  { %v1975_v11 = vpop.f32.mrf.mxu0 }
 0x191   :  { %v2026_v12 = vpop.f32.mrf.mxu1 }
 0x1c2   :  { %v2062_v14 = vpop.f32.mrf.mxu0 }
 0x1c3   :  { %v2113_v15 = vpop.f32.mrf.mxu1  ;;  %v2063_v18 = vadd.f32 %v2062_v14, %v2012_v0 }
 0x1c4   :  { %v2064_v19 = vpop.f32.mrf.mxu0 }
 0x1c5   :  { %v2115_v20 = vpop.f32.mrf.mxu1  ;;  %v2114_v21 = vadd.f32 %v2113_v15, %v2063_v18  ;;  %v2065_v22 = vadd.f32 %v2064_v19, %v2014_v16 }
 0x1c6   :  { %v2066_v23 = vpop.f32.mrf.mxu0 }
 0x1c7   :  { %v2117_v24 = vpop.f32.mrf.mxu1  ;;  %v2116_v27 = vadd.f32 %v2115_v20, %v2065_v22  ;;  %v2067_v28 = vadd.f32 %v2066_v23, %v2016_v6  ;;  %v2130_v31 = vmax.f32 %v2114_v21, 0.0 }
 0x1c8   :  { %v2068_v29 = vpop.f32.mrf.mxu0 }
 0x1c9   :  { %v2119_v30 = vpop.f32.mrf.mxu1  ;;  %v2131_v32 = vmax.f32 %v2116_v27, 0.0  ;;  %v2118_v33 = vadd.f32 %v2117_v24, %v2067_v28  ;;  %v2069_v34 = vadd.f32 %v2068_v29, %v2018_v25 }
 0x1ca   :  { %v2072_v35 = vpop.f32.mrf.mxu0 }
 0x1cb   :  { %v2123_v36 = vpop.f32.mrf.mxu1  ;;  %v2454_v40 = vpack.c.bf16 %v2131_v32, %v2130_v31  ;;  %v2120_v41 = vadd.f32 %v2119_v30, %v2069_v34  ;;  %v2073_v44 = vadd.f32 %v2072_v35, %v2022_v8  ;;  %v2132_v42 = vmax.f32 %v2118_v33, 0.0 }
 0x1cc   :  { %v2074_v38 = vpop.f32.mrf.mxu0 }
 0x1cd   :  { %v2125_v39 = vpop.f32.mrf.mxu1  ;;  %2156 = vst [vmem:[%s3780_s3] sm:$0xff] %v2454_v40  ;;  %v2133_v43 = vmax.f32 %v2120_v41, 0.0  ;;  %v2124_v45 = vadd.f32 %v2123_v36, %v2073_v44  ;;  %v2075_v46 = vadd.f32 %v2074_v38, %v2024_v37 }
 0x1ce   :  { %v2076_v47 = vpop.f32.mrf.mxu0 }
 0x1cf   :  { %v2127_v48 = vpop.f32.mrf.mxu1  ;;  %v2455_v49 = vpack.c.bf16 %v2133_v43, %v2132_v42  ;;  %v2126_v51 = vadd.f32 %v2125_v39, %v2075_v46  ;;  %v2134_v57 = vmax.f32 %v2124_v45, 0.0 }
 0x1d0   :  { %v2077_v52 = vpop.f32.mrf.mxu0 }
 0x1d1   :  { %v2128_v56 = vpop.f32.mrf.mxu1  ;;  %2157 = vst [vmem:[%s3780_s3 + $0x8] sm:$0xff] %v2455_v49  ;;  %v2135_v58 = vmax.f32 %v2126_v51, 0.0 }
 0x1d3   :  { %v2456_v59 = vpack.c.bf16 %v2135_v58, %v2134_v57 }
 0x1d5   :  { %2158 = vst [vmem:[%s3780_s3 + $0x10] sm:$0x11] %v2456_v59 }

// kernel: actor_forward.9
= control target key start
LH: loop header
LB: loop body
LE: loop exit
PB: predicated region body
PF: predicated region fallthrough
CT: control target
= control target key end

     0   :  { %v321_v35 = vlaneseq  ;;  %v3610_v36 = vmov 1966171168   ;;  %s4747_s0 = inlined_call_operand.vmem [shape: bf16[2,2304], index: 0, kind: input, shape index: {}]   ;;  %s4748_s1 = inlined_call_operand.vmem [shape: bf16[2304,256], index: 1, kind: input, shape index: {}]   ;;  %s4749_s2 = inlined_call_operand.vmem [shape: f32[1,256], index: 2, kind: input, shape index: {}]   ;;  %s4750_s3 = inlined_call_operand.vmem [shape: bf16[256,256], index: 3, kind: input, shape index: {}]   ;;  %s4751_s4 = inlined_call_operand.vmem [shape: f32[1,256], index: 4, kind: input, shape index: {}]   ;;  %s4752_s5 = inlined_call_operand.vmem [shape: bf16[256,4], index: 5, kind: input, shape index: {}]   ;;  %s4753_s6 = inlined_call_operand.vmem [shape: f32[1,4], index: 6, kind: input, shape index: {}]   ;;  %s4754_s7 = inlined_call_operand.hbm [shape: f32[2,4], index: 7, kind: output, shape index: {}]  }
   0x1   :  { %v3088_v0 = vld [vmem:[%s4748_s1 + $0x74] ss:$8 sps:$4 sm:$0xff]   ;;  %v3090_v1 = vld [vmem:[%s4748_s1 + $0x70] ss:$8 sps:$4 sm:$0xff]   ;;  %v3094_v4 = vld [vmem:[%s4748_s1 + $0x64] ss:$8 sps:$4 sm:$0xff]   ;;  %v336_v37 = vunpack.c.l.s4 %v3610_v36 }
   0x2   :  { %1912 = vmatprep.subr.bf16.mxu0 %v3088_v0  ;;  %v3091_v2 = vld [vmem:[%s4748_s1 + $0x174] ss:$8 sps:$4 sm:$0xff]   ;;  %v3093_v3 = vld [vmem:[%s4748_s1 + $0x170] ss:$8 sps:$4 sm:$0xff]   ;;  %v3096_v5 = vld [vmem:[%s4748_s1 + $0x60] ss:$8 sps:$4 sm:$0xff]  }
   0x3   :  { %1913 = vmatpush1.bf16.msra.mxu0 %v3090_v1  ;;  %1953 = vmatprep.subr.bf16.mxu1 %v3091_v2  ;;  %v3097_v6 = vld [vmem:[%s4748_s1 + $0x164] ss:$8 sps:$4 sm:$0xff]   ;;  %v3099_v7 = vld [vmem:[%s4748_s1 + $0x160] ss:$8 sps:$4 sm:$0xff]   ;;  %v3100_v8 = vld [vmem:[%s4748_s1 + $0x54] ss:$8 sps:$4 sm:$0xff]   ;;  %v337_v43 = vunpack.c.0.s8 %v336_v37 }
   0x4   :  { %1954 = vmatpush1.bf16.msra.mxu1 %v3093_v3  ;;  %1914 = vmatprep.subr.bf16.mxu0 %v3094_v4  ;;  %v3102_v9 = vld [vmem:[%s4748_s1 + $0x50] ss:$8 sps:$4 sm:$0xff]   ;;  %v3103_v10 = vld [vmem:[%s4748_s1 + $0x154] ss:$8 sps:$4 sm:$0xff]   ;;  %v3106_v11 = vld [vmem:[%s4748_s1 + $0x44] ss:$8 sps:$4 sm:$0xff]  }
   0x5   :  { %1955 = vmatprep.subr.bf16.mxu1 %v3097_v6  ;;  %v3105_v12 = vld [vmem:[%s4748_s1 + $0x150] ss:$8 sps:$4 sm:$0xff]   ;;  %v3109_v13 = vld [vmem:[%s4748_s1 + $0x144] ss:$8 sps:$4 sm:$0xff]   ;;  %v3108_v14 = vld [vmem:[%s4748_s1 + $0x40] ss:$8 sps:$4 sm:$0xff]  }
   0x6   :  { %v3112_v15 = vld [vmem:[%s4748_s1 + $0x34] ss:$8 sps:$4 sm:$0xff]   ;;  %v3111_v16 = vld [vmem:[%s4748_s1 + $0x140] ss:$8 sps:$4 sm:$0xff]   ;;  %v3114_v18 = vld [vmem:[%s4748_s1 + $0x30] ss:$8 sps:$4 sm:$0xff]  }
   0x7   :  { %1915 = vmatpush1.bf16.msra.mxu0 %v3096_v5  ;;  %v3115_v17 = vld [vmem:[%s4748_s1 + $0x134] ss:$8 sps:$4 sm:$0xff]   ;;  %v3118_v19 = vld [vmem:[%s4748_s1 + $0x24] ss:$8 sps:$4 sm:$0xff]   ;;  %v3117_v20 = vld [vmem:[%s4748_s1 + $0x130] ss:$8 sps:$4 sm:$0xff]  }
   0x8   :  { %1916 = vmatprep.subr.bf16.mxu0 %v3100_v8  ;;  %1956 = vmatpush1.bf16.msra.mxu1 %v3099_v7  ;;  %v3121_v21 = vld [vmem:[%s4748_s1 + $0x124] ss:$8 sps:$4 sm:$0xff]   ;;  %v3120_v22 = vld [vmem:[%s4748_s1 + $0x20] ss:$8 sps:$4 sm:$0xff]   ;;  %v3124_v23 = vld [vmem:[%s4748_s1 + $0x14] ss:$8 sps:$4 sm:$0xff]  }
   0x9   :  { %1957 = vmatprep.subr.bf16.mxu1 %v3103_v10  ;;  %v3123_v24 = vld [vmem:[%s4748_s1 + $0x120] ss:$8 sps:$4 sm:$0xff]   ;;  %v3127_v25 = vld [vmem:[%s4748_s1 + $0x114] ss:$8 sps:$4 sm:$0xff]   ;;  %v3126_v26 = vld [vmem:[%s4748_s1 + $0x10] ss:$8 sps:$4 sm:$0xff]  }
   0xa   :  { %v3130_v27 = vld [vmem:[%s4748_s1 + $0x4] ss:$8 sps:$4 sm:$0xff]   ;;  %v3129_v28 = vld [vmem:[%s4748_s1 + $0x110] ss:$8 sps:$4 sm:$0xff]   ;;  %v3132_v30 = vld [vmem:[%s4748_s1] ss:$8 sps:$4 sm:$0xff]  }
   0xb   :  { %1917 = vmatpush1.bf16.msra.mxu0 %v3102_v9  ;;  %v3133_v29 = vld [vmem:[%s4748_s1 + $0x104] ss:$8 sps:$4 sm:$0xff]   ;;  %v3136_v31 = vld [vmem:[%s4748_s1 + $0xf4] ss:$8 sps:$4 sm:$0xff]   ;;  %v3135_v32 = vld [vmem:[%s4748_s1 + $0x100] ss:$8 sps:$4 sm:$0xff]  }
   0xc   :  { %1918 = vmatprep.subr.bf16.mxu0 %v3106_v11  ;;  %1958 = vmatpush1.bf16.msra.mxu1 %v3105_v12  ;;  %v3139_v33 = vld [vmem:[%s4748_s1 + $0x1f4] ss:$8 sps:$4 sm:$0xff]   ;;  %v3138_v34 = vld [vmem:[%s4748_s1 + $0xf0] ss:$8 sps:$4 sm:$0xff]   ;;  %v3142_v38 = vld [vmem:[%s4748_s1 + $0xe4] ss:$8 sps:$4 sm:$0xff]  }
   0xd   :  { %1959 = vmatprep.subr.bf16.mxu1 %v3109_v13  ;;  %v3141_v39 = vld [vmem:[%s4748_s1 + $0x1f0] ss:$8 sps:$4 sm:$0xff]   ;;  %v3145_v40 = vld [vmem:[%s4748_s1 + $0x1e4] ss:$8 sps:$4 sm:$0xff]   ;;  %v3144_v41 = vld [vmem:[%s4748_s1 + $0xe0] ss:$8 sps:$4 sm:$0xff]  }
   0xe   :  { %v3769_v42 = vshrl.u32 %v321_v35, 7  ;;  %v3148_v44 = vld [vmem:[%s4748_s1 + $0xd4] ss:$8 sps:$4 sm:$0xff]   ;;  %v3147_v45 = vld [vmem:[%s4748_s1 + $0x1e0] ss:$8 sps:$4 sm:$0xff]  }
   0xf   :  { %1919 = vmatpush1.bf16.msra.mxu0 %v3108_v14  ;;  %v3151_v46 = vld [vmem:[%s4748_s1 + $0x1d4] ss:$8 sps:$4 sm:$0xff]   ;;  %v3150_v47 = vld [vmem:[%s4748_s1 + $0xd0] ss:$8 sps:$4 sm:$0xff]   ;;  %v3154_v49 = vld [vmem:[%s4748_s1 + $0xc4] ss:$8 sps:$4 sm:$0xff]  }
  0x10   :  { %1920 = vmatprep.subr.bf16.mxu0 %v3112_v15  ;;  %1960 = vmatpush1.bf16.msra.mxu1 %v3111_v16  ;;  %v3784_v48 = vsub.s32 %v337_v43, %v3769_v42  ;;  %v3153_v50 = vld [vmem:[%s4748_s1 + $0x1d0] ss:$8 sps:$4 sm:$0xff]   ;;  %v3157_v51 = vld [vmem:[%s4748_s1 + $0x1c4] ss:$8 sps:$4 sm:$0xff]   ;;  %v3156_v53 = vld [vmem:[%s4748_s1 + $0xc0] ss:$8 sps:$4 sm:$0xff]  }
  0x11   :  { %1961 = vmatprep.subr.bf16.mxu1 %v3115_v17  ;;  %v28_v52 = vld [vmem:[%s4747_s0] sm:$0xff]  ;;  %v3160_v55 = vld [vmem:[%s4748_s1 + $0xb4] ss:$8 sps:$4 sm:$0xff]   ;;  %v3162_v59 = vld [vmem:[%s4748_s1 + $0xb0] ss:$8 sps:$4 sm:$0xff]  }
  0x12   :  { %v341_v54 = vrot.slane %v28_v52, %v3784_v48  ;;  %v3159_v56 = vld [vmem:[%s4748_s1 + $0x1c0] ss:$8 sps:$4 sm:$0xff]   ;;  %v3163_v58 = vld [vmem:[%s4748_s1 + $0x1b4] ss:$8 sps:$4 sm:$0xff]   ;;  %v3166_v61 = vld [vmem:[%s4748_s1 + $0xa4] ss:$8 sps:$4 sm:$0xff]   ;;  %v334_v63 = vcombine.high %v28_v52, %v28_v52 }
  0x13   :  { %1921 = vmatpush1.bf16.msra.mxu0 %v3114_v18  ;;  %v3165_v62 = vld [vmem:[%s4748_s1 + $0x1b0] ss:$8 sps:$4 sm:$0xff]   ;;  %v3169_v1 = vld [vmem:[%s4748_s1 + $0x1a4] ss:$8 sps:$4 sm:$0xff]   ;;  %v3168_v2 = vld [vmem:[%s4748_s1 + $0xa0] ss:$8 sps:$4 sm:$0xff]  }
  0x14   :  { %1922 = vmatprep.subr.bf16.mxu0 %v3118_v19  ;;  %1962 = vmatpush1.bf16.msra.mxu1 %v3117_v20  ;;  %v349_v57 = vcombine.high %v341_v54, %v341_v54  ;;  %v3172_v3 = vld [vmem:[%s4748_s1 + $0x94] ss:$8 sps:$4 sm:$0xff]   ;;  %v3171_v4 = vld [vmem:[%s4748_s1 + $0x1a0] ss:$8 sps:$4 sm:$0xff]   ;;  %v3834_v5 = vrot.slane %v334_v63, %v3784_v48  ;;  %v3174_v7 = vld [vmem:[%s4748_s1 + $0x90] ss:$8 sps:$4 sm:$0xff]   ;;  %v357_v13 = vrot.slane %v341_v54, %v3784_v48 }
  0x15   :  { %1963 = vmatprep.subr.bf16.mxu1 %v3121_v21  ;;  %v3175_v6 = vld [vmem:[%s4748_s1 + $0x194] ss:$8 sps:$4 sm:$0xff]   ;;  %v3178_v8 = vld [vmem:[%s4748_s1 + $0x84] ss:$8 sps:$4 sm:$0xff]   ;;  %v3177_v9 = vld [vmem:[%s4748_s1 + $0x190] ss:$8 sps:$4 sm:$0xff]  }
  0x16   :  { %v371_v60 = vrot.slane %v349_v57, %v3784_v48  ;;  %v350_v10 = vcombine.high %v3834_v5, %v3834_v5  ;;  %v3181_v11 = vld [vmem:[%s4748_s1 + $0x184] ss:$8 sps:$4 sm:$0xff]   ;;  %v3180_v12 = vld [vmem:[%s4748_s1 + $0x80] ss:$8 sps:$4 sm:$0xff]   ;;  %v3187_v14 = vld [vmem:[%s4748_s1 + $0x274] ss:$8 sps:$4 sm:$0xff]   ;;  %v379_v19 = vcombine.high %v357_v13, %v357_v13 }
  0x17   :  { %1923 = vmatpush1.bf16.msra.mxu0 %v3120_v22  ;;  %v3184_v15 = vld [vmem:[%s4748_s1 + $0x180] ss:$8 sps:$4 sm:$0xff]   ;;  %v3190_v17 = vld [vmem:[%s4748_s1 + $0x374] ss:$8 sps:$4 sm:$0xff]   ;;  %v3185_v18 = vld [vmem:[%s4748_s1 + $0x270] ss:$8 sps:$4 sm:$0xff]  }
  0x18   :  { %1924 = vmatprep.subr.bf16.mxu0 %v3124_v23  ;;  %1964 = vmatpush1.bf16.msra.mxu1 %v3123_v24  ;;  %v381_v0 = vcombine.high %v371_v60, %v371_v60  ;;  %v378_v16 = vrot.slane %v350_v10, %v3784_v48  ;;  %v3193_v20 = vld [vmem:[%s4748_s1 + $0x264] ss:$8 sps:$4 sm:$0xff]   ;;  %v3188_v21 = vld [vmem:[%s4748_s1 + $0x370] ss:$8 sps:$4 sm:$0xff]   ;;  %v3191_v24 = vld [vmem:[%s4748_s1 + $0x260] ss:$8 sps:$4 sm:$0xff]  }
  0x19   :  { %1965 = vmatprep.subr.bf16.mxu1 %v3127_v25  ;;  %1944 = vmatprep.mubr.bf16.mxu0 %v371_v60  ;;  %v3196_v23 = vld [vmem:[%s4748_s1 + $0x364] ss:$8 sps:$4 sm:$0xff]   ;;  %v3199_v25 = vld [vmem:[%s4748_s1 + $0x254] ss:$8 sps:$4 sm:$0xff]   ;;  %v3209_v36 = vld [vmem:[%s4748_s1 + $0x230] ss:$8 sps:$4 sm:$0xff]  }
  0x1a   :  { %1985 = vmatprep.mubr.bf16.mxu1 %v381_v0  ;;  %v382_v22 = vcombine.high %v378_v16, %v378_v16  ;;  %v3214_v35 = vld [vmem:[%s4748_s1 + $0x334] ss:$8 sps:$4 sm:$0xff]   ;;  %v3217_v37 = vld [vmem:[%s4748_s1 + $0x224] ss:$8 sps:$4 sm:$0xff]   ;;  %v3218_v43 = vld [vmem:[%s4748_s1 + $0x320] ss:$8 sps:$4 sm:$0xff]  }
  0x1b   :  { %1925 = vmatpush1.bf16.msra.mxu0 %v3126_v26  ;;  %v3194_v26 = vld [vmem:[%s4748_s1 + $0x360] ss:$8 sps:$4 sm:$0xff]   ;;  %v3233_v54 = vld [vmem:[%s4748_s1 + $0x2f0] ss:$8 sps:$4 sm:$0xff]   ;;  %v3244_v57 = vld [vmem:[%s4748_s1 + $0x3e4] ss:$8 sps:$4 sm:$0xff]  }
  0x1c   :  { %1926 = vmatprep.subr.bf16.mxu0 %v3130_v27  ;;  %1966 = vmatpush1.bf16.msra.mxu1 %v3129_v28  ;;  %v3202_v27 = vld [vmem:[%s4748_s1 + $0x354] ss:$8 sps:$4 sm:$0xff]   ;;  %v3197_v28 = vld [vmem:[%s4748_s1 + $0x250] ss:$8 sps:$4 sm:$0xff]   ;;  %v3230_v52 = vld [vmem:[%s4748_s1 + $0x300] ss:$8 sps:$4 sm:$0xff]  }
  0x1d   :  { %1967 = vmatprep.subr.bf16.mxu1 %v3133_v29  ;;  %v3205_v29 = vld [vmem:[%s4748_s1 + $0x244] ss:$8 sps:$4 sm:$0xff]   ;;  %v3242_v60 = vld [vmem:[%s4748_s1 + $0x3e0] ss:$8 sps:$4 sm:$0xff]   ;;  %v3248_v0 = vld [vmem:[%s4748_s1 + $0x3d0] ss:$8 sps:$4 sm:$0xff]  }
  0x1e   :  { %v3253_v63 = vld [vmem:[%s4748_s1 + $0x2c4] ss:$8 sps:$4 sm:$0xff]  }
  0x1f   :  { %1927 = vmatpush1.bf16.msra.mxu0 %v3132_v30  ;;  %v3200_v30 = vld [vmem:[%s4748_s1 + $0x350] ss:$8 sps:$4 sm:$0xff]   ;;  %v3268_v10 = vld [vmem:[%s4748_s1 + $0x3a4] ss:$8 sps:$4 sm:$0xff]  }
  0x20   :  { %1928 = vmatprep.subr.bf16.mxu0 %v3136_v31  ;;  %1968 = vmatpush1.bf16.msra.mxu1 %v3135_v32  ;;  %v3208_v31 = vld [vmem:[%s4748_s1 + $0x344] ss:$8 sps:$4 sm:$0xff]   ;;  %v3203_v32 = vld [vmem:[%s4748_s1 + $0x240] ss:$8 sps:$4 sm:$0xff]  }
  0x21   :  { %1969 = vmatprep.subr.bf16.mxu1 %v3139_v33  ;;  %v3211_v33 = vld [vmem:[%s4748_s1 + $0x234] ss:$8 sps:$4 sm:$0xff]  }
  0x23   :  { %1929 = vmatpush2.bf16.msra.mxu0 %v3138_v34  ;;  %v3206_v34 = vld [vmem:[%s4748_s1 + $0x340] ss:$8 sps:$4 sm:$0xff]  }
  0x24   :  { %1930 = vmatprep.subr.bf16.mxu0 %v3142_v38  ;;  %1970 = vmatpush2.bf16.msra.mxu1 %v3141_v39  ;;  %v3212_v38 = vld [vmem:[%s4748_s1 + $0x330] ss:$8 sps:$4 sm:$0xff]   ;;  %v3220_v39 = vld [vmem:[%s4748_s1 + $0x324] ss:$8 sps:$4 sm:$0xff]  }
  0x25   :  { %1971 = vmatprep.subr.bf16.mxu1 %v3145_v40  ;;  %v3215_v40 = vld [vmem:[%s4748_s1 + $0x220] ss:$8 sps:$4 sm:$0xff]  }
  0x27   :  { %1931 = vmatpush2.bf16.msra.mxu0 %v3144_v41  ;;  %v3223_v41 = vld [vmem:[%s4748_s1 + $0x214] ss:$8 sps:$4 sm:$0xff]  }
  0x28   :  { %1932 = vmatprep.subr.bf16.mxu0 %v3148_v44  ;;  %1972 = vmatpush2.bf16.msra.mxu1 %v3147_v45  ;;  %v3226_v44 = vld [vmem:[%s4748_s1 + $0x314] ss:$8 sps:$4 sm:$0xff]   ;;  %v3221_v45 = vld [vmem:[%s4748_s1 + $0x210] ss:$8 sps:$4 sm:$0xff]  }
  0x29   :  { %1973 = vmatprep.subr.bf16.mxu1 %v3151_v46  ;;  %v3229_v46 = vld [vmem:[%s4748_s1 + $0x204] ss:$8 sps:$4 sm:$0xff]  }
  0x2b   :  { %1933 = vmatpush2.bf16.msra.mxu0 %v3150_v47  ;;  %v3224_v47 = vld [vmem:[%s4748_s1 + $0x310] ss:$8 sps:$4 sm:$0xff]  }
  0x2c   :  { %1934 = vmatprep.subr.bf16.mxu0 %v3154_v49  ;;  %1974 = vmatpush2.bf16.msra.mxu1 %v3153_v50  ;;  %v3232_v49 = vld [vmem:[%s4748_s1 + $0x304] ss:$8 sps:$4 sm:$0xff]   ;;  %v3227_v50 = vld [vmem:[%s4748_s1 + $0x200] ss:$8 sps:$4 sm:$0xff]  }
  0x2d   :  { %1975 = vmatprep.subr.bf16.mxu1 %v3157_v51  ;;  %v3235_v51 = vld [vmem:[%s4748_s1 + $0x2f4] ss:$8 sps:$4 sm:$0xff]  }
  0x2f   :  { %1935 = vmatpush2.bf16.msra.mxu0 %v3156_v53  ;;  %v3238_v53 = vld [vmem:[%s4748_s1 + $0x3f4] ss:$8 sps:$4 sm:$0xff]  }
  0x30   :  { %1936 = vmatprep.subr.bf16.mxu0 %v3160_v55  ;;  %1976 = vmatpush2.bf16.msra.mxu1 %v3159_v56  ;;  %v3241_v55 = vld [vmem:[%s4748_s1 + $0x2e4] ss:$8 sps:$4 sm:$0xff]   ;;  %v3236_v56 = vld [vmem:[%s4748_s1 + $0x3f0] ss:$8 sps:$4 sm:$0xff]  }
  0x31   :  { %1977 = vmatprep.subr.bf16.mxu1 %v3163_v58  ;;  %v3239_v58 = vld [vmem:[%s4748_s1 + $0x2e0] ss:$8 sps:$4 sm:$0xff]  }
  0x33   :  { %1937 = vmatpush2.bf16.msra.mxu0 %v3162_v59  ;;  %v3247_v59 = vld [vmem:[%s4748_s1 + $0x2d4] ss:$8 sps:$4 sm:$0xff]  }
  0x34   :  { %1938 = vmatprep.subr.bf16.mxu0 %v3166_v61  ;;  %1978 = vmatpush2.bf16.msra.mxu1 %v3165_v62  ;;  %v3250_v61 = vld [vmem:[%s4748_s1 + $0x3d4] ss:$8 sps:$4 sm:$0xff]   ;;  %v3245_v62 = vld [vmem:[%s4748_s1 + $0x2d0] ss:$8 sps:$4 sm:$0xff]  }
  0x35   :  { %1979 = vmatprep.subr.bf16.mxu1 %v3169_v1  ;;  %v3256_v1 = vld [vmem:[%s4748_s1 + $0x3c4] ss:$8 sps:$4 sm:$0xff]  }
  0x37   :  { %1939 = vmatpush2.bf16.msra.mxu0 %v3168_v2  ;;  %v3251_v2 = vld [vmem:[%s4748_s1 + $0x2c0] ss:$8 sps:$4 sm:$0xff]  }
  0x38   :  { %1940 = vmatprep.subr.bf16.mxu0 %v3172_v3  ;;  %1980 = vmatpush2.bf16.msra.mxu1 %v3171_v4  ;;  %v3259_v3 = vld [vmem:[%s4748_s1 + $0x2b4] ss:$8 sps:$4 sm:$0xff]   ;;  %v3254_v4 = vld [vmem:[%s4748_s1 + $0x3c0] ss:$8 sps:$4 sm:$0xff]  }
  0x39   :  { %1981 = vmatprep.subr.bf16.mxu1 %v3175_v6  ;;  %v3262_v6 = vld [vmem:[%s4748_s1 + $0x3b4] ss:$8 sps:$4 sm:$0xff]  }
  0x3b   :  { %1941 = vmatpush2.bf16.msra.mxu0 %v3174_v7  ;;  %v3257_v7 = vld [vmem:[%s4748_s1 + $0x2b0] ss:$8 sps:$4 sm:$0xff]  }
  0x3c   :  { %1942 = vmatprep.subr.bf16.mxu0 %v3178_v8  ;;  %1982 = vmatpush2.bf16.msra.mxu1 %v3177_v9  ;;  %v3265_v8 = vld [vmem:[%s4748_s1 + $0x2a4] ss:$8 sps:$4 sm:$0xff]   ;;  %v3260_v9 = vld [vmem:[%s4748_s1 + $0x3b0] ss:$8 sps:$4 sm:$0xff]  }
  0x3d   :  { %1983 = vmatprep.subr.bf16.mxu1 %v3181_v11  ;;  %v3263_v11 = vld [vmem:[%s4748_s1 + $0x2a0] ss:$8 sps:$4 sm:$0xff]  }
  0x3f   :  { %1943 = vmatpush2.bf16.msra.mxu0 %v3180_v12  ;;  %v3271_v12 = vld [vmem:[%s4748_s1 + $0x294] ss:$8 sps:$4 sm:$0xff]  }
  0x40   :  { %1994 = vmatprep.subr.bf16.mxu0 %v3187_v14  ;;  %1984 = vmatpush2.bf16.msra.mxu1 %v3184_v15  ;;  %v3274_v14 = vld [vmem:[%s4748_s1 + $0x394] ss:$8 sps:$4 sm:$0xff]   ;;  %v3269_v15 = vld [vmem:[%s4748_s1 + $0x290] ss:$8 sps:$4 sm:$0xff]  }
  0x41   :  { %2035 = vmatprep.subr.bf16.mxu1 %v3190_v17  ;;  %v3272_v17 = vld [vmem:[%s4748_s1 + $0x390] ss:$8 sps:$4 sm:$0xff]  }
  0x42   :  { %1945 = vmatmul.mubr.bf16.vlgmr.msra.gmra.mxu0 %v357_v13  ;;  %v3266_v13 = vld [vmem:[%s4748_s1 + $0x3a0] ss:$8 sps:$4 sm:$0xff]  }
  0x43   :  { %1995 = vmatpush1.bf16.msra.mxu0 %v3185_v18  ;;  %2026 = vmatprep.mubr.bf16.mxu0 %v378_v16  ;;  %v3277_v16 = vld [vmem:[%s4748_s1 + $0x284] ss:$8 sps:$4 sm:$0xff]  }
  0x44   :  { %1986 = vmatmul.mubr.bf16.vlgmr.msra.gmra.mxu1 %v379_v19  ;;  %1996 = vmatprep.subr.bf16.mxu0 %v3193_v20  ;;  %v3280_v18 = vld [vmem:[%s4748_s1 + $0x384] ss:$8 sps:$4 sm:$0xff]   ;;  %v3275_v19 = vld [vmem:[%s4748_s1 + $0x280] ss:$8 sps:$4 sm:$0xff]   ;;  %v364_v20 = vrot.slane %v3834_v5, %v3784_v48 }
  0x45   :  { %2036 = vmatpush1.bf16.msra.mxu1 %v3188_v21  ;;  %2067 = vmatprep.mubr.bf16.mxu1 %v382_v22  ;;  %v3283_v21 = vld [vmem:[%s4748_s1 + $0x474] ss:$8 sps:$4 sm:$0xff]   ;;  %v3278_v22 = vld [vmem:[%s4748_s1 + $0x380] ss:$8 sps:$4 sm:$0xff]  }
  0x46   :  { %2037 = vmatprep.subr.bf16.mxu1 %v3196_v23  ;;  %v3286_v23 = vld [vmem:[%s4748_s1 + $0x574] ss:$8 sps:$4 sm:$0xff]   ;;  %v380_v5 = vcombine.high %v364_v20, %v364_v20 }
  0x47   :  { %1997 = vmatpush1.bf16.msra.mxu0 %v3191_v24  ;;  %v3281_v24 = vld [vmem:[%s4748_s1 + $0x470] ss:$8 sps:$4 sm:$0xff]  }
  0x48   :  { %1998 = vmatprep.subr.bf16.mxu0 %v3199_v25  ;;  %v3289_v25 = vld [vmem:[%s4748_s1 + $0x464] ss:$8 sps:$4 sm:$0xff]  }
  0x49   :  { %2038 = vmatpush1.bf16.msra.mxu1 %v3194_v26  ;;  %v4070_v26 = vld [vmem:[%s4747_s0 + $0x8] sm:$0xff] }
  0x4a   :  { %2039 = vmatprep.subr.bf16.mxu1 %v3202_v27  ;;  %v3284_v27 = vld [vmem:[%s4748_s1 + $0x570] ss:$8 sps:$4 sm:$0xff]  }
  0x4b   :  { %1999 = vmatpush1.bf16.msra.mxu0 %v3197_v28  ;;  %v4077_v28 = vrot.slane %v4070_v26, %v3784_v48 }
  0x4c   :  { %2000 = vmatprep.subr.bf16.mxu0 %v3205_v29  ;;  %v3292_v29 = vld [vmem:[%s4748_s1 + $0x564] ss:$8 sps:$4 sm:$0xff]  }
  0x4d   :  { %2040 = vmatpush1.bf16.msra.mxu1 %v3200_v30  ;;  %v3287_v30 = vld [vmem:[%s4748_s1 + $0x460] ss:$8 sps:$4 sm:$0xff]  }
  0x4e   :  { %2041 = vmatprep.subr.bf16.mxu1 %v3208_v31  ;;  %v398_v31 = vcombine.high %v4077_v28, %v4077_v28 }
  0x4f   :  { %2001 = vmatpush1.bf16.msra.mxu0 %v3203_v32  ;;  %v3295_v32 = vld [vmem:[%s4748_s1 + $0x454] ss:$8 sps:$4 sm:$0xff]  }
  0x50   :  { %2002 = vmatprep.subr.bf16.mxu0 %v3211_v33  ;;  %v3290_v33 = vld [vmem:[%s4748_s1 + $0x560] ss:$8 sps:$4 sm:$0xff]  }
  0x51   :  { %2042 = vmatpush1.bf16.msra.mxu1 %v3206_v34  ;;  %v420_v34 = vrot.slane %v398_v31, %v3784_v48  ;;  %v3371_v31 = vld [vmem:[%s4748_s1 + $0x480] ss:$8 sps:$4 sm:$0xff]  }
  0x52   :  { %2043 = vmatprep.subr.bf16.mxu1 %v3214_v35  ;;  %v3298_v35 = vld [vmem:[%s4748_s1 + $0x554] ss:$8 sps:$4 sm:$0xff]  }
  0x53   :  { %2003 = vmatpush1.bf16.msra.mxu0 %v3209_v36  ;;  %v3293_v36 = vld [vmem:[%s4748_s1 + $0x450] ss:$8 sps:$4 sm:$0xff]  }
  0x54   :  { %2004 = vmatprep.subr.bf16.mxu0 %v3217_v37  ;;  %v430_v37 = vcombine.high %v420_v34, %v420_v34 }
  0x55   :  { %2044 = vmatpush1.bf16.msra.mxu1 %v3212_v38  ;;  %v3301_v38 = vld [vmem:[%s4748_s1 + $0x444] ss:$8 sps:$4 sm:$0xff]  }
  0x56   :  { %2045 = vmatprep.subr.bf16.mxu1 %v3220_v39  ;;  %v3296_v39 = vld [vmem:[%s4748_s1 + $0x550] ss:$8 sps:$4 sm:$0xff]  }
  0x57   :  { %2005 = vmatpush1.bf16.msra.mxu0 %v3215_v40  ;;  %v3304_v40 = vld [vmem:[%s4748_s1 + $0x544] ss:$8 sps:$4 sm:$0xff]  }
  0x58   :  { %2006 = vmatprep.subr.bf16.mxu0 %v3223_v41  ;;  %v3299_v41 = vld [vmem:[%s4748_s1 + $0x440] ss:$8 sps:$4 sm:$0xff]  }
  0x59   :  { %2046 = vmatpush1.bf16.msra.mxu1 %v3218_v43  ;;  %v3307_v43 = vld [vmem:[%s4748_s1 + $0x434] ss:$8 sps:$4 sm:$0xff]  }
  0x5a   :  { %2047 = vmatprep.subr.bf16.mxu1 %v3226_v44  ;;  %v3302_v44 = vld [vmem:[%s4748_s1 + $0x540] ss:$8 sps:$4 sm:$0xff]  }
  0x5b   :  { %2007 = vmatpush1.bf16.msra.mxu0 %v3221_v45  ;;  %v3310_v45 = vld [vmem:[%s4748_s1 + $0x534] ss:$8 sps:$4 sm:$0xff]  }
  0x5c   :  { %2008 = vmatprep.subr.bf16.mxu0 %v3229_v46  ;;  %v3305_v46 = vld [vmem:[%s4748_s1 + $0x430] ss:$8 sps:$4 sm:$0xff]  }
  0x5d   :  { %2048 = vmatpush1.bf16.msra.mxu1 %v3224_v47  ;;  %v3313_v47 = vld [vmem:[%s4748_s1 + $0x424] ss:$8 sps:$4 sm:$0xff]  }
  0x5e   :  { %2049 = vmatprep.subr.bf16.mxu1 %v3232_v49  ;;  %v3308_v49 = vld [vmem:[%s4748_s1 + $0x530] ss:$8 sps:$4 sm:$0xff]  }
  0x5f   :  { %2009 = vmatpush1.bf16.msra.mxu0 %v3227_v50  ;;  %v3316_v50 = vld [vmem:[%s4748_s1 + $0x524] ss:$8 sps:$4 sm:$0xff]  }
  0x60   :  { %2010 = vmatprep.subr.bf16.mxu0 %v3235_v51  ;;  %v3311_v51 = vld [vmem:[%s4748_s1 + $0x420] ss:$8 sps:$4 sm:$0xff]  }
  0x61   :  { %2050 = vmatpush1.bf16.msra.mxu1 %v3230_v52  ;;  %v3319_v52 = vld [vmem:[%s4748_s1 + $0x414] ss:$8 sps:$4 sm:$0xff]  }
  0x62   :  { %2051 = vmatprep.subr.bf16.mxu1 %v3238_v53  ;;  %v3314_v53 = vld [vmem:[%s4748_s1 + $0x520] ss:$8 sps:$4 sm:$0xff]  }
  0x63   :  { %2011 = vmatpush2.bf16.msra.mxu0 %v3233_v54  ;;  %v3322_v54 = vld [vmem:[%s4748_s1 + $0x514] ss:$8 sps:$4 sm:$0xff]  }
  0x64   :  { %2012 = vmatprep.subr.bf16.mxu0 %v3241_v55  ;;  %v3317_v55 = vld [vmem:[%s4748_s1 + $0x410] ss:$8 sps:$4 sm:$0xff]  }
  0x65   :  { %2052 = vmatpush2.bf16.msra.mxu1 %v3236_v56  ;;  %v3325_v56 = vld [vmem:[%s4748_s1 + $0x404] ss:$8 sps:$4 sm:$0xff]  }
  0x66   :  { %2053 = vmatprep.subr.bf16.mxu1 %v3244_v57  ;;  %v3320_v57 = vld [vmem:[%s4748_s1 + $0x510] ss:$8 sps:$4 sm:$0xff]  }
  0x67   :  { %2013 = vmatpush2.bf16.msra.mxu0 %v3239_v58  ;;  %v3328_v58 = vld [vmem:[%s4748_s1 + $0x504] ss:$8 sps:$4 sm:$0xff]  }
  0x68   :  { %2014 = vmatprep.subr.bf16.mxu0 %v3247_v59  ;;  %v3323_v59 = vld [vmem:[%s4748_s1 + $0x400] ss:$8 sps:$4 sm:$0xff]  }
  0x69   :  { %2054 = vmatpush2.bf16.msra.mxu1 %v3242_v60  ;;  %v3331_v60 = vld [vmem:[%s4748_s1 + $0x4f4] ss:$8 sps:$4 sm:$0xff]  }
  0x6a   :  { %2055 = vmatprep.subr.bf16.mxu1 %v3250_v61  ;;  %v3326_v61 = vld [vmem:[%s4748_s1 + $0x500] ss:$8 sps:$4 sm:$0xff]  }
  0x6b   :  { %2015 = vmatpush2.bf16.msra.mxu0 %v3245_v62  ;;  %v3334_v62 = vld [vmem:[%s4748_s1 + $0x5f4] ss:$8 sps:$4 sm:$0xff]  }
  0x6c   :  { %2016 = vmatprep.subr.bf16.mxu0 %v3253_v63  ;;  %v3329_v63 = vld [vmem:[%s4748_s1 + $0x4f0] ss:$8 sps:$4 sm:$0xff]  }
  0x6d   :  { %2056 = vmatpush2.bf16.msra.mxu1 %v3248_v0  ;;  %v3337_v0 = vld [vmem:[%s4748_s1 + $0x4e4] ss:$8 sps:$4 sm:$0xff]  }
  0x6e   :  { %2057 = vmatprep.subr.bf16.mxu1 %v3256_v1  ;;  %v3332_v1 = vld [vmem:[%s4748_s1 + $0x5f0] ss:$8 sps:$4 sm:$0xff]  }
  0x6f   :  { %2017 = vmatpush2.bf16.msra.mxu0 %v3251_v2  ;;  %v3340_v2 = vld [vmem:[%s4748_s1 + $0x5e4] ss:$8 sps:$4 sm:$0xff]  }
  0x70   :  { %2018 = vmatprep.subr.bf16.mxu0 %v3259_v3  ;;  %v3335_v3 = vld [vmem:[%s4748_s1 + $0x4e0] ss:$8 sps:$4 sm:$0xff]  }
  0x71   :  { %2058 = vmatpush2.bf16.msra.mxu1 %v3254_v4  ;;  %v3343_v4 = vld [vmem:[%s4748_s1 + $0x4d4] ss:$8 sps:$4 sm:$0xff]  }
  0x72   :  { %2059 = vmatprep.subr.bf16.mxu1 %v3262_v6  ;;  %v3338_v6 = vld [vmem:[%s4748_s1 + $0x5e0] ss:$8 sps:$4 sm:$0xff]  }
  0x73   :  { %2019 = vmatpush2.bf16.msra.mxu0 %v3257_v7  ;;  %v3346_v7 = vld [vmem:[%s4748_s1 + $0x5d4] ss:$8 sps:$4 sm:$0xff]  }
  0x74   :  { %2020 = vmatprep.subr.bf16.mxu0 %v3265_v8  ;;  %v3341_v8 = vld [vmem:[%s4748_s1 + $0x4d0] ss:$8 sps:$4 sm:$0xff]  }
  0x75   :  { %2060 = vmatpush2.bf16.msra.mxu1 %v3260_v9  ;;  %v3349_v9 = vld [vmem:[%s4748_s1 + $0x4c4] ss:$8 sps:$4 sm:$0xff]  }
  0x76   :  { %2061 = vmatprep.subr.bf16.mxu1 %v3268_v10  ;;  %v3344_v10 = vld [vmem:[%s4748_s1 + $0x5d0] ss:$8 sps:$4 sm:$0xff]  }
  0x77   :  { %2021 = vmatpush2.bf16.msra.mxu0 %v3263_v11  ;;  %v3352_v11 = vld [vmem:[%s4748_s1 + $0x5c4] ss:$8 sps:$4 sm:$0xff]  }
  0x78   :  { %2022 = vmatprep.subr.bf16.mxu0 %v3271_v12  ;;  %v3347_v12 = vld [vmem:[%s4748_s1 + $0x4c0] ss:$8 sps:$4 sm:$0xff]  }
  0x79   :  { %2062 = vmatpush2.bf16.msra.mxu1 %v3266_v13  ;;  %v3355_v13 = vld [vmem:[%s4748_s1 + $0x4b4] ss:$8 sps:$4 sm:$0xff]  }
  0x7a   :  { %2063 = vmatprep.subr.bf16.mxu1 %v3274_v14  ;;  %v3350_v14 = vld [vmem:[%s4748_s1 + $0x5c0] ss:$8 sps:$4 sm:$0xff]  }
  0x7b   :  { %2023 = vmatpush2.bf16.msra.mxu0 %v3269_v15  ;;  %v3358_v15 = vld [vmem:[%s4748_s1 + $0x5b4] ss:$8 sps:$4 sm:$0xff]  }
  0x7c   :  { %2024 = vmatprep.subr.bf16.mxu0 %v3277_v16  ;;  %v3353_v16 = vld [vmem:[%s4748_s1 + $0x4b0] ss:$8 sps:$4 sm:$0xff]  }
  0x7d   :  { %2064 = vmatpush2.bf16.msra.mxu1 %v3272_v17  ;;  %v3361_v17 = vld [vmem:[%s4748_s1 + $0x4a4] ss:$8 sps:$4 sm:$0xff]  }
  0x7e   :  { %2065 = vmatprep.subr.bf16.mxu1 %v3280_v18  ;;  %v3356_v18 = vld [vmem:[%s4748_s1 + $0x5b0] ss:$8 sps:$4 sm:$0xff]  }
  0x7f   :  { %2025 = vmatpush2.bf16.msra.mxu0 %v3275_v19  ;;  %v383_v19 = vcombine.high %v4070_v26, %v4070_v26  ;;  %v3373_v26 = vld [vmem:[%s4748_s1 + $0x484] ss:$8 sps:$4 sm:$0xff]  }
  0x80   :  { %2076 = vmatprep.subr.bf16.mxu0 %v3283_v21  ;;  %v3359_v21 = vld [vmem:[%s4748_s1 + $0x4a0] ss:$8 sps:$4 sm:$0xff]  }
  0x81   :  { %2066 = vmatpush2.bf16.msra.mxu1 %v3278_v22  ;;  %v3367_v22 = vld [vmem:[%s4748_s1 + $0x494] ss:$8 sps:$4 sm:$0xff]  }
  0x82   :  { %2027 = vmatmul.mubr.bf16.vlgmr.msra.gmra.mxu0 %v364_v20  ;;  %2117 = vmatprep.subr.bf16.mxu1 %v3286_v23  ;;  %v3364_v20 = vld [vmem:[%s4748_s1 + $0x5a4] ss:$8 sps:$4 sm:$0xff]   ;;  %v3362_v23 = vld [vmem:[%s4748_s1 + $0x5a0] ss:$8 sps:$4 sm:$0xff]  }
  0x83   :  { %2077 = vmatpush1.bf16.msra.mxu0 %v3281_v24  ;;  %2108 = vmatprep.mubr.bf16.mxu0 %v420_v34  ;;  %v4241_v24 = vrot.slane %v383_v19, %v3784_v48  ;;  %v3374_v34 = vld [vmem:[%s4748_s1 + $0x580] ss:$8 sps:$4 sm:$0xff]  }
  0x84   :  { %2068 = vmatmul.mubr.bf16.vlgmr.msra.gmra.mxu1 %v380_v5  ;;  %2078 = vmatprep.subr.bf16.mxu0 %v3289_v25  ;;  %v3370_v5 = vld [vmem:[%s4748_s1 + $0x594] ss:$8 sps:$4 sm:$0xff]   ;;  %v3365_v25 = vld [vmem:[%s4748_s1 + $0x490] ss:$8 sps:$4 sm:$0xff]  }
  0x85   :  { %2118 = vmatpush1.bf16.msra.mxu1 %v3284_v27  ;;  %2149 = vmatprep.mubr.bf16.mxu1 %v430_v37  ;;  %v3368_v27 = vld [vmem:[%s4748_s1 + $0x590] ss:$8 sps:$4 sm:$0xff]  }
  0x86   :  { %2119 = vmatprep.subr.bf16.mxu1 %v3292_v29  ;;  %v399_v29 = vcombine.high %v4241_v24, %v4241_v24 }
  0x87   :  { %2079 = vmatpush1.bf16.msra.mxu0 %v3287_v30  ;;  %v3376_v30 = vld [vmem:[%s4748_s1 + $0x584] ss:$8 sps:$4 sm:$0xff]  }
  0x88   :  { %2080 = vmatprep.subr.bf16.mxu0 %v3295_v32  ;;  %v406_v32 = vrot.slane %v4077_v28, %v3784_v48  ;;  %v3377_v28 = vld [vmem:[%s4748_s1 + $0x670] ss:$8 sps:$4 sm:$0xff]  }
  0x89   :  { %2120 = vmatpush1.bf16.msra.mxu1 %v3290_v33  ;;  %v3379_v33 = vld [vmem:[%s4748_s1 + $0x674] ss:$8 sps:$4 sm:$0xff]  }
  0x8a   :  { %2121 = vmatprep.subr.bf16.mxu1 %v3298_v35  ;;  %v427_v35 = vrot.slane %v399_v29, %v3784_v48  ;;  %v428_v37 = vcombine.high %v406_v32, %v406_v32 }
  0x8b   :  { %2081 = vmatpush1.bf16.msra.mxu0 %v3293_v36  ;;  %v3382_v36 = vld [vmem:[%s4748_s1 + $0x774] ss:$8 sps:$4 sm:$0xff]  }
  0x8c   :  { %2082 = vmatprep.subr.bf16.mxu0 %v3301_v38  ;;  %v3380_v38 = vld [vmem:[%s4748_s1 + $0x770] ss:$8 sps:$4 sm:$0xff]  }
  0x8d   :  { %2122 = vmatpush1.bf16.msra.mxu1 %v3296_v39  ;;  %v3385_v39 = vld [vmem:[%s4748_s1 + $0x664] ss:$8 sps:$4 sm:$0xff]  }
  0x8e   :  { %2123 = vmatprep.subr.bf16.mxu1 %v3304_v40  ;;  %v3383_v40 = vld [vmem:[%s4748_s1 + $0x660] ss:$8 sps:$4 sm:$0xff]  }
  0x8f   :  { %2083 = vmatpush1.bf16.msra.mxu0 %v3299_v41  ;;  %v3388_v41 = vld [vmem:[%s4748_s1 + $0x764] ss:$8 sps:$4 sm:$0xff]  }
  0x90   :  { %2084 = vmatprep.subr.bf16.mxu0 %v3307_v43  ;;  %v431_v43 = vcombine.high %v427_v35, %v427_v35 }
  0x91   :  { %2124 = vmatpush1.bf16.msra.mxu1 %v3302_v44  ;;  %v3391_v44 = vld [vmem:[%s4748_s1 + $0x654] ss:$8 sps:$4 sm:$0xff]  }
  0x92   :  { %2125 = vmatprep.subr.bf16.mxu1 %v3310_v45  ;;  %v3386_v45 = vld [vmem:[%s4748_s1 + $0x760] ss:$8 sps:$4 sm:$0xff]  }
  0x93   :  { %2085 = vmatpush1.bf16.msra.mxu0 %v3305_v46  ;;  %v3394_v46 = vld [vmem:[%s4748_s1 + $0x754] ss:$8 sps:$4 sm:$0xff]  }
  0x94   :  { %2086 = vmatprep.subr.bf16.mxu0 %v3313_v47  ;;  %v3389_v47 = vld [vmem:[%s4748_s1 + $0x650] ss:$8 sps:$4 sm:$0xff]  }
  0x95   :  { %2126 = vmatpush1.bf16.msra.mxu1 %v3308_v49  ;;  %v3397_v49 = vld [vmem:[%s4748_s1 + $0x644] ss:$8 sps:$4 sm:$0xff]  }
  0x96   :  { %2127 = vmatprep.subr.bf16.mxu1 %v3316_v50  ;;  %v3392_v50 = vld [vmem:[%s4748_s1 + $0x750] ss:$8 sps:$4 sm:$0xff]  }
  0x97   :  { %2087 = vmatpush1.bf16.msra.mxu0 %v3311_v51  ;;  %v3400_v51 = vld [vmem:[%s4748_s1 + $0x744] ss:$8 sps:$4 sm:$0xff]  }
  0x98   :  { %2088 = vmatprep.subr.bf16.mxu0 %v3319_v52  ;;  %v3395_v52 = vld [vmem:[%s4748_s1 + $0x640] ss:$8 sps:$4 sm:$0xff]  }
  0x99   :  { %2128 = vmatpush1.bf16.msra.mxu1 %v3314_v53  ;;  %v3403_v53 = vld [vmem:[%s4748_s1 + $0x634] ss:$8 sps:$4 sm:$0xff]  }
  0x9a   :  { %2129 = vmatprep.subr.bf16.mxu1 %v3322_v54  ;;  %v3398_v54 = vld [vmem:[%s4748_s1 + $0x740] ss:$8 sps:$4 sm:$0xff]  }
  0x9b   :  { %2089 = vmatpush1.bf16.msra.mxu0 %v3317_v55  ;;  %v3406_v55 = vld [vmem:[%s4748_s1 + $0x734] ss:$8 sps:$4 sm:$0xff]  }
  0x9c   :  { %2090 = vmatprep.subr.bf16.mxu0 %v3325_v56  ;;  %v3401_v56 = vld [vmem:[%s4748_s1 + $0x630] ss:$8 sps:$4 sm:$0xff]  }
  0x9d   :  { %2130 = vmatpush1.bf16.msra.mxu1 %v3320_v57  ;;  %v3409_v57 = vld [vmem:[%s4748_s1 + $0x624] ss:$8 sps:$4 sm:$0xff]  }
  0x9e   :  { %2131 = vmatprep.subr.bf16.mxu1 %v3328_v58  ;;  %v3404_v58 = vld [vmem:[%s4748_s1 + $0x730] ss:$8 sps:$4 sm:$0xff]  }
  0x9f   :  { %2091 = vmatpush1.bf16.msra.mxu0 %v3323_v59  ;;  %v3412_v59 = vld [vmem:[%s4748_s1 + $0x724] ss:$8 sps:$4 sm:$0xff]  }
  0xa0   :  { %2092 = vmatprep.subr.bf16.mxu0 %v3331_v60  ;;  %v3407_v60 = vld [vmem:[%s4748_s1 + $0x620] ss:$8 sps:$4 sm:$0xff]  }
  0xa1   :  { %2132 = vmatpush1.bf16.msra.mxu1 %v3326_v61  ;;  %v3415_v61 = vld [vmem:[%s4748_s1 + $0x614] ss:$8 sps:$4 sm:$0xff]  }
  0xa2   :  { %2133 = vmatprep.subr.bf16.mxu1 %v3334_v62  ;;  %v3410_v62 = vld [vmem:[%s4748_s1 + $0x720] ss:$8 sps:$4 sm:$0xff]  }
  0xa3   :  { %2093 = vmatpush2.bf16.msra.mxu0 %v3329_v63  ;;  %v3418_v63 = vld [vmem:[%s4748_s1 + $0x714] ss:$8 sps:$4 sm:$0xff]  }
  0xa4   :  { %2094 = vmatprep.subr.bf16.mxu0 %v3337_v0 }
  0xa5   :  { %2134 = vmatpush2.bf16.msra.mxu1 %v3332_v1 }
  0xa6   :  { %2135 = vmatprep.subr.bf16.mxu1 %v3340_v2 }
  0xa7   :  { %2095 = vmatpush2.bf16.msra.mxu0 %v3335_v3 }
  0xa8   :  { %2096 = vmatprep.subr.bf16.mxu0 %v3343_v4 }
  0xa9   :  { %2136 = vmatpush2.bf16.msra.mxu1 %v3338_v6 }
  0xaa   :  { %2137 = vmatprep.subr.bf16.mxu1 %v3346_v7 }
  0xab   :  { %2097 = vmatpush2.bf16.msra.mxu0 %v3341_v8 }
  0xac   :  { %2098 = vmatprep.subr.bf16.mxu0 %v3349_v9 }
  0xad   :  { %2138 = vmatpush2.bf16.msra.mxu1 %v3344_v10 }
  0xae   :  { %2139 = vmatprep.subr.bf16.mxu1 %v3352_v11 }
  0xaf   :  { %2099 = vmatpush2.bf16.msra.mxu0 %v3347_v12 }
  0xb0   :  { %2100 = vmatprep.subr.bf16.mxu0 %v3355_v13 }
  0xb1   :  { %2140 = vmatpush2.bf16.msra.mxu1 %v3350_v14 }
  0xb2   :  { %2141 = vmatprep.subr.bf16.mxu1 %v3358_v15 }
  0xb3   :  { %2101 = vmatpush2.bf16.msra.mxu0 %v3353_v16 }
  0xb4   :  { %2102 = vmatprep.subr.bf16.mxu0 %v3361_v17 }
  0xb5   :  { %2142 = vmatpush2.bf16.msra.mxu1 %v3356_v18 }
  0xb6   :  { %2143 = vmatprep.subr.bf16.mxu1 %v3364_v20 }
  0xb7   :  { %2103 = vmatpush2.bf16.msra.mxu0 %v3359_v21 }
  0xb8   :  { %2104 = vmatprep.subr.bf16.mxu0 %v3367_v22 }
  0xb9   :  { %2144 = vmatpush2.bf16.msra.mxu1 %v3362_v23 }
  0xba   :  { %2145 = vmatprep.subr.bf16.mxu1 %v3370_v5 }
  0xbb   :  { %2105 = vmatpush2.bf16.msra.mxu0 %v3365_v25 }
  0xbc   :  { %2106 = vmatprep.subr.bf16.mxu0 %v3373_v26 }
  0xbd   :  { %2146 = vmatpush2.bf16.msra.mxu1 %v3368_v27 }
  0xbe   :  { %2147 = vmatprep.subr.bf16.mxu1 %v3376_v30 }
  0xbf   :  { %2107 = vmatpush2.bf16.msra.mxu0 %v3371_v31 }
  0xc0   :  { %2158 = vmatprep.subr.bf16.mxu0 %v3379_v33 }
  0xc1   :  { %2148 = vmatpush2.bf16.msra.mxu1 %v3374_v34 }
  0xc2   :  { %2109 = vmatmul.mubr.bf16.vlgmr.msra.gmra.mxu0 %v406_v32  ;;  %2199 = vmatprep.subr.bf16.mxu1 %v3382_v36 }
  0xc3   :  { %2159 = vmatpush1.bf16.msra.mxu0 %v3377_v28  ;;  %2190 = vmatprep.mubr.bf16.mxu0 %v427_v35 }
  0xc4   :  { %2150 = vmatmul.mubr.bf16.vlgmr.msra.gmra.mxu1 %v428_v37  ;;  %2160 = vmatprep.subr.bf16.mxu0 %v3385_v39 }
  0xc5   :  { %2200 = vmatpush1.bf16.msra.mxu1 %v3380_v38  ;;  %2231 = vmatprep.mubr.bf16.mxu1 %v431_v43 }
  0xc6   :  { %2201 = vmatprep.subr.bf16.mxu1 %v3388_v41 }
  0xc7   :  { %2161 = vmatpush1.bf16.msra.mxu0 %v3383_v40 }
  0xc8   :  { %2162 = vmatprep.subr.bf16.mxu0 %v3391_v44 }
  0xc9   :  { %2202 = vmatpush1.bf16.msra.mxu1 %v3386_v45 }
  0xca   :  { %2203 = vmatprep.subr.bf16.mxu1 %v3394_v46 }
  0xcb   :  { %2163 = vmatpush1.bf16.msra.mxu0 %v3389_v47 }
  0xcc   :  { %2164 = vmatprep.subr.bf16.mxu0 %v3397_v49 }
  0xcd   :  { %2204 = vmatpush1.bf16.msra.mxu1 %v3392_v50 }
  0xce   :  { %2205 = vmatprep.subr.bf16.mxu1 %v3400_v51 }
  0xcf   :  { %2165 = vmatpush1.bf16.msra.mxu0 %v3395_v52 }
  0xd0   :  { %2166 = vmatprep.subr.bf16.mxu0 %v3403_v53 }
  0xd1   :  { %2206 = vmatpush1.bf16.msra.mxu1 %v3398_v54 }
  0xd2   :  { %2207 = vmatprep.subr.bf16.mxu1 %v3406_v55 }
  0xd3   :  { %2167 = vmatpush1.bf16.msra.mxu0 %v3401_v56 }
  0xd4   :  { %2168 = vmatprep.subr.bf16.mxu0 %v3409_v57 }
  0xd5   :  { %2208 = vmatpush1.bf16.msra.mxu1 %v3404_v58 }
  0xd6   :  { %2209 = vmatprep.subr.bf16.mxu1 %v3412_v59 }
  0xd7   :  { %12 = vsyncpa [#allocation3], 0  ;;  %2169 = vmatpush1.bf16.msra.mxu0 %v3407_v60  ;;  %v3413_v0 = vld [vmem:[%s4748_s1 + $0x610] ss:$8 sps:$4 sm:$0xff]   ;;  %v3421_v1 = vld [vmem:[%s4748_s1 + $0x604] ss:$8 sps:$4 sm:$0xff]   ;;  %v413_v43 = vrot.slane %v4241_v24, %v3784_v48 }
  0xd8   :  { %2170 = vmatprep.subr.bf16.mxu0 %v3415_v61  ;;  %v3416_v2 = vld [vmem:[%s4748_s1 + $0x710] ss:$8 sps:$4 sm:$0xff]   ;;  %v3424_v3 = vld [vmem:[%s4748_s1 + $0x704] ss:$8 sps:$4 sm:$0xff]   ;;  %v3419_v4 = vld [vmem:[%s4748_s1 + $0x600] ss:$8 sps:$4 sm:$0xff]  }
  0xd9   :  { %2210 = vmatpush1.bf16.msra.mxu1 %v3410_v62  ;;  %v3427_v6 = vld [vmem:[%s4748_s1 + $0x6f4] ss:$8 sps:$4 sm:$0xff]   ;;  %v3422_v7 = vld [vmem:[%s4748_s1 + $0x700] ss:$8 sps:$4 sm:$0xff]   ;;  %v3425_v9 = vld [vmem:[%s4748_s1 + $0x6f0] ss:$8 sps:$4 sm:$0xff]   ;;  %v429_v50 = vcombine.high %v413_v43, %v413_v43 }
  0xda   :  { %2211 = vmatprep.subr.bf16.mxu1 %v3418_v63  ;;  %v3430_v8 = vld [vmem:[%s4748_s1 + $0x7f4] ss:$8 sps:$4 sm:$0xff]   ;;  %v3433_v10 = vld [vmem:[%s4748_s1 + $0x6e4] ss:$8 sps:$4 sm:$0xff]   ;;  %v3428_v11 = vld [vmem:[%s4748_s1 + $0x7f0] ss:$8 sps:$4 sm:$0xff]  }
  0xdb   :  { %2171 = vmatpush1.bf16.msra.mxu0 %v3413_v0  ;;  %v3436_v12 = vld [vmem:[%s4748_s1 + $0x7e4] ss:$8 sps:$4 sm:$0xff]   ;;  %v3431_v13 = vld [vmem:[%s4748_s1 + $0x6e0] ss:$8 sps:$4 sm:$0xff]   ;;  %v3439_v14 = vld [vmem:[%s4748_s1 + $0x6d4] ss:$8 sps:$4 sm:$0xff]  }
  0xdc   :  { %2172 = vmatprep.subr.bf16.mxu0 %v3421_v1  ;;  %v3434_v15 = vld [vmem:[%s4748_s1 + $0x7e0] ss:$8 sps:$4 sm:$0xff]   ;;  %v3442_v16 = vld [vmem:[%s4748_s1 + $0x7d4] ss:$8 sps:$4 sm:$0xff]   ;;  %v3437_v17 = vld [vmem:[%s4748_s1 + $0x6d0] ss:$8 sps:$4 sm:$0xff]  }
  0xdd   :  { %2212 = vmatpush1.bf16.msra.mxu1 %v3416_v2  ;;  %v3445_v18 = vld [vmem:[%s4748_s1 + $0x6c4] ss:$8 sps:$4 sm:$0xff]   ;;  %v3440_v19 = vld [vmem:[%s4748_s1 + $0x7d0] ss:$8 sps:$4 sm:$0xff]   ;;  %v3443_v21 = vld [vmem:[%s4748_s1 + $0x6c0] ss:$8 sps:$4 sm:$0xff]  }
  0xde   :  { %2213 = vmatprep.subr.bf16.mxu1 %v3424_v3  ;;  %v3448_v20 = vld [vmem:[%s4748_s1 + $0x7c4] ss:$8 sps:$4 sm:$0xff]   ;;  %v3451_v22 = vld [vmem:[%s4748_s1 + $0x6b4] ss:$8 sps:$4 sm:$0xff]   ;;  %v3446_v23 = vld [vmem:[%s4748_s1 + $0x7c0] ss:$8 sps:$4 sm:$0xff]  }
  0xdf   :  { %2173 = vmatpush1.bf16.msra.mxu0 %v3419_v4  ;;  %v3454_v5 = vld [vmem:[%s4748_s1 + $0x7b4] ss:$8 sps:$4 sm:$0xff]   ;;  %v3449_v25 = vld [vmem:[%s4748_s1 + $0x6b0] ss:$8 sps:$4 sm:$0xff]   ;;  %v3457_v26 = vld [vmem:[%s4748_s1 + $0x6a4] ss:$8 sps:$4 sm:$0xff]  }
  0xe0   :  { %2174 = vmatprep.subr.bf16.mxu0 %v3427_v6  ;;  %v3452_v27 = vld [vmem:[%s4748_s1 + $0x7b0] ss:$8 sps:$4 sm:$0xff]   ;;  %v3460_v29 = vld [vmem:[%s4748_s1 + $0x7a4] ss:$8 sps:$4 sm:$0xff]   ;;  %v3455_v30 = vld [vmem:[%s4748_s1 + $0x6a0] ss:$8 sps:$4 sm:$0xff]  }
  0xe1   :  { %2214 = vmatpush1.bf16.msra.mxu1 %v3422_v7  ;;  %v3463_v31 = vld [vmem:[%s4748_s1 + $0x694] ss:$8 sps:$4 sm:$0xff]   ;;  %v3458_v32 = vld [vmem:[%s4748_s1 + $0x7a0] ss:$8 sps:$4 sm:$0xff]   ;;  %v3461_v34 = vld [vmem:[%s4748_s1 + $0x690] ss:$8 sps:$4 sm:$0xff]  }
  0xe2   :  { %2215 = vmatprep.subr.bf16.mxu1 %v3430_v8  ;;  %v3466_v33 = vld [vmem:[%s4748_s1 + $0x794] ss:$8 sps:$4 sm:$0xff]   ;;  %v3469_v35 = vld [vmem:[%s4748_s1 + $0x684] ss:$8 sps:$4 sm:$0xff]   ;;  %v3464_v28 = vld [vmem:[%s4748_s1 + $0x790] ss:$8 sps:$4 sm:$0xff]  }
  0xe3   :  { %2175 = vmatpush2.bf16.msra.mxu0 %v3425_v9  ;;  %v4452_v36 = vld.sshfl [vmem:[%s4747_s0 + $0x10] sm:$0x11 pattern:$0x75316420]  ;;  %v3472_v37 = vld [vmem:[%s4748_s1 + $0x784] ss:$8 sps:$4 sm:$0xff]  }
  0xe4   :  { %2176 = vmatprep.subr.bf16.mxu0 %v3433_v10  ;;  %v3467_v38 = vld [vmem:[%s4748_s1 + $0x680] ss:$8 sps:$4 sm:$0xff]   ;;  %v323_v39 = vsub.s32 0, %v3769_v42  ;;  %v439_v40 = vcombine.high %v4452_v36, %v4452_v36  ;;  %v3476_v44 = vld [vmem:[%s4748_s1 + $0x874] ss:$8 sps:$4 sm:$0xff]   ;;  %v327_v46 = vsub.s32 1, %v3769_v42 }
  0xe5   :  { %2216 = vmatpush2.bf16.msra.mxu1 %v3428_v11  ;;  %v319_v41 = vld [vmem:[%s4749_s2] sm:$0x3]  ;;  %v3474_v24 = vld [vmem:[%s4748_s1 + $0x870] ss:$8 sps:$4 sm:$0xff]   ;;  %v3479_v51 = vld [vmem:[%s4748_s1 + $0x864] ss:$8 sps:$4 sm:$0xff]  }
  0xe6   :  { %2217 = vmatprep.subr.bf16.mxu1 %v3436_v12  ;;  %v3470_v45 = vld [vmem:[%s4748_s1 + $0x780] ss:$8 sps:$4 sm:$0xff]   ;;  %v324_v47 = vrot.slane %v319_v41, %v323_v39  ;;  %v453_v49 = vrot.slane %v439_v40, %v3784_v48  ;;  %v328_v52 = vrot.slane %v319_v41, %v327_v46  ;;  %v3482_v58 = vld [vmem:[%s4748_s1 + $0x854] ss:$8 sps:$4 sm:$0xff]   ;;  %v3480_v0 = vld [vmem:[%s4748_s1 + $0x850] ss:$8 sps:$4 sm:$0xff]  }
  0xe7   :  { %2177 = vmatpush2.bf16.msra.mxu0 %v3431_v13  ;;  %v3477_v55 = vld [vmem:[%s4748_s1 + $0x860] ss:$8 sps:$4 sm:$0xff]   ;;  %v3485_v2 = vld [vmem:[%s4748_s1 + $0x844] ss:$8 sps:$4 sm:$0xff]   ;;  %v3488_v7 = vld [vmem:[%s4748_s1 + $0x834] ss:$8 sps:$4 sm:$0xff]  }
  0xe8   :  { %2178 = vmatprep.subr.bf16.mxu0 %v3439_v14  ;;  %v3483_v6 = vld [vmem:[%s4748_s1 + $0x840] ss:$8 sps:$4 sm:$0xff]   ;;  %v3486_v8 = vld [vmem:[%s4748_s1 + $0x830] ss:$8 sps:$4 sm:$0xff]   ;;  %v3491_v9 = vld [vmem:[%s4748_s1 + $0x824] ss:$8 sps:$4 sm:$0xff]  }
  0xe9   :  { %2218 = vmatpush2.bf16.msra.mxu1 %v3434_v15  ;;  %v3489_v10 = vld [vmem:[%s4748_s1 + $0x820] ss:$8 sps:$4 sm:$0xff]   ;;  %v3494_v11 = vld [vmem:[%s4748_s1 + $0x814] ss:$8 sps:$4 sm:$0xff]   ;;  %v3492_v12 = vld [vmem:[%s4748_s1 + $0x810] ss:$8 sps:$4 sm:$0xff]  }
  0xea   :  { %2219 = vmatprep.subr.bf16.mxu1 %v3442_v16  ;;  %v3497_v13 = vld [vmem:[%s4748_s1 + $0x804] ss:$8 sps:$4 sm:$0xff]   ;;  %v3495_v14 = vld [vmem:[%s4748_s1 + $0x800] ss:$8 sps:$4 sm:$0xff]   ;;  %v3500_v15 = vld [vmem:[%s4748_s1 + $0x8f4] ss:$8 sps:$4 sm:$0xff]  }
  0xeb   :  { %2179 = vmatpush2.bf16.msra.mxu0 %v3437_v17  ;;  %v3498_v16 = vld [vmem:[%s4748_s1 + $0x8f0] ss:$8 sps:$4 sm:$0xff]   ;;  %v3503_v17 = vld [vmem:[%s4748_s1 + $0x8e4] ss:$8 sps:$4 sm:$0xff]   ;;  %s3611_s19 = smov [#allocation2]   ;;  %vm2710_vm0 = vcmask 25600  }
  0xec   :  { %2180 = vmatprep.subr.bf16.mxu0 %v3445_v18  ;;  %v3501_v18 = vld [vmem:[%s4748_s1 + $0x8e0] ss:$8 sps:$4 sm:$0xff]   ;;  %s2718_s20 = sshll.u32 %s3611_s19, 4  ;;  %s2719_s20 = int_to_ptr.vmem [resolvable:$true] %s2718_s20 }
  0xed   :  { %2220 = vmatpush2.bf16.msra.mxu1 %v3440_v19  ;;  %v3506_v19 = vld [vmem:[%s4748_s1 + $0x8d4] ss:$8 sps:$4 sm:$0xff]   ;;  %s3588_s21 = scalar_lea.vmem %s2719_s20, 32  ;;  %p3593_p1 = scmp.lt.s32.totalorder %s2719_s20, %s2719_s20 }
  0xee   :  { %2221 = vmatprep.subr.bf16.mxu1 %v3448_v20  ;;  %v3504_v20 = vld [vmem:[%s4748_s1 + $0x8d0] ss:$8 sps:$4 sm:$0xff]   ;;  %p3589_p0 = scmp.ne.s32.totalorder %s2719_s20, %s3588_s21  ;;  %p3594_p2 = scmp.lt.s32.totalorder %s3588_s21, %s3588_s21 }
  0xef   :  { %2181 = vmatpush2.bf16.msra.mxu0 %v3443_v21  ;;  %v3509_v21 = vld [vmem:[%s4748_s1 + $0x8c4] ss:$8 sps:$4 sm:$0xff]  }
  0xf0   :  { %2182 = vmatprep.subr.bf16.mxu0 %v3451_v22  ;;  %v3507_v22 = vld [vmem:[%s4748_s1 + $0x8c0] ss:$8 sps:$4 sm:$0xff]   ;;  %p3595_p3 = por %p3594_p2, %p3593_p1 }
  0xf1   :  { %2222 = vmatpush2.bf16.msra.mxu1 %v3446_v23  ;;  %v3512_v23 = vld [vmem:[%s4748_s1 + $0x8b4] ss:$8 sps:$4 sm:$0xff]  }
  0xf2   :  { %2223 = vmatprep.subr.bf16.mxu1 %v3454_v5  ;;  %v3510_v5 = vld [vmem:[%s4748_s1 + $0x8b0] ss:$8 sps:$4 sm:$0xff]   ;;  %p3596_p4 = pnand %p3595_p3, %p3589_p0 }
  0xf3   :  { %2183 = vmatpush2.bf16.msra.mxu0 %v3449_v25  ;;  %v3515_v25 = vld [vmem:[%s4748_s1 + $0x8a4] ss:$8 sps:$4 sm:$0xff]  }
  0xf4   :  { %2184 = vmatprep.subr.bf16.mxu0 %v3457_v26  ;;  %v3513_v26 = vld [vmem:[%s4748_s1 + $0x8a0] ss:$8 sps:$4 sm:$0xff]  }
  0xf5   :  { %2224 = vmatpush2.bf16.msra.mxu1 %v3452_v27  ;;  %v3518_v27 = vld [vmem:[%s4748_s1 + $0x894] ss:$8 sps:$4 sm:$0xff]  }
  0xf6   :  { %2225 = vmatprep.subr.bf16.mxu1 %v3460_v29  ;;  %v3516_v29 = vld [vmem:[%s4748_s1 + $0x890] ss:$8 sps:$4 sm:$0xff]  }
  0xf7   :  { %2185 = vmatpush2.bf16.msra.mxu0 %v3455_v30  ;;  %v3521_v30 = vld [vmem:[%s4748_s1 + $0x884] ss:$8 sps:$4 sm:$0xff]  }
  0xf8   :  { %2186 = vmatprep.subr.bf16.mxu0 %v3463_v31  ;;  %v3519_v31 = vld [vmem:[%s4748_s1 + $0x880] ss:$8 sps:$4 sm:$0xff]  }
  0xf9   :  { %2226 = vmatpush2.bf16.msra.mxu1 %v3458_v32  ;;  %v446_v32 = vrot.slane %v4452_v36, %v3784_v48  ;;  %v3522_v48 = vld [vmem:[%s4750_s3 + $0x70] ss:$8 sps:$4 sm:$0xff]   ;;  %v3524_v36 = vld [vmem:[%s4750_s3 + $0x74] ss:$8 sps:$4 sm:$0xff]  }
  0xfa   :  { %2227 = vmatprep.subr.bf16.mxu1 %v3466_v33 }
  0xfb   :  { %2187 = vmatpush2.bf16.msra.mxu0 %v3461_v34 }
  0xfc   :  { %2188 = vmatprep.subr.bf16.mxu0 %v3469_v35 }
  0xfd   :  { %2228 = vmatpush2.bf16.msra.mxu1 %v3464_v28 }
  0xfe   :  { %2229 = vmatprep.subr.bf16.mxu1 %v3472_v37 }
  0xff   :  { %2189 = vmatpush2.bf16.msra.mxu0 %v3467_v38 }
 0x100   :  { %2240 = vmatprep.subr.bf16.mxu0 %v3476_v44 }
 0x101   :  { %2230 = vmatpush2.bf16.msra.mxu1 %v3470_v45 }
 0x102   :  { %v1946_v53 = vpop.f32.mrf.mxu0  ;;  %2191 = vmatmul.mubr.bf16.vlgmr.msra.gmra.mxu0 %v413_v43  ;;  %2489 = vmatprep.subr.bf16.mxu1 %v3524_v36 }
 0x103   :  { %v1947_v54 = vadd.f32 %v1946_v53, %v324_v47  ;;  %2241 = vmatpush1.bf16.msra.mxu0 %v3474_v24  ;;  %2272 = vmatprep.mubr.bf16.mxu0 %v453_v49  ;;  %v3527_v47 = vld [vmem:[%s4750_s3 + $0x64] ss:$8 sps:$4 sm:$0xff]   ;;  %v3525_v49 = vld [vmem:[%s4750_s3 + $0x60] ss:$8 sps:$4 sm:$0xff]  }
 0x104   :  { %v1948_v56 = vpop.f32.mrf.mxu0  ;;  %v1987_v57 = vpop.f32.mrf.mxu1  ;;  %2232 = vmatmul.mubr.bf16.vlgmr.msra.gmra.mxu1 %v429_v50  ;;  %2242 = vmatprep.subr.bf16.mxu0 %v3479_v51  ;;  %v3530_v50 = vld [vmem:[%s4750_s3 + $0x54] ss:$8 sps:$4 sm:$0xff]   ;;  %v3528_v51 = vld [vmem:[%s4750_s3 + $0x50] ss:$8 sps:$4 sm:$0xff]   ;;  %v3531_v53 = vld [vmem:[%s4750_s3 + $0x40] ss:$8 sps:$4 sm:$0xff]  }
 0x105   :  { %v1949_v59 = vadd.f32 %v1948_v56, %v328_v52  ;;  %v4495_v60 = vadd.f32 %v1987_v57, %v1947_v54  ;;  %2490 = vmatpush1.bf16.msra.mxu1 %v3522_v48  ;;  %v3533_v52 = vld [vmem:[%s4750_s3 + $0x44] ss:$8 sps:$4 sm:$0xff]   ;;  %v3536_v54 = vld [vmem:[%s4750_s3 + $0x34] ss:$8 sps:$4 sm:$0xff]   ;;  %v3537_v57 = vld [vmem:[%s4750_s3 + $0x20] ss:$8 sps:$4 sm:$0xff]  }
 0x106   :  { %v1950_v61 = vpop.f32.mrf.mxu0  ;;  %v1989_v62 = vpop.f32.mrf.mxu1  ;;  %2491 = vmatprep.subr.bf16.mxu1 %v3527_v47  ;;  %v3539_v56 = vld [vmem:[%s4750_s3 + $0x24] ss:$8 sps:$4 sm:$0xff]  }
 0x107   :  { %v4497_v63 = vadd.f32 %v1989_v62, %v1949_v59  ;;  %2243 = vmatpush1.bf16.msra.mxu0 %v3477_v55  ;;  %v3534_v55 = vld [vmem:[%s4750_s3 + $0x30] ss:$8 sps:$4 sm:$0xff]   ;;  %v3543_v61 = vld [vmem:[%s4750_s3] ss:$8 sps:$4 sm:$0xff]   ;;  %v3548_v62 = vld [vmem:[%s4750_s3 + $0xf4] ss:$8 sps:$4 sm:$0xff]  }
 0x108   :  { %v1951_v1 = vpop.f32.mrf.mxu0  ;;  %2244 = vmatprep.subr.bf16.mxu0 %v3482_v58  ;;  %v1991_v3 = vpop.f32.mrf.mxu1  ;;  %v3542_v58 = vld [vmem:[%s4750_s3 + $0x14] ss:$8 sps:$4 sm:$0xff]   ;;  %v3540_v59 = vld [vmem:[%s4750_s3 + $0x10] ss:$8 sps:$4 sm:$0xff]  }
 0x109   :  { %2492 = vmatpush1.bf16.msra.mxu1 %v3525_v49  ;;  %v3549_v1 = vld [vmem:[%s4750_s3 + $0xe0] ss:$8 sps:$4 sm:$0xff]   ;;  %v3552_v3 = vld [vmem:[%s4750_s3 + $0xd0] ss:$8 sps:$4 sm:$0xff]  }
 0x10a   :  { %v1992_v4 = vpop.f32.mrf.mxu1  ;;  %2493 = vmatprep.subr.bf16.mxu1 %v3530_v50 }
 0x10b   :  { %2245 = vmatpush1.bf16.msra.mxu0 %v3480_v0  ;;  %v3551_v0 = vld [vmem:[%s4750_s3 + $0xe4] ss:$8 sps:$4 sm:$0xff]  }
 0x10c   :  { %2246 = vmatprep.subr.bf16.mxu0 %v3485_v2  ;;  %v3554_v2 = vld [vmem:[%s4750_s3 + $0xd4] ss:$8 sps:$4 sm:$0xff]   ;;  %v3557_v4 = vld [vmem:[%s4750_s3 + $0xc4] ss:$8 sps:$4 sm:$0xff]  }
 0x10d   :  { %2494 = vmatpush1.bf16.msra.mxu1 %v3528_v51 }
 0x10e   :  { %2495 = vmatprep.subr.bf16.mxu1 %v3533_v52 }
 0x10f   :  { %2247 = vmatpush1.bf16.msra.mxu0 %v3483_v6  ;;  %v3555_v6 = vld [vmem:[%s4750_s3 + $0xc0] ss:$8 sps:$4 sm:$0xff]  }
 0x110   :  { %2248 = vmatprep.subr.bf16.mxu0 %v3488_v7  ;;  %v3560_v7 = vld [vmem:[%s4750_s3 + $0xb4] ss:$8 sps:$4 sm:$0xff]  }
 0x111   :  { %2496 = vmatpush1.bf16.msra.mxu1 %v3531_v53 }
 0x112   :  { %2497 = vmatprep.subr.bf16.mxu1 %v3536_v54 }
 0x113   :  { %2249 = vmatpush1.bf16.msra.mxu0 %v3486_v8  ;;  %v3558_v8 = vld [vmem:[%s4750_s3 + $0xb0] ss:$8 sps:$4 sm:$0xff]  }
 0x114   :  { %2250 = vmatprep.subr.bf16.mxu0 %v3491_v9  ;;  %v3563_v9 = vld [vmem:[%s4750_s3 + $0xa4] ss:$8 sps:$4 sm:$0xff]  }
 0x115   :  { %2498 = vmatpush1.bf16.msra.mxu1 %v3534_v55 }
 0x116   :  { %2499 = vmatprep.subr.bf16.mxu1 %v3539_v56 }
 0x117   :  { %2251 = vmatpush1.bf16.msra.mxu0 %v3489_v10  ;;  %v3561_v10 = vld [vmem:[%s4750_s3 + $0xa0] ss:$8 sps:$4 sm:$0xff]  }
 0x118   :  { %2252 = vmatprep.subr.bf16.mxu0 %v3494_v11 }
 0x119   :  { %2500 = vmatpush1.bf16.msra.mxu1 %v3537_v57 }
 0x11a   :  { %2501 = vmatprep.subr.bf16.mxu1 %v3542_v58 }
 0x11b   :  { %2253 = vmatpush1.bf16.msra.mxu0 %v3492_v12  ;;  %v3566_v12 = vld [vmem:[%s4750_s3 + $0x94] ss:$8 sps:$4 sm:$0xff]  }
 0x11c   :  { %2254 = vmatprep.subr.bf16.mxu0 %v3497_v13 }
 0x11d   :  { %2502 = vmatpush1.bf16.msra.mxu1 %v3540_v59 }
 0x11f   :  { %2255 = vmatpush1.bf16.msra.mxu0 %v3495_v14  ;;  %v3564_v14 = vld [vmem:[%s4750_s3 + $0x90] ss:$8 sps:$4 sm:$0xff]  }
 0x120   :  { %2256 = vmatprep.subr.bf16.mxu0 %v3500_v15 }
 0x123   :  { %2257 = vmatpush2.bf16.msra.mxu0 %v3498_v16 }
 0x124   :  { %2258 = vmatprep.subr.bf16.mxu0 %v3503_v17 }
 0x127   :  { %2259 = vmatpush2.bf16.msra.mxu0 %v3501_v18 }
 0x128   :  { %2260 = vmatprep.subr.bf16.mxu0 %v3506_v19 }
 0x12b   :  { %2261 = vmatpush2.bf16.msra.mxu0 %v3504_v20 }
 0x12c   :  { %2262 = vmatprep.subr.bf16.mxu0 %v3509_v21  ;;  %v3569_v21 = vld [vmem:[%s4750_s3 + $0x84] ss:$8 sps:$4 sm:$0xff]  }
 0x12f   :  { %2263 = vmatpush2.bf16.msra.mxu0 %v3507_v22 }
 0x130   :  { %2264 = vmatprep.subr.bf16.mxu0 %v3512_v23  ;;  %v3567_v23 = vld [vmem:[%s4750_s3 + $0x80] ss:$8 sps:$4 sm:$0xff]  }
 0x133   :  { %2265 = vmatpush2.bf16.msra.mxu0 %v3510_v5 }
 0x134   :  { %2266 = vmatprep.subr.bf16.mxu0 %v3515_v25 }
 0x137   :  { %2267 = vmatpush2.bf16.msra.mxu0 %v3513_v26 }
 0x138   :  { %2268 = vmatprep.subr.bf16.mxu0 %v3518_v27  ;;  %v3570_v27 = vld [vmem:[%s4752_s5 + $0x78] sm:$0xff]  }
 0x13b   :  { %2269 = vmatpush2.bf16.msra.mxu0 %v3516_v29  ;;  %v3571_v29 = vld [vmem:[%s4752_s5 + $0x38] sm:$0xff]  }
 0x13c   :  { %2270 = vmatprep.subr.bf16.mxu0 %v3521_v30  ;;  %v3572_v30 = vld [vmem:[%s4752_s5 + $0x70] sm:$0xff]  }
 0x13f   :  { %2271 = vmatpush2.bf16.msra.mxu0 %v3519_v31  ;;  %v3573_v31 = vld [vmem:[%s4752_s5 + $0x30] sm:$0xff]  }
 0x140   :  { %3064 = vmatprep.subr.bf16.mxu0 %v3570_v27 }
 0x142   :  { %v2028_v33 = vpop.f32.mrf.mxu0  ;;  %2273 = vmatmul.mubr.bf16.vlgmr.msra.gmra.mxu0 %v446_v32  ;;  %v3574_v32 = vld [vmem:[%s4752_s5 + $0x68] sm:$0xff]  }
 0x143   :  { %v2029_v34 = vadd.f32 %v2028_v33, %v4495_v60  ;;  %v3545_v60 = vld [vmem:[%s4750_s3 + $0x4] ss:$8 sps:$4 sm:$0xff]   ;;  %3065 = vmatpush3.bf16.msra.mxu0 %v3571_v29 }
 0x144   :  { %v2030_v35 = vpop.f32.mrf.mxu0  ;;  %v2069_v28 = vpop.f32.mrf.mxu1  ;;  %2503 = vmatprep.subr.bf16.mxu1 %v3545_v60  ;;  %3066 = vmatprep.subr.bf16.mxu0 %v3572_v30  ;;  %v3575_v33 = vld [vmem:[%s4752_s5 + $0x28] sm:$0xff]  }
 0x145   :  { %v2031_v37 = vadd.f32 %v2030_v35, %v4497_v63  ;;  %v4584_v38 = vadd.f32 %v2069_v28, %v2029_v34  ;;  %2504 = vmatpush1.bf16.msra.mxu1 %v3543_v61  ;;  %v3546_v63 = vld [vmem:[%s4750_s3 + $0xf0] ss:$8 sps:$4 sm:$0xff]   ;;  %v3576_v34 = vld [vmem:[%s4752_s5 + $0x60] sm:$0xff]  }
 0x146   :  { %v2032_v40 = vpop.f32.mrf.mxu0  ;;  %v2071_v41 = vpop.f32.mrf.mxu1  ;;  %2505 = vmatprep.subr.bf16.mxu1 %v3548_v62  ;;  %v3577_v35 = vld [vmem:[%s4752_s5 + $0x20] sm:$0xff]   ;;  %v3578_v28 = vld [vmem:[%s4752_s5 + $0x58] sm:$0xff]  }
 0x147   :  { %v4586_v43 = vadd.f32 %v2071_v41, %v2031_v37  ;;  %3067 = vmatpush3.bf16.msra.mxu0 %v3573_v31  ;;  %v3579_v37 = vld [vmem:[%s4752_s5 + $0x18] sm:$0xff]   ;;  %v3581_v40 = vld [vmem:[%s4752_s5 + $0x10] sm:$0xff]  }
 0x148   :  { %v2033_v44 = vpop.f32.mrf.mxu0  ;;  %v2073_v45 = vpop.f32.mrf.mxu1  ;;  %3068 = vmatprep.subr.bf16.mxu0 %v3574_v32 }
 0x149   :  { %2506 = vmatpush2.bf16.msra.mxu1 %v3546_v63  ;;  %v3582_v63 = vld [vmem:[%s4752_s5 + $0x48] sm:$0xff]  }
 0x14a   :  { %v2074_v24 = vpop.f32.mrf.mxu1  ;;  %2507 = vmatprep.subr.bf16.mxu1 %v3551_v0  ;;  %v3583_v0 = vld [vmem:[%s4752_s5 + $0x8] sm:$0xff]  }
 0x14b   :  { %3069 = vmatpush3.bf16.msra.mxu0 %v3575_v33 }
 0x14c   :  { %3070 = vmatprep.subr.bf16.mxu0 %v3576_v34 }
 0x14d   :  { %2508 = vmatpush2.bf16.msra.mxu1 %v3549_v1  ;;  %v3584_v1 = vld [vmem:[%s4752_s5 + $0x40] sm:$0xff]  }
 0x14e   :  { %2509 = vmatprep.subr.bf16.mxu1 %v3554_v2  ;;  %v3585_v2 = vld [vmem:[%s4752_s5] sm:$0xff]  }
 0x14f   :  { %3071 = vmatpush3.bf16.msra.mxu0 %v3577_v35 }
 0x150   :  { %3072 = vmatprep.subr.bf16.mxu0 %v3578_v28 }
 0x151   :  { %2510 = vmatpush2.bf16.msra.mxu1 %v3552_v3  ;;  %v2317_v3 = vld [vmem:[%s4751_s4] sm:$0x3] }
 0x152   :  { %2511 = vmatprep.subr.bf16.mxu1 %v3557_v4  ;;  %v2322_v4 = vrot.slane %v2317_v3, %v323_v39  ;;  %v3047_v39 = vld [vmem:[%s4753_s6] ss:$0 sm:$0xff] }
 0x153   :  { %3073 = vmatpush3.bf16.msra.mxu0 %v3579_v37 }
 0x155   :  { %2512 = vmatpush2.bf16.msra.mxu1 %v3555_v6  ;;  %v2326_v6 = vrot.slane %v2317_v3, %v327_v46 }
 0x156   :  { %2513 = vmatprep.subr.bf16.mxu1 %v3560_v7 }
 0x159   :  { %2514 = vmatpush2.bf16.msra.mxu1 %v3558_v8 }
 0x15a   :  { %2515 = vmatprep.subr.bf16.mxu1 %v3563_v9 }
 0x15d   :  { %2516 = vmatpush2.bf16.msra.mxu1 %v3561_v10 }
 0x15e   :  { %2517 = vmatprep.subr.bf16.mxu1 %v3566_v12 }
 0x161   :  { %2518 = vmatpush2.bf16.msra.mxu1 %v3564_v14 }
 0x162   :  { %2519 = vmatprep.subr.bf16.mxu1 %v3569_v21 }
 0x165   :  { %2520 = vmatpush2.bf16.msra.mxu1 %v3567_v23 }
 0x182   :  { %v2110_v11 = vpop.f32.mrf.mxu0 }
 0x183   :  { %v2111_v13 = vadd.f32 %v2110_v11, %v4584_v38  ;;  %v3580_v38 = vld [vmem:[%s4752_s5 + $0x50] sm:$0xff]  }
 0x184   :  { %v2112_v15 = vpop.f32.mrf.mxu0  ;;  %v2151_v16 = vpop.f32.mrf.mxu1  ;;  %3074 = vmatprep.subr.bf16.mxu0 %v3580_v38 }
 0x185   :  { %v2113_v17 = vadd.f32 %v2112_v15, %v4586_v43  ;;  %v2152_v18 = vadd.f32 %v2151_v16, %v2111_v13  ;;  %3075 = vmatpush3.bf16.msra.mxu0 %v3581_v40 }
 0x186   :  { %v2114_v19 = vpop.f32.mrf.mxu0  ;;  %v2153_v20 = vpop.f32.mrf.mxu1  ;;  %3076 = vmatprep.subr.bf16.mxu0 %v3582_v63 }
 0x187   :  { %v2154_v22 = vadd.f32 %v2153_v20, %v2113_v17 }
 0x188   :  { %v2115_v5 = vpop.f32.mrf.mxu0  ;;  %v2155_v25 = vpop.f32.mrf.mxu1 }
 0x189   :  { %3077 = vmatpush3.bf16.msra.mxu0 %v3583_v0 }
 0x18a   :  { %v2156_v26 = vpop.f32.mrf.mxu1  ;;  %3078 = vmatprep.subr.bf16.mxu0 %v3584_v1 }
 0x18d   :  { %3079 = vmatpush3.bf16.msra.mxu0 %v3585_v2 }
 0x1c2   :  { %v2192_v41 = vpop.f32.mrf.mxu0 }
 0x1c3   :  { %v2193_v49 = vadd.f32 %v2192_v41, %v2152_v18 }
 0x1c4   :  { %v2194_v43 = vpop.f32.mrf.mxu0  ;;  %v2233_v44 = vpop.f32.mrf.mxu1 }
 0x1c5   :  { %v2195_v50 = vadd.f32 %v2194_v43, %v2154_v22  ;;  %v2234_v51 = vadd.f32 %v2233_v44, %v2193_v49 }
 0x1c6   :  { %v2196_v45 = vpop.f32.mrf.mxu0  ;;  %v2235_v48 = vpop.f32.mrf.mxu1 }
 0x1c7   :  { %v2236_v53 = vadd.f32 %v2235_v48, %v2195_v50 }
 0x1c8   :  { %v2197_v36 = vpop.f32.mrf.mxu0  ;;  %v2237_v47 = vpop.f32.mrf.mxu1 }
 0x1ca   :  { %v2238_v24 = vpop.f32.mrf.mxu1 }
 0x202   :  { %v2274_v52 = vpop.f32.mrf.mxu0 }
 0x203   :  { %v2275_v54 = vadd.f32 %v2274_v52, %v2234_v51 }
 0x204   :  { %v2276_v55 = vpop.f32.mrf.mxu0 }
 0x205   :  { %v2277_v56 = vadd.f32 %v2276_v55, %v2236_v53  ;;  %v2281_v57 = vmax.f32 %v2275_v54, 0.0 }
 0x206   :  { %v2278_v58 = vpop.f32.mrf.mxu0 }
 0x207   :  { %v2282_v59 = vmax.f32 %v2277_v56, 0.0  ;;  %v2283_v62 = vpack.c.bf16 %v2281_v57, %v2281_v57 }
 0x208   :  { %v2279_v60 = vpop.f32.mrf.mxu0 }
 0x209   :  { %v2284_v61 = vpack.c.bf16 %v2282_v59, %v2282_v59 }
 0x20b   :  { %2521 = vmatprep.mubr.bf16.mxu1 %v2284_v61 }
 0x20c   :  { %2522 = vmatmul.mubr.bf16.vlgmr.msra.gmra.mxu1 %v2283_v62 }
 0x2cc   :  { %v2523_v7 = vpop.f32.mrf.mxu1 }
 0x2cd   :  { %v2524_v8 = vadd.f32 %v2523_v7, %v2322_v4 }
 0x2ce   :  { %v2525_v9 = vpop.f32.mrf.mxu1 }
 0x2cf   :  { %v2526_v10 = vadd.f32 %v2525_v9, %v2326_v6  ;;  %v2530_v11 = vmax.f32 %v2524_v8, 0.0 }
 0x2d0   :  { %v2527_v12 = vpop.f32.mrf.mxu1 }
 0x2d1   :  { %v2531_v13 = vmax.f32 %v2526_v10, 0.0  ;;  %v2532_v16 = vpack.c.bf16 %v2530_v11, %v2530_v11 }
 0x2d2   :  { %v2528_v14 = vpop.f32.mrf.mxu1 }
 0x2d3   :  { %v2533_v15 = vpack.c.bf16 %v2531_v13, %v2531_v13 }
 0x2d5   :  { %2701 = vmatprep.mubr.bf16.mxu0 %v2533_v15 }
 0x2d6   :  { %2702 = vmatmul.mubr.bf16.vlgmr.msra.gmra.mxu0 %v2532_v16 }
 0x396   :  { %v3080_v17 = vpop.f32.mrf.mxu0 }
 0x398   :  { %v3081_v18 = vpop.f32.mrf.mxu0 }
 0x399   :  { %v3082_v42 = vadd.f32 %v3081_v18, %v3080_v17 }
 0x39a   :  { %v3083_v46 = vpop.f32.mrf.mxu0 }
 0x39b   :  { %v2704_v19 = vadd.f32 %v3082_v42, %v3047_v39 }
 0x39c   :  { %v3084_v20 = vpop.f32.mrf.mxu0 }
 0x39d   :  { %3586 = vtanh.f32 %v2704_v19 }
 0x3aa   :  { %v3587_v21 = vpop.eup %3586 }
 0x3ab   :  { %2711 = vst.msk [vmem:[#allocation2] sm:$0x3] %vm2710_vm0, %v3587_v21 }
 0x3ac   :  { %3599 = shalt.err (!%p3596_p4)
}
 0x3ad   :  { %2721 = dma.vmem_to_hbm [thread:$0]  %s2719_s20, 32, %s4754_s7, [#allocation3]  }
 0x3ae   :  { %3608 = dma.done.wait [#allocation3], 32  }
 0x3af   :  { %3609 = vsyncadd [#allocation3], 4294967264 }
 0x3b0   :  { %2725 = vsyncpa [#allocation3], 1 }

</bundles_post_ra>
